<compile_context>
chip_gen: v6e
topology: v6e:2x2x1
jax: 0.10.0
libtpu: 0.0.40
codegen_flags: <defaults>
</compile_context>

<pallas_src>
import numpy as np

import jax
import jax.numpy as jnp
from jax.experimental import pallas as pl
from jax.experimental.pallas import tpu as pltpu

EPS = 1e-5
NEG_INF = -1e30


def _vmem_specs(n):
    return [pl.BlockSpec(memory_space=pltpu.MemorySpace.VMEM) for _ in range(n)]


# ---------------------------------------------------------------------------
# Host-built (trace-time) constants: boundary masks + pool-1 compaction.
# ---------------------------------------------------------------------------

def _tap_masks(n, h, w):
    """(9, N*H*W, 1) 0/1 masks.  Row (n*h+i)*w+j of tap k=(dh+1)*3+(dw+1) is 1
    iff (i+dh, j+dw) lies inside the image (the conv's zero padding)."""
    r = n * h * w
    m = np.zeros((9, r, 1), np.float32)
    for k in range(9):
        dh, dw = k // 3 - 1, k % 3 - 1
        for nn in range(n):
            for i in range(h):
                for j in range(w):
                    if 0 <= i + dh < h and 0 <= j + dw < w:
                        m[k, (nn * h + i) * w + j, 0] = 1.0
    return m


def _pool_select(n, h, w):
    """(N*h/2*w/2, N*h*w): compacts the even-(i,j) anchor rows after the
    in-place 2x2 window max."""
    ho, wo = h // 2, w // 2
    s = np.zeros((n * ho * wo, n * h * w), np.float32)
    for nn in range(n):
        for io in range(ho):
            for jo in range(wo):
                s[(nn * ho + io) * wo + jo, (nn * h + 2 * io) * w + 2 * jo] = 1.0
    return s


def _im2col_3x3_same(x_nhwc):
    # Only used for conv1 (Cin=1): negligible data; avoids a 1-lane activation.
    n, h, w, c = x_nhwc.shape
    xp = jnp.pad(x_nhwc, ((0, 0), (1, 1), (1, 1), (0, 0)))
    cols = [xp[:, kh:kh + h, kw:kw + w, :] for kh in range(3) for kw in range(3)]
    return jnp.stack(cols, axis=3).reshape(n * h * w, 9 * c)


# ---------------------------------------------------------------------------
# In-kernel helpers.
# ---------------------------------------------------------------------------

def _bn_relu(y, gamma, beta):
    """Training-mode BatchNorm (batch stats, biased var) + ReLU, in f32."""
    r = y.shape[0]
    mean = jnp.sum(y, axis=0, keepdims=True) * (1.0 / r)
    msq = jnp.sum(y * y, axis=0, keepdims=True) * (1.0 / r)
    var = jnp.maximum(msq - mean * mean, 0.0)      # guard single-pass cancellation
    scale = gamma * jax.lax.rsqrt(var + EPS)
    shift = beta - mean * scale
    return jnp.maximum(y * scale + shift, 0.0)


def _shift(a_f32, d, r):
    """out[row] = a[(row + d) mod r]; callers mask / select the valid rows."""
    return pltpu.roll(a_f32, (-d) % r, axis=0)


def _conv3x3_accum(a_f32, w_ref, mask_ref, width, r):
    """3x3 'same' conv on a flat (R, Cin) activation: per-tap XLU roll + VPU
    boundary mask + K=Cin MXU dot, accumulated in f32.  Used for Cin=64.
    TODO(synk): fuse into one K=9*Cin matmul once unaligned 64-lane scratch
    stores (or minor-dim value concat) are guaranteed to lower."""
    acc = jnp.dot(a_f32.astype(jnp.bfloat16), w_ref[4],
                  preferred_element_type=jnp.float32)
    for k in range(9):
        if k == 4:
            continue
        d = (k // 3 - 1) * width + (k % 3 - 1)
        src = (_shift(a_f32, d, r) * mask_ref[k]).astype(jnp.bfloat16)
        acc = acc + jnp.dot(src, w_ref[k], preferred_element_type=jnp.float32)
    return acc


def _conv3x3_bigk(a_f32, w_ref, mask_ref, cat_ref, width, r):
    """3x3 'same' conv, Cin=128: stage the 9 tap-shifted copies into a VMEM
    scratch (R, 9*Cin) with 128-lane-aligned stores, then ONE K=9*Cin matmul
    (single MXU accumulation, no per-tap pops/VPU adds)."""
    cin = a_f32.shape[1]
    for k in range(9):
        d = (k // 3 - 1) * width + (k % 3 - 1)
        src = a_f32 if d == 0 else _shift(a_f32, d, r) * mask_ref[k]
        cat_ref[:, k * cin:(k + 1) * cin] = src.astype(jnp.bfloat16)
    return jnp.dot(cat_ref[...], w_ref[...], preferred_element_type=jnp.float32)


def _pool_window_max(a_f32, width, r):
    """Max over each 2x2 window anchored at its top-left row (taps +1,+W,+W+1).
    Only anchor rows (even i, even j) are consumed downstream, so no mask."""
    m = a_f32
    for d in (1, width, width + 1):
        m = jnp.maximum(m, _shift(a_f32, d, r))
    return m


# ---------------------------------------------------------------------------
# The fused kernel.
# ---------------------------------------------------------------------------

def fused_cnn_kernel(p0_ref,
                     cw1_ref, cw2_ref, cw3_ref, cw4_ref,
                     g1_ref, be1_ref, g2_ref, be2_ref,
                     g3_ref, be3_ref, g4_ref, be4_ref,
                     mask_a_ref, mask_b_ref, sel1_ref,
                     fw1_ref, fb1_ref, fw2_ref, fb2_ref, fw3_ref, fb3_ref,
                     o_ref,
                     cat4_ref, catp_ref):
    r1 = mask_a_ref.shape[1]              # N * 8 * 8
    r2 = mask_b_ref.shape[1]              # N * 4 * 4
    w1d, w2d = 8, 4                       # spatial W before / after first pool
    n = o_ref.shape[0]
    hw2 = r2 // n                         # rows per sample after pool 1 (= 16)

    # conv1 + BN + ReLU (tiny im2col patches for the 1-channel input, built in wrapper)
    y1 = jnp.dot(p0_ref[...], cw1_ref[...], preferred_element_type=jnp.float32)
    a1 = _bn_relu(y1, g1_ref[...], be1_ref[...])                          # (R1, 64)

    # conv2 + BN + ReLU (roll-shift taps, no permutation matmuls)
    a2 = _bn_relu(_conv3x3_accum(a1, cw2_ref, mask_a_ref, w1d, r1),
                  g2_ref[...], be2_ref[...])                              # (R1, 64)

    # maxpool 2x2 #1: window max via rolls + one tiny anchor-row compaction matmul
    m1 = _pool_window_max(a2, w1d, r1).astype(jnp.bfloat16)
    a2p = jnp.dot(sel1_ref[...], m1, preferred_element_type=jnp.float32)  # (R2, 64)

    # conv3 + BN + ReLU
    a3 = _bn_relu(_conv3x3_accum(a2p, cw3_ref, mask_b_ref, w2d, r2),
                  g3_ref[...], be3_ref[...])                              # (R2, 128)

    # conv4 + BN + ReLU: single K=1152 matmul via lane-aligned tap concat in VMEM
    a4 = _bn_relu(_conv3x3_bigk(a3, cw4_ref, mask_b_ref, cat4_ref, w2d, r2),
                  g4_ref[...], be4_ref[...])                              # (R2, 128)

    # maxpool 2x2 #2 fused into fc1: window max, lane-concat the 4 pooled spatial
    # positions (128-lane-aligned stores), pick one row per sample with static
    # slices, then ONE K=512 matmul against fc1 weights pre-permuted to PyTorch's
    # NCHW flatten order.
    m2 = _pool_window_max(a4, w2d, r2)
    for p, anchor in enumerate((0, 2, 2 * w2d, 2 * w2d + 2)):
        blk = m2 if anchor == 0 else _shift(m2, anchor, r2)
        catp_ref[:, p * 128:(p + 1) * 128] = blk.astype(jnp.bfloat16)
    x_fc = jnp.concatenate(
        [catp_ref[i * hw2:i * hw2 + 1, :] for i in range(n)], axis=0)     # (N, 512)

    h1 = jnp.maximum(
        jnp.dot(x_fc, fw1_ref[...], preferred_element_type=jnp.float32)
        + fb1_ref[...], 0.0).astype(jnp.bfloat16)
    h2 = jnp.maximum(
        jnp.dot(h1, fw2_ref[...], preferred_element_type=jnp.float32)
        + fb2_ref[...], 0.0).astype(jnp.bfloat16)
    # fc3 padded to 128 classes (pad bias = -1e30): lane-dense store, and the
    # padded lanes contribute exp(.) == 0 so log_softmax stays exact.
    logits = (jnp.dot(h2, fw3_ref[...], preferred_element_type=jnp.float32)
              + fb3_ref[...])                                             # (N, 128)

    mx = jnp.max(logits, axis=1, keepdims=True)
    z = logits - mx
    lse = jnp.log(jnp.sum(jnp.exp(z), axis=1, keepdims=True))
    o_ref[...] = z - lse


# ---------------------------------------------------------------------------
# Parameters & wrappers.
# ---------------------------------------------------------------------------

def init_params(key, num_classes=11):
    ks = jax.random.split(key, 14)
    s = 0.05

    def conv_w(k, cin, cout):      # (kh, kw, cin, cout)
        return jax.random.normal(k, (3, 3, cin, cout), jnp.float32) * s

    def lin_w(k, din, dout):       # (din, dout)
        return jax.random.normal(k, (din, dout), jnp.float32) * s

    p = {
        "c1w": conv_w(ks[0], 1, 64),    "c1b": jax.random.normal(ks[1], (64,)) * s,
        "c2w": conv_w(ks[2], 64, 64),   "c2b": jax.random.normal(ks[3], (64,)) * s,
        "c3w": conv_w(ks[4], 64, 128),  "c3b": jax.random.normal(ks[5], (128,)) * s,
        "c4w": conv_w(ks[6], 128, 128), "c4b": jax.random.normal(ks[7], (128,)) * s,
        "g1": jnp.ones((64,)),  "be1": jnp.zeros((64,)),
        "g2": jnp.ones((64,)),  "be2": jnp.zeros((64,)),
        "g3": jnp.ones((128,)), "be3": jnp.zeros((128,)),
        "g4": jnp.ones((128,)), "be4": jnp.zeros((128,)),
        "w1": lin_w(ks[8], 128 * 2 * 2, 256), "b1": jax.random.normal(ks[9], (256,)) * s,
        "w2": lin_w(ks[10], 256, 256),        "b2": jax.random.normal(ks[11], (256,)) * s,
        "w3": lin_w(ks[12], 256, num_classes),
        "b3": jax.random.normal(ks[13], (num_classes,)) * s,
    }
    return jax.tree_util.tree_map(lambda a: jnp.asarray(a, jnp.float32), p)


def pack_params(p, num_classes=11):
    """One-time parameter prep: reshapes, bf16 casts, fc1 NCHW-flatten fold."""
    bf = lambda a: a.astype(jnp.bfloat16)
    # fc1: PyTorch flattens NCHW -> per-sample feature index c*4 + (2*po+qo).
    # Kernel lane-concat is p-major (p = 2*po+qo) with c inside each 128-block.
    fw1 = jnp.concatenate([p["w1"][q::4, :] for q in range(4)], axis=0)   # (512, 256)
    pad_c = 128 - num_classes
    return {
        # conv1 K padded 9->16 (zero rows) to match the zero-padded patch columns.
        "cw1": bf(jnp.pad(p["c1w"].reshape(9, 64), ((0, 7), (0, 0)))),
        "cw2": bf(p["c2w"].reshape(9, 64, 64)),
        "cw3": bf(p["c3w"].reshape(9, 64, 128)),
        "cw4": bf(p["c4w"].reshape(9 * 128, 128)),
        # conv biases c1b..c4b unused on purpose: training-mode BN's batch mean
        # subtraction cancels them exactly.
        "g1": p["g1"].reshape(1, -1), "be1": p["be1"].reshape(1, -1),
        "g2": p["g2"].reshape(1, -1), "be2": p["be2"].reshape(1, -1),
        "g3": p["g3"].reshape(1, -1), "be3": p["be3"].reshape(1, -1),
        "g4": p["g4"].reshape(1, -1), "be4": p["be4"].reshape(1, -1),
        "fw1": bf(fw1),      "fb1": p["b1"].reshape(1, -1),
        "fw2": bf(p["w2"]),  "fb2": p["b2"].reshape(1, -1),
        # fc3 padded to 128 output lanes; padded bias = -1e30 keeps log_softmax exact.
        "fw3": bf(jnp.pad(p["w3"], ((0, 0), (0, pad_c)))),
        "fb3": jnp.concatenate(
            [p["b3"], jnp.full((pad_c,), NEG_INF, jnp.float32)]).reshape(1, -1),
    }


def cifar_cnn_forward(x_nchw, packed, *, num_classes=11):
    n, cin, h, w = x_nchw.shape
    assert cin == 1 and h == 8 and w == 8, (n, cin, h, w)   # fc1 expects 128*2*2
    x = jnp.transpose(x_nchw, (0, 2, 3, 1))                 # NCHW -> NHWC
    patches = jnp.pad(_im2col_3x3_same(x), ((0, 0), (0, 7))).astype(jnp.bfloat16)

    # Host-built constants: O(N) boundary masks + pool-1 compaction.
    mask_a = jnp.asarray(_tap_masks(n, h, w), jnp.float32)              # (9, 128, 1)
    mask_b = jnp.asarray(_tap_masks(n, h // 2, w // 2), jnp.float32)    # (9, 32, 1)
    sel1 = jnp.asarray(_pool_select(n, h, w), jnp.bfloat16)             # (32, 128)
    r2 = n * (h // 2) * (w // 2)

    out_padded = pl.pallas_call(
        fused_cnn_kernel,
        out_shape=jax.ShapeDtypeStruct((n, 128), jnp.float32),
        in_specs=_vmem_specs(22),
        out_specs=pl.BlockSpec(memory_space=pltpu.MemorySpace.VMEM),
        scratch_shapes=[
            pltpu.VMEM((r2, 9 * 128), jnp.bfloat16),   # conv4 lane-aligned tap concat
            pltpu.VMEM((r2, 4 * 128), jnp.bfloat16),   # pool2 lane concat for fc1
        ],
    )(patches,
      packed["cw1"], packed["cw2"], packed["cw3"], packed["cw4"],
      packed["g1"], packed["be1"], packed["g2"], packed["be2"],
      packed["g3"], packed["be3"], packed["g4"], packed["be4"],
      mask_a, mask_b, sel1,
      packed["fw1"], packed["fb1"], packed["fw2"], packed["fb2"],
      packed["fw3"], packed["fb3"])
    return out_padded[:, :num_classes]


# ---------------------------------------------------------------------------
# Pure-JAX f32 reference (numerical cross-check).
# ---------------------------------------------------------------------------

def _ref_forward(x_nchw, p):
    x = jnp.transpose(x_nchw, (0, 2, 3, 1))

    def conv_bn_relu(x, w, b, g, be):
        y = jax.lax.conv_general_dilated(
            x, w, (1, 1), "SAME",
            dimension_numbers=("NHWC", "HWIO", "NHWC")) + b
        mean = y.mean(axis=(0, 1, 2), keepdims=True)
        var = ((y - mean) ** 2).mean(axis=(0, 1, 2), keepdims=True)
        return jnp.maximum((y - mean) * jax.lax.rsqrt(var + EPS) * g + be, 0.0)

    def pool(x):
        n, h, w, c = x.shape
        return jnp.max(x.reshape(n, h // 2, 2, w // 2, 2, c), axis=(2, 4))

    x = conv_bn_relu(x, p["c1w"], p["c1b"], p["g1"], p["be1"])
    x = conv_bn_relu(x, p["c2w"], p["c2b"], p["g2"], p["be2"])
    x = pool(x)
    x = conv_bn_relu(x, p["c3w"], p["c3b"], p["g3"], p["be3"])
    x = conv_bn_relu(x, p["c4w"], p["c4b"], p["g4"], p["be4"])
    x = pool(x)
    n = x.shape[0]
    x = jnp.transpose(x, (0, 3, 1, 2)).reshape(n, -1)
    h1 = jnp.maximum(x @ p["w1"] + p["b1"], 0.0)
    h2 = jnp.maximum(h1 @ p["w2"] + p["b2"], 0.0)
    logits = h2 @ p["w3"] + p["b3"]
    return jax.nn.log_softmax(logits, axis=1)


if __name__ == "__main__":
    key = jax.random.PRNGKey(0)
    k_x, k_p = jax.random.split(key)
    # 8x8 single-channel input: two 2x2 maxpools -> 2x2 spatial = 128*2*2 = fc1 in.
    x = jax.random.normal(k_x, (2, 1, 8, 8), jnp.float32)
    params = init_params(k_p, num_classes=11)
    packed = pack_params(params, num_classes=11)

    out = jax.jit(cifar_cnn_forward)(x, packed)
    out = jax.block_until_ready(out)

    assert out.shape == (2, 11), out.shape
    assert bool(jnp.all(jnp.isfinite(out)))
    row_sums = jnp.sum(jnp.exp(out), axis=1)
    assert bool(jnp.all(jnp.abs(row_sums - 1.0) < 1e-3)), row_sums

    # Cross-check vs pure-JAX f32 reference (kernel matmul operands are bf16).
    ref = jax.jit(_ref_forward)(x, params)
    max_err = float(jnp.max(jnp.abs(out - ref)))
    assert max_err < 0.1, max_err

    print("KERNEL_OK")
</pallas_src>

<mosaic_0001>
module attributes {stable_mosaic.version = 11 : i64} {
  func.func @fused_cnn_kernel(%arg0: memref<128x16xbf16, #tpu.memory_space<vmem>>, %arg1: memref<16x64xbf16, #tpu.memory_space<vmem>>, %arg2: memref<9x64x64xbf16, #tpu.memory_space<vmem>>, %arg3: memref<9x64x128xbf16, #tpu.memory_space<vmem>>, %arg4: memref<1152x128xbf16, #tpu.memory_space<vmem>>, %arg5: memref<1x64xf32, #tpu.memory_space<vmem>>, %arg6: memref<1x64xf32, #tpu.memory_space<vmem>>, %arg7: memref<1x64xf32, #tpu.memory_space<vmem>>, %arg8: memref<1x64xf32, #tpu.memory_space<vmem>>, %arg9: memref<1x128xf32, #tpu.memory_space<vmem>>, %arg10: memref<1x128xf32, #tpu.memory_space<vmem>>, %arg11: memref<1x128xf32, #tpu.memory_space<vmem>>, %arg12: memref<1x128xf32, #tpu.memory_space<vmem>>, %arg13: memref<9x128x1xf32, #tpu.memory_space<vmem>>, %arg14: memref<9x32x1xf32, #tpu.memory_space<vmem>>, %arg15: memref<32x128xbf16, #tpu.memory_space<vmem>>, %arg16: memref<512x256xbf16, #tpu.memory_space<vmem>>, %arg17: memref<1x256xf32, #tpu.memory_space<vmem>>, %arg18: memref<256x256xbf16, #tpu.memory_space<vmem>>, %arg19: memref<1x256xf32, #tpu.memory_space<vmem>>, %arg20: memref<256x128xbf16, #tpu.memory_space<vmem>>, %arg21: memref<1x128xf32, #tpu.memory_space<vmem>>, %arg22: memref<2x128xf32, #tpu.memory_space<vmem>>, %arg23: memref<32x1152xbf16, #tpu.memory_space<vmem>>, %arg24: memref<32x512xbf16, #tpu.memory_space<vmem>>) attributes {dimension_semantics = [], scalar_prefetch = 0 : i64, scratch_operands = 2 : i64, tpu.core_type = #tpu.core_type<tc>} {
    %c0 = arith.constant 0 : index
    %c0_0 = arith.constant 0 : index
    %0 = vector.load %arg0[%c0, %c0_0] : memref<128x16xbf16, #tpu.memory_space<vmem>>, vector<128x16xbf16>
    %c0_1 = arith.constant 0 : index
    %c0_2 = arith.constant 0 : index
    %1 = vector.load %arg1[%c0_1, %c0_2] : memref<16x64xbf16, #tpu.memory_space<vmem>>, vector<16x64xbf16>
    %cst = arith.constant dense<0.000000e+00> : vector<128x64xf32>
    %2 = tpu.matmul %0, %1, %cst {dimension_numbers = #tpu.dot_dimension_numbers<[1], [0], [0], [1], [0, 0, 1, 1], [], []>} : vector<128x16xbf16>, vector<16x64xbf16>, vector<128x64xf32> -> vector<128x64xf32>
    %c0_3 = arith.constant 0 : index
    %c0_4 = arith.constant 0 : index
    %3 = vector.load %arg5[%c0_3, %c0_4] : memref<1x64xf32, #tpu.memory_space<vmem>>, vector<1x64xf32>
    %c0_5 = arith.constant 0 : index
    %c0_6 = arith.constant 0 : index
    %4 = vector.load %arg6[%c0_5, %c0_6] : memref<1x64xf32, #tpu.memory_space<vmem>>, vector<1x64xf32>
    %cst_7 = arith.constant dense<0.000000e+00> : vector<64xf32>
    %5 = vector.multi_reduction <add>, %2, %cst_7 [0] : vector<128x64xf32> to vector<64xf32>
    %6 = vector.shape_cast %5 : vector<64xf32> to vector<1x64xf32>
    %cst_8 = arith.constant 7.812500e-03 : f32
    %7 = vector.broadcast %cst_8 : f32 to vector<1x64xf32>
    %8 = arith.mulf %6, %7 : vector<1x64xf32>
    %9 = arith.mulf %2, %2 : vector<128x64xf32>
    %cst_9 = arith.constant dense<0.000000e+00> : vector<64xf32>
    %10 = vector.multi_reduction <add>, %9, %cst_9 [0] : vector<128x64xf32> to vector<64xf32>
    %11 = vector.shape_cast %10 : vector<64xf32> to vector<1x64xf32>
    %cst_10 = arith.constant 7.812500e-03 : f32
    %12 = vector.broadcast %cst_10 : f32 to vector<1x64xf32>
    %13 = arith.mulf %11, %12 : vector<1x64xf32>
    %14 = arith.mulf %8, %8 : vector<1x64xf32>
    %15 = arith.subf %13, %14 : vector<1x64xf32>
    %cst_11 = arith.constant 0.000000e+00 : f32
    %16 = vector.broadcast %cst_11 : f32 to vector<1x64xf32>
    %17 = arith.maximumf %15, %16 : vector<1x64xf32>
    %cst_12 = arith.constant 9.99999974E-6 : f32
    %18 = vector.broadcast %cst_12 : f32 to vector<1x64xf32>
    %19 = arith.addf %17, %18 : vector<1x64xf32>
    %20 = math.rsqrt %19 : vector<1x64xf32>
    %21 = arith.mulf %3, %20 : vector<1x64xf32>
    %22 = arith.mulf %8, %21 : vector<1x64xf32>
    %23 = arith.subf %4, %22 : vector<1x64xf32>
    %24 = vector.broadcast %21 : vector<1x64xf32> to vector<128x64xf32>
    %25 = arith.mulf %2, %24 : vector<128x64xf32>
    %26 = vector.broadcast %23 : vector<1x64xf32> to vector<128x64xf32>
    %27 = arith.addf %25, %26 : vector<128x64xf32>
    %cst_13 = arith.constant 0.000000e+00 : f32
    %28 = vector.broadcast %cst_13 : f32 to vector<128x64xf32>
    %29 = arith.maximumf %27, %28 : vector<128x64xf32>
    %30 = arith.truncf %29 : vector<128x64xf32> to vector<128x64xbf16>
    %c4 = arith.constant 4 : index
    %c0_14 = arith.constant 0 : index
    %c0_15 = arith.constant 0 : index
    %31 = vector.load %arg2[%c4, %c0_14, %c0_15] : memref<9x64x64xbf16, #tpu.memory_space<vmem>>, vector<1x64x64xbf16>
    %32 = vector.shape_cast %31 : vector<1x64x64xbf16> to vector<64x64xbf16>
    %cst_16 = arith.constant dense<0.000000e+00> : vector<128x64xf32>
    %33 = tpu.matmul %30, %32, %cst_16 {dimension_numbers = #tpu.dot_dimension_numbers<[1], [0], [0], [1], [0, 0, 1, 1], [], []>} : vector<128x64xbf16>, vector<64x64xbf16>, vector<128x64xf32> -> vector<128x64xf32>
    %c9_i32 = arith.constant 9 : i32
    %34 = tpu.dynamic_rotate %29 by %c9_i32 dim 0 : vector<128x64xf32>, i32 -> vector<128x64xf32>
    %c0_17 = arith.constant 0 : index
    %c0_18 = arith.constant 0 : index
    %c0_19 = arith.constant 0 : index
    %35 = vector.load %arg13[%c0_17, %c0_18, %c0_19] : memref<9x128x1xf32, #tpu.memory_space<vmem>>, vector<1x128x1xf32>
    %36 = vector.shape_cast %35 : vector<1x128x1xf32> to vector<128x1xf32>
    %37 = vector.broadcast %36 : vector<128x1xf32> to vector<128x64xf32>
    %38 = arith.mulf %34, %37 : vector<128x64xf32>
    %39 = arith.truncf %38 : vector<128x64xf32> to vector<128x64xbf16>
    %c0_20 = arith.constant 0 : index
    %c0_21 = arith.constant 0 : index
    %c0_22 = arith.constant 0 : index
    %40 = vector.load %arg2[%c0_20, %c0_21, %c0_22] : memref<9x64x64xbf16, #tpu.memory_space<vmem>>, vector<1x64x64xbf16>
    %41 = vector.shape_cast %40 : vector<1x64x64xbf16> to vector<64x64xbf16>
    %cst_23 = arith.constant dense<0.000000e+00> : vector<128x64xf32>
    %42 = tpu.matmul %39, %41, %cst_23 {dimension_numbers = #tpu.dot_dimension_numbers<[1], [0], [0], [1], [0, 0, 1, 1], [], []>} : vector<128x64xbf16>, vector<64x64xbf16>, vector<128x64xf32> -> vector<128x64xf32>
    %43 = arith.addf %33, %42 : vector<128x64xf32>
    %c8_i32 = arith.constant 8 : i32
    %44 = tpu.dynamic_rotate %29 by %c8_i32 dim 0 : vector<128x64xf32>, i32 -> vector<128x64xf32>
    %c1 = arith.constant 1 : index
    %c0_24 = arith.constant 0 : index
    %c0_25 = arith.constant 0 : index
    %45 = vector.load %arg13[%c1, %c0_24, %c0_25] : memref<9x128x1xf32, #tpu.memory_space<vmem>>, vector<1x128x1xf32>
    %46 = vector.shape_cast %45 : vector<1x128x1xf32> to vector<128x1xf32>
    %47 = vector.broadcast %46 : vector<128x1xf32> to vector<128x64xf32>
    %48 = arith.mulf %44, %47 : vector<128x64xf32>
    %49 = arith.truncf %48 : vector<128x64xf32> to vector<128x64xbf16>
    %c1_26 = arith.constant 1 : index
    %c0_27 = arith.constant 0 : index
    %c0_28 = arith.constant 0 : index
    %50 = vector.load %arg2[%c1_26, %c0_27, %c0_28] : memref<9x64x64xbf16, #tpu.memory_space<vmem>>, vector<1x64x64xbf16>
    %51 = vector.shape_cast %50 : vector<1x64x64xbf16> to vector<64x64xbf16>
    %cst_29 = arith.constant dense<0.000000e+00> : vector<128x64xf32>
    %52 = tpu.matmul %49, %51, %cst_29 {dimension_numbers = #tpu.dot_dimension_numbers<[1], [0], [0], [1], [0, 0, 1, 1], [], []>} : vector<128x64xbf16>, vector<64x64xbf16>, vector<128x64xf32> -> vector<128x64xf32>
    %53 = arith.addf %43, %52 : vector<128x64xf32>
    %c7_i32 = arith.constant 7 : i32
    %54 = tpu.dynamic_rotate %29 by %c7_i32 dim 0 : vector<128x64xf32>, i32 -> vector<128x64xf32>
    %c2 = arith.constant 2 : index
    %c0_30 = arith.constant 0 : index
    %c0_31 = arith.constant 0 : index
    %55 = vector.load %arg13[%c2, %c0_30, %c0_31] : memref<9x128x1xf32, #tpu.memory_space<vmem>>, vector<1x128x1xf32>
    %56 = vector.shape_cast %55 : vector<1x128x1xf32> to vector<128x1xf32>
    %57 = vector.broadcast %56 : vector<128x1xf32> to vector<128x64xf32>
    %58 = arith.mulf %54, %57 : vector<128x64xf32>
    %59 = arith.truncf %58 : vector<128x64xf32> to vector<128x64xbf16>
    %c2_32 = arith.constant 2 : index
    %c0_33 = arith.constant 0 : index
    %c0_34 = arith.constant 0 : index
    %60 = vector.load %arg2[%c2_32, %c0_33, %c0_34] : memref<9x64x64xbf16, #tpu.memory_space<vmem>>, vector<1x64x64xbf16>
    %61 = vector.shape_cast %60 : vector<1x64x64xbf16> to vector<64x64xbf16>
    %cst_35 = arith.constant dense<0.000000e+00> : vector<128x64xf32>
    %62 = tpu.matmul %59, %61, %cst_35 {dimension_numbers = #tpu.dot_dimension_numbers<[1], [0], [0], [1], [0, 0, 1, 1], [], []>} : vector<128x64xbf16>, vector<64x64xbf16>, vector<128x64xf32> -> vector<128x64xf32>
    %63 = arith.addf %53, %62 : vector<128x64xf32>
    %c1_i32 = arith.constant 1 : i32
    %64 = tpu.dynamic_rotate %29 by %c1_i32 dim 0 : vector<128x64xf32>, i32 -> vector<128x64xf32>
    %c3 = arith.constant 3 : index
    %c0_36 = arith.constant 0 : index
    %c0_37 = arith.constant 0 : index
    %65 = vector.load %arg13[%c3, %c0_36, %c0_37] : memref<9x128x1xf32, #tpu.memory_space<vmem>>, vector<1x128x1xf32>
    %66 = vector.shape_cast %65 : vector<1x128x1xf32> to vector<128x1xf32>
    %67 = vector.broadcast %66 : vector<128x1xf32> to vector<128x64xf32>
    %68 = arith.mulf %64, %67 : vector<128x64xf32>
    %69 = arith.truncf %68 : vector<128x64xf32> to vector<128x64xbf16>
    %c3_38 = arith.constant 3 : index
    %c0_39 = arith.constant 0 : index
    %c0_40 = arith.constant 0 : index
    %70 = vector.load %arg2[%c3_38, %c0_39, %c0_40] : memref<9x64x64xbf16, #tpu.memory_space<vmem>>, vector<1x64x64xbf16>
    %71 = vector.shape_cast %70 : vector<1x64x64xbf16> to vector<64x64xbf16>
    %cst_41 = arith.constant dense<0.000000e+00> : vector<128x64xf32>
    %72 = tpu.matmul %69, %71, %cst_41 {dimension_numbers = #tpu.dot_dimension_numbers<[1], [0], [0], [1], [0, 0, 1, 1], [], []>} : vector<128x64xbf16>, vector<64x64xbf16>, vector<128x64xf32> -> vector<128x64xf32>
    %73 = arith.addf %63, %72 : vector<128x64xf32>
    %c127_i32 = arith.constant 127 : i32
    %74 = tpu.dynamic_rotate %29 by %c127_i32 dim 0 : vector<128x64xf32>, i32 -> vector<128x64xf32>
    %c5 = arith.constant 5 : index
    %c0_42 = arith.constant 0 : index
    %c0_43 = arith.constant 0 : index
    %75 = vector.load %arg13[%c5, %c0_42, %c0_43] : memref<9x128x1xf32, #tpu.memory_space<vmem>>, vector<1x128x1xf32>
    %76 = vector.shape_cast %75 : vector<1x128x1xf32> to vector<128x1xf32>
    %77 = vector.broadcast %76 : vector<128x1xf32> to vector<128x64xf32>
    %78 = arith.mulf %74, %77 : vector<128x64xf32>
    %79 = arith.truncf %78 : vector<128x64xf32> to vector<128x64xbf16>
    %c5_44 = arith.constant 5 : index
    %c0_45 = arith.constant 0 : index
    %c0_46 = arith.constant 0 : index
    %80 = vector.load %arg2[%c5_44, %c0_45, %c0_46] : memref<9x64x64xbf16, #tpu.memory_space<vmem>>, vector<1x64x64xbf16>
    %81 = vector.shape_cast %80 : vector<1x64x64xbf16> to vector<64x64xbf16>
    %cst_47 = arith.constant dense<0.000000e+00> : vector<128x64xf32>
    %82 = tpu.matmul %79, %81, %cst_47 {dimension_numbers = #tpu.dot_dimension_numbers<[1], [0], [0], [1], [0, 0, 1, 1], [], []>} : vector<128x64xbf16>, vector<64x64xbf16>, vector<128x64xf32> -> vector<128x64xf32>
    %83 = arith.addf %73, %82 : vector<128x64xf32>
    %c121_i32 = arith.constant 121 : i32
    %84 = tpu.dynamic_rotate %29 by %c121_i32 dim 0 : vector<128x64xf32>, i32 -> vector<128x64xf32>
    %c6 = arith.constant 6 : index
    %c0_48 = arith.constant 0 : index
    %c0_49 = arith.constant 0 : index
    %85 = vector.load %arg13[%c6, %c0_48, %c0_49] : memref<9x128x1xf32, #tpu.memory_space<vmem>>, vector<1x128x1xf32>
    %86 = vector.shape_cast %85 : vector<1x128x1xf32> to vector<128x1xf32>
    %87 = vector.broadcast %86 : vector<128x1xf32> to vector<128x64xf32>
    %88 = arith.mulf %84, %87 : vector<128x64xf32>
    %89 = arith.truncf %88 : vector<128x64xf32> to vector<128x64xbf16>
    %c6_50 = arith.constant 6 : index
    %c0_51 = arith.constant 0 : index
    %c0_52 = arith.constant 0 : index
    %90 = vector.load %arg2[%c6_50, %c0_51, %c0_52] : memref<9x64x64xbf16, #tpu.memory_space<vmem>>, vector<1x64x64xbf16>
    %91 = vector.shape_cast %90 : vector<1x64x64xbf16> to vector<64x64xbf16>
    %cst_53 = arith.constant dense<0.000000e+00> : vector<128x64xf32>
    %92 = tpu.matmul %89, %91, %cst_53 {dimension_numbers = #tpu.dot_dimension_numbers<[1], [0], [0], [1], [0, 0, 1, 1], [], []>} : vector<128x64xbf16>, vector<64x64xbf16>, vector<128x64xf32> -> vector<128x64xf32>
    %93 = arith.addf %83, %92 : vector<128x64xf32>
    %c120_i32 = arith.constant 120 : i32
    %94 = tpu.dynamic_rotate %29 by %c120_i32 dim 0 : vector<128x64xf32>, i32 -> vector<128x64xf32>
    %c7 = arith.constant 7 : index
    %c0_54 = arith.constant 0 : index
    %c0_55 = arith.constant 0 : index
    %95 = vector.load %arg13[%c7, %c0_54, %c0_55] : memref<9x128x1xf32, #tpu.memory_space<vmem>>, vector<1x128x1xf32>
    %96 = vector.shape_cast %95 : vector<1x128x1xf32> to vector<128x1xf32>
    %97 = vector.broadcast %96 : vector<128x1xf32> to vector<128x64xf32>
    %98 = arith.mulf %94, %97 : vector<128x64xf32>
    %99 = arith.truncf %98 : vector<128x64xf32> to vector<128x64xbf16>
    %c7_56 = arith.constant 7 : index
    %c0_57 = arith.constant 0 : index
    %c0_58 = arith.constant 0 : index
    %100 = vector.load %arg2[%c7_56, %c0_57, %c0_58] : memref<9x64x64xbf16, #tpu.memory_space<vmem>>, vector<1x64x64xbf16>
    %101 = vector.shape_cast %100 : vector<1x64x64xbf16> to vector<64x64xbf16>
    %cst_59 = arith.constant dense<0.000000e+00> : vector<128x64xf32>
    %102 = tpu.matmul %99, %101, %cst_59 {dimension_numbers = #tpu.dot_dimension_numbers<[1], [0], [0], [1], [0, 0, 1, 1], [], []>} : vector<128x64xbf16>, vector<64x64xbf16>, vector<128x64xf32> -> vector<128x64xf32>
    %103 = arith.addf %93, %102 : vector<128x64xf32>
    %c119_i32 = arith.constant 119 : i32
    %104 = tpu.dynamic_rotate %29 by %c119_i32 dim 0 : vector<128x64xf32>, i32 -> vector<128x64xf32>
    %c8 = arith.constant 8 : index
    %c0_60 = arith.constant 0 : index
    %c0_61 = arith.constant 0 : index
    %105 = vector.load %arg13[%c8, %c0_60, %c0_61] : memref<9x128x1xf32, #tpu.memory_space<vmem>>, vector<1x128x1xf32>
    %106 = vector.shape_cast %105 : vector<1x128x1xf32> to vector<128x1xf32>
    %107 = vector.broadcast %106 : vector<128x1xf32> to vector<128x64xf32>
    %108 = arith.mulf %104, %107 : vector<128x64xf32>
    %109 = arith.truncf %108 : vector<128x64xf32> to vector<128x64xbf16>
    %c8_62 = arith.constant 8 : index
    %c0_63 = arith.constant 0 : index
    %c0_64 = arith.constant 0 : index
    %110 = vector.load %arg2[%c8_62, %c0_63, %c0_64] : memref<9x64x64xbf16, #tpu.memory_space<vmem>>, vector<1x64x64xbf16>
    %111 = vector.shape_cast %110 : vector<1x64x64xbf16> to vector<64x64xbf16>
    %cst_65 = arith.constant dense<0.000000e+00> : vector<128x64xf32>
    %112 = tpu.matmul %109, %111, %cst_65 {dimension_numbers = #tpu.dot_dimension_numbers<[1], [0], [0], [1], [0, 0, 1, 1], [], []>} : vector<128x64xbf16>, vector<64x64xbf16>, vector<128x64xf32> -> vector<128x64xf32>
    %113 = arith.addf %103, %112 : vector<128x64xf32>
    %c0_66 = arith.constant 0 : index
    %c0_67 = arith.constant 0 : index
    %114 = vector.load %arg7[%c0_66, %c0_67] : memref<1x64xf32, #tpu.memory_space<vmem>>, vector<1x64xf32>
    %c0_68 = arith.constant 0 : index
    %c0_69 = arith.constant 0 : index
    %115 = vector.load %arg8[%c0_68, %c0_69] : memref<1x64xf32, #tpu.memory_space<vmem>>, vector<1x64xf32>
    %cst_70 = arith.constant dense<0.000000e+00> : vector<64xf32>
    %116 = vector.multi_reduction <add>, %113, %cst_70 [0] : vector<128x64xf32> to vector<64xf32>
    %117 = vector.shape_cast %116 : vector<64xf32> to vector<1x64xf32>
    %cst_71 = arith.constant 7.812500e-03 : f32
    %118 = vector.broadcast %cst_71 : f32 to vector<1x64xf32>
    %119 = arith.mulf %117, %118 : vector<1x64xf32>
    %120 = arith.mulf %113, %113 : vector<128x64xf32>
    %cst_72 = arith.constant dense<0.000000e+00> : vector<64xf32>
    %121 = vector.multi_reduction <add>, %120, %cst_72 [0] : vector<128x64xf32> to vector<64xf32>
    %122 = vector.shape_cast %121 : vector<64xf32> to vector<1x64xf32>
    %cst_73 = arith.constant 7.812500e-03 : f32
    %123 = vector.broadcast %cst_73 : f32 to vector<1x64xf32>
    %124 = arith.mulf %122, %123 : vector<1x64xf32>
    %125 = arith.mulf %119, %119 : vector<1x64xf32>
    %126 = arith.subf %124, %125 : vector<1x64xf32>
    %cst_74 = arith.constant 0.000000e+00 : f32
    %127 = vector.broadcast %cst_74 : f32 to vector<1x64xf32>
    %128 = arith.maximumf %126, %127 : vector<1x64xf32>
    %cst_75 = arith.constant 9.99999974E-6 : f32
    %129 = vector.broadcast %cst_75 : f32 to vector<1x64xf32>
    %130 = arith.addf %128, %129 : vector<1x64xf32>
    %131 = math.rsqrt %130 : vector<1x64xf32>
    %132 = arith.mulf %114, %131 : vector<1x64xf32>
    %133 = arith.mulf %119, %132 : vector<1x64xf32>
    %134 = arith.subf %115, %133 : vector<1x64xf32>
    %135 = vector.broadcast %132 : vector<1x64xf32> to vector<128x64xf32>
    %136 = arith.mulf %113, %135 : vector<128x64xf32>
    %137 = vector.broadcast %134 : vector<1x64xf32> to vector<128x64xf32>
    %138 = arith.addf %136, %137 : vector<128x64xf32>
    %cst_76 = arith.constant 0.000000e+00 : f32
    %139 = vector.broadcast %cst_76 : f32 to vector<128x64xf32>
    %140 = arith.maximumf %138, %139 : vector<128x64xf32>
    %c127_i32_77 = arith.constant 127 : i32
    %141 = tpu.dynamic_rotate %140 by %c127_i32_77 dim 0 : vector<128x64xf32>, i32 -> vector<128x64xf32>
    %142 = arith.maximumf %140, %141 : vector<128x64xf32>
    %c120_i32_78 = arith.constant 120 : i32
    %143 = tpu.dynamic_rotate %140 by %c120_i32_78 dim 0 : vector<128x64xf32>, i32 -> vector<128x64xf32>
    %144 = arith.maximumf %142, %143 : vector<128x64xf32>
    %c119_i32_79 = arith.constant 119 : i32
    %145 = tpu.dynamic_rotate %140 by %c119_i32_79 dim 0 : vector<128x64xf32>, i32 -> vector<128x64xf32>
    %146 = arith.maximumf %144, %145 : vector<128x64xf32>
    %147 = arith.truncf %146 : vector<128x64xf32> to vector<128x64xbf16>
    %c0_80 = arith.constant 0 : index
    %c0_81 = arith.constant 0 : index
    %148 = vector.load %arg15[%c0_80, %c0_81] : memref<32x128xbf16, #tpu.memory_space<vmem>>, vector<32x128xbf16>
    %cst_82 = arith.constant dense<0.000000e+00> : vector<32x64xf32>
    %149 = tpu.matmul %148, %147, %cst_82 {dimension_numbers = #tpu.dot_dimension_numbers<[1], [0], [0], [1], [0, 0, 1, 1], [], []>} : vector<32x128xbf16>, vector<128x64xbf16>, vector<32x64xf32> -> vector<32x64xf32>
    %150 = arith.truncf %149 : vector<32x64xf32> to vector<32x64xbf16>
    %c4_83 = arith.constant 4 : index
    %c0_84 = arith.constant 0 : index
    %c0_85 = arith.constant 0 : index
    %151 = vector.load %arg3[%c4_83, %c0_84, %c0_85] : memref<9x64x128xbf16, #tpu.memory_space<vmem>>, vector<1x64x128xbf16>
    %152 = vector.shape_cast %151 : vector<1x64x128xbf16> to vector<64x128xbf16>
    %cst_86 = arith.constant dense<0.000000e+00> : vector<32x128xf32>
    %153 = tpu.matmul %150, %152, %cst_86 {dimension_numbers = #tpu.dot_dimension_numbers<[1], [0], [0], [1], [0, 0, 1, 1], [], []>} : vector<32x64xbf16>, vector<64x128xbf16>, vector<32x128xf32> -> vector<32x128xf32>
    %c5_i32 = arith.constant 5 : i32
    %154 = tpu.dynamic_rotate %149 by %c5_i32 dim 0 : vector<32x64xf32>, i32 -> vector<32x64xf32>
    %c0_87 = arith.constant 0 : index
    %c0_88 = arith.constant 0 : index
    %c0_89 = arith.constant 0 : index
    %155 = vector.load %arg14[%c0_87, %c0_88, %c0_89] : memref<9x32x1xf32, #tpu.memory_space<vmem>>, vector<1x32x1xf32>
    %156 = vector.shape_cast %155 : vector<1x32x1xf32> to vector<32x1xf32>
    %157 = vector.broadcast %156 : vector<32x1xf32> to vector<32x64xf32>
    %158 = arith.mulf %154, %157 : vector<32x64xf32>
    %159 = arith.truncf %158 : vector<32x64xf32> to vector<32x64xbf16>
    %c0_90 = arith.constant 0 : index
    %c0_91 = arith.constant 0 : index
    %c0_92 = arith.constant 0 : index
    %160 = vector.load %arg3[%c0_90, %c0_91, %c0_92] : memref<9x64x128xbf16, #tpu.memory_space<vmem>>, vector<1x64x128xbf16>
    %161 = vector.shape_cast %160 : vector<1x64x128xbf16> to vector<64x128xbf16>
    %cst_93 = arith.constant dense<0.000000e+00> : vector<32x128xf32>
    %162 = tpu.matmul %159, %161, %cst_93 {dimension_numbers = #tpu.dot_dimension_numbers<[1], [0], [0], [1], [0, 0, 1, 1], [], []>} : vector<32x64xbf16>, vector<64x128xbf16>, vector<32x128xf32> -> vector<32x128xf32>
    %163 = arith.addf %153, %162 : vector<32x128xf32>
    %c4_i32 = arith.constant 4 : i32
    %164 = tpu.dynamic_rotate %149 by %c4_i32 dim 0 : vector<32x64xf32>, i32 -> vector<32x64xf32>
    %c1_94 = arith.constant 1 : index
    %c0_95 = arith.constant 0 : index
    %c0_96 = arith.constant 0 : index
    %165 = vector.load %arg14[%c1_94, %c0_95, %c0_96] : memref<9x32x1xf32, #tpu.memory_space<vmem>>, vector<1x32x1xf32>
    %166 = vector.shape_cast %165 : vector<1x32x1xf32> to vector<32x1xf32>
    %167 = vector.broadcast %166 : vector<32x1xf32> to vector<32x64xf32>
    %168 = arith.mulf %164, %167 : vector<32x64xf32>
    %169 = arith.truncf %168 : vector<32x64xf32> to vector<32x64xbf16>
    %c1_97 = arith.constant 1 : index
    %c0_98 = arith.constant 0 : index
    %c0_99 = arith.constant 0 : index
    %170 = vector.load %arg3[%c1_97, %c0_98, %c0_99] : memref<9x64x128xbf16, #tpu.memory_space<vmem>>, vector<1x64x128xbf16>
    %171 = vector.shape_cast %170 : vector<1x64x128xbf16> to vector<64x128xbf16>
    %cst_100 = arith.constant dense<0.000000e+00> : vector<32x128xf32>
    %172 = tpu.matmul %169, %171, %cst_100 {dimension_numbers = #tpu.dot_dimension_numbers<[1], [0], [0], [1], [0, 0, 1, 1], [], []>} : vector<32x64xbf16>, vector<64x128xbf16>, vector<32x128xf32> -> vector<32x128xf32>
    %173 = arith.addf %163, %172 : vector<32x128xf32>
    %c3_i32 = arith.constant 3 : i32
    %174 = tpu.dynamic_rotate %149 by %c3_i32 dim 0 : vector<32x64xf32>, i32 -> vector<32x64xf32>
    %c2_101 = arith.constant 2 : index
    %c0_102 = arith.constant 0 : index
    %c0_103 = arith.constant 0 : index
    %175 = vector.load %arg14[%c2_101, %c0_102, %c0_103] : memref<9x32x1xf32, #tpu.memory_space<vmem>>, vector<1x32x1xf32>
    %176 = vector.shape_cast %175 : vector<1x32x1xf32> to vector<32x1xf32>
    %177 = vector.broadcast %176 : vector<32x1xf32> to vector<32x64xf32>
    %178 = arith.mulf %174, %177 : vector<32x64xf32>
    %179 = arith.truncf %178 : vector<32x64xf32> to vector<32x64xbf16>
    %c2_104 = arith.constant 2 : index
    %c0_105 = arith.constant 0 : index
    %c0_106 = arith.constant 0 : index
    %180 = vector.load %arg3[%c2_104, %c0_105, %c0_106] : memref<9x64x128xbf16, #tpu.memory_space<vmem>>, vector<1x64x128xbf16>
    %181 = vector.shape_cast %180 : vector<1x64x128xbf16> to vector<64x128xbf16>
    %cst_107 = arith.constant dense<0.000000e+00> : vector<32x128xf32>
    %182 = tpu.matmul %179, %181, %cst_107 {dimension_numbers = #tpu.dot_dimension_numbers<[1], [0], [0], [1], [0, 0, 1, 1], [], []>} : vector<32x64xbf16>, vector<64x128xbf16>, vector<32x128xf32> -> vector<32x128xf32>
    %183 = arith.addf %173, %182 : vector<32x128xf32>
    %c1_i32_108 = arith.constant 1 : i32
    %184 = tpu.dynamic_rotate %149 by %c1_i32_108 dim 0 : vector<32x64xf32>, i32 -> vector<32x64xf32>
    %c3_109 = arith.constant 3 : index
    %c0_110 = arith.constant 0 : index
    %c0_111 = arith.constant 0 : index
    %185 = vector.load %arg14[%c3_109, %c0_110, %c0_111] : memref<9x32x1xf32, #tpu.memory_space<vmem>>, vector<1x32x1xf32>
    %186 = vector.shape_cast %185 : vector<1x32x1xf32> to vector<32x1xf32>
    %187 = vector.broadcast %186 : vector<32x1xf32> to vector<32x64xf32>
    %188 = arith.mulf %184, %187 : vector<32x64xf32>
    %189 = arith.truncf %188 : vector<32x64xf32> to vector<32x64xbf16>
    %c3_112 = arith.constant 3 : index
    %c0_113 = arith.constant 0 : index
    %c0_114 = arith.constant 0 : index
    %190 = vector.load %arg3[%c3_112, %c0_113, %c0_114] : memref<9x64x128xbf16, #tpu.memory_space<vmem>>, vector<1x64x128xbf16>
    %191 = vector.shape_cast %190 : vector<1x64x128xbf16> to vector<64x128xbf16>
    %cst_115 = arith.constant dense<0.000000e+00> : vector<32x128xf32>
    %192 = tpu.matmul %189, %191, %cst_115 {dimension_numbers = #tpu.dot_dimension_numbers<[1], [0], [0], [1], [0, 0, 1, 1], [], []>} : vector<32x64xbf16>, vector<64x128xbf16>, vector<32x128xf32> -> vector<32x128xf32>
    %193 = arith.addf %183, %192 : vector<32x128xf32>
    %c31_i32 = arith.constant 31 : i32
    %194 = tpu.dynamic_rotate %149 by %c31_i32 dim 0 : vector<32x64xf32>, i32 -> vector<32x64xf32>
    %c5_116 = arith.constant 5 : index
    %c0_117 = arith.constant 0 : index
    %c0_118 = arith.constant 0 : index
    %195 = vector.load %arg14[%c5_116, %c0_117, %c0_118] : memref<9x32x1xf32, #tpu.memory_space<vmem>>, vector<1x32x1xf32>
    %196 = vector.shape_cast %195 : vector<1x32x1xf32> to vector<32x1xf32>
    %197 = vector.broadcast %196 : vector<32x1xf32> to vector<32x64xf32>
    %198 = arith.mulf %194, %197 : vector<32x64xf32>
    %199 = arith.truncf %198 : vector<32x64xf32> to vector<32x64xbf16>
    %c5_119 = arith.constant 5 : index
    %c0_120 = arith.constant 0 : index
    %c0_121 = arith.constant 0 : index
    %200 = vector.load %arg3[%c5_119, %c0_120, %c0_121] : memref<9x64x128xbf16, #tpu.memory_space<vmem>>, vector<1x64x128xbf16>
    %201 = vector.shape_cast %200 : vector<1x64x128xbf16> to vector<64x128xbf16>
    %cst_122 = arith.constant dense<0.000000e+00> : vector<32x128xf32>
    %202 = tpu.matmul %199, %201, %cst_122 {dimension_numbers = #tpu.dot_dimension_numbers<[1], [0], [0], [1], [0, 0, 1, 1], [], []>} : vector<32x64xbf16>, vector<64x128xbf16>, vector<32x128xf32> -> vector<32x128xf32>
    %203 = arith.addf %193, %202 : vector<32x128xf32>
    %c29_i32 = arith.constant 29 : i32
    %204 = tpu.dynamic_rotate %149 by %c29_i32 dim 0 : vector<32x64xf32>, i32 -> vector<32x64xf32>
    %c6_123 = arith.constant 6 : index
    %c0_124 = arith.constant 0 : index
    %c0_125 = arith.constant 0 : index
    %205 = vector.load %arg14[%c6_123, %c0_124, %c0_125] : memref<9x32x1xf32, #tpu.memory_space<vmem>>, vector<1x32x1xf32>
    %206 = vector.shape_cast %205 : vector<1x32x1xf32> to vector<32x1xf32>
    %207 = vector.broadcast %206 : vector<32x1xf32> to vector<32x64xf32>
    %208 = arith.mulf %204, %207 : vector<32x64xf32>
    %209 = arith.truncf %208 : vector<32x64xf32> to vector<32x64xbf16>
    %c6_126 = arith.constant 6 : index
    %c0_127 = arith.constant 0 : index
    %c0_128 = arith.constant 0 : index
    %210 = vector.load %arg3[%c6_126, %c0_127, %c0_128] : memref<9x64x128xbf16, #tpu.memory_space<vmem>>, vector<1x64x128xbf16>
    %211 = vector.shape_cast %210 : vector<1x64x128xbf16> to vector<64x128xbf16>
    %cst_129 = arith.constant dense<0.000000e+00> : vector<32x128xf32>
    %212 = tpu.matmul %209, %211, %cst_129 {dimension_numbers = #tpu.dot_dimension_numbers<[1], [0], [0], [1], [0, 0, 1, 1], [], []>} : vector<32x64xbf16>, vector<64x128xbf16>, vector<32x128xf32> -> vector<32x128xf32>
    %213 = arith.addf %203, %212 : vector<32x128xf32>
    %c28_i32 = arith.constant 28 : i32
    %214 = tpu.dynamic_rotate %149 by %c28_i32 dim 0 : vector<32x64xf32>, i32 -> vector<32x64xf32>
    %c7_130 = arith.constant 7 : index
    %c0_131 = arith.constant 0 : index
    %c0_132 = arith.constant 0 : index
    %215 = vector.load %arg14[%c7_130, %c0_131, %c0_132] : memref<9x32x1xf32, #tpu.memory_space<vmem>>, vector<1x32x1xf32>
    %216 = vector.shape_cast %215 : vector<1x32x1xf32> to vector<32x1xf32>
    %217 = vector.broadcast %216 : vector<32x1xf32> to vector<32x64xf32>
    %218 = arith.mulf %214, %217 : vector<32x64xf32>
    %219 = arith.truncf %218 : vector<32x64xf32> to vector<32x64xbf16>
    %c7_133 = arith.constant 7 : index
    %c0_134 = arith.constant 0 : index
    %c0_135 = arith.constant 0 : index
    %220 = vector.load %arg3[%c7_133, %c0_134, %c0_135] : memref<9x64x128xbf16, #tpu.memory_space<vmem>>, vector<1x64x128xbf16>
    %221 = vector.shape_cast %220 : vector<1x64x128xbf16> to vector<64x128xbf16>
    %cst_136 = arith.constant dense<0.000000e+00> : vector<32x128xf32>
    %222 = tpu.matmul %219, %221, %cst_136 {dimension_numbers = #tpu.dot_dimension_numbers<[1], [0], [0], [1], [0, 0, 1, 1], [], []>} : vector<32x64xbf16>, vector<64x128xbf16>, vector<32x128xf32> -> vector<32x128xf32>
    %223 = arith.addf %213, %222 : vector<32x128xf32>
    %c27_i32 = arith.constant 27 : i32
    %224 = tpu.dynamic_rotate %149 by %c27_i32 dim 0 : vector<32x64xf32>, i32 -> vector<32x64xf32>
    %c8_137 = arith.constant 8 : index
    %c0_138 = arith.constant 0 : index
    %c0_139 = arith.constant 0 : index
    %225 = vector.load %arg14[%c8_137, %c0_138, %c0_139] : memref<9x32x1xf32, #tpu.memory_space<vmem>>, vector<1x32x1xf32>
    %226 = vector.shape_cast %225 : vector<1x32x1xf32> to vector<32x1xf32>
    %227 = vector.broadcast %226 : vector<32x1xf32> to vector<32x64xf32>
    %228 = arith.mulf %224, %227 : vector<32x64xf32>
    %229 = arith.truncf %228 : vector<32x64xf32> to vector<32x64xbf16>
    %c8_140 = arith.constant 8 : index
    %c0_141 = arith.constant 0 : index
    %c0_142 = arith.constant 0 : index
    %230 = vector.load %arg3[%c8_140, %c0_141, %c0_142] : memref<9x64x128xbf16, #tpu.memory_space<vmem>>, vector<1x64x128xbf16>
    %231 = vector.shape_cast %230 : vector<1x64x128xbf16> to vector<64x128xbf16>
    %cst_143 = arith.constant dense<0.000000e+00> : vector<32x128xf32>
    %232 = tpu.matmul %229, %231, %cst_143 {dimension_numbers = #tpu.dot_dimension_numbers<[1], [0], [0], [1], [0, 0, 1, 1], [], []>} : vector<32x64xbf16>, vector<64x128xbf16>, vector<32x128xf32> -> vector<32x128xf32>
    %233 = arith.addf %223, %232 : vector<32x128xf32>
    %c0_144 = arith.constant 0 : index
    %c0_145 = arith.constant 0 : index
    %234 = vector.load %arg9[%c0_144, %c0_145] : memref<1x128xf32, #tpu.memory_space<vmem>>, vector<1x128xf32>
    %c0_146 = arith.constant 0 : index
    %c0_147 = arith.constant 0 : index
    %235 = vector.load %arg10[%c0_146, %c0_147] : memref<1x128xf32, #tpu.memory_space<vmem>>, vector<1x128xf32>
    %cst_148 = arith.constant dense<0.000000e+00> : vector<128xf32>
    %236 = vector.multi_reduction <add>, %233, %cst_148 [0] : vector<32x128xf32> to vector<128xf32>
    %237 = vector.shape_cast %236 : vector<128xf32> to vector<1x128xf32>
    %cst_149 = arith.constant 3.125000e-02 : f32
    %238 = vector.broadcast %cst_149 : f32 to vector<1x128xf32>
    %239 = arith.mulf %237, %238 : vector<1x128xf32>
    %240 = arith.mulf %233, %233 : vector<32x128xf32>
    %cst_150 = arith.constant dense<0.000000e+00> : vector<128xf32>
    %241 = vector.multi_reduction <add>, %240, %cst_150 [0] : vector<32x128xf32> to vector<128xf32>
    %242 = vector.shape_cast %241 : vector<128xf32> to vector<1x128xf32>
    %cst_151 = arith.constant 3.125000e-02 : f32
    %243 = vector.broadcast %cst_151 : f32 to vector<1x128xf32>
    %244 = arith.mulf %242, %243 : vector<1x128xf32>
    %245 = arith.mulf %239, %239 : vector<1x128xf32>
    %246 = arith.subf %244, %245 : vector<1x128xf32>
    %cst_152 = arith.constant 0.000000e+00 : f32
    %247 = vector.broadcast %cst_152 : f32 to vector<1x128xf32>
    %248 = arith.maximumf %246, %247 : vector<1x128xf32>
    %cst_153 = arith.constant 9.99999974E-6 : f32
    %249 = vector.broadcast %cst_153 : f32 to vector<1x128xf32>
    %250 = arith.addf %248, %249 : vector<1x128xf32>
    %251 = math.rsqrt %250 : vector<1x128xf32>
    %252 = arith.mulf %234, %251 : vector<1x128xf32>
    %253 = arith.mulf %239, %252 : vector<1x128xf32>
    %254 = arith.subf %235, %253 : vector<1x128xf32>
    %255 = vector.broadcast %252 : vector<1x128xf32> to vector<32x128xf32>
    %256 = arith.mulf %233, %255 : vector<32x128xf32>
    %257 = vector.broadcast %254 : vector<1x128xf32> to vector<32x128xf32>
    %258 = arith.addf %256, %257 : vector<32x128xf32>
    %cst_154 = arith.constant 0.000000e+00 : f32
    %259 = vector.broadcast %cst_154 : f32 to vector<32x128xf32>
    %260 = arith.maximumf %258, %259 : vector<32x128xf32>
    %c5_i32_155 = arith.constant 5 : i32
    %261 = tpu.dynamic_rotate %260 by %c5_i32_155 dim 0 : vector<32x128xf32>, i32 -> vector<32x128xf32>
    %c0_156 = arith.constant 0 : index
    %c0_157 = arith.constant 0 : index
    %c0_158 = arith.constant 0 : index
    %262 = vector.load %arg14[%c0_156, %c0_157, %c0_158] : memref<9x32x1xf32, #tpu.memory_space<vmem>>, vector<1x32x1xf32>
    %263 = vector.shape_cast %262 : vector<1x32x1xf32> to vector<32x1xf32>
    %264 = vector.broadcast %263 : vector<32x1xf32> to vector<32x128xf32>
    %265 = arith.mulf %261, %264 : vector<32x128xf32>
    %266 = arith.truncf %265 : vector<32x128xf32> to vector<32x128xbf16>
    %c0_159 = arith.constant 0 : index
    %c0_160 = arith.constant 0 : index
    %267 = vector.load %arg23[%c0_159, %c0_160] : memref<32x1152xbf16, #tpu.memory_space<vmem>>, vector<32x128xbf16>
    tpu.vector_store %arg23[%c0_159, %c0_160], %266 {strides = array<i32>} : memref<32x1152xbf16, #tpu.memory_space<vmem>>, vector<32x128xbf16>,
    %c4_i32_161 = arith.constant 4 : i32
    %268 = tpu.dynamic_rotate %260 by %c4_i32_161 dim 0 : vector<32x128xf32>, i32 -> vector<32x128xf32>
    %c1_162 = arith.constant 1 : index
    %c0_163 = arith.constant 0 : index
    %c0_164 = arith.constant 0 : index
    %269 = vector.load %arg14[%c1_162, %c0_163, %c0_164] : memref<9x32x1xf32, #tpu.memory_space<vmem>>, vector<1x32x1xf32>
    %270 = vector.shape_cast %269 : vector<1x32x1xf32> to vector<32x1xf32>
    %271 = vector.broadcast %270 : vector<32x1xf32> to vector<32x128xf32>
    %272 = arith.mulf %268, %271 : vector<32x128xf32>
    %273 = arith.truncf %272 : vector<32x128xf32> to vector<32x128xbf16>
    %c0_165 = arith.constant 0 : index
    %c128 = arith.constant 128 : index
    %274 = vector.load %arg23[%c0_165, %c128] : memref<32x1152xbf16, #tpu.memory_space<vmem>>, vector<32x128xbf16>
    tpu.vector_store %arg23[%c0_165, %c128], %273 {strides = array<i32>} : memref<32x1152xbf16, #tpu.memory_space<vmem>>, vector<32x128xbf16>,
    %c3_i32_166 = arith.constant 3 : i32
    %275 = tpu.dynamic_rotate %260 by %c3_i32_166 dim 0 : vector<32x128xf32>, i32 -> vector<32x128xf32>
    %c2_167 = arith.constant 2 : index
    %c0_168 = arith.constant 0 : index
    %c0_169 = arith.constant 0 : index
    %276 = vector.load %arg14[%c2_167, %c0_168, %c0_169] : memref<9x32x1xf32, #tpu.memory_space<vmem>>, vector<1x32x1xf32>
    %277 = vector.shape_cast %276 : vector<1x32x1xf32> to vector<32x1xf32>
    %278 = vector.broadcast %277 : vector<32x1xf32> to vector<32x128xf32>
    %279 = arith.mulf %275, %278 : vector<32x128xf32>
    %280 = arith.truncf %279 : vector<32x128xf32> to vector<32x128xbf16>
    %c0_170 = arith.constant 0 : index
    %c256 = arith.constant 256 : index
    %281 = vector.load %arg23[%c0_170, %c256] : memref<32x1152xbf16, #tpu.memory_space<vmem>>, vector<32x128xbf16>
    tpu.vector_store %arg23[%c0_170, %c256], %280 {strides = array<i32>} : memref<32x1152xbf16, #tpu.memory_space<vmem>>, vector<32x128xbf16>,
    %c1_i32_171 = arith.constant 1 : i32
    %282 = tpu.dynamic_rotate %260 by %c1_i32_171 dim 0 : vector<32x128xf32>, i32 -> vector<32x128xf32>
    %c3_172 = arith.constant 3 : index
    %c0_173 = arith.constant 0 : index
    %c0_174 = arith.constant 0 : index
    %283 = vector.load %arg14[%c3_172, %c0_173, %c0_174] : memref<9x32x1xf32, #tpu.memory_space<vmem>>, vector<1x32x1xf32>
    %284 = vector.shape_cast %283 : vector<1x32x1xf32> to vector<32x1xf32>
    %285 = vector.broadcast %284 : vector<32x1xf32> to vector<32x128xf32>
    %286 = arith.mulf %282, %285 : vector<32x128xf32>
    %287 = arith.truncf %286 : vector<32x128xf32> to vector<32x128xbf16>
    %c0_175 = arith.constant 0 : index
    %c384 = arith.constant 384 : index
    %288 = vector.load %arg23[%c0_175, %c384] : memref<32x1152xbf16, #tpu.memory_space<vmem>>, vector<32x128xbf16>
    tpu.vector_store %arg23[%c0_175, %c384], %287 {strides = array<i32>} : memref<32x1152xbf16, #tpu.memory_space<vmem>>, vector<32x128xbf16>,
    %289 = arith.truncf %260 : vector<32x128xf32> to vector<32x128xbf16>
    %c0_176 = arith.constant 0 : index
    %c512 = arith.constant 512 : index
    %290 = vector.load %arg23[%c0_176, %c512] : memref<32x1152xbf16, #tpu.memory_space<vmem>>, vector<32x128xbf16>
    tpu.vector_store %arg23[%c0_176, %c512], %289 {strides = array<i32>} : memref<32x1152xbf16, #tpu.memory_space<vmem>>, vector<32x128xbf16>,
    %c31_i32_177 = arith.constant 31 : i32
    %291 = tpu.dynamic_rotate %260 by %c31_i32_177 dim 0 : vector<32x128xf32>, i32 -> vector<32x128xf32>
    %c5_178 = arith.constant 5 : index
    %c0_179 = arith.constant 0 : index
    %c0_180 = arith.constant 0 : index
    %292 = vector.load %arg14[%c5_178, %c0_179, %c0_180] : memref<9x32x1xf32, #tpu.memory_space<vmem>>, vector<1x32x1xf32>
    %293 = vector.shape_cast %292 : vector<1x32x1xf32> to vector<32x1xf32>
    %294 = vector.broadcast %293 : vector<32x1xf32> to vector<32x128xf32>
    %295 = arith.mulf %291, %294 : vector<32x128xf32>
    %296 = arith.truncf %295 : vector<32x128xf32> to vector<32x128xbf16>
    %c0_181 = arith.constant 0 : index
    %c640 = arith.constant 640 : index
    %297 = vector.load %arg23[%c0_181, %c640] : memref<32x1152xbf16, #tpu.memory_space<vmem>>, vector<32x128xbf16>
    tpu.vector_store %arg23[%c0_181, %c640], %296 {strides = array<i32>} : memref<32x1152xbf16, #tpu.memory_space<vmem>>, vector<32x128xbf16>,
    %c29_i32_182 = arith.constant 29 : i32
    %298 = tpu.dynamic_rotate %260 by %c29_i32_182 dim 0 : vector<32x128xf32>, i32 -> vector<32x128xf32>
    %c6_183 = arith.constant 6 : index
    %c0_184 = arith.constant 0 : index
    %c0_185 = arith.constant 0 : index
    %299 = vector.load %arg14[%c6_183, %c0_184, %c0_185] : memref<9x32x1xf32, #tpu.memory_space<vmem>>, vector<1x32x1xf32>
    %300 = vector.shape_cast %299 : vector<1x32x1xf32> to vector<32x1xf32>
    %301 = vector.broadcast %300 : vector<32x1xf32> to vector<32x128xf32>
    %302 = arith.mulf %298, %301 : vector<32x128xf32>
    %303 = arith.truncf %302 : vector<32x128xf32> to vector<32x128xbf16>
    %c0_186 = arith.constant 0 : index
    %c768 = arith.constant 768 : index
    %304 = vector.load %arg23[%c0_186, %c768] : memref<32x1152xbf16, #tpu.memory_space<vmem>>, vector<32x128xbf16>
    tpu.vector_store %arg23[%c0_186, %c768], %303 {strides = array<i32>} : memref<32x1152xbf16, #tpu.memory_space<vmem>>, vector<32x128xbf16>,
    %c28_i32_187 = arith.constant 28 : i32
    %305 = tpu.dynamic_rotate %260 by %c28_i32_187 dim 0 : vector<32x128xf32>, i32 -> vector<32x128xf32>
    %c7_188 = arith.constant 7 : index
    %c0_189 = arith.constant 0 : index
    %c0_190 = arith.constant 0 : index
    %306 = vector.load %arg14[%c7_188, %c0_189, %c0_190] : memref<9x32x1xf32, #tpu.memory_space<vmem>>, vector<1x32x1xf32>
    %307 = vector.shape_cast %306 : vector<1x32x1xf32> to vector<32x1xf32>
    %308 = vector.broadcast %307 : vector<32x1xf32> to vector<32x128xf32>
    %309 = arith.mulf %305, %308 : vector<32x128xf32>
    %310 = arith.truncf %309 : vector<32x128xf32> to vector<32x128xbf16>
    %c0_191 = arith.constant 0 : index
    %c896 = arith.constant 896 : index
    %311 = vector.load %arg23[%c0_191, %c896] : memref<32x1152xbf16, #tpu.memory_space<vmem>>, vector<32x128xbf16>
    tpu.vector_store %arg23[%c0_191, %c896], %310 {strides = array<i32>} : memref<32x1152xbf16, #tpu.memory_space<vmem>>, vector<32x128xbf16>,
    %c27_i32_192 = arith.constant 27 : i32
    %312 = tpu.dynamic_rotate %260 by %c27_i32_192 dim 0 : vector<32x128xf32>, i32 -> vector<32x128xf32>
    %c8_193 = arith.constant 8 : index
    %c0_194 = arith.constant 0 : index
    %c0_195 = arith.constant 0 : index
    %313 = vector.load %arg14[%c8_193, %c0_194, %c0_195] : memref<9x32x1xf32, #tpu.memory_space<vmem>>, vector<1x32x1xf32>
    %314 = vector.shape_cast %313 : vector<1x32x1xf32> to vector<32x1xf32>
    %315 = vector.broadcast %314 : vector<32x1xf32> to vector<32x128xf32>
    %316 = arith.mulf %312, %315 : vector<32x128xf32>
    %317 = arith.truncf %316 : vector<32x128xf32> to vector<32x128xbf16>
    %c0_196 = arith.constant 0 : index
    %c1024 = arith.constant 1024 : index
    %318 = vector.load %arg23[%c0_196, %c1024] : memref<32x1152xbf16, #tpu.memory_space<vmem>>, vector<32x128xbf16>
    tpu.vector_store %arg23[%c0_196, %c1024], %317 {strides = array<i32>} : memref<32x1152xbf16, #tpu.memory_space<vmem>>, vector<32x128xbf16>,
    %c0_197 = arith.constant 0 : index
    %c0_198 = arith.constant 0 : index
    %319 = vector.load %arg23[%c0_197, %c0_198] : memref<32x1152xbf16, #tpu.memory_space<vmem>>, vector<32x1152xbf16>
    %c0_199 = arith.constant 0 : index
    %c0_200 = arith.constant 0 : index
    %320 = vector.load %arg4[%c0_199, %c0_200] : memref<1152x128xbf16, #tpu.memory_space<vmem>>, vector<1152x128xbf16>
    %cst_201 = arith.constant dense<0.000000e+00> : vector<32x128xf32>
    %321 = tpu.matmul %319, %320, %cst_201 {dimension_numbers = #tpu.dot_dimension_numbers<[1], [0], [0], [1], [0, 0, 1, 1], [], []>} : vector<32x1152xbf16>, vector<1152x128xbf16>, vector<32x128xf32> -> vector<32x128xf32>
    %c0_202 = arith.constant 0 : index
    %c0_203 = arith.constant 0 : index
    %322 = vector.load %arg11[%c0_202, %c0_203] : memref<1x128xf32, #tpu.memory_space<vmem>>, vector<1x128xf32>
    %c0_204 = arith.constant 0 : index
    %c0_205 = arith.constant 0 : index
    %323 = vector.load %arg12[%c0_204, %c0_205] : memref<1x128xf32, #tpu.memory_space<vmem>>, vector<1x128xf32>
    %cst_206 = arith.constant dense<0.000000e+00> : vector<128xf32>
    %324 = vector.multi_reduction <add>, %321, %cst_206 [0] : vector<32x128xf32> to vector<128xf32>
    %325 = vector.shape_cast %324 : vector<128xf32> to vector<1x128xf32>
    %cst_207 = arith.constant 3.125000e-02 : f32
    %326 = vector.broadcast %cst_207 : f32 to vector<1x128xf32>
    %327 = arith.mulf %325, %326 : vector<1x128xf32>
    %328 = arith.mulf %321, %321 : vector<32x128xf32>
    %cst_208 = arith.constant dense<0.000000e+00> : vector<128xf32>
    %329 = vector.multi_reduction <add>, %328, %cst_208 [0] : vector<32x128xf32> to vector<128xf32>
    %330 = vector.shape_cast %329 : vector<128xf32> to vector<1x128xf32>
    %cst_209 = arith.constant 3.125000e-02 : f32
    %331 = vector.broadcast %cst_209 : f32 to vector<1x128xf32>
    %332 = arith.mulf %330, %331 : vector<1x128xf32>
    %333 = arith.mulf %327, %327 : vector<1x128xf32>
    %334 = arith.subf %332, %333 : vector<1x128xf32>
    %cst_210 = arith.constant 0.000000e+00 : f32
    %335 = vector.broadcast %cst_210 : f32 to vector<1x128xf32>
    %336 = arith.maximumf %334, %335 : vector<1x128xf32>
    %cst_211 = arith.constant 9.99999974E-6 : f32
    %337 = vector.broadcast %cst_211 : f32 to vector<1x128xf32>
    %338 = arith.addf %336, %337 : vector<1x128xf32>
    %339 = math.rsqrt %338 : vector<1x128xf32>
    %340 = arith.mulf %322, %339 : vector<1x128xf32>
    %341 = arith.mulf %327, %340 : vector<1x128xf32>
    %342 = arith.subf %323, %341 : vector<1x128xf32>
    %343 = vector.broadcast %340 : vector<1x128xf32> to vector<32x128xf32>
    %344 = arith.mulf %321, %343 : vector<32x128xf32>
    %345 = vector.broadcast %342 : vector<1x128xf32> to vector<32x128xf32>
    %346 = arith.addf %344, %345 : vector<32x128xf32>
    %cst_212 = arith.constant 0.000000e+00 : f32
    %347 = vector.broadcast %cst_212 : f32 to vector<32x128xf32>
    %348 = arith.maximumf %346, %347 : vector<32x128xf32>
    %c31_i32_213 = arith.constant 31 : i32
    %349 = tpu.dynamic_rotate %348 by %c31_i32_213 dim 0 : vector<32x128xf32>, i32 -> vector<32x128xf32>
    %350 = arith.maximumf %348, %349 : vector<32x128xf32>
    %c28_i32_214 = arith.constant 28 : i32
    %351 = tpu.dynamic_rotate %348 by %c28_i32_214 dim 0 : vector<32x128xf32>, i32 -> vector<32x128xf32>
    %352 = arith.maximumf %350, %351 : vector<32x128xf32>
    %c27_i32_215 = arith.constant 27 : i32
    %353 = tpu.dynamic_rotate %348 by %c27_i32_215 dim 0 : vector<32x128xf32>, i32 -> vector<32x128xf32>
    %354 = arith.maximumf %352, %353 : vector<32x128xf32>
    %355 = arith.truncf %354 : vector<32x128xf32> to vector<32x128xbf16>
    %c0_216 = arith.constant 0 : index
    %c0_217 = arith.constant 0 : index
    %356 = vector.load %arg24[%c0_216, %c0_217] : memref<32x512xbf16, #tpu.memory_space<vmem>>, vector<32x128xbf16>
    tpu.vector_store %arg24[%c0_216, %c0_217], %355 {strides = array<i32>} : memref<32x512xbf16, #tpu.memory_space<vmem>>, vector<32x128xbf16>,
    %c30_i32 = arith.constant 30 : i32
    %357 = tpu.dynamic_rotate %354 by %c30_i32 dim 0 : vector<32x128xf32>, i32 -> vector<32x128xf32>
    %358 = arith.truncf %357 : vector<32x128xf32> to vector<32x128xbf16>
    %c0_218 = arith.constant 0 : index
    %c128_219 = arith.constant 128 : index
    %359 = vector.load %arg24[%c0_218, %c128_219] : memref<32x512xbf16, #tpu.memory_space<vmem>>, vector<32x128xbf16>
    tpu.vector_store %arg24[%c0_218, %c128_219], %358 {strides = array<i32>} : memref<32x512xbf16, #tpu.memory_space<vmem>>, vector<32x128xbf16>,
    %c24_i32 = arith.constant 24 : i32
    %360 = tpu.dynamic_rotate %354 by %c24_i32 dim 0 : vector<32x128xf32>, i32 -> vector<32x128xf32>
    %361 = arith.truncf %360 : vector<32x128xf32> to vector<32x128xbf16>
    %c0_220 = arith.constant 0 : index
    %c256_221 = arith.constant 256 : index
    %362 = vector.load %arg24[%c0_220, %c256_221] : memref<32x512xbf16, #tpu.memory_space<vmem>>, vector<32x128xbf16>
    tpu.vector_store %arg24[%c0_220, %c256_221], %361 {strides = array<i32>} : memref<32x512xbf16, #tpu.memory_space<vmem>>, vector<32x128xbf16>,
    %c22_i32 = arith.constant 22 : i32
    %363 = tpu.dynamic_rotate %354 by %c22_i32 dim 0 : vector<32x128xf32>, i32 -> vector<32x128xf32>
    %364 = arith.truncf %363 : vector<32x128xf32> to vector<32x128xbf16>
    %c0_222 = arith.constant 0 : index
    %c384_223 = arith.constant 384 : index
    %365 = vector.load %arg24[%c0_222, %c384_223] : memref<32x512xbf16, #tpu.memory_space<vmem>>, vector<32x128xbf16>
    tpu.vector_store %arg24[%c0_222, %c384_223], %364 {strides = array<i32>} : memref<32x512xbf16, #tpu.memory_space<vmem>>, vector<32x128xbf16>,
    %c0_224 = arith.constant 0 : index
    %c0_225 = arith.constant 0 : index
    %366 = vector.load %arg24[%c0_224, %c0_225] : memref<32x512xbf16, #tpu.memory_space<vmem>>, vector<1x512xbf16>
    %c16 = arith.constant 16 : index
    %c0_226 = arith.constant 0 : index
    %367 = vector.load %arg24[%c16, %c0_226] : memref<32x512xbf16, #tpu.memory_space<vmem>>, vector<1x512xbf16>
    %368 = tpu.concatenate %366, %367 in 0 : vector<1x512xbf16>, vector<1x512xbf16> -> vector<2x512xbf16>
    %c0_227 = arith.constant 0 : index
    %c0_228 = arith.constant 0 : index
    %369 = vector.load %arg16[%c0_227, %c0_228] : memref<512x256xbf16, #tpu.memory_space<vmem>>, vector<512x256xbf16>
    %cst_229 = arith.constant dense<0.000000e+00> : vector<2x256xf32>
    %370 = tpu.matmul %368, %369, %cst_229 {dimension_numbers = #tpu.dot_dimension_numbers<[1], [0], [0], [1], [0, 0, 1, 1], [], []>} : vector<2x512xbf16>, vector<512x256xbf16>, vector<2x256xf32> -> vector<2x256xf32>
    %c0_230 = arith.constant 0 : index
    %c0_231 = arith.constant 0 : index
    %371 = vector.load %arg17[%c0_230, %c0_231] : memref<1x256xf32, #tpu.memory_space<vmem>>, vector<1x256xf32>
    %372 = vector.broadcast %371 : vector<1x256xf32> to vector<2x256xf32>
    %373 = arith.addf %370, %372 : vector<2x256xf32>
    %cst_232 = arith.constant 0.000000e+00 : f32
    %374 = vector.broadcast %cst_232 : f32 to vector<2x256xf32>
    %375 = arith.maximumf %373, %374 : vector<2x256xf32>
    %376 = arith.truncf %375 : vector<2x256xf32> to vector<2x256xbf16>
    %c0_233 = arith.constant 0 : index
    %c0_234 = arith.constant 0 : index
    %377 = vector.load %arg18[%c0_233, %c0_234] : memref<256x256xbf16, #tpu.memory_space<vmem>>, vector<256x256xbf16>
    %cst_235 = arith.constant dense<0.000000e+00> : vector<2x256xf32>
    %378 = tpu.matmul %376, %377, %cst_235 {dimension_numbers = #tpu.dot_dimension_numbers<[1], [0], [0], [1], [0, 0, 1, 1], [], []>} : vector<2x256xbf16>, vector<256x256xbf16>, vector<2x256xf32> -> vector<2x256xf32>
    %c0_236 = arith.constant 0 : index
    %c0_237 = arith.constant 0 : index
    %379 = vector.load %arg19[%c0_236, %c0_237] : memref<1x256xf32, #tpu.memory_space<vmem>>, vector<1x256xf32>
    %380 = vector.broadcast %379 : vector<1x256xf32> to vector<2x256xf32>
    %381 = arith.addf %378, %380 : vector<2x256xf32>
    %cst_238 = arith.constant 0.000000e+00 : f32
    %382 = vector.broadcast %cst_238 : f32 to vector<2x256xf32>
    %383 = arith.maximumf %381, %382 : vector<2x256xf32>
    %384 = arith.truncf %383 : vector<2x256xf32> to vector<2x256xbf16>
    %c0_239 = arith.constant 0 : index
    %c0_240 = arith.constant 0 : index
    %385 = vector.load %arg20[%c0_239, %c0_240] : memref<256x128xbf16, #tpu.memory_space<vmem>>, vector<256x128xbf16>
    %cst_241 = arith.constant dense<0.000000e+00> : vector<2x128xf32>
    %386 = tpu.matmul %384, %385, %cst_241 {dimension_numbers = #tpu.dot_dimension_numbers<[1], [0], [0], [1], [0, 0, 1, 1], [], []>} : vector<2x256xbf16>, vector<256x128xbf16>, vector<2x128xf32> -> vector<2x128xf32>
    %c0_242 = arith.constant 0 : index
    %c0_243 = arith.constant 0 : index
    %387 = vector.load %arg21[%c0_242, %c0_243] : memref<1x128xf32, #tpu.memory_space<vmem>>, vector<1x128xf32>
    %388 = vector.broadcast %387 : vector<1x128xf32> to vector<2x128xf32>
    %389 = arith.addf %386, %388 : vector<2x128xf32>
    %cst_244 = arith.constant dense<0xFF800000> : vector<2xf32>
    %390 = vector.multi_reduction <maximumf>, %389, %cst_244 [1] : vector<2x128xf32> to vector<2xf32>
    %391 = vector.shape_cast %390 : vector<2xf32> to vector<2x1xf32>
    %392 = vector.broadcast %391 : vector<2x1xf32> to vector<2x128xf32>
    %393 = arith.subf %389, %392 : vector<2x128xf32>
    %394 = math.exp %393 : vector<2x128xf32>
    %cst_245 = arith.constant dense<0.000000e+00> : vector<2xf32>
    %395 = vector.multi_reduction <add>, %394, %cst_245 [1] : vector<2x128xf32> to vector<2xf32>
    %396 = vector.shape_cast %395 : vector<2xf32> to vector<2x1xf32>
    %397 = math.log %396 : vector<2x1xf32>
    %398 = vector.broadcast %397 : vector<2x1xf32> to vector<2x128xf32>
    %399 = arith.subf %393, %398 : vector<2x128xf32>
    %c0_246 = arith.constant 0 : index
    %c0_247 = arith.constant 0 : index
    %400 = vector.load %arg22[%c0_246, %c0_247] : memref<2x128xf32, #tpu.memory_space<vmem>>, vector<2x128xf32>
    tpu.vector_store %arg22[%c0_246, %c0_247], %399 {strides = array<i32>} : memref<2x128xf32, #tpu.memory_space<vmem>>, vector<2x128xf32>,
    return
  }
}

</mosaic_0001>

<bundles_post_ra>
// kernel: cifar_cnn_forward.1
= control target key start
LH: loop header
LB: loop body
LE: loop exit
PB: predicated region body
PF: predicated region fallthrough
CT: control target
= control target key end

     0   :  { %s11843_s0 = inlined_call_operand.vmem [shape: bf16[128,16], index: 0, kind: input, shape index: {}]   ;;  %s11844_s1 = inlined_call_operand.hbm [shape: bf16[16,64], index: 1, kind: input, shape index: {}]   ;;  %s11845_s2 = inlined_call_operand.hbm [shape: bf16[9,64,64], index: 2, kind: input, shape index: {}]   ;;  %s11846_s3 = inlined_call_operand.hbm [shape: bf16[9,64,128], index: 3, kind: input, shape index: {}]   ;;  %s11847_s4 = inlined_call_operand.hbm [shape: bf16[1152,128], index: 4, kind: input, shape index: {}]   ;;  %s11848_s5 = inlined_call_operand.hbm [shape: f32[1,64], index: 5, kind: input, shape index: {}]   ;;  %s11849_s6 = inlined_call_operand.hbm [shape: f32[1,64], index: 6, kind: input, shape index: {}]   ;;  %s11850_s7 = inlined_call_operand.hbm [shape: f32[1,64], index: 7, kind: input, shape index: {}]   ;;  %s11851_s8 = inlined_call_operand.hbm [shape: f32[1,64], index: 8, kind: input, shape index: {}]   ;;  %s11852_s9 = inlined_call_operand.hbm [shape: f32[1,128], index: 9, kind: input, shape index: {}]   ;;  %s11853_s10 = inlined_call_operand.hbm [shape: f32[1,128], index: 10, kind: input, shape index: {}]   ;;  %s11854_s11 = inlined_call_operand.hbm [shape: f32[1,128], index: 11, kind: input, shape index: {}]   ;;  %s11855_s12 = inlined_call_operand.hbm [shape: f32[1,128], index: 12, kind: input, shape index: {}]   ;;  %s11856_s13 = inlined_call_operand.hbm [shape: f32[9,128,1], index: 13, kind: input, shape index: {}]   ;;  %s11857_s14 = inlined_call_operand.hbm [shape: f32[9,32,1], index: 14, kind: input, shape index: {}]   ;;  %s11858_s15 = inlined_call_operand.hbm [shape: bf16[32,128], index: 15, kind: input, shape index: {}]   ;;  %s11859_s16 = inlined_call_operand.vmem [shape: bf16[512,256], index: 16, kind: input, shape index: {}]   ;;  %s11860_s17 = inlined_call_operand.vmem [shape: f32[1,256], index: 17, kind: input, shape index: {}]   ;;  %s11861_s18 = inlined_call_operand.hbm [shape: bf16[256,256], index: 18, kind: input, shape index: {}]   ;;  %s11862_s19 = inlined_call_operand.hbm [shape: f32[1,256], index: 19, kind: input, shape index: {}]   ;;  %s11863_s20 = inlined_call_operand.hbm [shape: bf16[256,128], index: 20, kind: input, shape index: {}]   ;;  %s11864_s21 = inlined_call_operand.hbm [shape: f32[1,128], index: 21, kind: input, shape index: {}]   ;;  %s11865_s22 = inlined_call_operand.hbm [shape: f32[2,128], index: 22, kind: output, shape index: {}]  }
   0x1   :  { %11942 = sst [smem:[#allocation169_spill]] %s11843_s0 }
   0x2   :  { %11943 = sst [smem:[#allocation170_spill]] %s11844_s1 }
   0x3   :  { %11944 = sst [smem:[#allocation171_spill]] %s11845_s2 }
   0x4   :  { %11945 = sst [smem:[#allocation172_spill]] %s11846_s3 }
   0x5   :  { %11946 = sst [smem:[#allocation173_spill]] %s11847_s4 }
   0x6   :  { %11947 = sst [smem:[#allocation174_spill]] %s11848_s5 }
   0x7   :  { %11948 = sst [smem:[#allocation175_spill]] %s11849_s6 }
   0x8   :  { %27 = vsyncpa [#allocation5], 0 }
   0x9   :  { %28 = vsyncpa [#allocation8], 0 }
   0xa   :  { %29 = vsyncpa [#allocation11], 0 }
   0xb   :  { %30 = vsyncpa [#allocation14], 0 }
   0xc   :  { %31 = vsyncpa [#allocation17], 0 }
   0xd   :  { %32 = vsyncpa [#allocation20], 0 }
   0xe   :  { %33 = vsyncpa [#allocation23], 0 }
   0xf   :  { %34 = vsyncpa [#allocation26], 0 }
  0x10   :  { %35 = vsyncpa [#allocation29], 0 }
  0x11   :  { %36 = vsyncpa [#allocation32], 0 }
  0x12   :  { %37 = vsyncpa [#allocation6], 0  ;;  %s9226_s3 = smov [#allocation7]   ;;  %s9227_s29 = smov [#allocation10]  }
  0x13   :  { %s57_s28 = sshll.u32 %s9226_s3, 4  ;;  %s81_s30 = sshll.u32 %s9227_s29, 4  ;;  %s58_s28 = int_to_ptr.vmem [resolvable:$true] %s57_s28  ;;  %s82_s30 = int_to_ptr.vmem [resolvable:$true] %s81_s30 }
  0x14   :  { %s8812_s4 = scalar_lea.vmem %s58_s28, 4608  ;;  %p8817_p1 = scmp.lt.s32.totalorder %s58_s28, %s58_s28 }
  0x15   :  { %p8813_p0 = scmp.ne.s32.totalorder %s58_s28, %s8812_s4  ;;  %p8818_p2 = scmp.lt.s32.totalorder %s8812_s4, %s8812_s4 }
  0x17   :  { %p8819_p3 = por %p8818_p2, %p8817_p1 }
  0x19   :  { %p8820_p4 = pnand %p8819_p3, %p8813_p0 }
  0x1b   :  { %8823 = shalt.err (!%p8820_p4)
}
  0x1c   :  { %s9228_s0 = smov 64   ;;  %s9229_s23 = smov 4  }
  0x1d   :  { %s11949_s24 = sld [smem:[#allocation171_spill]]  ;;  %s8832_s6 = scalar_lea.vmem %s82_s30, 9216 }
  0x1e   :  { %p8833_p5 = scmp.ne.s32.totalorder %s82_s30, %s8832_s6  ;;  %p8837_p6 = scmp.lt.s32.totalorder %s82_s30, %s82_s30 }
  0x1f   :  { %p8838_p7 = scmp.lt.s32.totalorder %s8832_s6, %s8832_s6 }
  0x21   :  { %p8839_p8 = por %p8838_p7, %p8837_p6 }
  0x23   :  { %63 = dma.hbm_to_vmem [thread:$0]  %s11949_s24, 4608, %s58_s28, [#allocation8], %s9228_s0, %s9228_s0, %s9229_s23  }
  0x24   :  { %p8840_p9 = pnand %p8839_p8, %p8833_p5 }
  0x26   :  { %8843 = shalt.err (!%p8840_p9)
}
  0x27   :  { %s11950_s2 = sld [smem:[#allocation173_spill]]  ;;  %s9230_s27 = smov [#allocation13]  }
  0x28   :  { %s104_s3 = sshll.u32 %s9230_s27, 4  ;;  %s9231_s29 = smov [#allocation16]   ;;  %s105_s3 = int_to_ptr.vmem [resolvable:$true] %s104_s3 }
  0x29   :  { %s124_s4 = sshll.u32 %s9231_s29, 4  ;;  %s8852_s28 = scalar_lea.vmem %s105_s3, 16  ;;  %s125_s4 = int_to_ptr.vmem [resolvable:$true] %s124_s4 }
  0x2a   :  { %p8853_p10 = scmp.ne.s32.totalorder %s105_s3, %s8852_s28  ;;  %s8856_s1 = scalar_lea.vmem %s105_s3, 32 }
  0x2b   :  { %p8857_p11 = scmp.lt.s32.totalorder %s105_s3, %s105_s3  ;;  %p8858_p12 = scmp.lt.s32.totalorder %s8856_s1, %s8852_s28 }
  0x2d   :  { %87 = dma.hbm_to_vmem [thread:$0]  %s11950_s2, 9216, %s82_s30, [#allocation11], %s9228_s0, %s9228_s0, %s9229_s23  }
  0x2e   :  { %p8859_p13 = por %p8858_p12, %p8857_p11 }
  0x30   :  { %p8860_p0 = pnand %p8859_p13, %p8853_p10 }
  0x32   :  { %8863 = shalt.err (!%p8860_p0)
}
  0x33   :  { %s11951_s6 = sld [smem:[#allocation175_spill]]  ;;  %s8872_s25 = scalar_lea.vmem %s125_s4, 16 }
  0x34   :  { %p8873_p1 = scmp.ne.s32.totalorder %s125_s4, %s8872_s25  ;;  %s8876_s30 = scalar_lea.vmem %s125_s4, 32 }
  0x35   :  { %p8877_p2 = scmp.lt.s32.totalorder %s125_s4, %s125_s4  ;;  %p8878_p3 = scmp.lt.s32.totalorder %s8876_s30, %s8872_s25 }
  0x37   :  { %p8879_p4 = por %p8878_p3, %p8877_p2 }
  0x39   :  { %107 = dma.hbm_to_vmem [thread:$0]  %s11951_s6, 16, %s105_s3, [#allocation14]  }
  0x3a   :  { %p8880_p5 = pnand %p8879_p4, %p8873_p1 }
  0x3c   :  { %8883 = shalt.err (!%p8880_p5)
}
  0x3d   :  { %127 = dma.hbm_to_vmem [thread:$0]  %s11851_s8, 16, %s125_s4, [#allocation17]  }
  0x3e   :  { %s9232_s27 = smov [#allocation19]   ;;  %s9233_s28 = smov [#allocation22]  }
  0x3f   :  { %s144_s29 = sshll.u32 %s9232_s27, 4  ;;  %s164_s1 = sshll.u32 %s9233_s28, 4  ;;  %s145_s29 = int_to_ptr.vmem [resolvable:$true] %s144_s29  ;;  %s165_s1 = int_to_ptr.vmem [resolvable:$true] %s164_s1 }
  0x40   :  { %s8892_s5 = scalar_lea.vmem %s145_s29, 16  ;;  %s8896_s3 = scalar_lea.vmem %s145_s29, 32 }
  0x41   :  { %p8893_p6 = scmp.ne.s32.totalorder %s145_s29, %s8892_s5  ;;  %p8897_p7 = scmp.lt.s32.totalorder %s145_s29, %s145_s29 }
  0x42   :  { %p8898_p8 = scmp.lt.s32.totalorder %s8896_s3, %s8892_s5 }
  0x44   :  { %p8899_p9 = por %p8898_p8, %p8897_p7 }
  0x46   :  { %p8900_p10 = pnand %p8899_p9, %p8893_p6 }
  0x48   :  { %8903 = shalt.err (!%p8900_p10)
}
  0x49   :  { %147 = dma.hbm_to_vmem [thread:$0]  %s11853_s10, 16, %s145_s29, [#allocation20]  }
  0x4a   :  { %s8912_s25 = scalar_lea.vmem %s165_s1, 16  ;;  %s8916_s8 = scalar_lea.vmem %s165_s1, 32 }
  0x4b   :  { %p8913_p11 = scmp.ne.s32.totalorder %s165_s1, %s8912_s25  ;;  %p8917_p12 = scmp.lt.s32.totalorder %s165_s1, %s165_s1 }
  0x4c   :  { %p8918_p13 = scmp.lt.s32.totalorder %s8916_s8, %s8912_s25 }
  0x4e   :  { %p8919_p0 = por %p8918_p13, %p8917_p12 }
  0x50   :  { %p8920_p1 = pnand %p8919_p0, %p8913_p11 }
  0x52   :  { %8923 = shalt.err (!%p8920_p1)
}
  0x53   :  { %167 = dma.hbm_to_vmem [thread:$0]  %s11855_s12, 16, %s165_s1, [#allocation23]  }
  0x54   :  { %s9234_s26 = smov [#allocation25]   ;;  %s9235_s27 = smov [#allocation28]  }
  0x55   :  { %s185_s2 = sshll.u32 %s9234_s26, 4  ;;  %s213_s28 = sshll.u32 %s9235_s27, 4  ;;  %s186_s2 = int_to_ptr.vmem [resolvable:$true] %s185_s2  ;;  %s214_s28 = int_to_ptr.vmem [resolvable:$true] %s213_s28 }
  0x56   :  { %s8932_s5 = scalar_lea.vmem %s186_s2, 4608  ;;  %p8937_p3 = scmp.lt.s32.totalorder %s186_s2, %s186_s2 }
  0x57   :  { %p8933_p2 = scmp.ne.s32.totalorder %s186_s2, %s8932_s5  ;;  %p8938_p4 = scmp.lt.s32.totalorder %s8932_s5, %s8932_s5 }
  0x59   :  { %p8939_p5 = por %p8938_p4, %p8937_p3 }
  0x5b   :  { %p8940_p6 = pnand %p8939_p5, %p8933_p2 }
  0x5d   :  { %8943 = shalt.err (!%p8940_p6)
}
  0x5e   :  { %s9236_s10 = smov 128   ;;  %s9237_s29 = smov 8  }
  0x5f   :  { %191 = dma.hbm_to_vmem [thread:$0]  %s11857_s14, 4608, %s186_s2, [#allocation26], %s9236_s10, %s9236_s10, %s9237_s29  }
  0x60   :  { %s8952_s1 = scalar_lea.vmem %s214_s28, 4096  ;;  %p8957_p8 = scmp.lt.s32.totalorder %s214_s28, %s214_s28 }
  0x61   :  { %p8953_p7 = scmp.ne.s32.totalorder %s214_s28, %s8952_s1  ;;  %p8958_p9 = scmp.lt.s32.totalorder %s8952_s1, %s8952_s1 }
  0x63   :  { %p8959_p10 = por %p8958_p9, %p8957_p8 }
  0x65   :  { %p8960_p11 = pnand %p8959_p10, %p8953_p7 }
  0x67   :  { %8963 = shalt.err (!%p8960_p11)
}
  0x68   :  { %219 = dma.hbm_to_vmem [thread:$0]  %s11861_s18, 4096, %s214_s28, [#allocation29], %s9236_s10, %s9236_s10, %s9237_s29  }
  0x69   :  { %s9238_s25 = smov [#allocation31]   ;;  %s9239_s4 = smov [#allocation4]  }
  0x6a   :  { %s235_s8 = sshll.u32 %s9238_s25, 4  ;;  %s45_s30 = sshll.u32 %s9239_s4, 4  ;;  %s236_s8 = int_to_ptr.vmem [resolvable:$true] %s235_s8  ;;  %s46_s30 = int_to_ptr.vmem [resolvable:$true] %s45_s30 }
  0x6b   :  { %s8972_s14 = scalar_lea.vmem %s236_s8, 2048  ;;  %p8977_p13 = scmp.lt.s32.totalorder %s236_s8, %s236_s8 }
  0x6c   :  { %p8973_p12 = scmp.ne.s32.totalorder %s236_s8, %s8972_s14  ;;  %p8978_p0 = scmp.lt.s32.totalorder %s8972_s14, %s8972_s14 }
  0x6e   :  { %p8979_p1 = por %p8978_p0, %p8977_p13 }
  0x70   :  { %p8980_p2 = pnand %p8979_p1, %p8973_p12 }
  0x72   :  { %8983 = shalt.err (!%p8980_p2)
}
  0x73   :  { %241 = dma.hbm_to_vmem [thread:$0]  %s11863_s20, 2048, %s236_s8, [#allocation32], %s9228_s0, %s9228_s0, %s9229_s23  }
  0x74   :  { %s8992_s18 = scalar_lea.vmem %s46_s30, 128  ;;  %p8997_p4 = scmp.lt.s32.totalorder %s46_s30, %s46_s30 }
  0x75   :  { %p8993_p3 = scmp.ne.s32.totalorder %s46_s30, %s8992_s18  ;;  %p8998_p5 = scmp.lt.s32.totalorder %s8992_s18, %s8992_s18 }
  0x77   :  { %p8999_p6 = por %p8998_p5, %p8997_p4 }
  0x79   :  { %p9000_p7 = pnand %p8999_p6, %p8993_p3 }
  0x7b   :  { %9003 = shalt.err (!%p9000_p7)
}
  0x7c   :  { %s11952_s5 = sld [smem:[#allocation170_spill]]  ;;  %s9240_s3 = smov [#allocation9]  }
  0x7d   :  { %s69_s12 = sshll.u32 %s9240_s3, 4  ;;  %s9241_s1 = smov [#allocation12]   ;;  %s70_s12 = int_to_ptr.vmem [resolvable:$true] %s69_s12 }
  0x7e   :  { %s94_s24 = sshll.u32 %s9241_s1, 4  ;;  %s9012_s20 = scalar_lea.vmem %s70_s12, 4608  ;;  %s95_s24 = int_to_ptr.vmem [resolvable:$true] %s94_s24 }
  0x7f   :  { %p9013_p8 = scmp.ne.s32.totalorder %s70_s12, %s9012_s20  ;;  %p9017_p9 = scmp.lt.s32.totalorder %s70_s12, %s70_s12 }
  0x80   :  { %p9018_p10 = scmp.lt.s32.totalorder %s9012_s20, %s9012_s20 }
  0x82   :  { %51 = dma.hbm_to_vmem [thread:$0]  %s11952_s5, 128, %s46_s30, [#allocation5], %s9228_s0, %s9228_s0, %s9229_s23  }
  0x83   :  { %p9019_p11 = por %p9018_p10, %p9017_p9 }
  0x85   :  { %p9020_p12 = pnand %p9019_p11, %p9013_p8 }
  0x87   :  { %9023 = shalt.err (!%p9020_p12)
}
  0x88   :  { %s11953_s8 = sld [smem:[#allocation172_spill]]  ;;  %s9032_s4 = scalar_lea.vmem %s95_s24, 16 }
  0x89   :  { %p9033_p13 = scmp.ne.s32.totalorder %s95_s24, %s9032_s4  ;;  %s9036_s30 = scalar_lea.vmem %s95_s24, 32 }
  0x8a   :  { %p9037_p0 = scmp.lt.s32.totalorder %s95_s24, %s95_s24  ;;  %p9038_p1 = scmp.lt.s32.totalorder %s9036_s30, %s9032_s4 }
  0x8c   :  { %p9039_p2 = por %p9038_p1, %p9037_p0 }
  0x8e   :  { %75 = dma.hbm_to_vmem [thread:$0]  %s11953_s8, 4608, %s70_s12, [#allocation8], %s9228_s0, %s9228_s0, %s9229_s23  }
  0x8f   :  { %p9040_p3 = pnand %p9039_p2, %p9033_p13 }
  0x91   :  { %9043 = shalt.err (!%p9040_p3)
}
  0x92   :  { %s11954_s2 = sld [smem:[#allocation174_spill]]  ;;  %s9242_s18 = smov [#allocation15]  }
  0x93   :  { %s114_s27 = sshll.u32 %s9242_s18, 4  ;;  %s9243_s28 = smov [#allocation18]   ;;  %s115_s27 = int_to_ptr.vmem [resolvable:$true] %s114_s27 }
  0x94   :  { %s134_s5 = sshll.u32 %s9243_s28, 4  ;;  %s9052_s3 = scalar_lea.vmem %s115_s27, 16  ;;  %s135_s5 = int_to_ptr.vmem [resolvable:$true] %s134_s5 }
  0x95   :  { %p9053_p4 = scmp.ne.s32.totalorder %s115_s27, %s9052_s3  ;;  %s9056_s12 = scalar_lea.vmem %s115_s27, 32 }
  0x96   :  { %p9057_p5 = scmp.lt.s32.totalorder %s115_s27, %s115_s27  ;;  %p9058_p6 = scmp.lt.s32.totalorder %s9056_s12, %s9052_s3 }
  0x98   :  { %97 = dma.hbm_to_vmem [thread:$0]  %s11954_s2, 16, %s95_s24, [#allocation11]  }
  0x99   :  { %p9059_p7 = por %p9058_p6, %p9057_p5 }
  0x9b   :  { %p9060_p8 = pnand %p9059_p7, %p9053_p4 }
  0x9d   :  { %9063 = shalt.err (!%p9060_p8)
}
  0x9e   :  { %117 = dma.hbm_to_vmem [thread:$0]  %s11850_s7, 16, %s115_s27, [#allocation14]  }
  0x9f   :  { %s9072_s6 = scalar_lea.vmem %s135_s5, 16  ;;  %s9076_s24 = scalar_lea.vmem %s135_s5, 32 }
  0xa0   :  { %p9073_p9 = scmp.ne.s32.totalorder %s135_s5, %s9072_s6  ;;  %p9077_p10 = scmp.lt.s32.totalorder %s135_s5, %s135_s5 }
  0xa1   :  { %p9078_p11 = scmp.lt.s32.totalorder %s9076_s24, %s9072_s6 }
  0xa3   :  { %p9079_p12 = por %p9078_p11, %p9077_p10 }
  0xa5   :  { %p9080_p13 = pnand %p9079_p12, %p9073_p9 }
  0xa7   :  { %9083 = shalt.err (!%p9080_p13)
}
  0xa8   :  { %137 = dma.hbm_to_vmem [thread:$0]  %s11852_s9, 16, %s135_s5, [#allocation17]  }
  0xa9   :  { %s9244_s4 = smov [#allocation21]   ;;  %s9245_s14 = smov [#allocation24]  }
  0xaa   :  { %s154_s30 = sshll.u32 %s9244_s4, 4  ;;  %s173_s26 = sshll.u32 %s9245_s14, 4  ;;  %s155_s30 = int_to_ptr.vmem [resolvable:$true] %s154_s30  ;;  %s174_s26 = int_to_ptr.vmem [resolvable:$true] %s173_s26 }
  0xab   :  { %s9092_s2 = scalar_lea.vmem %s155_s30, 16  ;;  %s9096_s7 = scalar_lea.vmem %s155_s30, 32 }
  0xac   :  { %p9093_p0 = scmp.ne.s32.totalorder %s155_s30, %s9092_s2  ;;  %p9097_p1 = scmp.lt.s32.totalorder %s155_s30, %s155_s30 }
  0xad   :  { %p9098_p2 = scmp.lt.s32.totalorder %s9096_s7, %s9092_s2 }
  0xaf   :  { %p9099_p3 = por %p9098_p2, %p9097_p1 }
  0xb1   :  { %p9100_p4 = pnand %p9099_p3, %p9093_p0 }
  0xb3   :  { %9103 = shalt.err (!%p9100_p4)
}
  0xb4   :  { %157 = dma.hbm_to_vmem [thread:$0]  %s11854_s11, 16, %s155_s30, [#allocation20]  }
  0xb5   :  { %s9112_s28 = scalar_lea.vmem %s174_s26, 18432  ;;  %p9117_p6 = scmp.lt.s32.totalorder %s174_s26, %s174_s26 }
  0xb6   :  { %p9113_p5 = scmp.ne.s32.totalorder %s174_s26, %s9112_s28  ;;  %p9118_p7 = scmp.lt.s32.totalorder %s9112_s28, %s9112_s28 }
  0xb8   :  { %p9119_p8 = por %p9118_p7, %p9117_p6 }
  0xba   :  { %p9120_p9 = pnand %p9119_p8, %p9113_p5 }
  0xbc   :  { %9123 = shalt.err (!%p9120_p9)
}
  0xbd   :  { %179 = dma.hbm_to_vmem [thread:$0]  %s11856_s13, 18432, %s174_s26, [#allocation23], %s9236_s10, %s9236_s10, %s9237_s29  }
  0xbe   :  { %s9246_s3 = smov [#allocation27]   ;;  %s9247_s1 = smov [#allocation30]  }
  0xbf   :  { %s197_s12 = sshll.u32 %s9246_s3, 4  ;;  %s226_s20 = sshll.u32 %s9247_s1, 4  ;;  %s198_s12 = int_to_ptr.vmem [resolvable:$true] %s197_s12  ;;  %s227_s20 = int_to_ptr.vmem [resolvable:$true] %s226_s20 }
  0xc0   :  { %s9132_s11 = scalar_lea.vmem %s198_s12, 256  ;;  %p9137_p11 = scmp.lt.s32.totalorder %s198_s12, %s198_s12 }
  0xc1   :  { %p9133_p10 = scmp.ne.s32.totalorder %s198_s12, %s9132_s11  ;;  %p9138_p12 = scmp.lt.s32.totalorder %s9132_s11, %s9132_s11 }
  0xc3   :  { %p9139_p13 = por %p9138_p12, %p9137_p11 }
  0xc5   :  { %p9140_p0 = pnand %p9139_p13, %p9133_p10 }
  0xc7   :  { %9143 = shalt.err (!%p9140_p0)
}
  0xc8   :  { %203 = dma.hbm_to_vmem [thread:$0]  %s11858_s15, 256, %s198_s12, [#allocation26], %s9228_s0, %s9228_s0, %s9229_s23  }
  0xc9   :  { %s9152_s13 = scalar_lea.vmem %s227_s20, 32  ;;  %p9157_p2 = scmp.lt.s32.totalorder %s227_s20, %s227_s20 }
  0xca   :  { %p9153_p1 = scmp.ne.s32.totalorder %s227_s20, %s9152_s13  ;;  %p9158_p3 = scmp.lt.s32.totalorder %s9152_s13, %s9152_s13 }
  0xcc   :  { %p9159_p4 = por %p9158_p3, %p9157_p2 }
  0xce   :  { %p9160_p5 = pnand %p9159_p4, %p9153_p1 }
  0xd0   :  { %9163 = shalt.err (!%p9160_p5)
}
  0xd1   :  { %229 = dma.hbm_to_vmem [thread:$0]  %s11862_s19, 32, %s227_s20, [#allocation29]  }
  0xd2   :  { %s9248_s25 = smov [#allocation33]  }
  0xd3   :  { %s248_s8 = sshll.u32 %s9248_s25, 4  ;;  %s249_s8 = int_to_ptr.vmem [resolvable:$true] %s248_s8 }
  0xd4   :  { %s9172_s4 = scalar_lea.vmem %s249_s8, 16  ;;  %s9176_s30 = scalar_lea.vmem %s249_s8, 32 }
  0xd5   :  { %p9173_p6 = scmp.ne.s32.totalorder %s249_s8, %s9172_s4  ;;  %p9177_p7 = scmp.lt.s32.totalorder %s249_s8, %s249_s8 }
  0xd6   :  { %p9178_p8 = scmp.lt.s32.totalorder %s9176_s30, %s9172_s4 }
  0xd8   :  { %p9179_p9 = por %p9178_p8, %p9177_p7 }
  0xda   :  { %p9180_p10 = pnand %p9179_p9, %p9173_p6 }
  0xdc   :  { %9183 = shalt.err (!%p9180_p10)
}
  0xdd   :  { %251 = dma.hbm_to_vmem [thread:$0]  %s11864_s21, 16, %s249_s8, [#allocation32]  }
  0xde   :  { %9204 = dma.done.wait [#allocation5], 128  }
  0xdf   :  { %9205 = vsyncadd [#allocation5], 4294967168 }
  0xe0   :  { %9206 = dma.done.wait [#allocation8], 9216  }
  0xe1   :  { %9207 = vsyncadd [#allocation8], 4294958080 }
  0xe2   :  { %9208 = dma.done.wait [#allocation11], 9232  }
  0xe3   :  { %9209 = vsyncadd [#allocation11], 4294958064 }
  0xe4   :  { %9210 = dma.done.wait [#allocation14], 32  }
  0xe5   :  { %9211 = vsyncadd [#allocation14], 4294967264 }
  0xe6   :  { %9212 = dma.done.wait [#allocation17], 32  }
  0xe7   :  { %9213 = vsyncadd [#allocation17], 4294967264 }
  0xe8   :  { %9214 = dma.done.wait [#allocation20], 32  }
  0xe9   :  { %9215 = vsyncadd [#allocation20], 4294967264 }
  0xea   :  { %9216 = dma.done.wait [#allocation23], 18448  }
  0xeb   :  { %9217 = vsyncadd [#allocation23], 4294948848 }
  0xec   :  { %9218 = dma.done.wait [#allocation26], 4864  }
  0xed   :  { %9219 = vsyncadd [#allocation26], 4294962432 }
  0xee   :  { %9220 = dma.done.wait [#allocation29], 4128  }
  0xef   :  { %9221 = vsyncadd [#allocation29], 4294963168 }
  0xf0   :  { %9222 = dma.done.wait [#allocation32], 2064  }
  0xf1   :  { %9223 = vsyncadd [#allocation32], 4294965232  ;;  %v9249_v0 = vmov 0   ;;  %v713_v1 = vld [vmem:[#allocation24 + $0x10] sm:$0xff]  ;;  %v711_v2 = vld [vmem:[#allocation24] sm:$0xff]  ;;  %s11955_s23 = sld [smem:[#allocation169_spill]] }
  0xf2   :  { %8443 = vset.pattern.permute.xlu1 %v9249_v0  ;;  %8442 = vset.pattern.permute.xlu0 %v9249_v0  ;;  %v8444_v3 = vld [vmem:[#allocation4] sm:$0xff]   ;;  %v714_v4 = vld [vmem:[#allocation24 + $0x18] sm:$0xff]  ;;  %vm374_vm0 = vcmask 130048   ;;  %v715_v9 = vld [vmem:[#allocation24 + $0x20] sm:$0xff]  ;;  %vm498_vm1 = vcmask 523264   ;;  %vm6263_vm8 = vcmask 1040384  }
  0xf3   :  { %739 = vperm.xlu1 %8443, %v713_v1   ;;  %729 = vperm.xlu0 %8442, %v711_v2   ;;  %v712_v5 = vld [vmem:[#allocation24 + $0x8] sm:$0xff]  ;;  %v718_v11 = vld [vmem:[#allocation24 + $0x38] sm:$0xff]  ;;  %v717_v12 = vld [vmem:[#allocation24 + $0x30] sm:$0xff]  ;;  %vm6264_vm9 = vsmask.f32 256  ;;  %vm7176_vm11 = vcmask 1041408  }
  0xf4   :  { %8035 = vmatprep.subr.bf16.mxu0 %v8444_v3  ;;  %v716_v8 = vld [vmem:[#allocation24 + $0x28] sm:$0xff]  ;;  %v719_v16 = vld [vmem:[#allocation24 + $0x40] sm:$0xff]  ;;  %v722_v17 = vld [vmem:[#allocation24 + $0x58] sm:$0xff] }
  0xf5   :  { %8036 = vmatpush3.bf16.msra.mxu0 %v8444_v3  ;;  %v720_v15 = vld [vmem:[#allocation24 + $0x48] sm:$0xff]  ;;  %v721_v18 = vld [vmem:[#allocation24 + $0x50] sm:$0xff]  ;;  %v723_v22 = vld [vmem:[#allocation24 + $0x60] sm:$0xff] }
  0xf6   :  { %v724_v21 = vld [vmem:[#allocation24 + $0x68] sm:$0xff]  ;;  %v726_v23 = vld [vmem:[#allocation24 + $0x78] sm:$0xff]  ;;  %v725_v24 = vld [vmem:[#allocation24 + $0x70] sm:$0xff] }
  0xf7   :  { %v8445_v6 = vld [vmem:[%s11955_s23] sm:$0xff]   ;;  %v8446_v7 = vld [vmem:[%s11955_s23 + $0x8] sm:$0xff]   ;;  %744 = vperm.xlu1 %8443, %v714_v4   ;;  %734 = vperm.xlu0 %8442, %v712_v5   ;;  %v8447_v10 = vld [vmem:[%s11955_s23 + $0x10] sm:$0xff]  }
  0xf8   :  { %8037 = vmatprep.mubr.msk.bf16.mxu0 %vm374_vm0, %v8445_v6  ;;  %v8448_v13 = vld [vmem:[%s11955_s23 + $0x18] sm:$0xff]   ;;  %v8449_v14 = vld [vmem:[%s11955_s23 + $0x20] sm:$0xff]   ;;  %v8450_v19 = vld [vmem:[%s11955_s23 + $0x28] sm:$0xff]  }
  0xf9   :  { %8038 = vmatmul.mubr.msk.bf16.vlgmr.msra.gmra.mxu0 %vm374_vm0, %v8446_v7  ;;  %v8451_v20 = vld [vmem:[%s11955_s23 + $0x30] sm:$0xff]   ;;  %v8452_v25 = vld [vmem:[%s11955_s23 + $0x38] sm:$0xff]   ;;  %v1130_v27 = vld [vmem:[#allocation24 + $0x80] sm:$0xff] }
  0xfa   :  { %8041 = vmatprep.mubr.msk.bf16.mxu0 %vm374_vm0, %v8447_v10  ;;  %v1131_v26 = vld [vmem:[#allocation24 + $0x88] sm:$0xff]  ;;  %v1133_v28 = vld [vmem:[#allocation24 + $0x98] sm:$0xff]  ;;  %v1132_v29 = vld [vmem:[#allocation24 + $0x90] sm:$0xff] }
  0xfb   :  { %754 = vperm.xlu1 %8443, %v716_v8   ;;  %749 = vperm.xlu0 %8442, %v715_v9   ;;  %v1135_v30 = vld [vmem:[#allocation24 + $0xa8] sm:$0xff]  ;;  %v1134_v31 = vld [vmem:[#allocation24 + $0xa0] sm:$0xff]  ;;  %v1137_v32 = vld [vmem:[#allocation24 + $0xb8] sm:$0xff] }
  0xfc   :  { %v1136_v33 = vld [vmem:[#allocation24 + $0xb0] sm:$0xff]  ;;  %v1139_v34 = vld [vmem:[#allocation24 + $0xc8] sm:$0xff]  ;;  %v1138_v35 = vld [vmem:[#allocation24 + $0xc0] sm:$0xff] }
  0xfd   :  { %v1141_v36 = vld [vmem:[#allocation24 + $0xd8] sm:$0xff]  ;;  %v1140_v37 = vld [vmem:[#allocation24 + $0xd0] sm:$0xff]  ;;  %v1143_v38 = vld [vmem:[#allocation24 + $0xe8] sm:$0xff] }
  0xfe   :  { %v1142_v39 = vld [vmem:[#allocation24 + $0xe0] sm:$0xff]  ;;  %v1145_v40 = vld [vmem:[#allocation24 + $0xf8] sm:$0xff]  ;;  %v1144_v41 = vld [vmem:[#allocation24 + $0xf0] sm:$0xff] }
  0xff   :  { %764 = vperm.xlu1 %8443, %v718_v11   ;;  %759 = vperm.xlu0 %8442, %v717_v12   ;;  %v1455_v42 = vld [vmem:[#allocation24 + $0x108] sm:$0xff]  ;;  %v1454_v43 = vld [vmem:[#allocation24 + $0x100] sm:$0xff]  ;;  %v1457_v44 = vld [vmem:[#allocation24 + $0x118] sm:$0xff] }
 0x100   :  { %v1456_v45 = vld [vmem:[#allocation24 + $0x110] sm:$0xff]  ;;  %v1746_v46 = vld [vmem:[#allocation24 + $0x188] sm:$0xff]  ;;  %v1745_v47 = vld [vmem:[#allocation24 + $0x180] sm:$0xff] }
 0x101   :  { %8042 = vmatmul.mubr.msk.bf16.gmra.mxu0 %vm374_vm0, %v8448_v13  ;;  %v1748_v48 = vld [vmem:[#allocation24 + $0x198] sm:$0xff]  ;;  %v1747_v49 = vld [vmem:[#allocation24 + $0x190] sm:$0xff]  ;;  %v1459_v50 = vld [vmem:[#allocation24 + $0x128] sm:$0xff] }
 0x102   :  { %8045 = vmatprep.mubr.msk.bf16.mxu0 %vm374_vm0, %v8449_v14  ;;  %v1458_v51 = vld [vmem:[#allocation24 + $0x120] sm:$0xff]  ;;  %v1461_v52 = vld [vmem:[#allocation24 + $0x138] sm:$0xff]  ;;  %v1460_v53 = vld [vmem:[#allocation24 + $0x130] sm:$0xff] }
 0x103   :  { %774 = vperm.xlu1 %8443, %v720_v15   ;;  %769 = vperm.xlu0 %8442, %v719_v16   ;;  %v1750_v54 = vld [vmem:[#allocation24 + $0x1a8] sm:$0xff]  ;;  %v1749_v55 = vld [vmem:[#allocation24 + $0x1a0] sm:$0xff]  ;;  %v1752_v56 = vld [vmem:[#allocation24 + $0x1b8] sm:$0xff] }
 0x104   :  { %v1751_v57 = vld [vmem:[#allocation24 + $0x1b0] sm:$0xff]  ;;  %v1463_v58 = vld [vmem:[#allocation24 + $0x148] sm:$0xff]  ;;  %v1462_v59 = vld [vmem:[#allocation24 + $0x140] sm:$0xff] }
 0x105   :  { %v1465_v60 = vld [vmem:[#allocation24 + $0x158] sm:$0xff]  ;;  %v1464_v61 = vld [vmem:[#allocation24 + $0x150] sm:$0xff]  ;;  %v1754_v62 = vld [vmem:[#allocation24 + $0x1c8] sm:$0xff] }
 0x106   :  { %v1753_v63 = vld [vmem:[#allocation24 + $0x1c0] sm:$0xff]  ;;  %v1756_v0 = vld [vmem:[#allocation24 + $0x1d8] sm:$0xff]  ;;  %v1755_v1 = vld [vmem:[#allocation24 + $0x1d0] sm:$0xff] }
 0x107   :  { %784 = vperm.xlu1 %8443, %v722_v17   ;;  %779 = vperm.xlu0 %8442, %v721_v18   ;;  %v1467_v2 = vld [vmem:[#allocation24 + $0x168] sm:$0xff]  ;;  %v1466_v3 = vld [vmem:[#allocation24 + $0x160] sm:$0xff]  ;;  %v1469_v4 = vld [vmem:[#allocation24 + $0x178] sm:$0xff] }
 0x108   :  { %v1468_v5 = vld [vmem:[#allocation24 + $0x170] sm:$0xff]  ;;  %v1758_v6 = vld [vmem:[#allocation24 + $0x1e8] sm:$0xff]  ;;  %v1757_v7 = vld [vmem:[#allocation24 + $0x1e0] sm:$0xff] }
 0x109   :  { %8046 = vmatmul.mubr.msk.bf16.gmra.mxu0 %vm374_vm0, %v8450_v19  ;;  %v1760_v8 = vld [vmem:[#allocation24 + $0x1f8] sm:$0xff]  ;;  %v1759_v9 = vld [vmem:[#allocation24 + $0x1f0] sm:$0xff]  ;;  %v2037_v12 = vld [vmem:[#allocation24 + $0x288] sm:$0xff] }
 0x10a   :  { %8049 = vmatprep.mubr.msk.bf16.mxu0 %vm374_vm0, %v8451_v20  ;;  %v2036_v13 = vld [vmem:[#allocation24 + $0x280] sm:$0xff]  ;;  %v2039_v16 = vld [vmem:[#allocation24 + $0x298] sm:$0xff]  ;;  %v2038_v17 = vld [vmem:[#allocation24 + $0x290] sm:$0xff] }
 0x10b   :  { %794 = vperm.xlu1 %8443, %v724_v21   ;;  %789 = vperm.xlu0 %8442, %v723_v22   ;;  %v2328_v20 = vld [vmem:[#allocation24 + $0x308] sm:$0xff]  ;;  %v2327_v21 = vld [vmem:[#allocation24 + $0x300] sm:$0xff]  ;;  %vm11822_vm10 = vmand %vm6263_vm8, %vm6264_vm9 }
 0x10f   :  { %804 = vperm.xlu1 %8443, %v726_v23   ;;  %799 = vperm.xlu0 %8442, %v725_v24   ;;  %v2330_v24 = vld [vmem:[#allocation24 + $0x318] sm:$0xff] }
 0x111   :  { %8050 = vmatmul.mubr.msk.bf16.gmra.mxu0 %vm374_vm0, %v8452_v25  ;;  %v2329_v25 = vld [vmem:[#allocation24 + $0x310] sm:$0xff] }
 0x113   :  { %1153 = vperm.xlu1 %8443, %v1131_v26   ;;  %1148 = vperm.xlu0 %8442, %v1130_v27  }
 0x117   :  { %1163 = vperm.xlu1 %8443, %v1133_v28   ;;  %1158 = vperm.xlu0 %8442, %v1132_v29   ;;  %v2041_v28 = vld [vmem:[#allocation24 + $0x2a8] sm:$0xff]  ;;  %v2040_v29 = vld [vmem:[#allocation24 + $0x2a0] sm:$0xff] }
 0x11b   :  { %1173 = vperm.xlu1 %8443, %v1135_v30   ;;  %1168 = vperm.xlu0 %8442, %v1134_v31  }
 0x11f   :  { %1183 = vperm.xlu1 %8443, %v1137_v32   ;;  %1178 = vperm.xlu0 %8442, %v1136_v33   ;;  %v2043_v32 = vld [vmem:[#allocation24 + $0x2b8] sm:$0xff]  ;;  %v2042_v33 = vld [vmem:[#allocation24 + $0x2b0] sm:$0xff] }
 0x123   :  { %1193 = vperm.xlu1 %8443, %v1139_v34   ;;  %1188 = vperm.xlu0 %8442, %v1138_v35  }
 0x127   :  { %1203 = vperm.xlu1 %8443, %v1141_v36   ;;  %1198 = vperm.xlu0 %8442, %v1140_v37   ;;  %v2332_v36 = vld [vmem:[#allocation24 + $0x328] sm:$0xff]  ;;  %v2331_v37 = vld [vmem:[#allocation24 + $0x320] sm:$0xff] }
 0x12b   :  { %1213 = vperm.xlu1 %8443, %v1143_v38   ;;  %1208 = vperm.xlu0 %8442, %v1142_v39  }
 0x12f   :  { %1223 = vperm.xlu1 %8443, %v1145_v40   ;;  %1218 = vperm.xlu0 %8442, %v1144_v41   ;;  %v2334_v40 = vld [vmem:[#allocation24 + $0x338] sm:$0xff]  ;;  %v2333_v41 = vld [vmem:[#allocation24 + $0x330] sm:$0xff] }
 0x133   :  { %1477 = vperm.xlu1 %8443, %v1455_v42   ;;  %1472 = vperm.xlu0 %8442, %v1454_v43  }
 0x137   :  { %1487 = vperm.xlu1 %8443, %v1457_v44   ;;  %1482 = vperm.xlu0 %8442, %v1456_v45   ;;  %v2045_v44 = vld [vmem:[#allocation24 + $0x2c8] sm:$0xff]  ;;  %v2044_v45 = vld [vmem:[#allocation24 + $0x2c0] sm:$0xff] }
 0x13b   :  { %1768 = vperm.xlu1 %8443, %v1746_v46   ;;  %1763 = vperm.xlu0 %8442, %v1745_v47  }
 0x13f   :  { %1778 = vperm.xlu1 %8443, %v1748_v48   ;;  %1773 = vperm.xlu0 %8442, %v1747_v49   ;;  %v2047_v48 = vld [vmem:[#allocation24 + $0x2d8] sm:$0xff]  ;;  %v2046_v49 = vld [vmem:[#allocation24 + $0x2d0] sm:$0xff] }
 0x143   :  { %1497 = vperm.xlu1 %8443, %v1459_v50   ;;  %1492 = vperm.xlu0 %8442, %v1458_v51  }
 0x147   :  { %1507 = vperm.xlu1 %8443, %v1461_v52   ;;  %1502 = vperm.xlu0 %8442, %v1460_v53   ;;  %v2336_v52 = vld [vmem:[#allocation24 + $0x348] sm:$0xff]  ;;  %v2335_v53 = vld [vmem:[#allocation24 + $0x340] sm:$0xff] }
 0x14b   :  { %1788 = vperm.xlu1 %8443, %v1750_v54   ;;  %1783 = vperm.xlu0 %8442, %v1749_v55  }
 0x14f   :  { %1798 = vperm.xlu1 %8443, %v1752_v56   ;;  %1793 = vperm.xlu0 %8442, %v1751_v57   ;;  %v2338_v56 = vld [vmem:[#allocation24 + $0x358] sm:$0xff]  ;;  %v2337_v57 = vld [vmem:[#allocation24 + $0x350] sm:$0xff] }
 0x153   :  { %1517 = vperm.xlu1 %8443, %v1463_v58   ;;  %1512 = vperm.xlu0 %8442, %v1462_v59  }
 0x157   :  { %1527 = vperm.xlu1 %8443, %v1465_v60   ;;  %1522 = vperm.xlu0 %8442, %v1464_v61   ;;  %v2049_v60 = vld [vmem:[#allocation24 + $0x2e8] sm:$0xff]  ;;  %v2048_v61 = vld [vmem:[#allocation24 + $0x2e0] sm:$0xff] }
 0x15b   :  { %1808 = vperm.xlu1 %8443, %v1754_v62   ;;  %1803 = vperm.xlu0 %8442, %v1753_v63   ;;  %v8453_v62 = vld [vmem:[#allocation7 + $0x98] sm:$0xff]  }
 0x15c   :  { %8077 = vmatprep.subr.bf16.mxu0 %v8453_v62 }
 0x15d   :  { %8078 = vmatpush3.bf16.msra.mxu0 %v8453_v62 }
 0x15f   :  { %1818 = vperm.xlu1 %8443, %v1756_v0   ;;  %1813 = vperm.xlu0 %8442, %v1755_v1   ;;  %v2051_v1 = vld [vmem:[#allocation24 + $0x2f8] sm:$0xff] }
 0x163   :  { %1537 = vperm.xlu1 %8443, %v1467_v2   ;;  %1532 = vperm.xlu0 %8442, %v1466_v3   ;;  %v2050_v2 = vld [vmem:[#allocation24 + $0x2f0] sm:$0xff]  ;;  %v8454_v3 = vld [vmem:[#allocation7 + $0x90] sm:$0xff]  }
 0x164   :  { %8079 = vmatprep.subr.bf16.mxu0 %v8454_v3 }
 0x165   :  { %8080 = vmatpush3.bf16.msra.mxu0 %v8454_v3 }
 0x167   :  { %1547 = vperm.xlu1 %8443, %v1469_v4   ;;  %1542 = vperm.xlu0 %8442, %v1468_v5   ;;  %v8455_v4 = vld [vmem:[#allocation7 + $0x18] sm:$0xff]  }
 0x168   :  { %8053 = vmatprep.subr.bf16.mxu1 %v8455_v4 }
 0x169   :  { %8054 = vmatpush3.bf16.msra.mxu1 %v8455_v4 }
 0x16b   :  { %1828 = vperm.xlu1 %8443, %v1758_v6   ;;  %1823 = vperm.xlu0 %8442, %v1757_v7   ;;  %v2340_v7 = vld [vmem:[#allocation24 + $0x368] sm:$0xff] }
 0x16e   :  { %v9482_v10 = vpop.permute.xlu1 %739  ;;  %v9484_v11 = vpop.permute.xlu0 %729 }
 0x16f   :  { %1838 = vperm.xlu1 %8443, %v1760_v8   ;;  %1833 = vperm.xlu0 %8442, %v1759_v9   ;;  %v2339_v8 = vld [vmem:[#allocation24 + $0x360] sm:$0xff]  ;;  %v8456_v9 = vld [vmem:[#allocation7 + $0x88] sm:$0xff]  }
 0x170   :  { %8081 = vmatprep.subr.bf16.mxu0 %v8456_v9 }
 0x171   :  { %8082 = vmatpush3.bf16.msra.mxu0 %v8456_v9 }
 0x172   :  { %v9486_v14 = vpop.permute.xlu1 %744  ;;  %v9488_v15 = vpop.permute.xlu0 %734 }
 0x173   :  { %2059 = vperm.xlu1 %8443, %v2037_v12   ;;  %2054 = vperm.xlu0 %8442, %v2036_v13  }
 0x176   :  { %v9490_v18 = vpop.permute.xlu1 %754  ;;  %v9492_v19 = vpop.permute.xlu0 %749 }
 0x177   :  { %2069 = vperm.xlu1 %8443, %v2039_v16   ;;  %2064 = vperm.xlu0 %8442, %v2038_v17   ;;  %v8457_v16 = vld [vmem:[#allocation7 + $0x10] sm:$0xff]   ;;  %v2342_v17 = vld [vmem:[#allocation24 + $0x378] sm:$0xff] }
 0x178   :  { %8055 = vmatprep.subr.bf16.mxu1 %v8457_v16 }
 0x179   :  { %8056 = vmatpush3.bf16.msra.mxu1 %v8457_v16 }
 0x17a   :  { %v9494_v22 = vpop.permute.xlu1 %764  ;;  %v9496_v23 = vpop.permute.xlu0 %759 }
 0x17b   :  { %2350 = vperm.xlu1 %8443, %v2328_v20   ;;  %2345 = vperm.xlu0 %8442, %v2327_v21   ;;  %v2341_v20 = vld [vmem:[#allocation24 + $0x370] sm:$0xff] }
 0x17e   :  { %v9498_v26 = vpop.permute.xlu1 %774  ;;  %v9500_v27 = vpop.permute.xlu0 %769 }
 0x17f   :  { %11956 = vst [vmem:[#allocation46_spill] sm:$0xff] %v9498_v26  ;;  %11957 = vst [vmem:[#allocation47_spill] sm:$0xff] %v9500_v27  ;;  %2360 = vperm.xlu1 %8443, %v2330_v24   ;;  %2355 = vperm.xlu0 %8442, %v2329_v25   ;;  %v2619_v25 = vld [vmem:[#allocation24 + $0x388] sm:$0xff] }
 0x182   :  { %v9502_v30 = vpop.permute.xlu1 %784  ;;  %v9504_v31 = vpop.permute.xlu0 %779 }
 0x183   :  { %11958 = vst [vmem:[#allocation48_spill] sm:$0xff] %v9504_v31  ;;  %2079 = vperm.xlu1 %8443, %v2041_v28   ;;  %2074 = vperm.xlu0 %8442, %v2040_v29   ;;  %v2618_v28 = vld [vmem:[#allocation24 + $0x380] sm:$0xff]  ;;  %v8458_v29 = vld [vmem:[#allocation7 + $0x80] sm:$0xff]  }
 0x184   :  { %8083 = vmatprep.subr.bf16.mxu0 %v8458_v29 }
 0x185   :  { %8084 = vmatpush3.bf16.msra.mxu0 %v8458_v29 }
 0x186   :  { %v9506_v34 = vpop.permute.xlu1 %794  ;;  %v9508_v35 = vpop.permute.xlu0 %789 }
 0x187   :  { %2089 = vperm.xlu1 %8443, %v2043_v32   ;;  %2084 = vperm.xlu0 %8442, %v2042_v33   ;;  %v8459_v32 = vld [vmem:[#allocation7 + $0x8] sm:$0xff]  }
 0x188   :  { %8057 = vmatprep.subr.bf16.mxu1 %v8459_v32 }
 0x189   :  { %8058 = vmatpush3.bf16.msra.mxu1 %v8459_v32 }
 0x18a   :  { %v9510_v38 = vpop.permute.xlu1 %804  ;;  %v9512_v39 = vpop.permute.xlu0 %799 }
 0x18b   :  { %11959 = vst [vmem:[#allocation49_spill] sm:$0xff] %v9510_v38  ;;  %11960 = vst [vmem:[#allocation50_spill] sm:$0xff] %v9512_v39  ;;  %2370 = vperm.xlu1 %8443, %v2332_v36   ;;  %2365 = vperm.xlu0 %8442, %v2331_v37   ;;  %v2621_v37 = vld [vmem:[#allocation24 + $0x398] sm:$0xff] }
 0x18e   :  { %v9514_v42 = vpop.permute.xlu1 %1153  ;;  %v9516_v43 = vpop.permute.xlu0 %1148 }
 0x18f   :  { %11961 = vst [vmem:[#allocation51_spill] sm:$0xff] %v9514_v42  ;;  %11962 = vst [vmem:[#allocation52_spill] sm:$0xff] %v9516_v43  ;;  %2380 = vperm.xlu1 %8443, %v2334_v40   ;;  %2375 = vperm.xlu0 %8442, %v2333_v41   ;;  %v2620_v40 = vld [vmem:[#allocation24 + $0x390] sm:$0xff] }
 0x190   :  { %v9780_v42 = vld [vmem:[#allocation25 + $0x50] sm:$0xff] }
 0x191   :  { %12018 = vst [vmem:[#allocation108_spill] sm:$0xff] %v9780_v42 }
 0x192   :  { %v9518_v46 = vpop.permute.xlu1 %1163  ;;  %v9520_v47 = vpop.permute.xlu0 %1158 }
 0x193   :  { %11963 = vst [vmem:[#allocation53_spill] sm:$0xff] %v9518_v46  ;;  %11964 = vst [vmem:[#allocation54_spill] sm:$0xff] %v9520_v47  ;;  %2099 = vperm.xlu1 %8443, %v2045_v44   ;;  %2094 = vperm.xlu0 %8442, %v2044_v45   ;;  %v2910_v45 = vld [vmem:[#allocation24 + $0x408] sm:$0xff] }
 0x196   :  { %v9522_v50 = vpop.permute.xlu1 %1173  ;;  %v9524_v51 = vpop.permute.xlu0 %1168 }
 0x197   :  { %11965 = vst [vmem:[#allocation55_spill] sm:$0xff] %v9522_v50  ;;  %11966 = vst [vmem:[#allocation56_spill] sm:$0xff] %v9524_v51  ;;  %2109 = vperm.xlu1 %8443, %v2047_v48   ;;  %2104 = vperm.xlu0 %8442, %v2046_v49   ;;  %v2909_v48 = vld [vmem:[#allocation24 + $0x400] sm:$0xff]  ;;  %v8460_v49 = vld [vmem:[#allocation7] sm:$0xff]  }
 0x198   :  { %8059 = vmatprep.subr.bf16.mxu1 %v8460_v49 }
 0x199   :  { %8060 = vmatpush3.bf16.msra.mxu1 %v8460_v49 }
 0x19a   :  { %v9526_v54 = vpop.permute.xlu1 %1183  ;;  %v9528_v55 = vpop.permute.xlu0 %1178 }
 0x19b   :  { %11967 = vst [vmem:[#allocation57_spill] sm:$0xff] %v9526_v54  ;;  %11968 = vst [vmem:[#allocation58_spill] sm:$0xff] %v9528_v55  ;;  %2390 = vperm.xlu1 %8443, %v2336_v52   ;;  %2385 = vperm.xlu0 %8442, %v2335_v53  }
 0x19e   :  { %v9530_v58 = vpop.permute.xlu1 %1193  ;;  %v9532_v59 = vpop.permute.xlu0 %1188 }
 0x19f   :  { %11969 = vst [vmem:[#allocation59_spill] sm:$0xff] %v9530_v58  ;;  %11970 = vst [vmem:[#allocation60_spill] sm:$0xff] %v9532_v59  ;;  %2400 = vperm.xlu1 %8443, %v2338_v56   ;;  %2395 = vperm.xlu0 %8442, %v2337_v57   ;;  %v2626_v58 = vld [vmem:[#allocation24 + $0x3c0] sm:$0xff] }
 0x1a2   :  { %v9534_v63 = vpop.permute.xlu1 %1203  ;;  %v9536_v0 = vpop.permute.xlu0 %1198 }
 0x1a3   :  { %11971 = vst [vmem:[#allocation61_spill] sm:$0xff] %v9534_v63  ;;  %11972 = vst [vmem:[#allocation62_spill] sm:$0xff] %v9536_v0  ;;  %2119 = vperm.xlu1 %8443, %v2049_v60   ;;  %2114 = vperm.xlu0 %8442, %v2048_v61   ;;  %v2912_v60 = vld [vmem:[#allocation24 + $0x418] sm:$0xff]  ;;  %v2911_v61 = vld [vmem:[#allocation24 + $0x410] sm:$0xff] }
 0x1a6   :  { %v9538_v5 = vpop.permute.xlu1 %1213  ;;  %v9540_v6 = vpop.permute.xlu0 %1208 }
 0x1a7   :  { %11973 = vst [vmem:[#allocation63_spill] sm:$0xff] %v9538_v5  ;;  %11974 = vst [vmem:[#allocation64_spill] sm:$0xff] %v9540_v6  ;;  %2129 = vperm.xlu1 %8443, %v2051_v1   ;;  %2124 = vperm.xlu0 %8442, %v2050_v2   ;;  %v9568_v1 = vld [vmem:[#allocation7 + $0x38] sm:$0xff]   ;;  %v2916_v6 = vld [vmem:[#allocation24 + $0x438] sm:$0xff] }
 0x1a8   :  { %8101 = vmatprep.subr.bf16.mxu1 %v9568_v1 }
 0x1aa   :  { %v9542_v12 = vpop.permute.xlu1 %1223  ;;  %v9544_v13 = vpop.permute.xlu0 %1218 }
 0x1ab   :  { %11975 = vst [vmem:[#allocation65_spill] sm:$0xff] %v9542_v12  ;;  %11976 = vst [vmem:[#allocation66_spill] sm:$0xff] %v9544_v13  ;;  %2410 = vperm.xlu1 %8443, %v2340_v7   ;;  %2405 = vperm.xlu0 %8442, %v2339_v8  }
 0x1ae   :  { %v9546_v21 = vpop.permute.xlu1 %1477  ;;  %v9548_v24 = vpop.permute.xlu0 %1472 }
 0x1af   :  { %11977 = vst [vmem:[#allocation67_spill] sm:$0xff] %v9546_v21  ;;  %11978 = vst [vmem:[#allocation68_spill] sm:$0xff] %v9548_v24  ;;  %2420 = vperm.xlu1 %8443, %v2342_v17   ;;  %2415 = vperm.xlu0 %8442, %v2341_v20   ;;  %v2623_v20 = vld [vmem:[#allocation24 + $0x3a8] sm:$0xff]  ;;  %v9821_v24 = vld [vmem:[#allocation25 + $0x70] sm:$0xff] }
 0x1b0   :  { %12023 = vst [vmem:[#allocation113_spill] sm:$0xff] %v9821_v24 }
 0x1b2   :  { %v9550_v33 = vpop.permute.xlu1 %1487  ;;  %v9552_v36 = vpop.permute.xlu0 %1482 }
 0x1b3   :  { %11979 = vst [vmem:[#allocation69_spill] sm:$0xff] %v9550_v33  ;;  %11980 = vst [vmem:[#allocation70_spill] sm:$0xff] %v9552_v36  ;;  %2641 = vperm.xlu1 %8443, %v2619_v25   ;;  %2636 = vperm.xlu0 %8442, %v2618_v28   ;;  %v2622_v25 = vld [vmem:[#allocation24 + $0x3a0] sm:$0xff] }
 0x1b6   :  { %v9554_v41 = vpop.permute.xlu1 %1768  ;;  %v9556_v44 = vpop.permute.xlu0 %1763 }
 0x1b7   :  { %11981 = vst [vmem:[#allocation71_spill] sm:$0xff] %v9554_v41  ;;  %11982 = vst [vmem:[#allocation72_spill] sm:$0xff] %v9556_v44  ;;  %2651 = vperm.xlu1 %8443, %v2621_v37   ;;  %2646 = vperm.xlu0 %8442, %v2620_v40  }
 0x1b9   :  { %v9558_v52 = vpop.f32.mrf.mxu0 }
 0x1ba   :  { %v9560_v53 = vpop.permute.xlu1 %1778  ;;  %v9562_v56 = vpop.permute.xlu0 %1773  ;;  %v539_v8 = vmul.f32 %v9558_v52, %v9558_v52  ;;  %v502_v32 = vsel %vm498_vm1, %v9558_v52, 0.0 }
 0x1bb   :  { %11983 = vst [vmem:[#allocation73_spill] sm:$0xff] %v9560_v53  ;;  %11984 = vst [vmem:[#allocation74_spill] sm:$0xff] %v9562_v56  ;;  %2932 = vperm.xlu1 %8443, %v2910_v45   ;;  %2927 = vperm.xlu0 %8442, %v2909_v48   ;;  %v9564_v57 = vpop.f32.mrf.mxu0  ;;  %v2625_v56 = vld [vmem:[#allocation24 + $0x3b8] sm:$0xff] }
 0x1bc   :  { %v537_v2 = vmul.f32 %v9564_v57, %v9564_v57  ;;  %v499_v9 = vsel %vm498_vm1, %v9564_v57, 0.0 }
 0x1bd   :  { %v9566_v62 = vpop.f32.mrf.mxu0 }
 0x1be   :  { %v9572_v3 = vpop.permute.xlu1 %1497  ;;  %v9574_v4 = vpop.permute.xlu0 %1492  ;;  %v553_v37 = vsel %vm498_vm1, %v537_v2, 0.0  ;;  %v540_v40 = vmul.f32 %v9566_v62, %v9566_v62  ;;  %v504_v2 = vsel %vm498_vm1, %v9566_v62, 0.0 }
 0x1bf   :  { %11985 = vst [vmem:[#allocation75_spill] sm:$0xff] %v9572_v3  ;;  %11986 = vst [vmem:[#allocation76_spill] sm:$0xff] %v9574_v4  ;;  %2942 = vperm.xlu1 %8443, %v2912_v60   ;;  %2937 = vperm.xlu0 %8442, %v2911_v61   ;;  %v9576_v7 = vpop.f32.mrf.mxu0  ;;  %v9775_v4 = vld [vmem:[#allocation25 + $0x58] sm:$0xff] }
 0x1c0   :  { %v500_v16 = vsel %vm498_vm1, %v9576_v7, 0.0  ;;  %v538_v17 = vmul.f32 %v9576_v7, %v9576_v7  ;;  %12017 = vst [vmem:[#allocation107_spill] sm:$0xff] %v9775_v4 }
 0x1c1   :  { %v501_v28 = vadd.f32 %v500_v16, %v499_v9  ;;  %v9587_v29 = vpop.f32.mrf.mxu0  ;;  %v556_v16 = vsel %vm498_vm1, %v539_v8, 0.0 }
 0x1c2   :  { %v554_v45 = vsel %vm498_vm1, %v538_v17, 0.0  ;;  %v9595_v48 = vpop.permute.xlu1 %1507  ;;  %v9597_v49 = vpop.permute.xlu0 %1502  ;;  %v2624_v17 = vld [vmem:[#allocation24 + $0x3b0] sm:$0xff] }
 0x1c3   :  { %11987 = vst [vmem:[#allocation77_spill] sm:$0xff] %v9595_v48  ;;  %11988 = vst [vmem:[#allocation78_spill] sm:$0xff] %v9597_v49  ;;  %v555_v60 = vadd.f32 %v554_v45, %v553_v37  ;;  %2661 = vperm.xlu1 %8443, %v2623_v20   ;;  %2656 = vperm.xlu0 %8442, %v2622_v25   ;;  %v9599_v61 = vpop.f32.mrf.mxu0  ;;  %v503_v9 = vadd.f32 %v502_v32, %v501_v28  ;;  %v558_v20 = vsel %vm498_vm1, %v540_v40, 0.0 }
 0x1c4   :  { %v541_v53 = vmul.f32 %v9599_v61, %v9599_v61  ;;  %v506_v25 = vsel %vm498_vm1, %v9599_v61, 0.0 }
 0x1c5   :  { %v505_v44 = vadd.f32 %v504_v2, %v503_v9  ;;  %v557_v41 = vadd.f32 %v556_v16, %v555_v60  ;;  %v9606_v12 = vpop.f32.mrf.mxu0  ;;  %v543_v60 = vmul.f32 %v9587_v29, %v9587_v29  ;;  %v2914_v2 = vld [vmem:[#allocation24 + $0x428] sm:$0xff] }
 0x1c6   :  { %v9611_v28 = vpop.permute.xlu1 %1788  ;;  %v9613_v8 = vpop.permute.xlu0 %1783  ;;  %v560_v9 = vsel %vm498_vm1, %v541_v53, 0.0  ;;  %v544_v53 = vmul.f32 %v9606_v12, %v9606_v12 }
 0x1c7   :  { %11989 = vst [vmem:[#allocation79_spill] sm:$0xff] %v9611_v28  ;;  %11990 = vst [vmem:[#allocation80_spill] sm:$0xff] %v9613_v8  ;;  %v507_v32 = vadd.f32 %v506_v25, %v505_v44  ;;  %v559_v37 = vadd.f32 %v558_v20, %v557_v41  ;;  %2671 = vperm.xlu1 %8443, %v2625_v56   ;;  %2666 = vperm.xlu0 %8442, %v2624_v17   ;;  %v9615_v45 = vpop.f32.mrf.mxu0  ;;  %v2913_v28 = vld [vmem:[#allocation24 + $0x420] sm:$0xff]  ;;  %v9624_v8 = vld [vmem:[#allocation7 + $0x58] sm:$0xff]   ;;  %v510_v17 = vsel %vm498_vm1, %v9587_v29, 0.0 }
 0x1c8   :  { %v508_v40 = vsel %vm498_vm1, %v9615_v45, 0.0  ;;  %v542_v16 = vmul.f32 %v9615_v45, %v9615_v45  ;;  %8125 = vmatprep.subr.bf16.mxu0 %v9624_v8 }
 0x1c9   :  { %v561_v41 = vadd.f32 %v560_v9, %v559_v37  ;;  %v509_v44 = vadd.f32 %v508_v40, %v507_v32  ;;  %v9626_v56 = vpop.f32.mrf.mxu0  ;;  %v564_v9 = vsel %vm498_vm1, %v543_v60, 0.0  ;;  %v512_v40 = vsel %vm498_vm1, %v9606_v12, 0.0 }
 0x1ca   :  { %v562_v20 = vsel %vm498_vm1, %v542_v16, 0.0  ;;  %v9633_v25 = vpop.permute.xlu1 %1798  ;;  %v9635_v13 = vpop.permute.xlu0 %1793 }
 0x1cb   :  { %11991 = vst [vmem:[#allocation81_spill] sm:$0xff] %v9633_v25  ;;  %11992 = vst [vmem:[#allocation82_spill] sm:$0xff] %v9635_v13  ;;  %v563_v5 = vadd.f32 %v562_v20, %v561_v41  ;;  %2952 = vperm.xlu1 %8443, %v2914_v2   ;;  %2947 = vperm.xlu0 %8442, %v2913_v28   ;;  %v9638_v32 = vpop.f32.mrf.mxu0  ;;  %v511_v37 = vadd.f32 %v510_v17, %v509_v44  ;;  %v2915_v25 = vld [vmem:[#allocation24 + $0x430] sm:$0xff]  ;;  %v566_v2 = vsel %vm498_vm1, %v544_v53, 0.0 }
 0x1cc   :  { %v545_v16 = vmul.f32 %v9638_v32, %v9638_v32  ;;  %v514_v28 = vsel %vm498_vm1, %v9638_v32, 0.0 }
 0x1cd   :  { %v513_v63 = vadd.f32 %v512_v40, %v511_v37  ;;  %v565_v13 = vadd.f32 %v564_v9, %v563_v5  ;;  %v9645_v0 = vpop.f32.mrf.mxu0  ;;  %v547_v5 = vmul.f32 %v9626_v56, %v9626_v56  ;;  %v2627_v40 = vld [vmem:[#allocation24 + $0x3c8] sm:$0xff] }
 0x1ce   :  { %v9650_v41 = vpop.permute.xlu1 %1517  ;;  %v9652_v60 = vpop.permute.xlu0 %1512  ;;  %v568_v37 = vsel %vm498_vm1, %v545_v16, 0.0 }
 0x1cf   :  { %11993 = vst [vmem:[#allocation83_spill] sm:$0xff] %v9650_v41  ;;  %11994 = vst [vmem:[#allocation84_spill] sm:$0xff] %v9652_v60  ;;  %v515_v44 = vadd.f32 %v514_v28, %v513_v63  ;;  %v567_v17 = vadd.f32 %v566_v2, %v565_v13  ;;  %2962 = vperm.xlu1 %8443, %v2916_v6   ;;  %2957 = vperm.xlu0 %8442, %v2915_v25   ;;  %v9654_v20 = vpop.f32.mrf.mxu0  ;;  %v518_v6 = vsel %vm498_vm1, %v9626_v56, 0.0  ;;  %v2629_v41 = vld [vmem:[#allocation24 + $0x3d8] sm:$0xff] }
 0x1d0   :  { %v516_v53 = vsel %vm498_vm1, %v9654_v20, 0.0  ;;  %v546_v9 = vmul.f32 %v9654_v20, %v9654_v20  ;;  %v548_v25 = vmul.f32 %v9645_v0, %v9645_v0 }
 0x1d1   :  { %v569_v59 = vadd.f32 %v568_v37, %v567_v17  ;;  %v517_v63 = vadd.f32 %v516_v53, %v515_v44  ;;  %v9663_v13 = vpop.f32.mrf.mxu0  ;;  %v572_v17 = vsel %vm498_vm1, %v547_v5, 0.0  ;;  %v520_v37 = vsel %vm498_vm1, %v9645_v0, 0.0 }
 0x1d2   :  { %v570_v16 = vsel %vm498_vm1, %v546_v9, 0.0  ;;  %v9670_v2 = vpop.permute.xlu1 %1527  ;;  %v9672_v28 = vpop.permute.xlu0 %1522  ;;  %v2628_v9 = vld [vmem:[#allocation24 + $0x3d0] sm:$0xff] }
 0x1d3   :  { %11995 = vst [vmem:[#allocation85_spill] sm:$0xff] %v9670_v2  ;;  %11996 = vst [vmem:[#allocation86_spill] sm:$0xff] %v9672_v28  ;;  %v571_v54 = vadd.f32 %v570_v16, %v569_v59  ;;  %2681 = vperm.xlu1 %8443, %v2627_v40   ;;  %2676 = vperm.xlu0 %8442, %v2626_v58   ;;  %v9674_v55 = vpop.f32.mrf.mxu0  ;;  %v519_v44 = vadd.f32 %v518_v6, %v517_v63  ;;  %v574_v59 = vsel %vm498_vm1, %v548_v25, 0.0 }
 0x1d4   :  { %v549_v53 = vmul.f32 %v9674_v55, %v9674_v55  ;;  %v522_v58 = vsel %vm498_vm1, %v9674_v55, 0.0 }
 0x1d5   :  { %v521_v60 = vadd.f32 %v520_v37, %v519_v44  ;;  %v573_v2 = vadd.f32 %v572_v17, %v571_v54  ;;  %v9681_v48 = vpop.f32.mrf.mxu0  ;;  %v551_v54 = vmul.f32 %v9663_v13, %v9663_v13  ;;  %v2918_v37 = vld [vmem:[#allocation24 + $0x448] sm:$0xff] }
 0x1d6   :  { %v9686_v40 = vpop.permute.xlu1 %1808  ;;  %v9688_v5 = vpop.permute.xlu0 %1803  ;;  %v576_v44 = vsel %vm498_vm1, %v549_v53, 0.0 }
 0x1d7   :  { %11997 = vst [vmem:[#allocation87_spill] sm:$0xff] %v9686_v40  ;;  %11998 = vst [vmem:[#allocation88_spill] sm:$0xff] %v9688_v5  ;;  %v523_v63 = vadd.f32 %v522_v58, %v521_v60  ;;  %v575_v6 = vadd.f32 %v574_v59, %v573_v2  ;;  %2691 = vperm.xlu1 %8443, %v2629_v41   ;;  %2686 = vperm.xlu0 %8442, %v2628_v9   ;;  %v9690_v16 = vpop.f32.mrf.mxu0  ;;  %v2917_v40 = vld [vmem:[#allocation24 + $0x440] sm:$0xff]  ;;  %v526_v41 = vsel %vm498_vm1, %v9663_v13, 0.0 }
 0x1d8   :  { %v524_v25 = vsel %vm498_vm1, %v9690_v16, 0.0  ;;  %v550_v17 = vmul.f32 %v9690_v16, %v9690_v16  ;;  %v552_v2 = vmul.f32 %v9681_v48, %v9681_v48  ;;  %v580_v49 = vsel %vm498_vm1, %v551_v54, 0.0 }
 0x1d9   :  { %v577_v5 = vadd.f32 %v576_v44, %v575_v6  ;;  %v525_v60 = vadd.f32 %v524_v25, %v523_v63  ;;  %v528_v63 = vsel %vm498_vm1, %v9681_v48, 0.0  ;;  %v2920_v6 = vld [vmem:[#allocation24 + $0x458] sm:$0xff]  ;;  %v2919_v44 = vld [vmem:[#allocation24 + $0x450] sm:$0xff] }
 0x1da   :  { %v578_v9 = vsel %vm498_vm1, %v550_v17, 0.0  ;;  %v9704_v59 = vpop.permute.xlu1 %1818  ;;  %v9706_v53 = vpop.permute.xlu0 %1813  ;;  %v582_v51 = vsel %vm498_vm1, %v552_v2, 0.0  ;;  %v2632_v2 = vld [vmem:[#allocation24 + $0x3f0] sm:$0xff] }
 0x1db   :  { %11999 = vst [vmem:[#allocation89_spill] sm:$0xff] %v9704_v59  ;;  %12000 = vst [vmem:[#allocation90_spill] sm:$0xff] %v9706_v53  ;;  %v527_v58 = vadd.f32 %v526_v41, %v525_v60  ;;  %v579_v28 = vadd.f32 %v578_v9, %v577_v5  ;;  %2972 = vperm.xlu1 %8443, %v2918_v37   ;;  %2967 = vperm.xlu0 %8442, %v2917_v40   ;;  %v2631_v40 = vld [vmem:[#allocation24 + $0x3e8] sm:$0xff]  ;;  %v2630_v5 = vld [vmem:[#allocation24 + $0x3e0] sm:$0xff] }
 0x1dd   :  { %v529_v25 = vadd.f32 %v528_v63, %v527_v58  ;;  %v581_v50 = vadd.f32 %v580_v49, %v579_v28  ;;  %v2633_v28 = vld [vmem:[#allocation24 + $0x3f8] sm:$0xff] }
 0x1de   :  { %v9712_v17 = vpop.permute.xlu1 %1537  ;;  %v9714_v59 = vpop.permute.xlu0 %1532 }
 0x1df   :  { %v530_v53 = vrot.slane %v529_v25, 4  ;;  %v583_v60 = vadd.f32 %v582_v51, %v581_v50  ;;  %2982 = vperm.xlu1 %8443, %v2920_v6   ;;  %2977 = vperm.xlu0 %8442, %v2919_v44   ;;  %v2921_v44 = vld [vmem:[#allocation24 + $0x460] sm:$0xff] }
 0x1e1   :  { %v531_v54 = vadd.f32 %v530_v53, %v529_v25  ;;  %v584_v37 = vrot.slane %v583_v60, 4  ;;  %v2922_v53 = vld [vmem:[#allocation24 + $0x468] sm:$0xff] }
 0x1e2   :  { %v9716_v41 = vpop.permute.xlu1 %1547  ;;  %v9718_v9 = vpop.permute.xlu0 %1542 }
 0x1e3   :  { %12001 = vst [vmem:[#allocation91_spill] sm:$0xff] %v9716_v41  ;;  %12002 = vst [vmem:[#allocation92_spill] sm:$0xff] %v9718_v9  ;;  %v532_v58 = vrot.slane %v531_v54, 2  ;;  %v585_v49 = vadd.f32 %v584_v37, %v583_v60  ;;  %2701 = vperm.xlu1 %8443, %v2631_v40   ;;  %2696 = vperm.xlu0 %8442, %v2630_v5   ;;  %v2923_v37 = vld [vmem:[#allocation24 + $0x470] sm:$0xff] }
 0x1e5   :  { %v533_v63 = vadd.f32 %v532_v58, %v531_v54  ;;  %v586_v46 = vrot.slane %v585_v49, 2  ;;  %v2924_v54 = vld [vmem:[#allocation24 + $0x478] sm:$0xff] }
 0x1e6   :  { %v9720_v47 = vpop.permute.xlu1 %1828  ;;  %v9722_v50 = vpop.permute.xlu0 %1823 }
 0x1e7   :  { %12003 = vst [vmem:[#allocation93_spill] sm:$0xff] %v9720_v47  ;;  %12004 = vst [vmem:[#allocation94_spill] sm:$0xff] %v9722_v50  ;;  %v534_v51 = vrot.slane %v533_v63, 1  ;;  %v587_v6 = vadd.f32 %v586_v46, %v585_v49  ;;  %2711 = vperm.xlu1 %8443, %v2633_v28   ;;  %2706 = vperm.xlu0 %8442, %v2632_v2   ;;  %v3535_v28 = vld [vmem:[#allocation25 + $0x8] sm:$0xff]  ;;  %v3534_v2 = vld [vmem:[#allocation25] sm:$0xff] }
 0x1e9   :  { %v535_v25 = vadd.f32 %v534_v51, %v533_v63  ;;  %v588_v9 = vrot.slane %v587_v6, 1 }
 0x1ea   :  { %v9724_v41 = vpop.permute.xlu1 %1838  ;;  %v9726_v60 = vpop.permute.xlu0 %1833 }
 0x1eb   :  { %v536_v40 = vmul.f32 0.0078125, %v535_v25  ;;  %v589_v5 = vadd.f32 %v588_v9, %v587_v6  ;;  %2992 = vperm.xlu1 %8443, %v2922_v53   ;;  %2987 = vperm.xlu0 %8442, %v2921_v44   ;;  %v3537_v6 = vld [vmem:[#allocation25 + $0x18] sm:$0xff]  ;;  %v3536_v53 = vld [vmem:[#allocation25 + $0x10] sm:$0xff] }
 0x1ed   :  { %v590_v58 = vmul.f32 0.0078125, %v589_v5  ;;  %v591_v50 = vmul.f32 %v536_v40, %v536_v40 }
 0x1ee   :  { %v9728_v47 = vpop.permute.xlu1 %2059  ;;  %v9730_v46 = vpop.permute.xlu0 %2054 }
 0x1ef   :  { %12005 = vst [vmem:[#allocation95_spill] sm:$0xff] %v9728_v47  ;;  %12006 = vst [vmem:[#allocation96_spill] sm:$0xff] %v9730_v46  ;;  %v592_v49 = vsub.f32 %v590_v58, %v591_v50  ;;  %3002 = vperm.xlu1 %8443, %v2924_v54   ;;  %2997 = vperm.xlu0 %8442, %v2923_v37   ;;  %v9740_v50 = vld [vmem:[#allocation25 + $0x28] sm:$0xff]  ;;  %v9742_v54 = vld [vmem:[#allocation25 + $0x20] sm:$0xff]  ;;  %v600_v37 = vlaneseq }
 0x1f1   :  { %v593_v63 = vmax.f32 %v592_v49, 0.0 }
 0x1f2   :  { %v9732_v51 = vpop.permute.xlu1 %2069  ;;  %v9734_v25 = vpop.permute.xlu0 %2064 }
 0x1f3   :  { %12007 = vst [vmem:[#allocation97_spill] sm:$0xff] %v9732_v51  ;;  %12008 = vst [vmem:[#allocation98_spill] sm:$0xff] %v9734_v25  ;;  %v594_v9 = vadd.f32 1e-05, %v593_v63  ;;  %3545 = vperm.xlu1 %8443, %v3535_v28   ;;  %3540 = vperm.xlu0 %8442, %v3534_v2   ;;  %v9750_v28 = vld [vmem:[#allocation25 + $0x38] sm:$0xff]  ;;  %v9752_v2 = vld [vmem:[#allocation25 + $0x30] sm:$0xff] }
 0x1f4   :  { %v9754_v63 = vshrl.u32 %v600_v37, 7  ;;  %v9762_v25 = vld [vmem:[#allocation25 + $0x48] sm:$0xff]  ;;  %v9764_v51 = vld [vmem:[#allocation25 + $0x40] sm:$0xff] }
 0x1f5   :  { %8792 = vrsqrt.f32 %v594_v9  ;;  %12012 = vst [vmem:[#allocation102_spill] sm:$0xff] %v9762_v25  ;;  %12013 = vst [vmem:[#allocation103_spill] sm:$0xff] %v9764_v51 }
 0x1f6   :  { %v9736_v44 = vpop.permute.xlu1 %2350  ;;  %v9738_v5 = vpop.permute.xlu0 %2345  ;;  %12009 = vst [vmem:[#allocation99_spill] sm:$0xff] %v9754_v63  ;;  %v9767_v46 = vsub.s32 0, %v9754_v63  ;;  %vm1436_vm2 = vcmp.lt.s32.totalorder %v9754_v63, 7  ;;  %vm694_vm3 = vcmp.lt.s32.totalorder %v9754_v63, 1 }
 0x1f7   :  { %3555 = vperm.xlu1 %8443, %v3537_v6   ;;  %3550 = vperm.xlu0 %8442, %v3536_v53   ;;  %v496_v53 = vld [vmem:[#allocation12] sm:$0x1] }
 0x1f8   :  { %12014 = vst [vmem:[#allocation104_spill] sm:$0xff] %v9767_v46 }
 0x1fa   :  { %v9744_v58 = vpop.permute.xlu1 %2360  ;;  %v9746_v49 = vpop.permute.xlu0 %2355 }
 0x1fb   :  { %3751 = vperm.xlu1 %8443, %v9740_v50   ;;  %3746 = vperm.xlu0 %8442, %v9742_v54  }
 0x1fe   :  { %v9756_v9 = vpop.permute.xlu1 %2079  ;;  %v9758_v6 = vpop.permute.xlu0 %2074 }
 0x1ff   :  { %12010 = vst [vmem:[#allocation100_spill] sm:$0xff] %v9756_v9  ;;  %12011 = vst [vmem:[#allocation101_spill] sm:$0xff] %v9758_v6  ;;  %3761 = vperm.xlu1 %8443, %v9750_v28   ;;  %3756 = vperm.xlu0 %8442, %v9752_v2   ;;  %v497_v6 = vld [vmem:[#allocation13] sm:$0x1] }
 0x202   :  { %v8793_v47 = vpop.eup %8792  ;;  %v9769_v3 = vpop.permute.xlu1 %2089 }
 0x203   :  { %12015 = vst [vmem:[#allocation105_spill] sm:$0xff] %v9769_v3  ;;  %v9771_v37 = vpop.permute.xlu0 %2084  ;;  %v596_v9 = vmul.f32 %v8793_v47, %v496_v53  ;;  %3883 = vperm.xlu1 %8443, %v9762_v25   ;;  %3878 = vperm.xlu0 %8442, %v9764_v51   ;;  %v9788_v47 = vld [vmem:[#allocation25 + $0x68] sm:$0xff] }
 0x204   :  { %12016 = vst [vmem:[#allocation106_spill] sm:$0xff] %v9771_v37  ;;  %12019 = vst [vmem:[#allocation109_spill] sm:$0xff] %v9788_v47  ;;  %v9797_v37 = vld [vmem:[#allocation25 + $0x60] sm:$0xff] }
 0x205   :  { %v597_v33 = vmul.f32 %v596_v9, %v536_v40  ;;  %v9778_v36 = vrot.slane %v596_v9, %v9767_v46  ;;  %12020 = vst [vmem:[#allocation110_spill] sm:$0xff] %v9797_v37 }
 0x206   :  { %v9782_v43 = vpop.permute.xlu1 %2370 }
 0x207   :  { %v9784_v38 = vpop.permute.xlu0 %2365  ;;  %v598_v3 = vsub.f32 %v497_v6, %v597_v33  ;;  %3893 = vperm.xlu1 %8443, %v9775_v4   ;;  %3888 = vperm.xlu0 %8442, %v9780_v42   ;;  %v618_v53 = vmul.f32 %v9778_v36, %v9690_v16  ;;  %v616_v9 = vmul.f32 %v9645_v0, %v9778_v36  ;;  %v9812_v16 = vld [vmem:[#allocation25 + $0x78] sm:$0xff] }
 0x208   :  { %v617_v33 = vmul.f32 %v9778_v36, %v9674_v55  ;;  %12021 = vst [vmem:[#allocation111_spill] sm:$0xff] %v9812_v16 }
 0x209   :  { %v9793_v40 = vrot.slane %v598_v3, %v9767_v46  ;;  %v619_v3 = vmul.f32 %v9663_v13, %v9778_v36 }
 0x20a   :  { %v9801_v6 = vpop.permute.xlu1 %2380 }
 0x20b   :  { %v9803_v4 = vpop.permute.xlu0 %2375  ;;  %v640_v42 = vadd.f32 %v9793_v40, %v618_v53  ;;  %v638_v39 = vadd.f32 %v9793_v40, %v616_v9  ;;  %4014 = vperm.xlu1 %8443, %v9788_v47   ;;  %v639_v0 = vadd.f32 %v9793_v40, %v617_v33  ;;  %4009 = vperm.xlu0 %8442, %v9797_v37  }
 0x20c   :  { %v620_v53 = vmul.f32 %v9681_v48, %v9778_v36  ;;  %v641_v9 = vadd.f32 %v9793_v40, %v619_v3  ;;  %v9836_v3 = vld [vmem:[#allocation25 + $0xa8] sm:$0xff]  ;;  %v607_v37 = vmul.f32 %v9558_v52, %v9778_v36 }
 0x20d   :  { %v9814_v55 = vmax.f32 %v640_v42, 0.0  ;;  %v9816_v46 = vmax.f32 %v638_v39, 0.0  ;;  %v9823_v13 = vmax.f32 %v639_v0, 0.0  ;;  %12026 = vst [vmem:[#allocation116_spill] sm:$0xff] %v9836_v3 }
 0x20e   :  { %v9825_v47 = vpop.permute.xlu1 %2099  ;;  %v642_v42 = vadd.f32 %v9793_v40, %v620_v53  ;;  %v9838_v0 = vmax.f32 %v641_v9, 0.0  ;;  %v606_v53 = vmul.f32 %v9778_v36, %v9576_v7  ;;  %v629_v25 = vadd.f32 %v9793_v40, %v607_v37 }
 0x20f   :  { %12022 = vst [vmem:[#allocation112_spill] sm:$0xff] %v9816_v46  ;;  %12024 = vst [vmem:[#allocation114_spill] sm:$0xff] %v9825_v47  ;;  %v9827_v33 = vpop.permute.xlu0 %2094  ;;  %4024 = vperm.xlu1 %8443, %v9812_v16   ;;  %v1432_v39 = vrot.slane %v9823_v13, 1  ;;  %4019 = vperm.xlu0 %8442, %v9821_v24   ;;  %v9840_v47 = vld [vmem:[#allocation25 + $0xa0] sm:$0xff]  ;;  %v12031_v48 = vrot.slane %v9814_v55, 1  ;;  %v12033_v24 = vrot.slane %v9816_v46, 1 }
 0x210   :  { %12025 = vst [vmem:[#allocation115_spill] sm:$0xff] %v9827_v33  ;;  %12027 = vst [vmem:[#allocation117_spill] sm:$0xff] %v9838_v0  ;;  %v9863_v7 = vmax.f32 %v642_v42, 0.0  ;;  %v690_v42 = vrot.slane %v9838_v0, 7 }
 0x211   :  { %12028 = vst [vmem:[#allocation118_spill] sm:$0xff] %v9840_v47  ;;  %v9855_v9 = vsel %vm1436_vm2, %v1432_v39, %v12031_v48  ;;  %v9861_v51 = vsel %vm1436_vm2, %v12033_v24, %v1432_v39  ;;  %v9878_v24 = vld [vmem:[#allocation25 + $0xb8] sm:$0xff]  ;;  %v9881_v39 = vld [vmem:[#allocation25 + $0xb0] sm:$0xff] }
 0x212   :  { %v9847_v33 = vpop.permute.xlu1 %2109  ;;  %12032 = vst [vmem:[#allocation121_spill] sm:$0xff] %v9855_v9  ;;  %12034 = vst [vmem:[#allocation122_spill] sm:$0xff] %v9861_v51  ;;  %v9873_v48 = vmul.f32 %v9714_v59, %v9861_v51  ;;  %v605_v51 = vmul.f32 %v9778_v36, %v9564_v57  ;;  %v9907_v59 = vmax.f32 %v629_v25, 0.0  ;;  %v12042_v57 = vrot.slane %v9863_v7, 7 }
 0x213   :  { %12029 = vst [vmem:[#allocation119_spill] sm:$0xff] %v9847_v33  ;;  %v9849_v16 = vpop.permute.xlu0 %2104  ;;  %4145 = vperm.xlu1 %8443, %v9836_v3   ;;  %v628_v33 = vadd.f32 %v9793_v40, %v606_v53  ;;  %4140 = vperm.xlu0 %8442, %v9840_v47   ;;  %12037 = vst [vmem:[#allocation125_spill] sm:$0xff] %v9878_v24  ;;  %v12039_v53 = vrot.slane %v9814_v55, 7  ;;  %v608_v47 = vmul.f32 %v9566_v62, %v9778_v36 }
 0x214   :  { %12030 = vst [vmem:[#allocation120_spill] sm:$0xff] %v9849_v16  ;;  %v9869_v16 = vmul.f32 %v9712_v17, %v9855_v9  ;;  %12036 = vst [vmem:[#allocation124_spill] sm:$0xff] %v9873_v48  ;;  %v9918_v62 = vsel %vm694_vm3, %v690_v42, %v12042_v57 }
 0x215   :  { %12038 = vst [vmem:[#allocation126_spill] sm:$0xff] %v9881_v39  ;;  %v9894_v37 = vsel %vm694_vm3, %v12039_v53, %v690_v42  ;;  %v9905_v48 = vmax.f32 %v628_v33, 0.0  ;;  %v609_v53 = vmul.f32 %v9778_v36, %v9599_v61  ;;  %v630_v33 = vadd.f32 %v9793_v40, %v608_v47 }
 0x216   :  { %12035 = vst [vmem:[#allocation123_spill] sm:$0xff] %v9869_v16  ;;  %v9885_v52 = vpop.permute.xlu1 %2390  ;;  %v9903_v17 = vmul.f32 %v9726_v60, %v9894_v37  ;;  %v9912_v16 = vld [vmem:[#allocation25 + $0xc8] sm:$0xff]  ;;  %v627_v60 = vadd.f32 %v9793_v40, %v605_v51  ;;  %v9926_v25 = vmul.f32 %v9724_v41, %v9918_v62  ;;  %v678_v51 = vrot.slane %v9907_v59, 7  ;;  %v9943_v41 = vld [vmem:[#allocation25 + $0xd8] sm:$0xff] }
 0x217   :  { %v9887_v9 = vpop.permute.xlu0 %2385  ;;  %4155 = vperm.xlu1 %8443, %v9878_v24   ;;  %4150 = vperm.xlu0 %8442, %v9881_v39   ;;  %12041 = vst [vmem:[#allocation128_spill] sm:$0xff] %v9912_v16  ;;  %v9922_v24 = vld [vmem:[#allocation25 + $0xc0] sm:$0xff]  ;;  %v631_v61 = vadd.f32 %v9793_v40, %v609_v53  ;;  %v677_v42 = vrot.slane %v9905_v48, 7  ;;  %v9940_v57 = vmax.f32 %v630_v33, 0.0  ;;  %12046 = vst [vmem:[#allocation132_spill] sm:$0xff] %v9943_v41  ;;  %v9945_v53 = vld [vmem:[#allocation25 + $0xd0] sm:$0xff] }
 0x218   :  { %12040 = vst [vmem:[#allocation127_spill] sm:$0xff] %v9903_v17  ;;  %12043 = vst [vmem:[#allocation129_spill] sm:$0xff] %v9922_v24  ;;  %v9933_v0 = vmax.f32 %v627_v60, 0.0 }
 0x219   :  { %12044 = vst [vmem:[#allocation130_spill] sm:$0xff] %v9926_v25  ;;  %12047 = vst [vmem:[#allocation133_spill] sm:$0xff] %v9945_v53  ;;  %v9947_v21 = vmax.f32 %v631_v61, 0.0  ;;  %v9951_v60 = vsel %vm694_vm3, %v677_v42, %v678_v51  ;;  %v679_v17 = vrot.slane %v9940_v57, 7  ;;  %v9964_v25 = vld [vmem:[#allocation25 + $0xe8] sm:$0xff] }
 0x21a   :  { %v9929_v39 = vpop.permute.xlu1 %2400  ;;  %12045 = vst [vmem:[#allocation131_spill] sm:$0xff] %v9933_v0  ;;  %12048 = vst [vmem:[#allocation134_spill] sm:$0xff] %v9951_v60  ;;  %v9968_v31 = vmul.f32 %v9736_v44, %v9951_v60 }
 0x21b   :  { %v9931_v3 = vpop.permute.xlu0 %2395  ;;  %4268 = vperm.xlu1 %8443, %v9912_v16   ;;  %4263 = vperm.xlu0 %8442, %v9922_v24   ;;  %v610_v16 = vmul.f32 %v9778_v36, %v9615_v45  ;;  %12051 = vst [vmem:[#allocation137_spill] sm:$0xff] %v9964_v25  ;;  %v9970_v24 = vld [vmem:[#allocation25 + $0xe0] sm:$0xff]  ;;  %v12054_v45 = vrot.slane %v9933_v0, 7 }
 0x21c   :  { %12052 = vst [vmem:[#allocation138_spill] sm:$0xff] %v9968_v31  ;;  %12053 = vst [vmem:[#allocation139_spill] sm:$0xff] %v9970_v24 }
 0x21d   :  { %v632_v61 = vadd.f32 %v9793_v40, %v610_v16  ;;  %v611_v16 = vmul.f32 %v9587_v29, %v9778_v36 }
 0x21e   :  { %v9956_v47 = vpop.permute.xlu1 %2119 }
 0x21f   :  { %12049 = vst [vmem:[#allocation135_spill] sm:$0xff] %v9956_v47  ;;  %v9958_v33 = vpop.permute.xlu0 %2114  ;;  %4278 = vperm.xlu1 %8443, %v9943_v41   ;;  %4273 = vperm.xlu0 %8442, %v9945_v53   ;;  %v680_v47 = vrot.slane %v9947_v21, 7  ;;  %v633_v29 = vadd.f32 %v9793_v40, %v611_v16 }
 0x220   :  { %12050 = vst [vmem:[#allocation136_spill] sm:$0xff] %v9958_v33  ;;  %v9976_v33 = vsel %vm694_vm3, %v12054_v45, %v677_v42  ;;  %v9996_v42 = vsel %vm694_vm3, %v678_v51, %v679_v17  ;;  %v9999_v45 = vmax.f32 %v632_v61, 0.0 }
 0x221   :  { %12055 = vst [vmem:[#allocation140_spill] sm:$0xff] %v9976_v33  ;;  %v9987_v44 = vmul.f32 %v9738_v5, %v9976_v33  ;;  %v9992_v27 = vsel %vm694_vm3, %v679_v17, %v680_v47  ;;  %v615_v17 = vmul.f32 %v9626_v56, %v9778_v36  ;;  %v10016_v51 = vmul.f32 %v9746_v49, %v9996_v42 }
 0x222   :  { %v9981_v53 = vpop.permute.xlu1 %2129  ;;  %v10018_v61 = vmax.f32 %v633_v29, 0.0  ;;  %v614_v5 = vmul.f32 %v9778_v36, %v9654_v20  ;;  %v681_v56 = vrot.slane %v9999_v45, 7  ;;  %v10037_v20 = vld [vmem:[#allocation25 + $0x108] sm:$0xff] }
 0x223   :  { %12056 = vst [vmem:[#allocation141_spill] sm:$0xff] %v9981_v53  ;;  %v9983_v41 = vpop.permute.xlu0 %2124  ;;  %12058 = vst [vmem:[#allocation143_spill] sm:$0xff] %v9987_v44  ;;  %4391 = vperm.xlu1 %8443, %v9964_v25   ;;  %4386 = vperm.xlu0 %8442, %v9970_v24   ;;  %v10008_v53 = vmul.f32 %v9744_v58, %v9992_v27  ;;  %v10010_v25 = vld [vmem:[#allocation25 + $0xf0] sm:$0xff]  ;;  %v612_v58 = vmul.f32 %v9606_v12, %v9778_v36 }
 0x224   :  { %12057 = vst [vmem:[#allocation142_spill] sm:$0xff] %v9983_v41  ;;  %v10002_v41 = vld [vmem:[#allocation25 + $0xf8] sm:$0xff]  ;;  %12061 = vst [vmem:[#allocation146_spill] sm:$0xff] %v10010_v25  ;;  %v613_v44 = vmul.f32 %v9778_v36, %v9638_v32  ;;  %v637_v49 = vadd.f32 %v9793_v40, %v615_v17  ;;  %v682_v31 = vrot.slane %v10018_v61, 7  ;;  %v636_v12 = vadd.f32 %v9793_v40, %v614_v5  ;;  %v10042_v32 = vld [vmem:[#allocation25 + $0x100] sm:$0xff] }
 0x225   :  { %12059 = vst [vmem:[#allocation144_spill] sm:$0xff] %v10002_v41  ;;  %12060 = vst [vmem:[#allocation145_spill] sm:$0xff] %v10008_v53  ;;  %v634_v26 = vadd.f32 %v9793_v40, %v612_v58  ;;  %v10058_v5 = vsel %vm694_vm3, %v680_v47, %v681_v56 }
 0x226   :  { %12062 = vst [vmem:[#allocation147_spill] sm:$0xff] %v10016_v51  ;;  %v10020_v16 = vpop.permute.xlu1 %2410  ;;  %12063 = vst [vmem:[#allocation148_spill] sm:$0xff] %v10037_v20  ;;  %v635_v36 = vadd.f32 %v9793_v40, %v613_v44  ;;  %v10046_v17 = vsel %vm694_vm3, %v681_v56, %v682_v31  ;;  %v10061_v40 = vmax.f32 %v637_v49, 0.0  ;;  %v10064_v44 = vld [vmem:[#allocation25 + $0x118] sm:$0xff]  ;;  %v10066_v58 = vmax.f32 %v636_v12, 0.0 }
 0x227   :  { %v10022_v24 = vpop.permute.xlu0 %2405  ;;  %4401 = vperm.xlu1 %8443, %v10002_v41   ;;  %4396 = vperm.xlu0 %8442, %v10010_v25   ;;  %12064 = vst [vmem:[#allocation149_spill] sm:$0xff] %v10042_v32  ;;  %v10052_v51 = vmax.f32 %v634_v26, 0.0  ;;  %12067 = vst [vmem:[#allocation152_spill] sm:$0xff] %v10064_v44  ;;  %v10070_v26 = vmul.f32 %v9782_v43, %v10046_v17  ;;  %v10076_v47 = vmul.f32 %v9784_v38, %v10058_v5 }
 0x228   :  { %v10054_v53 = vmax.f32 %v635_v36, 0.0  ;;  %12066 = vst [vmem:[#allocation151_spill] sm:$0xff] %v10061_v40  ;;  %v10072_v36 = vld [vmem:[#allocation25 + $0x110] sm:$0xff]  ;;  %v659_v12 = vpack.c.bf16 %v9905_v48, %v9933_v0  ;;  %v686_v43 = vrot.slane %v10061_v40, 7  ;;  %v685_v38 = vrot.slane %v10066_v58, 7 }
 0x229   :  { %12068 = vst [vmem:[#allocation153_spill] sm:$0xff] %v10070_v26  ;;  %12069 = vst [vmem:[#allocation154_spill] sm:$0xff] %v10072_v36  ;;  %v683_v56 = vrot.slane %v10052_v51, 7 }
 0x22a   :  { %v10048_v41 = vpop.permute.xlu1 %2420  ;;  %12070 = vst [vmem:[#allocation155_spill] sm:$0xff] %v10076_v47  ;;  %v684_v49 = vrot.slane %v10054_v53, 7  ;;  %8085 = vmatprep.mubr.msk.bf16.mxu0 %vm498_vm1, %v659_v12  ;;  %v687_v47 = vrot.slane %v9816_v46, 7  ;;  %v810_v12 = vmul.f32 %v9486_v14, %v9951_v60  ;;  %v8464_v60 = vld [vmem:[#allocation7 + $0x50] sm:$0xff]  }
 0x22b   :  { %v10050_v29 = vpop.permute.xlu0 %2415  ;;  %4514 = vperm.xlu1 %8443, %v10037_v20   ;;  %4509 = vperm.xlu0 %8442, %v10042_v32  }
 0x22c   :  { %12065 = vst [vmem:[#allocation150_spill] sm:$0xff] %v10050_v29  ;;  %v10094_v29 = vsel %vm694_vm3, %v683_v56, %v684_v49  ;;  %v10141_v14 = vsel %vm694_vm3, %v684_v49, %v685_v38 }
 0x22d   :  { %v10161_v49 = vmul.f32 %v9887_v9, %v10141_v14 }
 0x22e   :  { %v10080_v20 = vpop.permute.xlu1 %2641 }
 0x22f   :  { %v10082_v32 = vpop.permute.xlu0 %2636  ;;  %4524 = vperm.xlu1 %8443, %v10064_v44   ;;  %4519 = vperm.xlu0 %8442, %v10072_v36   ;;  %v10103_v44 = vmul.f32 %v9801_v6, %v10094_v29  ;;  %v688_v6 = vrot.slane %v9823_v13, 7  ;;  %12077 = vst [vmem:[#allocation160_spill] sm:$0xff] %v10161_v49 }
 0x230   :  { %12071 = vst [vmem:[#allocation156_spill] sm:$0xff] %v10082_v32  ;;  %v10098_v32 = vsel %vm694_vm3, %v682_v31, %v683_v56  ;;  %v10118_v31 = vsel %vm694_vm3, %v685_v38, %v686_v43  ;;  %v661_v56 = vpack.c.bf16 %v9999_v45, %v9947_v21  ;;  %v10258_v38 = vmul.f32 %v10080_v20, %v9907_v59 }
 0x231   :  { %12072 = vst [vmem:[#allocation157_spill] sm:$0xff] %v10103_v44  ;;  %v10111_v25 = vmul.f32 %v9803_v4, %v10098_v32  ;;  %v809_v4 = vmul.f32 %v9482_v10, %v9976_v33  ;;  %v12075_v10 = vrot.slane %v9933_v0, 7  ;;  %v10156_v33 = vsel %vm694_vm3, %v686_v43, %v687_v47 }
 0x232   :  { %v10105_v36 = vpop.permute.xlu1 %2651 }
 0x233   :  { %v10107_v40 = vpop.permute.xlu0 %2646  ;;  %12073 = vst [vmem:[#allocation158_spill] sm:$0xff] %v10111_v25  ;;  %4734 = vperm.xlu1 %8443, %v9740_v50   ;;  %4729 = vperm.xlu0 %8442, %v9742_v54   ;;  %v660_v50 = vpack.c.bf16 %v9940_v57, %v9907_v59  ;;  %v10131_v54 = vmul.f32 %v9885_v52, %v10118_v31  ;;  %v12076_v25 = vrot.slane %v9863_v7, 7 }
 0x234   :  { %v807_v52 = vmul.f32 %v9484_v11, %v9918_v62  ;;  %v812_v11 = vmul.f32 %v9490_v18, %v9992_v27  ;;  %v824_v9 = vpack.c.bf16 %v810_v12, %v809_v4  ;;  %v12080_v12 = vrot.slane %v9814_v55, 7  ;;  %v8462_v4 = vld [vmem:[#allocation7 + $0x30] sm:$0xff]  }
 0x235   :  { %12074 = vst [vmem:[#allocation159_spill] sm:$0xff] %v10131_v54  ;;  %v10149_v44 = vsel %vm694_vm3, %v12076_v25, %v12075_v10  ;;  %8086 = vmatmul.mubr.msk.bf16.vlgmr.msra.gmra.mxu0 %vm498_vm1, %v660_v50  ;;  %v10165_v25 = vsel %vm694_vm3, %v687_v47, %v688_v6  ;;  %v10182_v47 = vmul.f32 %v9931_v3, %v10156_v33  ;;  %v8465_v10 = vld [vmem:[#allocation7 + $0x28] sm:$0xff]  }
 0x236   :  { %v10133_v26 = vpop.permute.xlu1 %2932  ;;  %8089 = vmatprep.mubr.msk.bf16.mxu0 %vm498_vm1, %v661_v56  ;;  %v808_v43 = vmul.f32 %v9488_v15, %v10149_v44  ;;  %v10178_v50 = vmul.f32 %v9929_v39, %v10165_v25  ;;  %8126 = vmatpush3.bf16.msra.mxu0 %v9624_v8  ;;  %v10191_v15 = vmul.f32 %v9508_v35, %v10156_v33 }
 0x237   :  { %v10135_v46 = vpop.permute.xlu0 %2927  ;;  %4744 = vperm.xlu1 %8443, %v9750_v28   ;;  %v811_v28 = vmul.f32 %v9492_v19, %v9996_v42  ;;  %12079 = vst [vmem:[#allocation162_spill] sm:$0xff] %v10182_v47  ;;  %8127 = vmatprep.subr.bf16.mxu0 %v8464_v60  ;;  %v10195_v39 = vmul.f32 %v9502_v30, %v10118_v31  ;;  %v1422_v30 = vrot.slane %v9907_v59, 1  ;;  %v12086_v47 = vld [vmem:[#allocation46_spill] sm:$0xff] }
 0x238   :  { %12078 = vst [vmem:[#allocation161_spill] sm:$0xff] %v10178_v50  ;;  %v823_v56 = vpack.c.bf16 %v808_v43, %v807_v52  ;;  %v10201_v3 = vsel %vm694_vm3, %v688_v6, %v12080_v12  ;;  %4739 = vperm.xlu0 %8442, %v9752_v2   ;;  %v10208_v35 = vmul.f32 %v9506_v34, %v10165_v25  ;;  %v1423_v6 = vrot.slane %v9940_v57, 1  ;;  %v8466_v12 = vld [vmem:[#allocation7 + $0x48] sm:$0xff]  }
 0x239   :  { %v825_v52 = vpack.c.bf16 %v812_v11, %v811_v28  ;;  %v662_v43 = vpack.c.bf16 %v10052_v51, %v10018_v61  ;;  %v10219_v2 = vmul.f32 %v10020_v16, %v9894_v37  ;;  %v10223_v34 = vmul.f32 %v10022_v24, %v10201_v3  ;;  %12088 = vst [vmem:[#allocation46_spill] sm:$0xff] %v10258_v38  ;;  %v12107_v38 = vld [vmem:[#allocation68_spill] sm:$0xff] }
 0x23a   :  { %v10185_v18 = vpop.permute.xlu1 %2942  ;;  %8061 = vmatprep.mubr.msk.bf16.mxu1 %vm498_vm1, %v823_v56  ;;  %v1424_v11 = vrot.slane %v9947_v21, 1  ;;  %v814_v28 = vmul.f32 %v9494_v22, %v10046_v17  ;;  %v663_v24 = vpack.c.bf16 %v10066_v58, %v10054_v53  ;;  %v10244_v22 = vmul.f32 %v10048_v41, %v10149_v44  ;;  %8128 = vmatpush3.bf16.msra.mxu0 %v8464_v60  ;;  %v8467_v60 = vld [vmem:[#allocation7 + $0x40] sm:$0xff]  }
 0x23b   :  { %v10187_v19 = vpop.permute.xlu0 %2937  ;;  %8062 = vmatmul.mubr.msk.bf16.vlgmr.msra.gmra.mxu1 %vm498_vm1, %v824_v9  ;;  %12081 = vst [vmem:[#allocation163_spill] sm:$0xff] %v10219_v2  ;;  %12082 = vst [vmem:[#allocation164_spill] sm:$0xff] %v10223_v34  ;;  %v813_v9 = vmul.f32 %v9496_v23, %v10058_v5  ;;  %v12084_v23 = vld [vmem:[#allocation150_spill] sm:$0xff]  ;;  %v816_v16 = vmul.f32 %v12086_v47, %v10094_v29  ;;  %v12089_v41 = vrot.slane %v9905_v48, 1  ;;  %8129 = vmatprep.subr.bf16.mxu0 %v8466_v12 }
 0x23c   :  { %8065 = vmatprep.mubr.msk.bf16.mxu1 %vm498_vm1, %v825_v52  ;;  %8102 = vmatpush3.bf16.msra.mxu1 %v9568_v1  ;;  %12083 = vst [vmem:[#allocation165_spill] sm:$0xff] %v10244_v22  ;;  %v10248_v52 = vmul.f32 %v12084_v23, %v9918_v62  ;;  %v1420_v23 = vrot.slane %v9933_v0, 1  ;;  %v10275_v34 = vsel %vm1436_vm2, %v1423_v6, %v1424_v11  ;;  %v8468_v2 = vld [vmem:[#allocation7 + $0x20] sm:$0xff]  }
 0x23d   :  { %8090 = vmatmul.mubr.msk.bf16.gmra.mxu0 %vm498_vm1, %v662_v43  ;;  %8103 = vmatprep.subr.bf16.mxu1 %v8462_v4  ;;  %v12087_v43 = vld [vmem:[#allocation47_spill] sm:$0xff]  ;;  %v10264_v62 = vsel %vm1436_vm2, %v12089_v41, %v1422_v30  ;;  %v10279_v41 = vsel %vm1436_vm2, %v1422_v30, %v1423_v6  ;;  %v10283_v47 = vmul.f32 %v10105_v36, %v9947_v21  ;;  %v1426_v36 = vrot.slane %v10018_v61, 1 }
 0x23e   :  { %v10225_v8 = vpop.permute.xlu1 %2661  ;;  %12085 = vst [vmem:[#allocation150_spill] sm:$0xff] %v10248_v52  ;;  %v815_v50 = vmul.f32 %v12087_v43, %v10098_v32  ;;  %8093 = vmatprep.mubr.msk.bf16.mxu0 %vm498_vm1, %v663_v24  ;;  %v12090_v43 = vld [vmem:[#allocation156_spill] sm:$0xff]  ;;  %v826_v52 = vpack.c.bf16 %v814_v28, %v813_v9  ;;  %v10293_v49 = vmul.f32 %v10133_v26, %v10279_v41  ;;  %v12096_v30 = vrot.slane %v9999_v45, 1  ;;  %v12097_v9 = vld [vmem:[#allocation151_spill] sm:$0xff] }
 0x23f   :  { %v10227_v56 = vpop.permute.xlu0 %2656  ;;  %v10271_v24 = vmul.f32 %v12090_v43, %v9905_v48  ;;  %12092 = vst [vmem:[#allocation156_spill] sm:$0xff] %v10283_v47  ;;  %v10287_v43 = vmul.f32 %v10107_v40, %v9940_v57  ;;  %8130 = vmatpush3.bf16.msra.mxu0 %v8466_v12  ;;  %v1427_v26 = vrot.slane %v10052_v51, 1  ;;  %v10329_v54 = vmul.f32 %v10187_v19, %v10275_v34  ;;  %v10346_v19 = vld [vmem:[#allocation7 + $0xb8] sm:$0xff]   ;;  %v12105_v47 = vld [vmem:[#allocation102_spill] sm:$0xff] }
 0x240   :  { %8104 = vmatpush3.bf16.msra.mxu1 %v8462_v4  ;;  %12094 = vst [vmem:[#allocation167_spill] sm:$0xff] %v10293_v49  ;;  %v10297_v4 = vmul.f32 %v10135_v46, %v10264_v62  ;;  %v10304_v40 = vsel %vm1436_vm2, %v1424_v11, %v12096_v30  ;;  %v827_v6 = vpack.c.bf16 %v816_v16, %v815_v50  ;;  %v12098_v46 = vld [vmem:[#allocation112_spill] sm:$0xff]  ;;  %v12100_v16 = vrot.slane %v9905_v48, 1 }
 0x241   :  { %12091 = vst [vmem:[#allocation47_spill] sm:$0xff] %v10271_v24  ;;  %12093 = vst [vmem:[#allocation166_spill] sm:$0xff] %v10287_v43  ;;  %8105 = vmatprep.subr.bf16.mxu1 %v8465_v10  ;;  %v664_v22 = vpack.c.bf16 %v12098_v46, %v12097_v9  ;;  %8131 = vmatprep.subr.bf16.mxu0 %v8467_v60  ;;  %v10316_v11 = vmul.f32 %v10185_v18, %v10304_v40  ;;  %v12102_v18 = vld [vmem:[#allocation48_spill] sm:$0xff]  ;;  %v12106_v24 = vld [vmem:[#allocation103_spill] sm:$0xff] }
 0x242   :  { %v2672_v1 = vpop.permute.xlu1 %2671  ;;  %12095 = vst [vmem:[#allocation168_spill] sm:$0xff] %v10297_v4  ;;  %v10322_v30 = vsel %vm1436_vm2, %v1420_v23, %v12100_v16  ;;  %12101 = vst [vmem:[#allocation112_spill] sm:$0xff] %v10329_v54  ;;  %v817_v28 = vmul.f32 %v12102_v18, %v10141_v14  ;;  %v12103_v4 = vrot.slane %v9863_v7, 1  ;;  %v1428_v16 = vrot.slane %v10054_v53, 1  ;;  %4790 = vperm.xlu1 %8443, %v12105_v47  }
 0x243   :  { %v2667_v20 = vpop.permute.xlu0 %2666  ;;  %8066 = vmatmul.mubr.msk.bf16.gmra.mxu1 %vm498_vm1, %v826_v52  ;;  %12099 = vst [vmem:[#allocation151_spill] sm:$0xff] %v10316_v11  ;;  %v665_v52 = vpack.c.bf16 %v9814_v55, %v9823_v13  ;;  %v1429_v18 = vrot.slane %v10066_v58, 1  ;;  %8132 = vmatpush3.bf16.msra.mxu0 %v8467_v60  ;;  %v10361_v43 = vsel %vm1436_vm2, %v1426_v36, %v1427_v26  ;;  %v12110_v11 = vrot.slane %v9999_v45, 1 }
 0x244   :  { %8069 = vmatprep.mubr.msk.bf16.mxu1 %vm498_vm1, %v827_v6  ;;  %8106 = vmatpush3.bf16.msra.mxu1 %v8465_v10  ;;  %v10337_v49 = vsel %vm1436_vm2, %v12103_v4, %v1420_v23  ;;  %v10340_v6 = vld [vmem:[#allocation7 + $0x78] sm:$0xff]   ;;  %v10344_v10 = vmul.f32 %v10225_v8, %v10018_v61  ;;  %v12104_v4 = vld [vmem:[#allocation67_spill] sm:$0xff]  ;;  %v10370_v54 = vmul.f32 %v2672_v1, %v10054_v53 }
 0x245   :  { %8094 = vmatmul.mubr.msk.bf16.gmra.mxu0 %vm498_vm1, %v664_v22  ;;  %8107 = vmatprep.subr.bf16.mxu1 %v8468_v2  ;;  %v10355_v22 = vmul.f32 %v10227_v56, %v9999_v45  ;;  %v1551_v8 = vmul.f32 %v12104_v4, %v10322_v30  ;;  %v1550_v23 = vmul.f32 %v12107_v38, %v10337_v49 }
 0x246   :  { %v2953_v50 = vpop.permute.xlu1 %2952  ;;  %8097 = vmatprep.mubr.msk.bf16.mxu0 %vm498_vm1, %v665_v52  ;;  %4785 = vperm.xlu0 %8442, %v12106_v24   ;;  %12108 = vst [vmem:[#allocation48_spill] sm:$0xff] %v10370_v54  ;;  %v10373_v4 = vmul.f32 %v2667_v20, %v10052_v51  ;;  %v10379_v47 = vsel %vm1436_vm2, %v12110_v11, %v1426_v36  ;;  %v12116_v20 = vld [vmem:[#allocation110_spill] sm:$0xff] }
 0x247   :  { %v2948_v12 = vpop.permute.xlu0 %2947  ;;  %v828_v24 = vpack.c.bf16 %v10195_v39, %v817_v28  ;;  %8173 = vmatprep.subr.bf16.mxu0 %v10346_v19  ;;  %v10385_v38 = vmul.f32 %v2953_v50, %v10361_v43  ;;  %v829_v1 = vpack.c.bf16 %v10208_v35, %v10191_v15  ;;  %v10400_v39 = vsel %vm1436_vm2, %v1427_v26, %v1428_v16  ;;  %v12113_v28 = vld [vmem:[#allocation117_spill] sm:$0xff]  ;;  %v12122_v26 = vld [vmem:[#allocation70_spill] sm:$0xff] }
 0x248   :  { %8108 = vmatpush3.bf16.msra.mxu1 %v8468_v2  ;;  %12109 = vst [vmem:[#allocation67_spill] sm:$0xff] %v10373_v4  ;;  %v10389_v2 = vsel %vm1436_vm2, %v1428_v16, %v1429_v18  ;;  %v10396_v36 = vmul.f32 %v2948_v12, %v10379_v47  ;;  %v666_v11 = vpack.c.bf16 %v9863_v7, %v12113_v28  ;;  %v12114_v50 = vld [vmem:[#allocation109_spill] sm:$0xff] }
 0x249   :  { %8149 = vmatprep.subr.bf16.mxu1 %v10340_v6  ;;  %12111 = vst [vmem:[#allocation102_spill] sm:$0xff] %v10385_v38  ;;  %4846 = vperm.xlu1 %8443, %v12114_v50   ;;  %v1566_v12 = vpack.c.bf16 %v1551_v8, %v1550_v23  ;;  %v12120_v23 = vld [vmem:[#allocation52_spill] sm:$0xff] }
 0x24a   :  { %v2963_v52 = vpop.permute.xlu1 %2962  ;;  %12112 = vst [vmem:[#allocation103_spill] sm:$0xff] %v10396_v36  ;;  %4841 = vperm.xlu0 %8442, %v12116_v20   ;;  %v1226_v8 = vmul.f32 %v12120_v23, %v9863_v7  ;;  %v1552_v36 = vmul.f32 %v12122_v26, %v10264_v62  ;;  %v12127_v23 = vld [vmem:[#allocation76_spill] sm:$0xff] }
 0x24b   :  { %v2958_v60 = vpop.permute.xlu0 %2957  ;;  %8070 = vmatmul.mubr.msk.bf16.gmra.mxu1 %vm498_vm1, %v828_v24  ;;  %v10407_v56 = vmul.f32 %v2963_v52, %v10389_v2  ;;  %v12118_v24 = vld [vmem:[#allocation50_spill] sm:$0xff]  ;;  %v12119_v52 = vld [vmem:[#allocation49_spill] sm:$0xff] }
 0x24c   :  { %8073 = vmatprep.mubr.msk.bf16.mxu1 %vm498_vm1, %v829_v1  ;;  %v10418_v16 = vmul.f32 %v2958_v60, %v10400_v39  ;;  %v821_v50 = vmul.f32 %v12118_v24, %v10201_v3  ;;  %v822_v4 = vmul.f32 %v12119_v52, %v9894_v37  ;;  %v12121_v1 = vld [vmem:[#allocation51_spill] sm:$0xff]  ;;  %v12123_v24 = vld [vmem:[#allocation69_spill] sm:$0xff]  ;;  %v1430_v37 = vrot.slane %v12097_v9, 1 }
 0x24d   :  { %12115 = vst [vmem:[#allocation68_spill] sm:$0xff] %v10407_v56  ;;  %8098 = vmatmul.mubr.msk.bf16.gmra.mxu0 %vm498_vm1, %v666_v11  ;;  %v1227_v20 = vmul.f32 %v12121_v1, %v9933_v0  ;;  %v1553_v38 = vmul.f32 %v12123_v24, %v10279_v41  ;;  %v12124_v11 = vld [vmem:[#allocation116_spill] sm:$0xff]  ;;  %v1554_v1 = vmul.f32 %v12127_v23, %v10275_v34  ;;  %v12128_v0 = vld [vmem:[#allocation75_spill] sm:$0xff] }
 0x24e   :  { %v10409_v15 = vpop.permute.xlu1 %2681  ;;  %12117 = vst [vmem:[#allocation117_spill] sm:$0xff] %v10418_v16  ;;  %8133 = vmatprep.mubr.msk.bf16.mxu0 %vm498_vm1, %v1566_v12  ;;  %4922 = vperm.xlu1 %8443, %v12124_v11   ;;  %v1555_v60 = vmul.f32 %v12128_v0, %v10304_v40  ;;  %v12129_v16 = vld [vmem:[#allocation118_spill] sm:$0xff]  ;;  %v830_v26 = vpack.c.bf16 %v822_v4, %v821_v50  ;;  %v12130_v11 = vrot.slane %v12098_v46, 1  ;;  %v8472_v23 = vld [vmem:[#allocation7 + $0xb0] sm:$0xff]  }
 0x24f   :  { %v10411_v35 = vpop.permute.xlu0 %2676  ;;  %4917 = vperm.xlu0 %8442, %v12129_v16   ;;  %v1242_v56 = vpack.c.bf16 %v1227_v20, %v1226_v8  ;;  %v1567_v54 = vpack.c.bf16 %v1553_v38, %v1552_v36  ;;  %v10449_v24 = vsel %vm1436_vm2, %v1429_v18, %v1430_v37  ;;  %v12132_v38 = vld [vmem:[#allocation108_spill] sm:$0xff]  ;;  %v12133_v50 = vld [vmem:[#allocation54_spill] sm:$0xff]  ;;  %v12134_v20 = vld [vmem:[#allocation53_spill] sm:$0xff] }
 0x250   :  { %v1568_v4 = vpack.c.bf16 %v1555_v60, %v1554_v1  ;;  %v1228_v8 = vmul.f32 %v12133_v50, %v9905_v48  ;;  %v12138_v48 = vld [vmem:[#allocation77_spill] sm:$0xff] }
 0x252   :  { %v10438_v12 = vpop.permute.xlu1 %2691 }
 0x253   :  { %12125 = vst [vmem:[#allocation109_spill] sm:$0xff] %v10438_v12  ;;  %v10440_v52 = vpop.permute.xlu0 %2686  ;;  %8074 = vmatmul.mubr.msk.bf16.gmra.mxu1 %vm498_vm1, %v830_v26  ;;  %v12131_v12 = vld [vmem:[#allocation107_spill] sm:$0xff]  ;;  %4795 = vperm.xlu0 %8442, %v12132_v38  }
 0x254   :  { %12126 = vst [vmem:[#allocation110_spill] sm:$0xff] %v10440_v52  ;;  %v10455_v52 = vsel %vm1436_vm2, %v1430_v37, %v12130_v11  ;;  %4800 = vperm.xlu1 %8443, %v12131_v12   ;;  %8109 = vmatprep.mubr.msk.bf16.mxu1 %vm498_vm1, %v1242_v56  ;;  %v1229_v37 = vmul.f32 %v12134_v20, %v9907_v59  ;;  %v12135_v56 = vld [vmem:[#allocation56_spill] sm:$0xff]  ;;  %v12136_v12 = vld [vmem:[#allocation55_spill] sm:$0xff] }
 0x255   :  { %8134 = vmatmul.mubr.msk.bf16.vlgmr.msra.gmra.mxu0 %vm498_vm1, %v1567_v54  ;;  %v1230_v60 = vmul.f32 %v12135_v56, %v9940_v57  ;;  %v1231_v1 = vmul.f32 %v12136_v12, %v9947_v21  ;;  %v12137_v54 = vld [vmem:[#allocation78_spill] sm:$0xff]  ;;  %v12140_v57 = vld [vmem:[#allocation84_spill] sm:$0xff]  ;;  %v12141_v21 = vld [vmem:[#allocation83_spill] sm:$0xff] }
 0x256   :  { %v2973_v0 = vpop.permute.xlu1 %2972  ;;  %8137 = vmatprep.mubr.msk.bf16.mxu0 %vm498_vm1, %v1568_v4  ;;  %8174 = vmatpush3.bf16.msra.mxu0 %v10346_v19  ;;  %v1556_v11 = vmul.f32 %v12137_v54, %v10379_v47  ;;  %v8474_v59 = vld [vmem:[#allocation7 + $0xa8] sm:$0xff]   ;;  %v1558_v4 = vmul.f32 %v12140_v57, %v10400_v39  ;;  %v1559_v38 = vmul.f32 %v12141_v21, %v10389_v2  ;;  %v12142_v19 = vld [vmem:[#allocation113_spill] sm:$0xff]  ;;  %v8470_v20 = vld [vmem:[#allocation7 + $0x70] sm:$0xff]  }
 0x257   :  { %v2968_v16 = vpop.permute.xlu0 %2967  ;;  %v10462_v18 = vmul.f32 %v2973_v0, %v10455_v52  ;;  %v1557_v0 = vmul.f32 %v12138_v48, %v10361_v43  ;;  %8175 = vmatprep.subr.bf16.mxu0 %v8472_v23  ;;  %4851 = vperm.xlu0 %8442, %v12142_v19   ;;  %v1243_v50 = vpack.c.bf16 %v1229_v37, %v1228_v8  ;;  %v8475_v54 = vld [vmem:[#allocation7 + $0xa0] sm:$0xff]  }
 0x258   :  { %v10465_v36 = vmul.f32 %v2968_v16, %v10449_v24  ;;  %v12139_v16 = vld [vmem:[#allocation111_spill] sm:$0xff]  ;;  %v1244_v56 = vpack.c.bf16 %v1231_v1, %v1230_v60  ;;  %v1570_v48 = vpack.c.bf16 %v1559_v38, %v1558_v4  ;;  %v12144_v8 = vld [vmem:[#allocation57_spill] sm:$0xff]  ;;  %v12145_v60 = vld [vmem:[#allocation60_spill] sm:$0xff] }
 0x259   :  { %4856 = vperm.xlu1 %8443, %v12139_v16   ;;  %v1569_v12 = vpack.c.bf16 %v1557_v0, %v1556_v11  ;;  %v12143_v16 = vld [vmem:[#allocation58_spill] sm:$0xff]  ;;  %v1233_v37 = vmul.f32 %v12144_v8, %v10018_v61  ;;  %v1234_v1 = vmul.f32 %v12145_v60, %v10052_v51  ;;  %v12146_v11 = vld [vmem:[#allocation59_spill] sm:$0xff]  ;;  %v12148_v21 = vld [vmem:[#allocation85_spill] sm:$0xff]  ;;  %v1434_v61 = vrot.slane %v12113_v28, 1 }
 0x25a   :  { %v3025_v26 = vpack.c.bf16 %v10462_v18, %v10465_v36  ;;  %8176 = vmatpush3.bf16.msra.mxu0 %v8472_v23  ;;  %v1232_v57 = vmul.f32 %v12143_v16, %v9999_v45  ;;  %v8473_v23 = vld [vmem:[#allocation7 + $0x68] sm:$0xff]   ;;  %v1235_v0 = vmul.f32 %v12146_v11, %v10054_v53  ;;  %v1561_v45 = vmul.f32 %v12148_v21, %v10455_v52  ;;  %v12149_v38 = vld [vmem:[#allocation125_spill] sm:$0xff] }
 0x25b   :  { %8110 = vmatmul.mubr.msk.bf16.vlgmr.msra.gmra.mxu1 %vm498_vm1, %v1243_v50  ;;  %8177 = vmatprep.subr.bf16.mxu0 %v8474_v59  ;;  %v12150_v19 = vld [vmem:[#allocation126_spill] sm:$0xff]  ;;  %v12156_v11 = vld [vmem:[#allocation123_spill] sm:$0xff] }
 0x25c   :  { %8113 = vmatprep.mubr.msk.bf16.mxu1 %vm498_vm1, %v1244_v56  ;;  %8150 = vmatpush3.bf16.msra.mxu1 %v10340_v6  ;;  %v12147_v6 = vld [vmem:[#allocation86_spill] sm:$0xff]  ;;  %v1245_v50 = vpack.c.bf16 %v1233_v37, %v1232_v57  ;;  %v1246_v56 = vpack.c.bf16 %v1235_v0, %v1234_v1  ;;  %v12155_v37 = vld [vmem:[#allocation61_spill] sm:$0xff]  ;;  %v12157_v0 = vld [vmem:[#allocation124_spill] sm:$0xff] }
 0x25d   :  { %8138 = vmatmul.mubr.msk.bf16.gmra.mxu0 %vm498_vm1, %v1569_v12  ;;  %8151 = vmatprep.subr.bf16.mxu1 %v8470_v20  ;;  %v1560_v4 = vmul.f32 %v12147_v6, %v10449_v24  ;;  %v8476_v51 = vld [vmem:[#allocation7 + $0x60] sm:$0xff]   ;;  %v8479_v12 = vld [vmem:[#allocation7 + $0xf8] sm:$0xff]   ;;  %v1237_v60 = vmul.f32 %v12155_v37, %v12097_v9  ;;  %v12158_v6 = vpack.c.bf16 %v12156_v11, %v12157_v0  ;;  %v12167_v0 = vld [vmem:[#allocation139_spill] sm:$0xff] }
 0x25e   :  { %8141 = vmatprep.mubr.msk.bf16.mxu0 %vm498_vm1, %v1570_v48  ;;  %8178 = vmatpush3.bf16.msra.mxu0 %v8474_v59  ;;  %v12151_v59 = vld [vmem:[#allocation128_spill] sm:$0xff]  ;;  %v12152_v48 = vrot.slane %v9863_v7, 1 }
 0x25f   :  { %8179 = vmatprep.subr.bf16.mxu0 %v8475_v54  ;;  %4932 = vperm.xlu1 %8443, %v12149_v38   ;;  %v1571_v53 = vpack.c.bf16 %v1561_v45, %v1560_v4  ;;  %v10530_v1 = vld [vmem:[#allocation7 + $0xd8] sm:$0xff]  }
 0x260   :  { %8152 = vmatpush3.bf16.msra.mxu1 %v8470_v20  ;;  %4927 = vperm.xlu0 %8442, %v12150_v19   ;;  %v10516_v16 = vsel %vm1436_vm2, %v1434_v61, %v12152_v48  ;;  %v12153_v20 = vrot.slane %v9814_v55, 1  ;;  %v12159_v4 = vld [vmem:[#allocation64_spill] sm:$0xff]  ;;  %v12161_v38 = vld [vmem:[#allocation129_spill] sm:$0xff] }
 0x261   :  { %8153 = vmatprep.subr.bf16.mxu1 %v8473_v23  ;;  %v1238_v21 = vmul.f32 %v12159_v4, %v12098_v46  ;;  %v12168_v4 = vld [vmem:[#allocation132_spill] sm:$0xff] }
 0x262   :  { %8180 = vmatpush3.bf16.msra.mxu0 %v8475_v54  ;;  %v10522_v57 = vsel %vm1436_vm2, %v12153_v20, %v1434_v61  ;;  %v12154_v54 = vld [vmem:[#allocation62_spill] sm:$0xff]  ;;  %v12162_v61 = vld [vmem:[#allocation91_spill] sm:$0xff]  ;;  %v12166_v20 = vld [vmem:[#allocation96_spill] sm:$0xff] }
 0x263   :  { %8114 = vmatmul.mubr.msk.bf16.gmra.mxu1 %vm498_vm1, %v1245_v50  ;;  %4970 = vperm.xlu1 %8443, %v12151_v59   ;;  %v1236_v8 = vmul.f32 %v12154_v54, %v10066_v58  ;;  %v1565_v19 = vmul.f32 %v12162_v61, %v10516_v16  ;;  %v12163_v50 = vld [vmem:[#allocation92_spill] sm:$0xff]  ;;  %v12165_v59 = vld [vmem:[#allocation95_spill] sm:$0xff]  ;;  %v2132_v54 = vmul.f32 %v12166_v20, %v10322_v30 }
 0x264   :  { %8117 = vmatprep.mubr.msk.bf16.mxu1 %vm498_vm1, %v1246_v56  ;;  %8154 = vmatpush3.bf16.msra.mxu1 %v8473_v23  ;;  %v12160_v23 = vld [vmem:[#allocation63_spill] sm:$0xff]  ;;  %v1564_v56 = vmul.f32 %v12163_v50, %v10522_v57  ;;  %v2133_v48 = vmul.f32 %v12165_v59, %v10264_v62  ;;  %v12169_v62 = vld [vmem:[#allocation66_spill] sm:$0xff]  ;;  %v12173_v61 = vld [vmem:[#allocation72_spill] sm:$0xff] }
 0x265   :  { %8142 = vmatmul.mubr.msk.bf16.gmra.mxu0 %vm498_vm1, %v1571_v53  ;;  %8155 = vmatprep.subr.bf16.mxu1 %v8476_v51  ;;  %v1239_v45 = vmul.f32 %v12160_v23, %v9823_v13  ;;  %v12164_v53 = vld [vmem:[#allocation137_spill] sm:$0xff]  ;;  %v1247_v37 = vpack.c.bf16 %v1237_v60, %v1236_v8  ;;  %v12171_v60 = vld [vmem:[#allocation140_spill] sm:$0xff]  ;;  %v12176_v59 = vld [vmem:[#allocation98_spill] sm:$0xff] }
 0x266   :  { %8145 = vmatprep.mubr.msk.bf16.mxu0 %vm498_vm1, %v12158_v6  ;;  %4965 = vperm.xlu0 %8442, %v12161_v38   ;;  %v1573_v6 = vpack.c.bf16 %v1565_v19, %v1564_v56  ;;  %v2148_v23 = vpack.c.bf16 %v2133_v48, %v2132_v54  ;;  %v1240_v38 = vmul.f32 %v12169_v62, %v9814_v55  ;;  %v12174_v50 = vld [vmem:[#allocation133_spill] sm:$0xff]  ;;  %v12177_v20 = vld [vmem:[#allocation144_spill] sm:$0xff] }
 0x267   :  { %5018 = vperm.xlu1 %8443, %v12164_v53   ;;  %8221 = vmatprep.subr.bf16.mxu0 %v8479_v12  ;;  %v1248_v11 = vpack.c.bf16 %v1239_v45, %v1238_v21  ;;  %v12172_v21 = vld [vmem:[#allocation71_spill] sm:$0xff]  ;;  %v1841_v19 = vmul.f32 %v12173_v61, %v10149_v44  ;;  %v12175_v56 = vld [vmem:[#allocation97_spill] sm:$0xff]  ;;  %v2134_v48 = vmul.f32 %v12176_v59, %v10279_v41  ;;  %v12178_v54 = vld [vmem:[#allocation100_spill] sm:$0xff] }
 0x268   :  { %8156 = vmatpush3.bf16.msra.mxu1 %v8476_v51  ;;  %v12170_v51 = vld [vmem:[#allocation65_spill] sm:$0xff]  ;;  %v1842_v45 = vmul.f32 %v12172_v21, %v12171_v60  ;;  %v2135_v53 = vmul.f32 %v12175_v56, %v10275_v34  ;;  %v12181_v62 = vld [vmem:[#allocation148_spill] sm:$0xff]  ;;  %v12183_v60 = vld [vmem:[#allocation74_spill] sm:$0xff] }
 0x269   :  { %8197 = vmatprep.subr.bf16.mxu1 %v10530_v1  ;;  %v1241_v8 = vmul.f32 %v12170_v51, %v12113_v28  ;;  %v8480_v41 = vld [vmem:[#allocation7 + $0xf0] sm:$0xff]   ;;  %v12182_v51 = vld [vmem:[#allocation134_spill] sm:$0xff] }
 0x26a   :  { %5013 = vperm.xlu0 %8442, %v12167_v0   ;;  %v1857_v44 = vpack.c.bf16 %v1842_v45, %v1841_v19  ;;  %v1843_v21 = vmul.f32 %v12183_v60, %v12182_v51  ;;  %v12187_v19 = vld [vmem:[#allocation149_spill] sm:$0xff]  ;;  %v12199_v60 = vld [vmem:[#allocation119_spill] sm:$0xff] }
 0x26b   :  { %8118 = vmatmul.mubr.msk.bf16.gmra.mxu1 %vm498_vm1, %v1247_v37  ;;  %4980 = vperm.xlu1 %8443, %v12168_v4   ;;  %v2137_v37 = vmul.f32 %v12178_v54, %v10379_v47  ;;  %v12180_v4 = vld [vmem:[#allocation146_spill] sm:$0xff]  ;;  %v12184_v47 = vld [vmem:[#allocation73_spill] sm:$0xff] }
 0x26c   :  { %8121 = vmatprep.mubr.msk.bf16.mxu1 %vm498_vm1, %v1248_v11  ;;  %v12179_v11 = vld [vmem:[#allocation101_spill] sm:$0xff]  ;;  %v1844_v61 = vmul.f32 %v12184_v47, %v9996_v42  ;;  %v12190_v42 = vld [vmem:[#allocation152_spill] sm:$0xff] }
 0x26d   :  { %8146 = vmatmul.mubr.msk.bf16.gmra.mxu0 %vm498_vm1, %v1573_v6  ;;  %v2136_v0 = vmul.f32 %v12179_v11, %v10304_v40  ;;  %v1249_v6 = vpack.c.bf16 %v1241_v8, %v1240_v38  ;;  %v12185_v40 = vld [vmem:[#allocation80_spill] sm:$0xff]  ;;  %v12186_v8 = vld [vmem:[#allocation79_spill] sm:$0xff] }
 0x26e   :  { %8181 = vmatprep.mubr.msk.bf16.mxu0 %vm498_vm1, %v2148_v23  ;;  %4975 = vperm.xlu0 %8442, %v12174_v50   ;;  %v2149_v23 = vpack.c.bf16 %v2135_v53, %v2134_v48  ;;  %v1845_v38 = vmul.f32 %v12185_v40, %v9992_v27  ;;  %v1846_v45 = vmul.f32 %v12186_v8, %v10058_v5  ;;  %v12188_v50 = vld [vmem:[#allocation105_spill] sm:$0xff]  ;;  %v12189_v53 = vld [vmem:[#allocation106_spill] sm:$0xff]  ;;  %v12192_v27 = vld [vmem:[#allocation115_spill] sm:$0xff] }
 0x26f   :  { %5028 = vperm.xlu1 %8443, %v12177_v20   ;;  %v2150_v34 = vpack.c.bf16 %v2137_v37, %v2136_v0  ;;  %v2139_v56 = vmul.f32 %v12188_v50, %v10400_v39  ;;  %v2138_v59 = vmul.f32 %v12189_v53, %v10361_v43  ;;  %v12191_v48 = vld [vmem:[#allocation114_spill] sm:$0xff]  ;;  %v2140_v54 = vmul.f32 %v12192_v27, %v10389_v2  ;;  %v8478_v37 = vld [vmem:[#allocation7 + $0xd0] sm:$0xff]   ;;  %v12202_v40 = vld [vmem:[#allocation121_spill] sm:$0xff] }
 0x270   :  { %v2141_v20 = vmul.f32 %v12191_v48, %v10449_v24  ;;  %v1858_v5 = vpack.c.bf16 %v1844_v61, %v1843_v21  ;;  %v1859_v11 = vpack.c.bf16 %v1846_v45, %v1845_v38  ;;  %v12193_v0 = vld [vmem:[#allocation154_spill] sm:$0xff]  ;;  %v12203_v38 = vld [vmem:[#allocation136_spill] sm:$0xff]  ;;  %v12206_v48 = vld [vmem:[#allocation93_spill] sm:$0xff] }
 0x271   :  { %v2151_v39 = vpack.c.bf16 %v2139_v56, %v2138_v59  ;;  %v8483_v24 = vld [vmem:[#allocation7 + $0xe0] sm:$0xff]   ;;  %v2144_v8 = vmul.f32 %v12203_v38, %v12202_v40 }
 0x272   :  { %5023 = vperm.xlu0 %8442, %v12180_v4   ;;  %v2152_v43 = vpack.c.bf16 %v2141_v20, %v2140_v54  ;;  %v12205_v53 = vld [vmem:[#allocation90_spill] sm:$0xff]  ;;  %v1854_v20 = vmul.f32 %v12206_v48, %v10201_v3  ;;  %v12211_v3 = vld [vmem:[#allocation47_spill] sm:$0xff] }
 0x273   :  { %8122 = vmatmul.mubr.msk.bf16.gmra.mxu1 %vm498_vm1, %v1249_v6  ;;  %5066 = vperm.xlu1 %8443, %v12181_v62   ;;  %v8482_v6 = vld [vmem:[#allocation7 + $0xe8] sm:$0xff]   ;;  %v12196_v62 = vld [vmem:[#allocation88_spill] sm:$0xff]  ;;  %v1851_v59 = vmul.f32 %v12205_v53, %v10118_v31 }
 0x274   :  { %8157 = vmatprep.mubr.msk.bf16.mxu1 %vm498_vm1, %v1857_v44  ;;  %v12195_v44 = vld [vmem:[#allocation81_spill] sm:$0xff]  ;;  %v12207_v27 = vld [vmem:[#allocation94_spill] sm:$0xff] }
 0x275   :  { %8182 = vmatmul.mubr.msk.bf16.vlgmr.msra.gmra.mxu0 %vm498_vm1, %v2149_v23  ;;  %v1848_v4 = vmul.f32 %v12195_v44, %v10098_v32  ;;  %v8481_v23 = vld [vmem:[#allocation7 + $0xc8] sm:$0xff]   ;;  %v1853_v54 = vmul.f32 %v12207_v27, %v10165_v25 }
 0x276   :  { %8185 = vmatprep.mubr.msk.bf16.mxu0 %vm498_vm1, %v2150_v34  ;;  %5061 = vperm.xlu0 %8442, %v12187_v19   ;;  %v1849_v34 = vmul.f32 %v12196_v62, %v10094_v29  ;;  %v12201_v32 = vld [vmem:[#allocation135_spill] sm:$0xff]  ;;  %v12210_v25 = vld [vmem:[#allocation46_spill] sm:$0xff] }
 0x277   :  { %8222 = vmatpush3.bf16.msra.mxu0 %v8479_v12  ;;  %5076 = vperm.xlu1 %8443, %v12190_v42   ;;  %v12194_v12 = vld [vmem:[#allocation82_spill] sm:$0xff]  ;;  %v2145_v61 = vmul.f32 %v12201_v32, %v10522_v57  ;;  %v8485_v42 = vld [vmem:[#allocation7 + $0x118] sm:$0xff]   ;;  %v12217_v44 = vld [vmem:[#allocation143_spill] sm:$0xff] }
 0x278   :  { %8223 = vmatprep.subr.bf16.mxu0 %v8480_v41  ;;  %v1847_v2 = vmul.f32 %v12194_v12, %v10046_v17  ;;  %v12200_v17 = vld [vmem:[#allocation120_spill] sm:$0xff]  ;;  %v12220_v62 = vld [vmem:[#allocation166_spill] sm:$0xff]  ;;  %v12223_v32 = vld [vmem:[#allocation145_spill] sm:$0xff] }
 0x279   :  { %v2142_v47 = vmul.f32 %v12200_v17, %v10455_v52  ;;  %v2154_v50 = vpack.c.bf16 %v2145_v61, %v2144_v8  ;;  %v12204_v52 = vld [vmem:[#allocation89_spill] sm:$0xff]  ;;  %v2722_v17 = vmul.f32 %v10411_v35, %v10066_v58  ;;  %v12224_v61 = vld [vmem:[#allocation147_spill] sm:$0xff]  ;;  %v12235_v27 = vld [vmem:[#allocation158_spill] sm:$0xff] }
 0x27a   :  { %5071 = vperm.xlu0 %8442, %v12193_v0   ;;  %v1860_v29 = vpack.c.bf16 %v1848_v4, %v1847_v2  ;;  %v1852_v56 = vmul.f32 %v12204_v52, %v10156_v33  ;;  %v12209_v33 = vld [vmem:[#allocation142_spill] sm:$0xff]  ;;  %v1863_v0 = vpack.c.bf16 %v1854_v20, %v1853_v54  ;;  %v12225_v38 = vpack.c.bf16 %v12223_v32, %v12224_v61  ;;  %v12232_v35 = vld [vmem:[#allocation109_spill] sm:$0xff] }
 0x27b   :  { %8158 = vmatmul.mubr.msk.bf16.vlgmr.msra.gmra.mxu1 %vm498_vm1, %v1858_v5  ;;  %8224 = vmatpush3.bf16.msra.mxu0 %v8480_v41  ;;  %v12197_v41 = vld [vmem:[#allocation87_spill] sm:$0xff]  ;;  %v12208_v5 = vld [vmem:[#allocation141_spill] sm:$0xff]  ;;  %v12216_v2 = vld [vmem:[#allocation138_spill] sm:$0xff] }
 0x27c   :  { %8161 = vmatprep.mubr.msk.bf16.mxu1 %vm498_vm1, %v1859_v11  ;;  %8198 = vmatpush3.bf16.msra.mxu1 %v10530_v1  ;;  %v1850_v51 = vmul.f32 %v12197_v41, %v10141_v14  ;;  %v12198_v1 = vld [vmem:[#allocation122_spill] sm:$0xff]  ;;  %v2146_v11 = vmul.f32 %v12209_v33, %v10516_v16  ;;  %v1862_v31 = vpack.c.bf16 %v1852_v56, %v1851_v59  ;;  %v12234_v20 = vld [vmem:[#allocation157_spill] sm:$0xff] }
 0x27d   :  { %8186 = vmatmul.mubr.msk.bf16.gmra.mxu0 %vm498_vm1, %v2151_v39  ;;  %8199 = vmatprep.subr.bf16.mxu1 %v8478_v37  ;;  %v2143_v21 = vmul.f32 %v12199_v60, %v12198_v1  ;;  %v8484_v14 = vld [vmem:[#allocation7 + $0xc0] sm:$0xff]   ;;  %v12212_v39 = vpack.c.bf16 %v12210_v25, %v12211_v3  ;;  %v12218_v4 = vpack.c.bf16 %v12216_v2, %v12217_v44  ;;  %v2978_v60 = vpop.permute.xlu0 %2977  ;;  %v8487_v58 = vld [vmem:[#allocation7 + $0x108] sm:$0xff]  }
 0x27e   :  { %8189 = vmatprep.mubr.msk.bf16.mxu0 %vm498_vm1, %v2152_v43  ;;  %8225 = vmatprep.subr.bf16.mxu0 %v8482_v6  ;;  %v1861_v45 = vpack.c.bf16 %v1850_v51, %v1849_v34  ;;  %v12213_v43 = vld [vmem:[#allocation130_spill] sm:$0xff]  ;;  %v12222_v41 = vpack.c.bf16 %v10344_v10, %v10355_v22  ;;  %v2983_v51 = vpop.permute.xlu1 %2982  ;;  %v12236_v54 = vpack.c.bf16 %v12234_v20, %v12235_v27 }
 0x27f   :  { %8226 = vmatpush3.bf16.msra.mxu0 %v8482_v6  ;;  %v2153_v19 = vpack.c.bf16 %v2143_v21, %v2142_v47  ;;  %v2723_v21 = vmul.f32 %v10409_v15, %v12097_v9  ;;  %v8486_v47 = vld [vmem:[#allocation7 + $0x110] sm:$0xff]   ;;  %v12233_v52 = vld [vmem:[#allocation110_spill] sm:$0xff] }
 0x280   :  { %8200 = vmatpush3.bf16.msra.mxu1 %v8478_v37  ;;  %8227 = vmatprep.subr.bf16.mxu0 %v8483_v24  ;;  %v2147_v37 = vmul.f32 %v12208_v5, %v10337_v49  ;;  %v12230_v9 = vld [vmem:[#allocation67_spill] sm:$0xff]  ;;  %v2724_v56 = vmul.f32 %v12233_v52, %v12098_v46  ;;  %v12242_v25 = vld [vmem:[#allocation162_spill] sm:$0xff] }
 0x281   :  { %8201 = vmatprep.subr.bf16.mxu1 %v8481_v23  ;;  %v2734_v8 = vpack.c.bf16 %v2723_v21, %v2722_v17  ;;  %v12248_v2 = vld [vmem:[#allocation150_spill] sm:$0xff]  ;;  %v12257_v17 = vld [vmem:[#allocation103_spill] sm:$0xff] }
 0x282   :  { %v2155_v6 = vpack.c.bf16 %v2147_v37, %v2146_v11  ;;  %v2702_v22 = vpop.permute.xlu1 %2701  ;;  %v12238_v11 = vld [vmem:[#allocation160_spill] sm:$0xff]  ;;  %v12256_v21 = vld [vmem:[#allocation102_spill] sm:$0xff] }
 0x283   :  { %8162 = vmatmul.mubr.msk.bf16.gmra.mxu1 %vm498_vm1, %v1860_v29  ;;  %8228 = vmatpush3.bf16.msra.mxu0 %v8483_v24  ;;  %v12214_v24 = vld [vmem:[#allocation127_spill] sm:$0xff]  ;;  %v12226_v29 = vld [vmem:[#allocation153_spill] sm:$0xff]  ;;  %v2727_v53 = vmul.f32 %v2702_v22, %v12113_v28 }
 0x284   :  { %8165 = vmatprep.mubr.msk.bf16.mxu1 %vm498_vm1, %v1861_v45  ;;  %8202 = vmatpush3.bf16.msra.mxu1 %v8481_v23  ;;  %v12215_v12 = vpack.c.bf16 %v12213_v43, %v12214_v24  ;;  %v12219_v23 = vld [vmem:[#allocation156_spill] sm:$0xff]  ;;  %v2697_v45 = vpop.permute.xlu0 %2696 }
 0x285   :  { %8190 = vmatmul.mubr.msk.bf16.gmra.mxu0 %vm498_vm1, %v2153_v19  ;;  %8203 = vmatprep.subr.bf16.mxu1 %v8484_v14  ;;  %v12221_v34 = vpack.c.bf16 %v12219_v23, %v12220_v62  ;;  %v12229_v19 = vld [vmem:[#allocation48_spill] sm:$0xff]  ;;  %v2726_v59 = vmul.f32 %v2697_v45, %v9814_v55  ;;  %v12240_v55 = vld [vmem:[#allocation131_spill] sm:$0xff] }
 0x286   :  { %8193 = vmatprep.mubr.msk.bf16.mxu0 %vm498_vm1, %v2154_v50  ;;  %v12231_v15 = vpack.c.bf16 %v12229_v19, %v12230_v9  ;;  %v2725_v50 = vmul.f32 %v12232_v35, %v9823_v13  ;;  %v2712_v37 = vpop.permute.xlu1 %2711  ;;  %v12237_v13 = vld [vmem:[#allocation159_spill] sm:$0xff]  ;;  %v12245_v43 = vld [vmem:[#allocation164_spill] sm:$0xff] }
 0x287   :  { %v2736_v5 = vpack.c.bf16 %v2727_v53, %v2726_v59  ;;  %v2729_v46 = vmul.f32 %v2712_v37, %v12240_v55  ;;  %v12253_v62 = vld [vmem:[#allocation151_spill] sm:$0xff] }
 0x288   :  { %8204 = vmatpush3.bf16.msra.mxu1 %v8484_v14  ;;  %v12227_v14 = vld [vmem:[#allocation155_spill] sm:$0xff]  ;;  %v2735_v48 = vpack.c.bf16 %v2725_v50, %v2724_v56  ;;  %v2707_v33 = vpop.permute.xlu0 %2706 }
 0x289   :  { %8245 = vmatprep.subr.bf16.mxu1 %v8485_v42  ;;  %v12228_v10 = vpack.c.bf16 %v12226_v29, %v12227_v14  ;;  %v2728_v28 = vmul.f32 %v2707_v33, %v9863_v7  ;;  %v12250_v7 = vld [vmem:[#allocation167_spill] sm:$0xff]  ;;  %v3016_v14 = vmul.f32 %v2983_v51, %v12202_v40 }
 0x28a   :  { %v2993_v32 = vpop.permute.xlu1 %2992 }
 0x28b   :  { %8166 = vmatmul.mubr.msk.bf16.gmra.mxu1 %vm498_vm1, %v1862_v31  ;;  %v12239_v31 = vpack.c.bf16 %v12237_v13, %v12238_v11  ;;  %v3018_v22 = vmul.f32 %v2993_v32, %v10516_v16 }
 0x28c   :  { %8169 = vmatprep.mubr.msk.bf16.mxu1 %vm498_vm1, %v1863_v0  ;;  %v2737_v0 = vpack.c.bf16 %v2729_v46, %v2728_v28  ;;  %v2988_v61 = vpop.permute.xlu0 %2987 }
 0x28d   :  { %8194 = vmatmul.mubr.msk.bf16.gmra.mxu0 %vm498_vm1, %v2155_v6  ;;  %v12241_v6 = vld [vmem:[#allocation161_spill] sm:$0xff]  ;;  %v3017_v45 = vmul.f32 %v2988_v61, %v10522_v57 }
 0x28e   :  { %8229 = vmatprep.mubr.msk.bf16.mxu0 %vm498_vm1, %v12212_v39  ;;  %v12243_v3 = vpack.c.bf16 %v12241_v6, %v12242_v25  ;;  %v12244_v39 = vld [vmem:[#allocation163_spill] sm:$0xff] }
 0x28f   :  { %v12246_v24 = vpack.c.bf16 %v12244_v39, %v12245_v43  ;;  %v3027_v9 = vpack.c.bf16 %v3018_v22, %v3017_v45 }
 0x293   :  { %8170 = vmatmul.mubr.msk.bf16.gmra.mxu1 %vm498_vm1, %v12215_v12  ;;  %v12247_v12 = vld [vmem:[#allocation165_spill] sm:$0xff] }
 0x294   :  { %8205 = vmatprep.mubr.msk.bf16.mxu1 %vm498_vm1, %v12218_v4  ;;  %v12249_v44 = vpack.c.bf16 %v12247_v12, %v12248_v2  ;;  %v12251_v4 = vld [vmem:[#allocation168_spill] sm:$0xff] }
 0x295   :  { %8230 = vmatmul.mubr.msk.bf16.vlgmr.msra.gmra.mxu0 %vm498_vm1, %v12221_v34  ;;  %v12252_v23 = vpack.c.bf16 %v12250_v7, %v12251_v4  ;;  %v12254_v34 = vld [vmem:[#allocation112_spill] sm:$0xff] }
 0x296   :  { %8233 = vmatprep.mubr.msk.bf16.mxu0 %vm498_vm1, %v12222_v41  ;;  %v12255_v41 = vpack.c.bf16 %v12253_v62, %v12254_v34 }
 0x29b   :  { %8206 = vmatmul.mubr.msk.bf16.vlgmr.msra.gmra.mxu1 %vm498_vm1, %v12225_v38  ;;  %v12259_v38 = vld [vmem:[#allocation68_spill] sm:$0xff] }
 0x29c   :  { %8209 = vmatprep.mubr.msk.bf16.mxu1 %vm498_vm1, %v12228_v10  ;;  %8246 = vmatpush3.bf16.msra.mxu1 %v8485_v42  ;;  %v8488_v42 = vld [vmem:[#allocation7 + $0x100] sm:$0xff]   ;;  %v3015_v10 = vmul.f32 %v2978_v60, %v12198_v1 }
 0x29d   :  { %8234 = vmatmul.mubr.msk.bf16.gmra.mxu0 %vm498_vm1, %v12231_v15  ;;  %8247 = vmatprep.subr.bf16.mxu1 %v8486_v47  ;;  %v3003_v15 = vpop.permute.xlu1 %3002 }
 0x29e   :  { %8237 = vmatprep.mubr.msk.bf16.mxu0 %vm498_vm1, %v2734_v8  ;;  %v12260_v8 = vld [vmem:[#allocation117_spill] sm:$0xff]  ;;  %v3026_v19 = vpack.c.bf16 %v3016_v14, %v3015_v10  ;;  %v3020_v18 = vmul.f32 %v3003_v15, %v10322_v30 }
 0x29f   :  { %v12261_v29 = vpack.c.bf16 %v12259_v38, %v12260_v8 }
 0x2a0   :  { %8248 = vmatpush3.bf16.msra.mxu1 %v8486_v47  ;;  %v12258_v47 = vpack.c.bf16 %v12256_v21, %v12257_v17 }
 0x2a1   :  { %8249 = vmatprep.subr.bf16.mxu1 %v8487_v58 }
 0x2a3   :  { %8210 = vmatmul.mubr.msk.bf16.gmra.mxu1 %vm498_vm1, %v12236_v54 }
 0x2a4   :  { %8213 = vmatprep.mubr.msk.bf16.mxu1 %vm498_vm1, %v12239_v31  ;;  %8250 = vmatpush3.bf16.msra.mxu1 %v8487_v58  ;;  %v2998_v58 = vpop.permute.xlu0 %2997 }
 0x2a5   :  { %8238 = vmatmul.mubr.msk.bf16.gmra.mxu0 %vm498_vm1, %v2735_v48  ;;  %8251 = vmatprep.subr.bf16.mxu1 %v8488_v42  ;;  %v3019_v36 = vmul.f32 %v2998_v58, %v10337_v49 }
 0x2a6   :  { %8241 = vmatprep.mubr.msk.bf16.mxu0 %vm498_vm1, %v2736_v5 }
 0x2a8   :  { %8252 = vmatpush3.bf16.msra.mxu1 %v8488_v42 }
 0x2ab   :  { %8214 = vmatmul.mubr.msk.bf16.gmra.mxu1 %vm498_vm1, %v12243_v3 }
 0x2ac   :  { %8217 = vmatprep.mubr.msk.bf16.mxu1 %vm498_vm1, %v12246_v24 }
 0x2ad   :  { %8242 = vmatmul.mubr.msk.bf16.gmra.mxu0 %vm498_vm1, %v2737_v0 }
 0x2b3   :  { %8218 = vmatmul.mubr.msk.bf16.gmra.mxu1 %vm498_vm1, %v12249_v44 }
 0x2b4   :  { %8253 = vmatprep.mubr.msk.bf16.mxu1 %vm498_vm1, %v12252_v23 }
 0x2bb   :  { %8254 = vmatmul.mubr.msk.bf16.vlgmr.msra.gmra.mxu1 %vm498_vm1, %v12255_v41 }
 0x2bc   :  { %8257 = vmatprep.mubr.msk.bf16.mxu1 %vm498_vm1, %v12258_v47 }
 0x2c3   :  { %8258 = vmatmul.mubr.msk.bf16.gmra.mxu1 %vm498_vm1, %v12261_v29 }
 0x2c4   :  { %8261 = vmatprep.mubr.msk.bf16.mxu1 %vm498_vm1, %v3025_v26  ;;  %v3028_v26 = vpack.c.bf16 %v3020_v18, %v3019_v36 }
 0x2cb   :  { %8262 = vmatmul.mubr.msk.bf16.gmra.mxu1 %vm498_vm1, %v3026_v19 }
 0x2cc   :  { %8265 = vmatprep.mubr.msk.bf16.mxu1 %vm498_vm1, %v3027_v9 }
 0x2d3   :  { %8266 = vmatmul.mubr.msk.bf16.gmra.mxu1 %vm498_vm1, %v3028_v26 }
 0x2f5   :  { %v8087_v1 = vpop.f32.mrf.mxu0 }
 0x2f7   :  { %v1066_v40 = vpop.f32.mrf.mxu0 }
 0x2f9   :  { %v8088_v16 = vpop.f32.mrf.mxu0 }
 0x2fb   :  { %v8063_v51 = vpop.f32.mrf.mxu1  ;;  %v1069_v57 = vpop.f32.mrf.mxu0 }
 0x2fc   :  { %v1075_v60 = vadd.f32 %v8087_v1, %v8063_v51 }
 0x2fd   :  { %v921_v35 = vpop.f32.mrf.mxu1  ;;  %v8091_v50 = vpop.f32.mrf.mxu0 }
 0x2fe   :  { %v1067_v52 = vadd.f32 %v1066_v40, %v921_v35 }
 0x2ff   :  { %v8064_v56 = vpop.f32.mrf.mxu1  ;;  %v1082_v53 = vpop.f32.mrf.mxu0 }
 0x300   :  { %v1078_v59 = vadd.f32 %v8088_v16, %v8064_v56 }
 0x301   :  { %v924_v42 = vpop.f32.mrf.mxu1  ;;  %v8092_v48 = vpop.f32.mrf.mxu0 }
 0x302   :  { %v1070_v9 = vadd.f32 %v1069_v57, %v924_v42 }
 0x303   :  { %v8067_v30 = vpop.f32.mrf.mxu1  ;;  %v1085_v20 = vpop.f32.mrf.mxu0 }
 0x304   :  { %v1091_v49 = vadd.f32 %v8091_v50, %v8067_v30 }
 0x305   :  { %v937_v27 = vpop.f32.mrf.mxu1  ;;  %v8095_v54 = vpop.f32.mrf.mxu0 }
 0x306   :  { %v1083_v5 = vadd.f32 %v1082_v53, %v937_v27 }
 0x307   :  { %v8068_v37 = vpop.f32.mrf.mxu1  ;;  %v1098_v33 = vpop.f32.mrf.mxu0 }
 0x308   :  { %v1094_v13 = vadd.f32 %v8092_v48, %v8068_v37 }
 0x309   :  { %v940_v11 = vpop.f32.mrf.mxu1  ;;  %v8096_v31 = vpop.f32.mrf.mxu0 }
 0x30a   :  { %v1086_v57 = vadd.f32 %v1085_v20, %v940_v11 }
 0x30b   :  { %v8071_v55 = vpop.f32.mrf.mxu1  ;;  %v1101_v46 = vpop.f32.mrf.mxu0 }
 0x30c   :  { %v1107_v28 = vadd.f32 %v8095_v54, %v8071_v55 }
 0x30d   :  { %v953_v0 = vpop.f32.mrf.mxu1  ;;  %v8099_v6 = vpop.f32.mrf.mxu0 }
 0x30e   :  { %v1099_v25 = vadd.f32 %v1098_v33, %v953_v0 }
 0x30f   :  { %v8072_v3 = vpop.f32.mrf.mxu1  ;;  %v1114_v39 = vpop.f32.mrf.mxu0 }
 0x310   :  { %v1110_v43 = vadd.f32 %v8096_v31, %v8072_v3 }
 0x311   :  { %v956_v24 = vpop.f32.mrf.mxu1  ;;  %v8100_v12 = vpop.f32.mrf.mxu0 }
 0x312   :  { %v1102_v20 = vadd.f32 %v1101_v46, %v956_v24 }
 0x313   :  { %v8075_v2 = vpop.f32.mrf.mxu1  ;;  %v1117_v44 = vpop.f32.mrf.mxu0 }
 0x314   :  { %v1123_v7 = vadd.f32 %v8099_v6, %v8075_v2 }
 0x315   :  { %v969_v4 = vpop.f32.mrf.mxu1  ;;  %v8135_v23 = vpop.f32.mrf.mxu0 }
 0x316   :  { %v1115_v62 = vadd.f32 %v1114_v39, %v969_v4 }
 0x317   :  { %v8076_v34 = vpop.f32.mrf.mxu1  ;;  %v10737_v41 = vpop.f32.mrf.mxu0 }
 0x318   :  { %v1126_v21 = vadd.f32 %v8100_v12, %v8076_v34 }
 0x319   :  { %v972_v17 = vpop.f32.mrf.mxu1  ;;  %v10739_v47 = vpop.f32.mrf.mxu0 }
 0x31a   :  { %v1118_v32 = vadd.f32 %v1117_v44, %v972_v17 }
 0x31b   :  { %v8111_v61 = vpop.f32.mrf.mxu1  ;;  %v10741_v38 = vpop.f32.mrf.mxu0 }
 0x31c   :  { %v1406_v8 = vadd.f32 %v8111_v61, %v1075_v60 }
 0x31d   :  { %v1341_v29 = vpop.f32.mrf.mxu1  ;;  %v8139_v14 = vpop.f32.mrf.mxu0 }
 0x31e   :  { %v10743_v10 = vadd.f32 %v1341_v29, %v1067_v52  ;;  %v1730_v22 = vadd.f32 %v8135_v23, %v1406_v8 }
 0x31f   :  { %v8112_v45 = vpop.f32.mrf.mxu1  ;;  %v10745_v19 = vpop.f32.mrf.mxu0 }
 0x320   :  { %v10747_v15 = vadd.f32 %v8112_v45, %v1078_v59 }
 0x321   :  { %v1344_v58 = vpop.f32.mrf.mxu1  ;;  %v10749_v18 = vpop.f32.mrf.mxu0 }
 0x322   :  { %v10751_v36 = vadd.f32 %v1344_v58, %v1070_v9 }
 0x323   :  { %v8115_v26 = vpop.f32.mrf.mxu1  ;;  %v10753_v1 = vpop.f32.mrf.mxu0 }
 0x324   :  { %v1410_v40 = vadd.f32 %v8115_v26, %v1091_v49 }
 0x325   :  { %v1357_v16 = vpop.f32.mrf.mxu1  ;;  %v8143_v51 = vpop.f32.mrf.mxu0 }
 0x326   :  { %v10755_v60 = vadd.f32 %v1357_v16, %v1083_v5  ;;  %v1734_v35 = vadd.f32 %v8139_v14, %v1410_v40 }
 0x327   :  { %v8116_v50 = vpop.f32.mrf.mxu1  ;;  %v10757_v52 = vpop.f32.mrf.mxu0 }
 0x328   :  { %v10759_v56 = vadd.f32 %v8116_v50, %v1094_v13 }
 0x329   :  { %v1360_v53 = vpop.f32.mrf.mxu1  ;;  %v10761_v59 = vpop.f32.mrf.mxu0 }
 0x32a   :  { %v10763_v42 = vadd.f32 %v1360_v53, %v1086_v57 }
 0x32b   :  { %v8119_v48 = vpop.f32.mrf.mxu1  ;;  %v10765_v30 = vpop.f32.mrf.mxu0 }
 0x32c   :  { %v1414_v49 = vadd.f32 %v8119_v48, %v1107_v28 }
 0x32d   :  { %v1373_v27 = vpop.f32.mrf.mxu1  ;;  %v8147_v54 = vpop.f32.mrf.mxu0 }
 0x32e   :  { %v10767_v5 = vadd.f32 %v1373_v27, %v1099_v25  ;;  %v1738_v37 = vadd.f32 %v8143_v51, %v1414_v49 }
 0x32f   :  { %v8120_v33 = vpop.f32.mrf.mxu1  ;;  %v10769_v31 = vpop.f32.mrf.mxu0 }
 0x330   :  { %v10771_v13 = vadd.f32 %v8120_v33, %v1110_v43 }
 0x331   :  { %v1376_v11 = vpop.f32.mrf.mxu1  ;;  %v10773_v55 = vpop.f32.mrf.mxu0 }
 0x332   :  { %v10775_v0 = vadd.f32 %v1376_v11, %v1102_v20 }
 0x333   :  { %v8123_v6 = vpop.f32.mrf.mxu1  ;;  %v10777_v3 = vpop.f32.mrf.mxu0 }
 0x334   :  { %v1418_v28 = vadd.f32 %v8123_v6, %v1123_v7 }
 0x335   :  { %v1389_v39 = vpop.f32.mrf.mxu1  ;;  %v10779_v12 = vpop.f32.mrf.mxu0 }
 0x336   :  { %v10781_v25 = vadd.f32 %v1389_v39, %v1115_v62  ;;  %v1742_v2 = vadd.f32 %v8147_v54, %v1418_v28 }
 0x337   :  { %v8124_v44 = vpop.f32.mrf.mxu1  ;;  %v10783_v4 = vpop.f32.mrf.mxu0 }
 0x338   :  { %v10785_v46 = vadd.f32 %v8124_v44, %v1126_v21 }
 0x339   :  { %v1392_v43 = vpop.f32.mrf.mxu1  ;;  %v10787_v24 = vpop.f32.mrf.mxu0 }
 0x33a   :  { %v10789_v23 = vadd.f32 %v1392_v43, %v1118_v32 }
 0x33b   :  { %v8159_v34 = vpop.f32.mrf.mxu1  ;;  %v10791_v17 = vpop.f32.mrf.mxu0 }
 0x33c   :  { %v10793_v7 = vadd.f32 %v8159_v34, %v1730_v22 }
 0x33d   :  { %v1956_v61 = vpop.f32.mrf.mxu1  ;;  %v10795_v8 = vpop.f32.mrf.mxu0 }
 0x33f   :  { %v8160_v62 = vpop.f32.mrf.mxu1  ;;  %v10797_v29 = vpop.f32.mrf.mxu0 }
 0x341   :  { %v1959_v14 = vpop.f32.mrf.mxu1  ;;  %v10799_v45 = vpop.f32.mrf.mxu0 }
 0x343   :  { %v8163_v21 = vpop.f32.mrf.mxu1  ;;  %v10801_v9 = vpop.f32.mrf.mxu0 }
 0x344   :  { %v10803_v58 = vadd.f32 %v8163_v21, %v1734_v35 }
 0x345   :  { %v1972_v32 = vpop.f32.mrf.mxu1  ;;  %v10805_v26 = vpop.f32.mrf.mxu0 }
 0x347   :  { %v8164_v40 = vpop.f32.mrf.mxu1  ;;  %v10807_v22 = vpop.f32.mrf.mxu0 }
 0x348   :  { %12262 = vst [vmem:[#allocation50_spill] sm:$0xff] %v10807_v22 }
 0x349   :  { %v1975_v16 = vpop.f32.mrf.mxu1  ;;  %v10809_v51 = vpop.f32.mrf.mxu0 }
 0x34a   :  { %12263 = vst [vmem:[#allocation49_spill] sm:$0xff] %v10809_v51 }
 0x34b   :  { %v8167_v50 = vpop.f32.mrf.mxu1  ;;  %v10811_v57 = vpop.f32.mrf.mxu0 }
 0x34c   :  { %12264 = vst [vmem:[#allocation52_spill] sm:$0xff] %v10811_v57  ;;  %v10813_v53 = vadd.f32 %v8167_v50, %v1738_v37 }
 0x34d   :  { %v1988_v48 = vpop.f32.mrf.mxu1  ;;  %v10815_v49 = vpop.f32.mrf.mxu0 }
 0x34e   :  { %12265 = vst [vmem:[#allocation51_spill] sm:$0xff] %v10815_v49 }
 0x34f   :  { %v8168_v27 = vpop.f32.mrf.mxu1  ;;  %v10817_v35 = vpop.f32.mrf.mxu0 }
 0x350   :  { %12266 = vst [vmem:[#allocation70_spill] sm:$0xff] %v10817_v35 }
 0x351   :  { %v10819_v54 = vpop.f32.mrf.mxu1  ;;  %v10821_v33 = vpop.f32.mrf.mxu0 }
 0x352   :  { %12267 = vst [vmem:[#allocation69_spill] sm:$0xff] %v10821_v33 }
 0x353   :  { %v8171_v20 = vpop.f32.mrf.mxu1  ;;  %v10827_v28 = vpop.f32.mrf.mxu0 }
 0x354   :  { %v10823_v11 = vadd.f32 %v8171_v20, %v1742_v2  ;;  %12269 = vst [vmem:[#allocation76_spill] sm:$0xff] %v10827_v28 }
 0x355   :  { %v10825_v6 = vpop.f32.mrf.mxu1  ;;  %v10833_v44 = vpop.f32.mrf.mxu0 }
 0x356   :  { %12268 = vst [vmem:[#allocation116_spill] sm:$0xff] %v10823_v11 }
 0x357   :  { %v10829_v39 = vpop.f32.mrf.mxu1  ;;  %v2829_v21 = vpop.f32.mrf.mxu0 }
 0x358   :  { %12270 = vst [vmem:[#allocation75_spill] sm:$0xff] %v10829_v39 }
 0x359   :  { %v10831_v37 = vpop.f32.mrf.mxu1  ;;  %v10835_v35 = vpop.f32.mrf.mxu0 }
 0x35a   :  { %12271 = vst [vmem:[#allocation118_spill] sm:$0xff] %v10831_v37  ;;  %12272 = vst [vmem:[#allocation107_spill] sm:$0xff] %v10835_v35 }
 0x35b   :  { %v8207_v43 = vpop.f32.mrf.mxu1  ;;  %v10839_v20 = vpop.f32.mrf.mxu0 }
 0x35c   :  { %12274 = vst [vmem:[#allocation54_spill] sm:$0xff] %v10839_v20 }
 0x35d   :  { %v2538_v34 = vpop.f32.mrf.mxu1  ;;  %v10845_v11 = vpop.f32.mrf.mxu0 }
 0x35e   :  { %12277 = vst [vmem:[#allocation55_spill] sm:$0xff] %v10845_v11  ;;  %v1731_v11 = vadd.f32 %v10739_v47, %v10747_v15  ;;  %v1733_v47 = vadd.f32 %v10753_v1, %v10763_v42  ;;  %v1740_v1 = vadd.f32 %v10769_v31, %v10781_v25 }
 0x35f   :  { %v8208_v50 = vpop.f32.mrf.mxu1  ;;  %v10851_v22 = vpop.f32.mrf.mxu0 }
 0x360   :  { %12280 = vst [vmem:[#allocation111_spill] sm:$0xff] %v10851_v22  ;;  %v2022_v22 = vadd.f32 %v8160_v62, %v1731_v11  ;;  %v8491_v11 = vld [vmem:[#allocation9 + $0x18] sm:$0xff]  }
 0x361   :  { %v2541_v63 = vpop.f32.mrf.mxu1  ;;  %v10859_v39 = vpop.f32.mrf.mxu0  ;;  %8289 = vmatprep.subr.bf16.mxu1 %v8491_v11 }
 0x362   :  { %8290 = vmatpush3.bf16.msra.mxu1 %v8491_v11 }
 0x363   :  { %v10837_v33 = vpop.f32.mrf.mxu1 }
 0x364   :  { %12273 = vst [vmem:[#allocation108_spill] sm:$0xff] %v10837_v33  ;;  %v1728_v33 = vadd.f32 %v10737_v41, %v10743_v10  ;;  %v10870_v41 = vpop.f32.mrf.mxu0  ;;  %v1732_v10 = vadd.f32 %v10745_v19, %v10755_v60  ;;  %v2024_v60 = vadd.f32 %v1975_v16, %v1733_v47 }
 0x365   :  { %v2554_v2 = vpop.f32.mrf.mxu1 }
 0x366   :  { %v2019_v20 = vadd.f32 %v1956_v61, %v1728_v33  ;;  %v1735_v61 = vadd.f32 %v10749_v18, %v10759_v56  ;;  %v1737_v18 = vadd.f32 %v10765_v30, %v10775_v0  ;;  %v2316_v30 = vadd.f32 %v10795_v8, %v10803_v58 }
 0x367   :  { %v10841_v49 = vpop.f32.mrf.mxu1  ;;  %v2320_v8 = vadd.f32 %v10805_v26, %v10813_v53  ;;  %v12286_v26 = vld [vmem:[#allocation107_spill] sm:$0xff] }
 0x368   :  { %12275 = vst [vmem:[#allocation53_spill] sm:$0xff] %v10841_v49  ;;  %v2026_v19 = vadd.f32 %v8164_v40, %v1735_v61  ;;  %v12290_v61 = vld [vmem:[#allocation52_spill] sm:$0xff] }
 0x369   :  { %v10843_v28 = vpop.f32.mrf.mxu1 }
 0x36a   :  { %12276 = vst [vmem:[#allocation56_spill] sm:$0xff] %v10843_v28  ;;  %v2310_v28 = vadd.f32 %v10783_v4, %v2019_v20  ;;  %v2312_v4 = vadd.f32 %v10779_v12, %v10793_v7  ;;  %v1743_v12 = vadd.f32 %v10773_v55, %v10785_v46  ;;  %v1741_v7 = vadd.f32 %v10777_v3, %v10789_v23 }
 0x36b   :  { %v10847_v57 = vpop.f32.mrf.mxu1  ;;  %v2317_v16 = vadd.f32 %v10799_v45, %v2026_v19  ;;  %v2315_v55 = vadd.f32 %v10801_v9, %v2024_v60  ;;  %v2031_v3 = vadd.f32 %v10825_v6, %v1740_v1  ;;  %v8492_v6 = vld [vmem:[#allocation9 + $0x10] sm:$0xff]  }
 0x36c   :  { %12278 = vst [vmem:[#allocation78_spill] sm:$0xff] %v10847_v57  ;;  %v1729_v57 = vadd.f32 %v10741_v38, %v10751_v36  ;;  %v1736_v38 = vadd.f32 %v10757_v52, %v10767_v5  ;;  %v1739_v36 = vadd.f32 %v10761_v59, %v10771_v13  ;;  %v2601_v62 = vadd.f32 %v2538_v34, %v2310_v28  ;;  %v10894_v5 = vpop.f32.mrf.mxu0  ;;  %v12285_v28 = vld [vmem:[#allocation49_spill] sm:$0xff] }
 0x36d   :  { %v10849_v51 = vpop.f32.mrf.mxu1  ;;  %v2603_v42 = vadd.f32 %v8207_v43, %v2312_v4  ;;  %v2313_v52 = vadd.f32 %v10787_v24, %v2022_v22  ;;  %v8489_v24 = vld [vmem:[#allocation27] sm:$0xff]   ;;  %8291 = vmatprep.subr.bf16.mxu1 %v8492_v6 }
 0x36e   :  { %12279 = vst [vmem:[#allocation77_spill] sm:$0xff] %v10849_v51  ;;  %v2027_v13 = vadd.f32 %v1988_v48, %v1736_v38  ;;  %v2892_v40 = vadd.f32 %v2829_v21, %v2601_v62  ;;  %v10907_v23 = vpop.f32.mrf.mxu0  ;;  %8285 = vmatprep.mubr.bf16.mxu0 %v8489_v24  ;;  %v12288_v21 = vld [vmem:[#allocation108_spill] sm:$0xff]  ;;  %v12292_v38 = vld [vmem:[#allocation51_spill] sm:$0xff]  ;;  %8292 = vmatpush3.bf16.msra.mxu1 %v8492_v6 }
 0x36f   :  { %v10853_v37 = vpop.f32.mrf.mxu1  ;;  %v2604_v31 = vadd.f32 %v8208_v50, %v2313_v52  ;;  %v2607_v50 = vadd.f32 %v12288_v21, %v2316_v30  ;;  %v12289_v20 = vld [vmem:[#allocation53_spill] sm:$0xff] }
 0x370   :  { %12281 = vst [vmem:[#allocation84_spill] sm:$0xff] %v10853_v37  ;;  %v2020_v37 = vadd.f32 %v1959_v14, %v1729_v57  ;;  %v2023_v14 = vadd.f32 %v1972_v32, %v1732_v10  ;;  %v2030_v32 = vadd.f32 %v8168_v27, %v1739_v36  ;;  %v12282_v57 = vld [vmem:[#allocation75_spill] sm:$0xff]  ;;  %v2608_v10 = vadd.f32 %v12289_v20, %v2317_v16  ;;  %v8240_v62 = vpop.f32.mrf.mxu0 }
 0x371   :  { %v10857_v35 = vpop.f32.mrf.mxu1  ;;  %v2034_v48 = vadd.f32 %v12282_v57, %v1743_v12  ;;  %v2895_v53 = vadd.f32 %v12286_v26, %v2604_v31  ;;  %v12296_v12 = vld [vmem:[#allocation76_spill] sm:$0xff] }
 0x372   :  { %v2311_v59 = vadd.f32 %v10791_v17, %v2020_v37  ;;  %v2028_v17 = vadd.f32 %v10819_v54, %v1737_v18  ;;  %v2314_v22 = vadd.f32 %v10797_v29, %v2023_v14  ;;  %v12283_v29 = vld [vmem:[#allocation118_spill] sm:$0xff]  ;;  %v2321_v37 = vadd.f32 %v12285_v28, %v2030_v32  ;;  %v2864_v57 = vpop.f32.mrf.mxu0 }
 0x373   :  { %v10861_v49 = vpop.f32.mrf.mxu1  ;;  %v2032_v27 = vadd.f32 %v12283_v29, %v1741_v7  ;;  %v12284_v54 = vld [vmem:[#allocation50_spill] sm:$0xff] }
 0x374   :  { %v2602_v25 = vadd.f32 %v2541_v63, %v2311_v59  ;;  %v2894_v63 = vadd.f32 %v10833_v44, %v2603_v42  ;;  %v2605_v45 = vadd.f32 %v2554_v2, %v2314_v22  ;;  %v2318_v9 = vadd.f32 %v12284_v54, %v2027_v13  ;;  %v12287_v44 = vld [vmem:[#allocation54_spill] sm:$0xff]  ;;  %v12291_v2 = vld [vmem:[#allocation116_spill] sm:$0xff]  ;;  %v12295_v59 = vld [vmem:[#allocation69_spill] sm:$0xff] }
 0x375   :  { %v10867_v51 = vpop.f32.mrf.mxu1  ;;  %v2319_v47 = vadd.f32 %v12290_v61, %v2028_v17  ;;  %v10927_v36 = vadd.f32 %v12292_v38, %v12291_v2  ;;  %v12293_v14 = vld [vmem:[#allocation70_spill] sm:$0xff]  ;;  %v12294_v42 = vld [vmem:[#allocation56_spill] sm:$0xff]  ;;  %v10940_v13 = vadd.f32 %v12295_v59, %v2034_v48  ;;  %v10943_v7 = vadd.f32 %v12296_v12, %v2032_v27  ;;  %v12299_v54 = vld [vmem:[#allocation77_spill] sm:$0xff]  ;;  %v8243_v38 = vpop.f32.mrf.mxu0 }
 0x376   :  { %v2893_v34 = vadd.f32 %v12287_v44, %v2602_v25  ;;  %v10930_v19 = vadd.f32 %v12293_v14, %v2031_v3  ;;  %v2606_v52 = vadd.f32 %v12294_v42, %v2315_v55  ;;  %v8495_v17 = vld [vmem:[#allocation9 + $0x8] sm:$0xff]  }
 0x377   :  { %v10878_v15 = vpop.f32.mrf.mxu1  ;;  %v12298_v55 = vld [vmem:[#allocation55_spill] sm:$0xff]  ;;  %8293 = vmatprep.subr.bf16.mxu1 %v8495_v17  ;;  %v12301_v20 = vld [vmem:[#allocation84_spill] sm:$0xff]  ;;  %v2610_v42 = vadd.f32 %v10857_v35, %v2319_v47 }
 0x378   :  { %8294 = vmatpush3.bf16.msra.mxu1 %v8495_v17 }
 0x379   :  { %v10888_v56 = vpop.f32.mrf.mxu1 }
 0x37b   :  { %v8255_v0 = vpop.f32.mrf.mxu1 }
 0x37c   :  { %v10918_v43 = vadd.f32 %v8255_v0, %v2894_v63  ;;  %v12297_v0 = vld [vmem:[#allocation111_spill] sm:$0xff]  ;;  %v2899_v63 = vadd.f32 %v10859_v39, %v2608_v10 }
 0x37d   :  { %v3120_v46 = vpop.f32.mrf.mxu1  ;;  %v2896_v32 = vadd.f32 %v12297_v0, %v2605_v45 }
 0x37e   :  { %v10912_v58 = vadd.f32 %v3120_v46, %v2892_v40  ;;  %v3241_v31 = vmul.f32 %v10918_v43, %v10918_v43  ;;  %v3204_v22 = vsel %vm498_vm1, %v10918_v43, 0.0  ;;  %v2898_v46 = vadd.f32 %v12298_v55, %v2607_v50  ;;  %v12300_v50 = vld [vmem:[#allocation78_spill] sm:$0xff] }
 0x37f   :  { %v8256_v33 = vpop.f32.mrf.mxu1  ;;  %v2611_v6 = vadd.f32 %v12300_v50, %v2320_v8  ;;  %v2613_v55 = vadd.f32 %v10867_v51, %v10930_v19  ;;  %v2616_v51 = vadd.f32 %v10878_v15, %v10940_v13 }
 0x380   :  { %v3239_v60 = vmul.f32 %v10912_v58, %v10912_v58  ;;  %v10934_v18 = vadd.f32 %v8256_v33, %v2895_v53  ;;  %v3201_v25 = vsel %vm498_vm1, %v10912_v58, 0.0  ;;  %v2609_v33 = vadd.f32 %v12299_v54, %v2318_v9 }
 0x381   :  { %v3123_v4 = vpop.f32.mrf.mxu1  ;;  %v2897_v53 = vadd.f32 %v10870_v41, %v2606_v52  ;;  %v3258_v39 = vsel %vm498_vm1, %v3241_v31, 0.0  ;;  %v2612_v9 = vadd.f32 %v12301_v20, %v2321_v37  ;;  %v2902_v35 = vadd.f32 %v10894_v5, %v2611_v6 }
 0x382   :  { %v10936_v1 = vadd.f32 %v3123_v4, %v2893_v34  ;;  %v3255_v48 = vsel %vm498_vm1, %v3239_v60, 0.0  ;;  %v3242_v29 = vmul.f32 %v10934_v18, %v10934_v18  ;;  %v3206_v44 = vsel %vm498_vm1, %v10934_v18, 0.0 }
 0x383   :  { %v8259_v30 = vpop.f32.mrf.mxu1  ;;  %v2900_v37 = vadd.f32 %v10907_v23, %v2609_v33  ;;  %v2901_v5 = vadd.f32 %v2864_v57, %v2610_v42  ;;  %v2615_v54 = vadd.f32 %v10861_v49, %v10927_v36 }
 0x384   :  { %v3202_v40 = vsel %vm498_vm1, %v10936_v1, 0.0  ;;  %v3240_v24 = vmul.f32 %v10936_v1, %v10936_v1  ;;  %v10969_v34 = vadd.f32 %v8259_v30, %v2898_v46  ;;  %v3260_v41 = vsel %vm498_vm1, %v3242_v29, 0.0 }
 0x385   :  { %v3203_v16 = vadd.f32 %v3202_v40, %v3201_v25  ;;  %v3136_v3 = vpop.f32.mrf.mxu1  ;;  %v2903_v40 = vadd.f32 %v8240_v62, %v2612_v9 }
 0x386   :  { %v3256_v27 = vsel %vm498_vm1, %v3240_v24, 0.0  ;;  %v10962_v45 = vadd.f32 %v3136_v3, %v2896_v32  ;;  %v3245_v12 = vmul.f32 %v10969_v34, %v10969_v34  ;;  %v2877_v24 = vpop.f32.mrf.mxu0  ;;  %v3212_v23 = vsel %vm498_vm1, %v10969_v34, 0.0 }
 0x387   :  { %v3205_v11 = vadd.f32 %v3204_v22, %v3203_v16  ;;  %v3257_v28 = vadd.f32 %v3256_v27, %v3255_v48  ;;  %v8260_v26 = vpop.f32.mrf.mxu1  ;;  %v2904_v15 = vadd.f32 %v2877_v24, %v2613_v55 }
 0x388   :  { %v3243_v21 = vmul.f32 %v10962_v45, %v10962_v45  ;;  %v3208_v4 = vsel %vm498_vm1, %v10962_v45, 0.0  ;;  %v10978_v14 = vadd.f32 %v8260_v26, %v2899_v63  ;;  %v3266_v62 = vsel %vm498_vm1, %v3245_v12, 0.0  ;;  %v8244_v57 = vpop.f32.mrf.mxu0 }
 0x389   :  { %v3259_v10 = vadd.f32 %v3258_v39, %v3257_v28  ;;  %v3207_v61 = vadd.f32 %v3206_v44, %v3205_v11  ;;  %v3139_v2 = vpop.f32.mrf.mxu1  ;;  %v2614_v44 = vadd.f32 %v10888_v56, %v10943_v7 }
 0x38a   :  { %v10980_v60 = vadd.f32 %v3139_v2, %v2897_v53  ;;  %v3262_v30 = vsel %vm498_vm1, %v3243_v21, 0.0  ;;  %v3246_v17 = vmul.f32 %v10978_v14, %v10978_v14  ;;  %v3214_v48 = vsel %vm498_vm1, %v10978_v14, 0.0  ;;  %v2880_v56 = vpop.f32.mrf.mxu0 }
 0x38b   :  { %v3209_v52 = vadd.f32 %v3208_v4, %v3207_v61  ;;  %v3261_v8 = vadd.f32 %v3260_v41, %v3259_v10  ;;  %v8263_v59 = vpop.f32.mrf.mxu1  ;;  %v2906_v61 = vadd.f32 %v8243_v38, %v2615_v54  ;;  %v2905_v12 = vadd.f32 %v2880_v56, %v2614_v44 }
 0x38c   :  { %v3210_v0 = vsel %vm498_vm1, %v10980_v60, 0.0  ;;  %v3244_v32 = vmul.f32 %v10980_v60, %v10980_v60  ;;  %v11004_v29 = vadd.f32 %v8263_v59, %v2902_v35  ;;  %v3268_v28 = vsel %vm498_vm1, %v3246_v17, 0.0 }
 0x38d   :  { %v3263_v31 = vadd.f32 %v3262_v30, %v3261_v8  ;;  %v3211_v25 = vadd.f32 %v3210_v0, %v3209_v52  ;;  %v3152_v47 = vpop.f32.mrf.mxu1  ;;  %v2907_v59 = vadd.f32 %v8244_v57, %v2616_v51 }
 0x38e   :  { %v3264_v22 = vsel %vm498_vm1, %v3244_v32, 0.0  ;;  %v10997_v16 = vadd.f32 %v3152_v47, %v2900_v37  ;;  %v3249_v13 = vmul.f32 %v11004_v29, %v11004_v29  ;;  %v3220_v7 = vsel %vm498_vm1, %v11004_v29, 0.0 }
 0x38f   :  { %v3213_v46 = vadd.f32 %v3212_v23, %v3211_v25  ;;  %v3265_v3 = vadd.f32 %v3264_v22, %v3263_v31  ;;  %v8264_v63 = vpop.f32.mrf.mxu1 }
 0x390   :  { %v3247_v27 = vmul.f32 %v10997_v16, %v10997_v16  ;;  %v3216_v26 = vsel %vm498_vm1, %v10997_v16, 0.0  ;;  %v11015_v53 = vadd.f32 %v8264_v63, %v2903_v40  ;;  %v3274_v30 = vsel %vm498_vm1, %v3249_v13, 0.0 }
 0x391   :  { %v3267_v19 = vadd.f32 %v3266_v62, %v3265_v3  ;;  %v3215_v33 = vadd.f32 %v3214_v48, %v3213_v46  ;;  %v3155_v11 = vpop.f32.mrf.mxu1 }
 0x392   :  { %v11017_v39 = vadd.f32 %v3155_v11, %v2901_v5  ;;  %v3270_v50 = vsel %vm498_vm1, %v3247_v27, 0.0  ;;  %v3250_v41 = vmul.f32 %v11015_v53, %v11015_v53  ;;  %v3222_v38 = vsel %vm498_vm1, %v11015_v53, 0.0 }
 0x393   :  { %v3217_v49 = vadd.f32 %v3216_v26, %v3215_v33  ;;  %v3269_v36 = vadd.f32 %v3268_v28, %v3267_v19  ;;  %v8267_v21 = vpop.f32.mrf.mxu1 }
 0x394   :  { %v3218_v6 = vsel %vm498_vm1, %v11017_v39, 0.0  ;;  %v3248_v20 = vmul.f32 %v11017_v39, %v11017_v39  ;;  %v3197_v0 = vadd.f32 %v8267_v21, %v2906_v61  ;;  %v3276_v47 = vsel %vm498_vm1, %v3250_v41, 0.0 }
 0x395   :  { %v3271_v9 = vadd.f32 %v3270_v50, %v3269_v36  ;;  %v3219_v10 = vadd.f32 %v3218_v6, %v3217_v49  ;;  %v3168_v2 = vpop.f32.mrf.mxu1 }
 0x396   :  { %v3272_v4 = vsel %vm498_vm1, %v3248_v20, 0.0  ;;  %v11033_v42 = vadd.f32 %v3168_v2, %v2904_v15  ;;  %v3253_v55 = vmul.f32 %v3197_v0, %v3197_v0  ;;  %v3228_v48 = vsel %vm498_vm1, %v3197_v0, 0.0 }
 0x397   :  { %v3221_v52 = vadd.f32 %v3220_v7, %v3219_v10  ;;  %v3273_v8 = vadd.f32 %v3272_v4, %v3271_v9  ;;  %v8268_v37 = vpop.f32.mrf.mxu1 }
 0x398   :  { %v3251_v32 = vmul.f32 %v11033_v42, %v11033_v42  ;;  %v3224_v40 = vsel %vm498_vm1, %v11033_v42, 0.0  ;;  %v3198_v24 = vadd.f32 %v8268_v37, %v2907_v59  ;;  %v3282_v33 = vsel %vm498_vm1, %v3253_v55, 0.0  ;;  %v3199_v59 = vld [vmem:[#allocation15] sm:$0x1] }
 0x399   :  { %v3275_v31 = vadd.f32 %v3274_v30, %v3273_v8  ;;  %v3223_v25 = vadd.f32 %v3222_v38, %v3221_v52  ;;  %v3171_v35 = vpop.f32.mrf.mxu1  ;;  %v3200_v30 = vld [vmem:[#allocation16] sm:$0x1] }
 0x39a   :  { %v3196_v23 = vadd.f32 %v3171_v35, %v2905_v12  ;;  %v3278_v46 = vsel %vm498_vm1, %v3251_v32, 0.0  ;;  %v3254_v27 = vmul.f32 %v3198_v24, %v3198_v24  ;;  %v3230_v11 = vsel %vm498_vm1, %v3198_v24, 0.0  ;;  %v12302_v32 = vld [vmem:[#allocation104_spill] sm:$0xff] }
 0x39b   :  { %v3225_v17 = vadd.f32 %v3224_v40, %v3223_v25  ;;  %v3277_v22 = vadd.f32 %v3276_v47, %v3275_v31 }
 0x39c   :  { %v3226_v3 = vsel %vm498_vm1, %v3196_v23, 0.0  ;;  %v3252_v63 = vmul.f32 %v3196_v23, %v3196_v23  ;;  %v3284_v26 = vsel %vm498_vm1, %v3254_v27, 0.0 }
 0x39d   :  { %v3279_v5 = vadd.f32 %v3278_v46, %v3277_v22  ;;  %v3227_v62 = vadd.f32 %v3226_v3, %v3225_v17 }
 0x39e   :  { %v3280_v54 = vsel %vm498_vm1, %v3252_v63, 0.0 }
 0x39f   :  { %v3229_v51 = vadd.f32 %v3228_v48, %v3227_v62  ;;  %v3281_v19 = vadd.f32 %v3280_v54, %v3279_v5 }
 0x3a1   :  { %v3231_v57 = vadd.f32 %v3230_v11, %v3229_v51  ;;  %v3283_v28 = vadd.f32 %v3282_v33, %v3281_v19 }
 0x3a3   :  { %v3232_v44 = vrot.slane %v3231_v57, 4  ;;  %v3285_v49 = vadd.f32 %v3284_v26, %v3283_v28 }
 0x3a5   :  { %v3233_v36 = vadd.f32 %v3232_v44, %v3231_v57  ;;  %v3286_v21 = vrot.slane %v3285_v49, 4 }
 0x3a7   :  { %v3234_v15 = vrot.slane %v3233_v36, 2  ;;  %v3287_v13 = vadd.f32 %v3286_v21, %v3285_v49 }
 0x3a9   :  { %v3235_v50 = vadd.f32 %v3234_v15, %v3233_v36  ;;  %v3288_v6 = vrot.slane %v3287_v13, 2  ;;  %v12303_v15 = vld [vmem:[#allocation99_spill] sm:$0xff] }
 0x3aa   :  { %vm3529_vm4 = vcmp.lt.s32.totalorder %v12303_v15, 5  ;;  %vm3866_vm5 = vcmp.lt.s32.totalorder %v12303_v15, 3  ;;  %vm3734_vm6 = vcmp.lt.s32.totalorder %v12303_v15, 4  ;;  %vm6154_vm7 = vcmp.lt.s32.totalorder %v12303_v15, 6 }
 0x3ab   :  { %v3236_v20 = vrot.slane %v3235_v50, 1  ;;  %v3289_v9 = vadd.f32 %v3288_v6, %v3287_v13 }
 0x3ad   :  { %v3237_v10 = vadd.f32 %v3236_v20, %v3235_v50  ;;  %v3290_v61 = vrot.slane %v3289_v9, 1 }
 0x3af   :  { %v3238_v2 = vmul.f32 0.0078125, %v3237_v10  ;;  %v3291_v56 = vadd.f32 %v3290_v61, %v3289_v9 }
 0x3b1   :  { %v3292_v7 = vmul.f32 0.0078125, %v3291_v56  ;;  %v3293_v41 = vmul.f32 %v3238_v2, %v3238_v2 }
 0x3b3   :  { %v3294_v4 = vsub.f32 %v3292_v7, %v3293_v41 }
 0x3b5   :  { %v3295_v52 = vmax.f32 %v3294_v4, 0.0 }
 0x3b7   :  { %v3296_v8 = vadd.f32 1e-05, %v3295_v52 }
 0x3b9   :  { %8794 = vrsqrt.f32 %v3296_v8 }
 0x3c6   :  { %v8795_v37 = vpop.eup %8794 }
 0x3c7   :  { %v3298_v12 = vmul.f32 %v8795_v37, %v3199_v59 }
 0x3c9   :  { %v3299_v38 = vmul.f32 %v3298_v12, %v3238_v2  ;;  %v11051_v31 = vrot.slane %v3298_v12, %v12302_v32 }
 0x3cb   :  { %v3300_v25 = vsub.f32 %v3200_v30, %v3299_v38  ;;  %v3320_v35 = vmul.f32 %v11051_v31, %v3196_v23  ;;  %v3307_v47 = vmul.f32 %v11051_v31, %v10912_v58  ;;  %v3308_v40 = vmul.f32 %v11051_v31, %v10936_v1 }
 0x3cc   :  { %v3321_v17 = vmul.f32 %v11051_v31, %v3197_v0  ;;  %v3322_v22 = vmul.f32 %v11051_v31, %v3198_v24  ;;  %v3319_v55 = vmul.f32 %v11051_v31, %v11033_v42  ;;  %v3317_v46 = vmul.f32 %v11051_v31, %v11004_v29 }
 0x3cd   :  { %v11065_v3 = vrot.slane %v3300_v25, %v12302_v32  ;;  %v3318_v23 = vmul.f32 %v11051_v31, %v11015_v53  ;;  %v3315_v58 = vmul.f32 %v11051_v31, %v10997_v16  ;;  %v3316_v1 = vmul.f32 %v11051_v31, %v11017_v39 }
 0x3ce   :  { %v11075_v0 = vmul.f32 %v11051_v31, %v10969_v34  ;;  %v11079_v42 = vmul.f32 %v11051_v31, %v10978_v14  ;;  %v11083_v29 = vmul.f32 %v11051_v31, %v10962_v45  ;;  %v11087_v53 = vmul.f32 %v11051_v31, %v10980_v60 }
 0x3cf   :  { %v3342_v16 = vadd.f32 %v11065_v3, %v3320_v35  ;;  %v3329_v39 = vadd.f32 %v11065_v3, %v3307_v47  ;;  %v3330_v24 = vadd.f32 %v11065_v3, %v3308_v40  ;;  %v3343_v34 = vadd.f32 %v11065_v3, %v3321_v17 }
 0x3d0   :  { %v3344_v63 = vadd.f32 %v11065_v3, %v3322_v22  ;;  %v3341_v14 = vadd.f32 %v11065_v3, %v3319_v55  ;;  %v3339_v5 = vadd.f32 %v11065_v3, %v3317_v46  ;;  %v3340_v45 = vadd.f32 %v11065_v3, %v3318_v23 }
 0x3d1   :  { %v3358_v62 = vmax.f32 %v3342_v16, 0.0  ;;  %v11097_v48 = vmax.f32 %v3329_v39, 0.0  ;;  %v11099_v60 = vmax.f32 %v3330_v24, 0.0  ;;  %v3359_v27 = vmax.f32 %v3343_v34, 0.0 }
 0x3d2   :  { %v3360_v54 = vmax.f32 %v3344_v63, 0.0  ;;  %v3357_v51 = vmax.f32 %v3341_v14, 0.0  ;;  %v3355_v19 = vmax.f32 %v3339_v5, 0.0  ;;  %v3356_v33 = vmax.f32 %v3340_v45, 0.0 }
 0x3d3   :  { %v3361_v11 = vrot.slane %v11097_v48, 1  ;;  %v3362_v57 = vrot.slane %v11099_v60, 1  ;;  %v3375_v28 = vrot.slane %v3359_v27, 1  ;;  %v3374_v26 = vrot.slane %v3358_v62, 1 }
 0x3d4   :  { %v3376_v44 = vrot.slane %v3360_v54, 1  ;;  %v3373_v49 = vrot.slane %v3357_v51, 1  ;;  %v3371_v36 = vrot.slane %v3355_v19, 1  ;;  %v3372_v21 = vrot.slane %v3356_v33, 1 }
 0x3d5   :  { %v11107_v13 = vsel %vm1436_vm2, %v3361_v11, %v3362_v57  ;;  %v3378_v50 = vsel %vm1436_vm2, %v3374_v26, %v3375_v28  ;;  %v3337_v6 = vadd.f32 %v11065_v3, %v3315_v58  ;;  %v3338_v20 = vadd.f32 %v11065_v3, %v3316_v1 }
 0x3d6   :  { %v3377_v9 = vsel %vm1436_vm2, %v3375_v28, %v3376_v44  ;;  %v3392_v10 = vsel %vm1436_vm2, %v3376_v44, %v3361_v11  ;;  %v3393_v61 = vmax.f32 %v11097_v48, %v11107_v13  ;;  %v3379_v2 = vsel %vm1436_vm2, %v3373_v49, %v3374_v26 }
 0x3d7   :  { %v3407_v56 = vmax.f32 %v3359_v27, %v3377_v9  ;;  %v3408_v7 = vmax.f32 %v3360_v54, %v3392_v10  ;;  %v3405_v41 = vmax.f32 %v3357_v51, %v3379_v2  ;;  %v3406_v4 = vmax.f32 %v3358_v62, %v3378_v50 }
 0x3d8   :  { %v3380_v52 = vsel %vm1436_vm2, %v3372_v21, %v3373_v49  ;;  %v3381_v8 = vsel %vm1436_vm2, %v3371_v36, %v3372_v21  ;;  %v11125_v59 = vmax.f32 %v3337_v6, 0.0  ;;  %v3354_v37 = vmax.f32 %v3338_v20, 0.0 }
 0x3d9   :  { %v3423_v12 = vmax.f32 %v3407_v56, %v3360_v54  ;;  %v3424_v30 = vmax.f32 %v3408_v7, %v11097_v48  ;;  %v3421_v38 = vmax.f32 %v3405_v41, %v3358_v62  ;;  %v3422_v25 = vmax.f32 %v3406_v4, %v3359_v27 }
 0x3da   :  { %v3403_v35 = vmax.f32 %v3355_v19, %v3381_v8  ;;  %v3404_v47 = vmax.f32 %v3356_v33, %v3380_v52  ;;  %v3369_v40 = vrot.slane %v11125_v59, 1  ;;  %v3370_v17 = vrot.slane %v3354_v37, 1 }
 0x3db   :  { %v3439_v22 = vmax.f32 %v3423_v12, %v3392_v10  ;;  %v3440_v55 = vmax.f32 %v3424_v30, %v11107_v13  ;;  %v3437_v46 = vmax.f32 %v3421_v38, %v3378_v50  ;;  %v3438_v23 = vmax.f32 %v3422_v25, %v3377_v9 }
 0x3dc   :  { %v3419_v58 = vmax.f32 %v3403_v35, %v3356_v33  ;;  %v3420_v1 = vmax.f32 %v3404_v47, %v3357_v51  ;;  %v3382_v16 = vsel %vm1436_vm2, %v3370_v17, %v3371_v36  ;;  %v11134_v39 = vsel %vm1436_vm2, %v3369_v40, %v3370_v17 }
 0x3dd   :  { %v3448_v24 = vpack.c.bf16 %v3440_v55, %v3439_v22  ;;  %v3447_v34 = vpack.c.bf16 %v3438_v23, %v3437_v46  ;;  %v3401_v63 = vmax.f32 %v11125_v59, %v11134_v39  ;;  %v3402_v14 = vmax.f32 %v3354_v37, %v3382_v16 }
 0x3de   :  { %v3435_v5 = vmax.f32 %v3419_v58, %v3380_v52  ;;  %v3436_v45 = vmax.f32 %v3420_v1, %v3379_v2  ;;  %v3335_v62 = vadd.f32 %v11065_v3, %v11075_v0  ;;  %v3336_v48 = vadd.f32 %v11065_v3, %v11079_v42 }
 0x3df   :  { %8269 = vmatprep.subr.bf16.mxu0 %v3448_v24  ;;  %v3417_v27 = vmax.f32 %v3401_v63, %v3354_v37  ;;  %v3418_v54 = vmax.f32 %v3402_v14, %v3355_v19  ;;  %v3333_v51 = vadd.f32 %v11065_v3, %v11083_v29  ;;  %v3334_v33 = vadd.f32 %v11065_v3, %v11087_v53 }
 0x3e0   :  { %8270 = vmatpush3.bf16.msra.mxu0 %v3448_v24  ;;  %v3446_v11 = vpack.c.bf16 %v3436_v45, %v3435_v5  ;;  %v3351_v28 = vmax.f32 %v3335_v62, 0.0  ;;  %v3352_v26 = vmax.f32 %v3336_v48, 0.0  ;;  %v3309_v44 = vmul.f32 %v11051_v31, %v10918_v43  ;;  %v8493_v5 = vld [vmem:[#allocation9 + $0x98] sm:$0xff]   ;;  %v8494_v62 = vld [vmem:[#allocation9 + $0x90] sm:$0xff]   ;;  %v8496_v48 = vld [vmem:[#allocation9 + $0x88] sm:$0xff]  }
 0x3e1   :  { %8271 = vmatprep.subr.bf16.mxu0 %v3447_v34  ;;  %v3433_v0 = vmax.f32 %v3417_v27, %v3382_v16  ;;  %v3434_v49 = vmax.f32 %v3418_v54, %v3381_v8  ;;  %v3349_v42 = vmax.f32 %v3333_v51, 0.0  ;;  %v3350_v36 = vmax.f32 %v3334_v33, 0.0  ;;  %v8490_v45 = vld [vmem:[#allocation27 + $0x8] sm:$0xff]   ;;  %v8497_v27 = vld [vmem:[#allocation9 + $0x80] sm:$0xff]  }
 0x3e2   :  { %v3367_v21 = vrot.slane %v3351_v28, 1  ;;  %v3368_v19 = vrot.slane %v3352_v26, 1  ;;  %v3310_v29 = vmul.f32 %v11051_v31, %v10934_v18  ;;  %v3331_v13 = vadd.f32 %v11065_v3, %v3309_v44  ;;  %v8498_v54 = vld [vmem:[#allocation9] sm:$0xff]   ;;  %v8499_v51 = vld [vmem:[#allocation9 + $0x58] sm:$0xff]  }
 0x3e3   :  { %v3445_v53 = vpack.c.bf16 %v3434_v49, %v3433_v0  ;;  %v3365_v50 = vrot.slane %v3349_v42, 1  ;;  %v3366_v6 = vrot.slane %v3350_v36, 1  ;;  %v3409_v20 = vmax.f32 %v3393_v61, %v11099_v60  ;;  %8295 = vmatprep.subr.bf16.mxu1 %v8498_v54  ;;  %v11172_v33 = vld [vmem:[#allocation9 + $0x38] sm:$0xff]  }
 0x3e4   :  { %8272 = vmatpush3.bf16.msra.mxu0 %v3447_v34  ;;  %v3384_v43 = vsel %vm1436_vm2, %v3368_v19, %v3369_v40  ;;  %v3385_v9 = vsel %vm1436_vm2, %v3367_v21, %v3368_v19  ;;  %v3332_v10 = vadd.f32 %v11065_v3, %v3310_v29  ;;  %v3347_v2 = vmax.f32 %v3331_v13, 0.0  ;;  %8296 = vmatpush3.bf16.msra.mxu1 %v8498_v54 }
 0x3e5   :  { %8273 = vmatprep.subr.bf16.mxu0 %v3446_v11  ;;  %v3399_v56 = vmax.f32 %v3351_v28, %v3385_v9  ;;  %v3400_v18 = vmax.f32 %v3352_v26, %v3384_v43  ;;  %v3386_v31 = vsel %vm1436_vm2, %v3366_v6, %v3367_v21  ;;  %v3387_v7 = vsel %vm1436_vm2, %v3365_v50, %v3366_v6 }
 0x3e6   :  { %v3397_v61 = vmax.f32 %v3349_v42, %v3387_v7  ;;  %v3398_v41 = vmax.f32 %v3350_v36, %v3386_v31  ;;  %v3348_v4 = vmax.f32 %v3332_v10, 0.0  ;;  %v3363_v52 = vrot.slane %v3347_v2, 1  ;;  %8313 = vmatprep.subr.bf16.mxu1 %v11172_v33 }
 0x3e7   :  { %v3415_v8 = vmax.f32 %v3399_v56, %v3352_v26  ;;  %v3416_v37 = vmax.f32 %v3400_v18, %v11125_v59 }
 0x3e8   :  { %8274 = vmatpush3.bf16.msra.mxu0 %v3446_v11  ;;  %v3413_v12 = vmax.f32 %v3397_v61, %v3350_v36  ;;  %v3414_v3 = vmax.f32 %v3398_v41, %v3351_v28  ;;  %v3364_v30 = vrot.slane %v3348_v4, 1  ;;  %v3390_v38 = vsel %vm1436_vm2, %v3362_v57, %v3363_v52  ;;  %v11175_v11 = vpop.permute.xlu1 %3545  ;;  %v11177_v28 = vpop.permute.xlu0 %3540 }
 0x3e9   :  { %8275 = vmatprep.subr.bf16.mxu0 %v3445_v53  ;;  %v3431_v25 = vmax.f32 %v3415_v8, %v3384_v43  ;;  %v3432_v35 = vmax.f32 %v3416_v37, %v11134_v39  ;;  %v3394_v47 = vmax.f32 %v11099_v60, %v3390_v38  ;;  %v3425_v40 = vmax.f32 %v3409_v20, %v3390_v38 }
 0x3ea   :  { %v3429_v17 = vmax.f32 %v3413_v12, %v3386_v31  ;;  %v3430_v22 = vmax.f32 %v3414_v3, %v3385_v9  ;;  %v3388_v59 = vsel %vm1436_vm2, %v3364_v30, %v3365_v50  ;;  %v3389_v55 = vsel %vm1436_vm2, %v3363_v52, %v3364_v30 }
 0x3eb   :  { %v3444_v46 = vpack.c.bf16 %v3432_v35, %v3431_v25  ;;  %v3395_v23 = vmax.f32 %v3347_v2, %v3389_v55  ;;  %v3396_v58 = vmax.f32 %v3348_v4, %v3388_v59  ;;  %v3410_v1 = vmax.f32 %v3394_v47, %v3347_v2  ;;  %v8500_v25 = vld [vmem:[#allocation9 + $0x50] sm:$0xff]  }
 0x3ec   :  { %8276 = vmatpush3.bf16.msra.mxu0 %v3445_v53  ;;  %v3443_v57 = vpack.c.bf16 %v3430_v22, %v3429_v17  ;;  %v11179_v26 = vpop.permute.xlu1 %3555  ;;  %v11181_v44 = vpop.permute.xlu0 %3550 }
 0x3ed   :  { %8277 = vmatprep.subr.bf16.mxu0 %v3444_v46  ;;  %v3411_v16 = vmax.f32 %v3395_v23, %v3348_v4  ;;  %v3412_v39 = vmax.f32 %v3396_v58, %v3349_v42  ;;  %v3426_v24 = vmax.f32 %v3410_v1, %v3389_v55 }
 0x3ef   :  { %v3427_v60 = vmax.f32 %v3411_v16, %v3388_v59  ;;  %v3428_v34 = vmax.f32 %v3412_v39, %v3387_v7  ;;  %v3441_v63 = vpack.c.bf16 %v3426_v24, %v3425_v40 }
 0x3f0   :  { %8278 = vmatpush3.bf16.msra.mxu0 %v3444_v46  ;;  %v3752_v0 = vpop.permute.xlu1 %3751  ;;  %v3747_v49 = vpop.permute.xlu0 %3746 }
 0x3f1   :  { %8279 = vmatprep.subr.bf16.mxu0 %v3443_v57  ;;  %v3442_v14 = vpack.c.bf16 %v3428_v34, %v3427_v60 }
 0x3f4   :  { %8280 = vmatpush3.bf16.msra.mxu0 %v3443_v57  ;;  %v11183_v42 = vpop.permute.xlu1 %3761  ;;  %v11185_v36 = vpop.permute.xlu0 %3756 }
 0x3f5   :  { %8281 = vmatprep.subr.bf16.mxu0 %v3442_v14 }
 0x3f8   :  { %8282 = vmatpush3.bf16.msra.mxu0 %v3442_v14  ;;  %v3884_v21 = vpop.permute.xlu1 %3883  ;;  %v3879_v19 = vpop.permute.xlu0 %3878 }
 0x3f9   :  { %8283 = vmatprep.subr.bf16.mxu0 %v3441_v63 }
 0x3fc   :  { %8284 = vmatpush3.bf16.msra.mxu0 %v3441_v63  ;;  %v11187_v29 = vpop.permute.xlu1 %3893  ;;  %v11189_v13 = vpop.permute.xlu0 %3888 }
 0x3fd   :  { %8301 = vmatprep.subr.bf16.mxu0 %v8493_v5 }
 0x3ff   :  { %8286 = vmatmul.mubr.bf16.vlgmr.msra.gmra.mxu0 %v8490_v45  ;;  %v8503_v45 = vld [vmem:[#allocation9 + $0x30] sm:$0xff]  }
 0x400   :  { %8302 = vmatpush3.bf16.msra.mxu0 %v8493_v5  ;;  %v11193_v50 = vpop.permute.xlu1 %4014  ;;  %v11195_v6 = vpop.permute.xlu0 %4009  ;;  %v8502_v5 = vld [vmem:[#allocation9 + $0x48] sm:$0xff]  }
 0x401   :  { %8303 = vmatprep.subr.bf16.mxu0 %v8494_v62 }
 0x404   :  { %8304 = vmatpush3.bf16.msra.mxu0 %v8494_v62  ;;  %v11211_v61 = vpop.permute.xlu1 %4024  ;;  %v11213_v41 = vpop.permute.xlu0 %4019 }
 0x405   :  { %8305 = vmatprep.subr.bf16.mxu0 %v8496_v48 }
 0x408   :  { %8306 = vmatpush3.bf16.msra.mxu0 %v8496_v48  ;;  %v4146_v24 = vpop.permute.xlu1 %4145  ;;  %v4141_v60 = vpop.permute.xlu0 %4140 }
 0x409   :  { %8307 = vmatprep.subr.bf16.mxu0 %v8497_v27 }
 0x40c   :  { %8308 = vmatpush3.bf16.msra.mxu0 %v8497_v27 }
 0x40d   :  { %8325 = vmatprep.subr.bf16.mxu0 %v8499_v51 }
 0x4bf   :  { %v11191_v53 = vpop.f32.mrf.mxu0 }
 0x4c0   :  { %v3527_v9 = vrot.slane %v11191_v53, 3  ;;  %v3864_v27 = vrot.slane %v11191_v53, 5  ;;  %v4127_v54 = vrot.slane %v11191_v53, 1 }
 0x4c1   :  { %v11197_v20 = vpop.f32.mrf.mxu0 }
 0x4c2   :  { %v3525_v2 = vrot.slane %v11197_v20, 3  ;;  %v3862_v56 = vrot.slane %v11197_v20, 5  ;;  %v3730_v12 = vrot.slane %v11197_v20, 4 }
 0x4c3   :  { %v11199_v43 = vpop.f32.mrf.mxu0 }
 0x4c4   :  { %v3528_v10 = vrot.slane %v11199_v43, 3  ;;  %v3733_v18 = vrot.slane %v11199_v43, 4  ;;  %v3865_v31 = vrot.slane %v11199_v43, 5  ;;  %v3515_v3 = vpack.c.bf16 %v11199_v43, %v11191_v53 }
 0x4c5   :  { %v11209_v7 = vpop.f32.mrf.mxu0 }
 0x4c6   :  { %v11217_v4 = vsel %vm3529_vm4, %v3527_v9, %v3528_v10  ;;  %v3526_v52 = vrot.slane %v11209_v7, 3  ;;  %v3731_v8 = vrot.slane %v11209_v7, 4  ;;  %v3863_v37 = vrot.slane %v11209_v7, 5 }
 0x4c7   :  { %v3514_v30 = vpack.c.bf16 %v11209_v7, %v11197_v20  ;;  %v11238_v47 = vsel %vm3529_vm4, %v3528_v10, %v3525_v2  ;;  %v3561_v17 = vmul.f32 %v11179_v26, %v11217_v4  ;;  %v11256_v46 = vsel %vm3866_vm5, %v3865_v31, %v3862_v56 }
 0x4c8   :  { %v11230_v38 = vsel %vm3529_vm4, %v3526_v52, %v3527_v9  ;;  %v11234_v35 = vsel %vm3529_vm4, %v3525_v2, %v3526_v52  ;;  %v11242_v40 = vsel %vm3866_vm5, %v3862_v56, %v3863_v37  ;;  %v3558_v59 = vmul.f32 %v11177_v28, %v11238_v47  ;;  %v11289_v9 = vpop.permute.xlu0 %4150 }
 0x4c9   :  { %v3560_v22 = vmul.f32 %v11181_v44, %v11230_v38  ;;  %8309 = vmatprep.mubr.msk.bf16.mxu0 %vm498_vm1, %v3514_v30  ;;  %v3559_v55 = vmul.f32 %v11175_v11, %v11234_v35  ;;  %v3897_v23 = vmul.f32 %v3884_v21, %v11242_v40  ;;  %v11263_v58 = vsel %vm3734_vm6, %v3730_v12, %v3731_v8 }
 0x4ca   :  { %8310 = vmatmul.mubr.msk.bf16.vlgmr.msra.gmra.mxu0 %vm498_vm1, %v3515_v3  ;;  %v11269_v1 = vsel %vm3734_vm6, %v3733_v18, %v3730_v12  ;;  %v3896_v16 = vmul.f32 %v3879_v19, %v11256_v46  ;;  %v3765_v63 = vmul.f32 %v3752_v0, %v11263_v58  ;;  %v4126_v62 = vrot.slane %v11209_v7, 1  ;;  %v8504_v0 = vld [vmem:[#allocation9 + $0x40] sm:$0xff]   ;;  %v11287_v19 = vpop.permute.xlu1 %4155  ;;  %v8506_v12 = vld [vmem:[#allocation9 + $0xb8] sm:$0xff]  }
 0x4cb   :  { %8326 = vmatpush3.bf16.msra.mxu0 %v8499_v51  ;;  %v3562_v57 = vpack.c.bf16 %v3559_v55, %v3558_v59  ;;  %v3563_v39 = vpack.c.bf16 %v3561_v17, %v3560_v22  ;;  %v3764_v34 = vmul.f32 %v3747_v49, %v11269_v1  ;;  %v4125_v51 = vrot.slane %v11197_v20, 1  ;;  %v8505_v49 = vld [vmem:[#allocation9 + $0x28] sm:$0xff]  }
 0x4cc   :  { %8327 = vmatprep.subr.bf16.mxu0 %v8500_v25  ;;  %v3900_v14 = vpack.c.bf16 %v3897_v23, %v3896_v16  ;;  %v11285_v21 = vsel %vm3866_vm5, %v3863_v37, %v3864_v27  ;;  %v4130_v10 = vsel %vm1436_vm2, %v4126_v62, %v4127_v54  ;;  %v3995_v2 = vrot.slane %v11209_v7, 7  ;;  %v4264_v23 = vpop.permute.xlu0 %4263  ;;  %v8508_v16 = vld [vmem:[#allocation9 + $0xb0] sm:$0xff]  }
 0x4cd   :  { %8297 = vmatprep.mubr.msk.bf16.mxu1 %vm498_vm1, %v3562_v57  ;;  %v3768_v48 = vpack.c.bf16 %v3765_v63, %v3764_v34  ;;  %v11302_v56 = vsel %vm3866_vm5, %v3864_v27, %v3865_v31  ;;  %v3732_v52 = vrot.slane %v11191_v53, 4  ;;  %v3898_v37 = vmul.f32 %v11189_v13, %v11285_v21 }
 0x4ce   :  { %8298 = vmatmul.mubr.msk.bf16.vlgmr.msra.gmra.mxu1 %vm498_vm1, %v3563_v39  ;;  %8333 = vmatprep.mubr.msk.bf16.mxu0 %vm498_vm1, %v3900_v14  ;;  %v3994_v3 = vrot.slane %v11197_v20, 7  ;;  %v3997_v30 = vrot.slane %v11199_v43, 7  ;;  %v4159_v22 = vmul.f32 %v4146_v24, %v4130_v10  ;;  %v3899_v31 = vmul.f32 %v11187_v29, %v11302_v56  ;;  %v11319_v55 = vpop.permute.xlu1 %4268  ;;  %v8509_v24 = vld [vmem:[#allocation9 + $0x78] sm:$0xff]  }
 0x4cf   :  { %8328 = vmatpush3.bf16.msra.mxu0 %v8500_v25  ;;  %8314 = vmatpush3.bf16.msra.mxu1 %v11172_v33  ;;  %v4131_v33 = vsel %vm1436_vm2, %v4125_v51, %v4126_v62  ;;  %v8507_v25 = vld [vmem:[#allocation9 + $0x20] sm:$0xff]   ;;  %v3736_v59 = vsel %vm3734_vm6, %v3731_v8, %v3732_v52  ;;  %v11325_v29 = vsel %vm3734_vm6, %v3732_v52, %v3733_v18  ;;  %v4128_v63 = vrot.slane %v11199_v43, 1 }
 0x4d0   :  { %8321 = vmatprep.mubr.msk.bf16.mxu1 %vm498_vm1, %v3768_v48  ;;  %8329 = vmatprep.subr.bf16.mxu0 %v8502_v5  ;;  %v4158_v17 = vmul.f32 %v4141_v60, %v4131_v33  ;;  %v4000_v13 = vsel %vm694_vm3, %v3994_v3, %v3995_v2  ;;  %v3901_v57 = vpack.c.bf16 %v3899_v31, %v3898_v37  ;;  %v11341_v48 = vpop.permute.xlu0 %4273  ;;  %v3996_v33 = vrot.slane %v11191_v53, 7  ;;  %v8519_v31 = vld [vmem:[#allocation9 + $0xd0] sm:$0xff]  }
 0x4d1   :  { %8315 = vmatprep.subr.bf16.mxu1 %v8503_v45  ;;  %v3766_v39 = vmul.f32 %v11185_v36, %v3736_v59  ;;  %v4001_v60 = vsel %vm694_vm3, %v3997_v30, %v3994_v3  ;;  %v4028_v34 = vmul.f32 %v11193_v50, %v4000_v13  ;;  %v3767_v18 = vmul.f32 %v11183_v42, %v11325_v29  ;;  %v8512_v42 = vld [vmem:[#allocation9 + $0xa0] sm:$0xff]  }
 0x4d2   :  { %v4162_v8 = vpack.c.bf16 %v4159_v22, %v4158_v17  ;;  %v4027_v36 = vmul.f32 %v11195_v6, %v4001_v60  ;;  %v11339_v62 = vpop.permute.xlu1 %4278  ;;  %v8513_v6 = vld [vmem:[#allocation9 + $0x68] sm:$0xff]   ;;  %v4129_v27 = vsel %vm1436_vm2, %v4127_v54, %v4128_v63  ;;  %v8515_v3 = vld [vmem:[#allocation9 + $0x60] sm:$0xff]   ;;  %v8517_v17 = vld [vmem:[#allocation9 + $0xd8] sm:$0xff]   ;;  %v4281_v7 = vmul.f32 %v4264_v23, %v11234_v35 }
 0x4d3   :  { %8330 = vmatpush3.bf16.msra.mxu0 %v8502_v5  ;;  %8316 = vmatpush3.bf16.msra.mxu1 %v8503_v45  ;;  %v3769_v14 = vpack.c.bf16 %v3767_v18, %v3766_v39  ;;  %v8510_v5 = vld [vmem:[#allocation9 + $0xa8] sm:$0xff]   ;;  %v8511_v45 = vld [vmem:[#allocation9 + $0x70] sm:$0xff]   ;;  %v4160_v52 = vmul.f32 %v11289_v9, %v4129_v27  ;;  %v8520_v35 = vld [vmem:[#allocation9 + $0xe0] sm:$0xff]   ;;  %v4284_v39 = vmul.f32 %v11339_v62, %v11238_v47 }
 0x4d4   :  { %8331 = vmatprep.subr.bf16.mxu0 %v8504_v0  ;;  %8317 = vmatprep.subr.bf16.mxu1 %v8505_v49  ;;  %v4031_v50 = vpack.c.bf16 %v4028_v34, %v4027_v36  ;;  %v4387_v10 = vpop.permute.xlu0 %4386  ;;  %v8518_v22 = vld [vmem:[#allocation9 + $0xe8] sm:$0xff]   ;;  %v8522_v23 = vld [vmem:[#allocation9 + $0xc0] sm:$0xff]   ;;  %v8523_v60 = vld [vmem:[#allocation9 + $0x118] sm:$0xff]  }
 0x4d5   :  { %v4404_v54 = vmul.f32 %v4387_v10, %v11263_v58  ;;  %v8524_v18 = vld [vmem:[#allocation9 + $0x110] sm:$0xff]   ;;  %v8525_v47 = vld [vmem:[#allocation9 + $0x108] sm:$0xff]   ;;  %v8528_v62 = vld [vmem:[#allocation10 + $0xf8] sm:$0xff]  }
 0x4d6   :  { %v8532_v27 = vld [vmem:[#allocation10 + $0xf0] sm:$0xff]   ;;  %v8536_v10 = vld [vmem:[#allocation10 + $0xe8] sm:$0xff]  }
 0x4d7   :  { %8332 = vmatpush3.bf16.msra.mxu0 %v8504_v0  ;;  %8318 = vmatpush3.bf16.msra.mxu1 %v8505_v49  ;;  %v4132_v0 = vsel %vm1436_vm2, %v4128_v63, %v4125_v51  ;;  %v4392_v49 = vpop.permute.xlu1 %4391  ;;  %v3999_v51 = vsel %vm694_vm3, %v3995_v2, %v3996_v33  ;;  %v4282_v2 = vmul.f32 %v11319_v55, %v11230_v38  ;;  %v8521_v38 = vld [vmem:[#allocation9 + $0xc8] sm:$0xff]  }
 0x4d8   :  { %8349 = vmatprep.subr.bf16.mxu0 %v8506_v12  ;;  %8319 = vmatprep.subr.bf16.mxu1 %v8507_v25  ;;  %v4161_v37 = vmul.f32 %v11287_v19, %v4132_v0  ;;  %v4405_v20 = vmul.f32 %v4392_v49, %v3736_v59  ;;  %v3998_v19 = vsel %vm694_vm3, %v3996_v33, %v3997_v30  ;;  %v4397_v13 = vpop.permute.xlu0 %4396  ;;  %v8534_v0 = vld [vmem:[#allocation10 + $0xb0] sm:$0xff]   ;;  %v8535_v49 = vld [vmem:[#allocation10 + $0x68] sm:$0xff]  }
 0x4d9   :  { %v4029_v58 = vmul.f32 %v11213_v41, %v3999_v51  ;;  %v4030_v43 = vmul.f32 %v11211_v61, %v3998_v19  ;;  %v4285_v41 = vpack.c.bf16 %v4282_v2, %v4281_v7  ;;  %v4406_v55 = vmul.f32 %v4397_v13, %v11325_v29  ;;  %v8541_v51 = vld [vmem:[#allocation10 + $0x20] sm:$0xff]   ;;  %v8543_v19 = vld [vmem:[#allocation10 + $0x58] sm:$0xff]  }
 0x4da   :  { %8334 = vmatmul.mubr.msk.bf16.vlgmr.msra.gmra.mxu0 %vm498_vm1, %v3901_v57  ;;  %v4163_v53 = vpack.c.bf16 %v4161_v37, %v4160_v52  ;;  %v4408_v9 = vpack.c.bf16 %v4405_v20, %v4404_v54  ;;  %v8537_v52 = vld [vmem:[#allocation10 + $0x28] sm:$0xff]   ;;  %v8540_v54 = vld [vmem:[#allocation10 + $0xe0] sm:$0xff]   ;;  %v8546_v2 = vld [vmem:[#allocation10 + $0x98] sm:$0xff]  }
 0x4db   :  { %8350 = vmatpush3.bf16.msra.mxu0 %v8506_v12  ;;  %8357 = vmatprep.mubr.msk.bf16.mxu0 %vm498_vm1, %v4162_v8  ;;  %v8514_v12 = vld [vmem:[#allocation9 + $0xf8] sm:$0xff]   ;;  %v4032_v30 = vpack.c.bf16 %v4030_v43, %v4029_v58  ;;  %v4402_v59 = vpop.permute.xlu1 %4401  ;;  %v8538_v37 = vld [vmem:[#allocation10 + $0xa8] sm:$0xff]   ;;  %v8547_v43 = vld [vmem:[#allocation10 + $0x50] sm:$0xff]  }
 0x4dc   :  { %8320 = vmatpush3.bf16.msra.mxu1 %v8507_v25  ;;  %8351 = vmatprep.subr.bf16.mxu0 %v8508_v16  ;;  %v8516_v25 = vld [vmem:[#allocation9 + $0xf0] sm:$0xff]   ;;  %v4407_v61 = vmul.f32 %v4402_v59, %v11269_v1  ;;  %v4510_v8 = vpop.permute.xlu0 %4509  ;;  %v8545_v58 = vld [vmem:[#allocation10 + $0x18] sm:$0xff]  }
 0x4dd   :  { %8337 = vmatprep.subr.bf16.mxu1 %v8509_v24  ;;  %v4527_v1 = vmul.f32 %v4510_v8, %v11242_v40 }
 0x4de   :  { %v4409_v57 = vpack.c.bf16 %v4407_v61, %v4406_v55  ;;  %v8553_v61 = vld [vmem:[#allocation10 + $0x8] sm:$0xff]  }
 0x4df   :  { %8322 = vmatmul.mubr.msk.bf16.vlgmr.msra.gmra.mxu1 %vm498_vm1, %v3769_v14  ;;  %8352 = vmatpush3.bf16.msra.mxu0 %v8508_v16  ;;  %v4515_v16 = vpop.permute.xlu1 %4514  ;;  %v8554_v55 = vld [vmem:[#allocation10 + $0x88] sm:$0xff]  }
 0x4e0   :  { %8338 = vmatpush3.bf16.msra.mxu1 %v8509_v24  ;;  %8345 = vmatprep.mubr.msk.bf16.mxu1 %vm498_vm1, %v4031_v50  ;;  %v4283_v24 = vmul.f32 %v11341_v48, %v11217_v4  ;;  %v4528_v29 = vmul.f32 %v4515_v16, %v11285_v21  ;;  %v8526_v4 = vld [vmem:[#allocation9 + $0x100] sm:$0xff]   ;;  %v4520_v14 = vpop.permute.xlu0 %4519  ;;  %v8529_v48 = vld [vmem:[#allocation10 + $0x38] sm:$0xff]  }
 0x4e1   :  { %8353 = vmatprep.subr.bf16.mxu0 %v8510_v5  ;;  %8339 = vmatprep.subr.bf16.mxu1 %v8511_v45  ;;  %v4529_v21 = vmul.f32 %v4520_v14, %v11302_v56  ;;  %v8530_v50 = vld [vmem:[#allocation10 + $0xb8] sm:$0xff]  }
 0x4e2   :  { %v4286_v34 = vpack.c.bf16 %v4284_v39, %v4283_v24  ;;  %v4531_v36 = vpack.c.bf16 %v4528_v29, %v4527_v1  ;;  %v8557_v39 = vld [vmem:[#allocation10] sm:$0xff]   ;;  %v8566_v1 = vld [vmem:[#allocation10 + $0x1f8] sm:$0xff]  }
 0x4e3   :  { %8354 = vmatpush3.bf16.msra.mxu0 %v8510_v5  ;;  %v4525_v63 = vpop.permute.xlu1 %4524  ;;  %v8558_v24 = vld [vmem:[#allocation10 + $0x80] sm:$0xff]  }
 0x4e4   :  { %8340 = vmatpush3.bf16.msra.mxu1 %v8511_v45  ;;  %8355 = vmatprep.subr.bf16.mxu0 %v8512_v42  ;;  %v4530_v40 = vmul.f32 %v4525_v63, %v11256_v46  ;;  %v8527_v45 = vld [vmem:[#allocation10 + $0x78] sm:$0xff]   ;;  %v8533_v46 = vld [vmem:[#allocation10 + $0x30] sm:$0xff]  }
 0x4e5   :  { %8341 = vmatprep.subr.bf16.mxu1 %v8513_v6 }
 0x4e6   :  { %v4532_v5 = vpack.c.bf16 %v4530_v40, %v4529_v21 }
 0x4e7   :  { %8356 = vmatpush3.bf16.msra.mxu0 %v8512_v42 }
 0x4e8   :  { %8342 = vmatpush3.bf16.msra.mxu1 %v8513_v6  ;;  %8373 = vmatprep.subr.bf16.mxu0 %v8514_v12  ;;  %v8531_v6 = vld [vmem:[#allocation10 + $0x70] sm:$0xff]  }
 0x4e9   :  { %8343 = vmatprep.subr.bf16.mxu1 %v8515_v3 }
 0x4ea   :  { %8358 = vmatmul.mubr.msk.bf16.vlgmr.msra.gmra.mxu0 %vm498_vm1, %v4163_v53  ;;  %v8542_v53 = vld [vmem:[#allocation10 + $0xa0] sm:$0xff]  }
 0x4eb   :  { %8374 = vmatpush3.bf16.msra.mxu0 %v8514_v12  ;;  %8381 = vmatprep.mubr.msk.bf16.mxu0 %vm498_vm1, %v4408_v9  ;;  %v8544_v9 = vld [vmem:[#allocation10 + $0xd8] sm:$0xff]  }
 0x4ec   :  { %8344 = vmatpush3.bf16.msra.mxu1 %v8515_v3  ;;  %8375 = vmatprep.subr.bf16.mxu0 %v8516_v25  ;;  %v8539_v3 = vld [vmem:[#allocation10 + $0x60] sm:$0xff]  }
 0x4ed   :  { %8361 = vmatprep.subr.bf16.mxu1 %v8517_v17 }
 0x4ef   :  { %8346 = vmatmul.mubr.msk.bf16.vlgmr.msra.gmra.mxu1 %vm498_vm1, %v4032_v30  ;;  %8376 = vmatpush3.bf16.msra.mxu0 %v8516_v25  ;;  %v8548_v30 = vld [vmem:[#allocation10 + $0xd0] sm:$0xff]  }
 0x4f0   :  { %8362 = vmatpush3.bf16.msra.mxu1 %v8517_v17  ;;  %8369 = vmatprep.mubr.msk.bf16.mxu1 %vm498_vm1, %v4285_v41  ;;  %v8551_v41 = vld [vmem:[#allocation10 + $0x48] sm:$0xff]  }
 0x4f1   :  { %8377 = vmatprep.subr.bf16.mxu0 %v8518_v22  ;;  %8363 = vmatprep.subr.bf16.mxu1 %v8519_v31 }
 0x4f3   :  { %8378 = vmatpush3.bf16.msra.mxu0 %v8518_v22  ;;  %v8549_v22 = vld [vmem:[#allocation10 + $0x10] sm:$0xff]  }
 0x4f4   :  { %8364 = vmatpush3.bf16.msra.mxu1 %v8519_v31  ;;  %8379 = vmatprep.subr.bf16.mxu0 %v8520_v35  ;;  %v8550_v31 = vld [vmem:[#allocation10 + $0x90] sm:$0xff]  }
 0x4f5   :  { %8365 = vmatprep.subr.bf16.mxu1 %v8521_v38 }
 0x4f7   :  { %8380 = vmatpush3.bf16.msra.mxu0 %v8520_v35  ;;  %v8552_v35 = vld [vmem:[#allocation10 + $0xc8] sm:$0xff]  }
 0x4f8   :  { %8366 = vmatpush3.bf16.msra.mxu1 %v8521_v38  ;;  %7891 = vmatprep.subr.bf16.mxu0 %v8527_v45 }
 0x4f9   :  { %8367 = vmatprep.subr.bf16.mxu1 %v8522_v23 }
 0x4fa   :  { %8382 = vmatmul.mubr.msk.bf16.vlgmr.msra.gmra.mxu0 %vm498_vm1, %v4409_v57  ;;  %v8556_v57 = vld [vmem:[#allocation10 + $0xc0] sm:$0xff]  }
 0x4fb   :  { %7892 = vmatpush3.bf16.msra.mxu0 %v8529_v48 }
 0x4fc   :  { %8368 = vmatpush3.bf16.msra.mxu1 %v8522_v23  ;;  %7893 = vmatprep.subr.bf16.mxu0 %v8531_v6  ;;  %v8555_v23 = vld [vmem:[#allocation10 + $0x40] sm:$0xff]  }
 0x4fd   :  { %8385 = vmatprep.subr.bf16.mxu1 %v8523_v60 }
 0x4ff   :  { %8370 = vmatmul.mubr.msk.bf16.vlgmr.msra.gmra.mxu1 %vm498_vm1, %v4286_v34  ;;  %7894 = vmatpush3.bf16.msra.mxu0 %v8533_v46 }
 0x500   :  { %8386 = vmatpush3.bf16.msra.mxu1 %v8523_v60  ;;  %8393 = vmatprep.mubr.msk.bf16.mxu1 %vm498_vm1, %v4531_v36  ;;  %v8565_v60 = vld [vmem:[#allocation10 + $0x178] sm:$0xff]  }
 0x501   :  { %8387 = vmatprep.subr.bf16.mxu1 %v8524_v18  ;;  %7895 = vmatprep.subr.bf16.mxu0 %v8535_v49 }
 0x503   :  { %7896 = vmatpush3.bf16.msra.mxu0 %v8537_v52 }
 0x504   :  { %8388 = vmatpush3.bf16.msra.mxu1 %v8524_v18  ;;  %7897 = vmatprep.subr.bf16.mxu0 %v8539_v3 }
 0x505   :  { %8389 = vmatprep.subr.bf16.mxu1 %v8525_v47 }
 0x507   :  { %7898 = vmatpush3.bf16.msra.mxu0 %v8541_v51 }
 0x508   :  { %8390 = vmatpush3.bf16.msra.mxu1 %v8525_v47  ;;  %7899 = vmatprep.subr.bf16.mxu0 %v8543_v19 }
 0x509   :  { %8391 = vmatprep.subr.bf16.mxu1 %v8526_v4 }
 0x50b   :  { %7900 = vmatpush3.bf16.msra.mxu0 %v8545_v58 }
 0x50c   :  { %8392 = vmatpush3.bf16.msra.mxu1 %v8526_v4  ;;  %7901 = vmatprep.subr.bf16.mxu0 %v8547_v43  ;;  %v11400_v43 = vpop.permute.xlu0 %4729 }
 0x50d   :  { %7919 = vmatprep.subr.bf16.mxu1 %v8528_v62 }
 0x50f   :  { %8394 = vmatmul.mubr.msk.bf16.vlgmr.msra.gmra.mxu1 %vm498_vm1, %v4532_v5  ;;  %7902 = vmatpush3.bf16.msra.mxu0 %v8549_v22 }
 0x510   :  { %7920 = vmatpush3.bf16.msra.mxu1 %v8530_v50  ;;  %7903 = vmatprep.subr.bf16.mxu0 %v8551_v41  ;;  %v11402_v41 = vpop.permute.xlu1 %4734 }
 0x511   :  { %7921 = vmatprep.subr.bf16.mxu1 %v8532_v27 }
 0x513   :  { %7904 = vmatpush3.bf16.msra.mxu0 %v8553_v61 }
 0x514   :  { %7922 = vmatpush3.bf16.msra.mxu1 %v8534_v0  ;;  %7905 = vmatprep.subr.bf16.mxu0 %v8555_v23 }
 0x515   :  { %7923 = vmatprep.subr.bf16.mxu1 %v8536_v10 }
 0x517   :  { %7906 = vmatpush3.bf16.msra.mxu0 %v8557_v39 }
 0x518   :  { %7924 = vmatpush3.bf16.msra.mxu1 %v8538_v37  ;;  %7947 = vmatprep.subr.bf16.mxu0 %v8565_v60 }
 0x519   :  { %7925 = vmatprep.subr.bf16.mxu1 %v8540_v54 }
 0x51c   :  { %7926 = vmatpush3.bf16.msra.mxu1 %v8542_v53 }
 0x51d   :  { %7927 = vmatprep.subr.bf16.mxu1 %v8544_v9 }
 0x520   :  { %7928 = vmatpush3.bf16.msra.mxu1 %v8546_v2 }
 0x521   :  { %7929 = vmatprep.subr.bf16.mxu1 %v8548_v30 }
 0x524   :  { %7930 = vmatpush3.bf16.msra.mxu1 %v8550_v31 }
 0x525   :  { %7931 = vmatprep.subr.bf16.mxu1 %v8552_v35 }
 0x528   :  { %7932 = vmatpush3.bf16.msra.mxu1 %v8554_v55 }
 0x529   :  { %7933 = vmatprep.subr.bf16.mxu1 %v8556_v57 }
 0x52c   :  { %7934 = vmatpush3.bf16.msra.mxu1 %v8558_v24 }
 0x52d   :  { %7975 = vmatprep.subr.bf16.mxu1 %v8566_v1  ;;  %v11406_v1 = vpop.permute.xlu1 %4744 }
 0x58a   :  { %v11392_v33 = vpop.f32.mrf.mxu0 }
 0x58c   :  { %v3715_v20 = vpop.f32.mrf.mxu0 }
 0x58e   :  { %v11388_v42 = vpop.f32.mrf.mxu1  ;;  %v8312_v17 = vpop.f32.mrf.mxu0 }
 0x58f   :  { %v3724_v62 = vadd.f32 %v11392_v33, %v11388_v42 }
 0x590   :  { %v11390_v56 = vpop.f32.mrf.mxu1  ;;  %v3718_v38 = vpop.f32.mrf.mxu0 }
 0x591   :  { %v3716_v21 = vadd.f32 %v3715_v20, %v11390_v56 }
 0x592   :  { %v11394_v12 = vpop.f32.mrf.mxu1 }
 0x593   :  { %v3727_v6 = vadd.f32 %v8312_v17, %v11394_v12 }
 0x594   :  { %v3639_v25 = vpop.f32.mrf.mxu1 }
 0x595   :  { %v3719_v48 = vadd.f32 %v3718_v38, %v3639_v25 }
 0x59a   :  { %v8335_v13 = vpop.f32.mrf.mxu0 }
 0x59c   :  { %v3975_v8 = vpop.f32.mrf.mxu0 }
 0x59e   :  { %v8336_v34 = vpop.f32.mrf.mxu0 }
 0x59f   :  { %v8323_v7 = vpop.f32.mrf.mxu1 }
 0x5a0   :  { %v3978_v36 = vpop.f32.mrf.mxu0  ;;  %v3860_v27 = vadd.f32 %v8323_v7, %v3724_v62 }
 0x5a1   :  { %v3843_v59 = vpop.f32.mrf.mxu1 }
 0x5a2   :  { %v3858_v50 = vadd.f32 %v3843_v59, %v3716_v21  ;;  %v3992_v3 = vadd.f32 %v8335_v13, %v3860_v27 }
 0x5a3   :  { %v8324_v16 = vpop.f32.mrf.mxu1 }
 0x5a4   :  { %v3861_v10 = vadd.f32 %v8324_v16, %v3727_v6  ;;  %v3990_v52 = vadd.f32 %v3975_v8, %v3858_v50  ;;  %v11404_v8 = vpop.permute.xlu0 %4739 }
 0x5a5   :  { %v3846_v29 = vpop.f32.mrf.mxu1 }
 0x5a6   :  { %v3859_v46 = vadd.f32 %v3846_v29, %v3719_v48  ;;  %v3993_v53 = vadd.f32 %v8336_v34, %v3861_v10 }
 0x5a8   :  { %v3991_v51 = vadd.f32 %v3978_v36, %v3859_v46 }
 0x5aa   :  { %v8359_v4 = vpop.f32.mrf.mxu0 }
 0x5ac   :  { %v4237_v14 = vpop.f32.mrf.mxu0 }
 0x5ae   :  { %v8360_v5 = vpop.f32.mrf.mxu0 }
 0x5af   :  { %v8347_v18 = vpop.f32.mrf.mxu1 }
 0x5b0   :  { %v4240_v0 = vpop.f32.mrf.mxu0  ;;  %v4123_v20 = vadd.f32 %v8347_v18, %v3992_v3 }
 0x5b1   :  { %v4106_v47 = vpop.f32.mrf.mxu1 }
 0x5b2   :  { %v4121_v54 = vadd.f32 %v4106_v47, %v3990_v52  ;;  %v4254_v58 = vadd.f32 %v8359_v4, %v4123_v20 }
 0x5b3   :  { %v8348_v63 = vpop.f32.mrf.mxu1 }
 0x5b4   :  { %v4124_v42 = vadd.f32 %v8348_v63, %v3993_v53  ;;  %v4252_v33 = vadd.f32 %v4237_v14, %v4121_v54  ;;  %v11408_v14 = vpop.permute.xlu0 %4785 }
 0x5b5   :  { %v4109_v40 = vpop.f32.mrf.mxu1 }
 0x5b6   :  { %v4122_v19 = vadd.f32 %v4109_v40, %v3991_v51  ;;  %v4255_v22 = vadd.f32 %v8360_v5, %v4124_v42 }
 0x5b8   :  { %v4253_v17 = vadd.f32 %v4240_v0, %v4122_v19  ;;  %v11412_v27 = vpop.permute.xlu0 %4841 }
 0x5ba   :  { %v8383_v37 = vpop.f32.mrf.mxu0 }
 0x5bc   :  { %v4483_v9 = vpop.f32.mrf.mxu0  ;;  %v11416_v54 = vpop.permute.xlu0 %4917 }
 0x5be   :  { %v8384_v7 = vpop.f32.mrf.mxu0 }
 0x5bf   :  { %v8371_v45 = vpop.f32.mrf.mxu1 }
 0x5c0   :  { %v4377_v30 = vadd.f32 %v8371_v45, %v4254_v58  ;;  %v4486_v13 = vpop.f32.mrf.mxu0  ;;  %v11410_v45 = vpop.permute.xlu1 %4790 }
 0x5c1   :  { %v4360_v49 = vpop.f32.mrf.mxu1 }
 0x5c2   :  { %v4375_v12 = vadd.f32 %v4360_v49, %v4252_v33  ;;  %v4500_v55 = vadd.f32 %v8383_v37, %v4377_v30  ;;  %v11420_v33 = vpop.permute.xlu0 %4795 }
 0x5c3   :  { %v8372_v56 = vpop.f32.mrf.mxu1 }
 0x5c4   :  { %v4378_v38 = vadd.f32 %v8372_v56, %v4255_v22  ;;  %v4498_v59 = vadd.f32 %v4483_v9, %v4375_v12  ;;  %v11414_v49 = vpop.permute.xlu1 %4846 }
 0x5c5   :  { %v4363_v25 = vpop.f32.mrf.mxu1 }
 0x5c6   :  { %v4376_v31 = vadd.f32 %v4363_v25, %v4253_v17  ;;  %v4501_v24 = vadd.f32 %v8384_v7, %v4378_v38  ;;  %v11424_v7 = vpop.permute.xlu0 %4851 }
 0x5c8   :  { %v4499_v57 = vadd.f32 %v4486_v13, %v4376_v31  ;;  %v11418_v20 = vpop.permute.xlu1 %4922  ;;  %v4625_v31 = vld [vmem:[#allocation18] sm:$0x1] }
 0x5ca   :  { %v11428_v30 = vpop.permute.xlu0 %4927 }
 0x5cc   :  { %v11422_v58 = vpop.permute.xlu1 %4800 }
 0x5cf   :  { %v8395_v2 = vpop.f32.mrf.mxu1 }
 0x5d0   :  { %v4623_v39 = vadd.f32 %v8395_v2, %v4500_v55  ;;  %v11426_v2 = vpop.permute.xlu1 %4856 }
 0x5d1   :  { %v4606_v35 = vpop.f32.mrf.mxu1 }
 0x5d2   :  { %v4621_v23 = vadd.f32 %v4606_v35, %v4498_v59  ;;  %v4639_v47 = vmul.f32 %v4623_v39, %v4623_v39  ;;  %v11432_v35 = vpop.permute.xlu0 %4965 }
 0x5d3   :  { %v8396_v61 = vpop.f32.mrf.mxu1 }
 0x5d4   :  { %v4637_v29 = vmul.f32 %v4621_v23, %v4621_v23  ;;  %v4624_v34 = vadd.f32 %v8396_v61, %v4501_v24  ;;  %v11430_v22 = vpop.permute.xlu1 %4932  ;;  %v4626_v61 = vld [vmem:[#allocation19] sm:$0x1] }
 0x5d5   :  { %v4609_v16 = vpop.f32.mrf.mxu1 }
 0x5d6   :  { %v4622_v60 = vadd.f32 %v4609_v16, %v4499_v57  ;;  %v4640_v40 = vmul.f32 %v4624_v34, %v4624_v34  ;;  %v11437_v16 = vpop.permute.xlu0 %5013 }
 0x5d8   :  { %v4627_v18 = vadd.f32 %v4622_v60, %v4621_v23  ;;  %v4638_v36 = vmul.f32 %v4622_v60, %v4622_v60  ;;  %v11434_v59 = vpop.permute.xlu1 %4970 }
 0x5da   :  { %v4628_v4 = vadd.f32 %v4627_v18, %v4623_v39  ;;  %v4641_v63 = vadd.f32 %v4638_v36, %v4637_v29 }
 0x5dc   :  { %v4629_v21 = vadd.f32 %v4628_v4, %v4624_v34  ;;  %v4642_v5 = vadd.f32 %v4641_v63, %v4639_v47  ;;  %v11439_v29 = vpop.permute.xlu1 %5018 }
 0x5de   :  { %v4630_v62 = vrot.slane %v4629_v21, 4  ;;  %v4643_v48 = vadd.f32 %v4642_v5, %v4640_v40 }
 0x5e0   :  { %v4631_v50 = vadd.f32 %v4630_v62, %v4629_v21  ;;  %v4644_v6 = vrot.slane %v4643_v48, 4 }
 0x5e2   :  { %v4632_v46 = vrot.slane %v4631_v50, 2  ;;  %v4645_v0 = vadd.f32 %v4644_v6, %v4643_v48  ;;  %v11442_v48 = vpop.permute.xlu0 %4975 }
 0x5e4   :  { %v4633_v10 = vadd.f32 %v4632_v46, %v4631_v50  ;;  %v4646_v52 = vrot.slane %v4645_v0, 2 }
 0x5e6   :  { %v4634_v37 = vrot.slane %v4633_v10, 1  ;;  %v4647_v3 = vadd.f32 %v4646_v52, %v4645_v0 }
 0x5e8   :  { %v4635_v51 = vadd.f32 %v4634_v37, %v4633_v10  ;;  %v4648_v56 = vrot.slane %v4647_v3, 1 }
 0x5ea   :  { %v4636_v53 = vmul.f32 0.03125, %v4635_v51  ;;  %v4649_v19 = vadd.f32 %v4648_v56, %v4647_v3 }
 0x5ec   :  { %v4650_v9 = vmul.f32 0.03125, %v4649_v19  ;;  %v4651_v42 = vmul.f32 %v4636_v53, %v4636_v53 }
 0x5ee   :  { %v4652_v25 = vsub.f32 %v4650_v9, %v4651_v42 }
 0x5f0   :  { %v4653_v12 = vmax.f32 %v4652_v25, 0.0 }
 0x5f2   :  { %v4654_v17 = vadd.f32 1e-05, %v4653_v12 }
 0x5f4   :  { %8796 = vrsqrt.f32 %v4654_v17 }
 0x601   :  { %v8797_v38 = vpop.eup %8796 }
 0x602   :  { %v4656_v13 = vmul.f32 %v8797_v38, %v4625_v31  ;;  %v11482_v31 = vpop.permute.xlu0 %5023 }
 0x604   :  { %v4657_v55 = vmul.f32 %v4656_v13, %v4636_v53  ;;  %v4663_v57 = vrot.slane %v4656_v13, %v12302_v32 }
 0x606   :  { %v4658_v24 = vsub.f32 %v4626_v61, %v4657_v55  ;;  %v4665_v18 = vmul.f32 %v4663_v57, %v4621_v23  ;;  %v4666_v36 = vmul.f32 %v4663_v57, %v4622_v60  ;;  %v4667_v47 = vmul.f32 %v4663_v57, %v4623_v39  ;;  %v11452_v23 = vpop.permute.xlu1 %4980 }
 0x607   :  { %v4668_v4 = vmul.f32 %v4663_v57, %v4624_v34 }
 0x608   :  { %v4673_v63 = vrot.slane %v4658_v24, %v12302_v32 }
 0x60a   :  { %v4675_v40 = vadd.f32 %v4673_v63, %v4665_v18  ;;  %v4676_v21 = vadd.f32 %v4673_v63, %v4666_v36  ;;  %v4677_v5 = vadd.f32 %v4673_v63, %v4667_v47  ;;  %v4678_v62 = vadd.f32 %v4673_v63, %v4668_v4  ;;  %v11492_v61 = vpop.permute.xlu1 %5028 }
 0x60c   :  { %v11444_v50 = vmax.f32 %v4675_v40, 0.0  ;;  %v11446_v6 = vmax.f32 %v4676_v21, 0.0  ;;  %v11448_v46 = vmax.f32 %v4677_v5, 0.0  ;;  %v11450_v0 = vmax.f32 %v4678_v62, 0.0 }
 0x60e   :  { %v4683_v39 = vrot.slane %v11444_v50, 3  ;;  %v4684_v60 = vrot.slane %v11446_v6, 3  ;;  %v4685_v34 = vrot.slane %v11448_v46, 3  ;;  %v4686_v10 = vrot.slane %v11450_v0, 3 }
 0x60f   :  { %v4715_v52 = vrot.slane %v11444_v50, 4  ;;  %v4716_v37 = vrot.slane %v11446_v6, 4  ;;  %v4717_v3 = vrot.slane %v11448_v46, 4  ;;  %v4718_v51 = vrot.slane %v11450_v0, 4 }
 0x610   :  { %v11464_v56 = vsel %vm3529_vm4, %v4685_v34, %v4686_v10  ;;  %v4688_v53 = vsel %vm3529_vm4, %v4684_v60, %v4685_v34  ;;  %v4689_v19 = vsel %vm3529_vm4, %v4683_v39, %v4684_v60  ;;  %v11472_v9 = vsel %vm3529_vm4, %v4686_v10, %v4683_v39 }
 0x611   :  { %v4692_v42 = vmul.f32 %v4689_v19, %v11175_v11  ;;  %v4693_v25 = vmul.f32 %v4688_v53, %v11181_v44  ;;  %v11478_v12 = vsel %vm3734_vm6, %v4717_v3, %v4718_v51  ;;  %v4720_v17 = vsel %vm3734_vm6, %v4716_v37, %v4717_v3  ;;  %v5062_v3 = vpop.permute.xlu0 %5061 }
 0x612   :  { %v4721_v38 = vsel %vm3734_vm6, %v4715_v52, %v4716_v37  ;;  %v11488_v13 = vsel %vm3734_vm6, %v4718_v51, %v4715_v52  ;;  %v4749_v11 = vmul.f32 %v11404_v8, %v4720_v17  ;;  %v4771_v44 = vrot.slane %v11444_v50, 5 }
 0x613   :  { %v7659_v55 = vpack.c.bf16 %v4692_v42, %v4692_v42  ;;  %v7660_v57 = vpack.c.bf16 %v4693_v25, %v4693_v25  ;;  %v4748_v24 = vmul.f32 %v11402_v41, %v4721_v38  ;;  %v4772_v18 = vrot.slane %v11446_v6, 5 }
 0x614   :  { %v7664_v36 = vpack.c.bf16 %v4749_v11, %v4749_v11  ;;  %v4773_v47 = vrot.slane %v11448_v46, 5  ;;  %v4774_v4 = vrot.slane %v11450_v0, 5  ;;  %v4827_v63 = vrot.slane %v11444_v50, 7  ;;  %v5067_v11 = vpop.permute.xlu1 %5066 }
 0x615   :  { %4712 = vst [vmem:[#allocation2 + $0x24] sm:$0xf] %v7659_v55  ;;  %4713 = vst [vmem:[#allocation2 + $0x48] sm:$0xf] %v7660_v57  ;;  %v7663_v8 = vpack.c.bf16 %v4748_v24, %v4748_v24  ;;  %v4777_v40 = vsel %vm3866_vm5, %v4771_v44, %v4772_v18  ;;  %v4828_v21 = vrot.slane %v11446_v6, 7  ;;  %v4829_v5 = vrot.slane %v11448_v46, 7 }
 0x616   :  { %4769 = vst [vmem:[#allocation2 + $0x4c] sm:$0xf] %v7664_v36  ;;  %v11505_v41 = vsel %vm3866_vm5, %v4773_v47, %v4774_v4  ;;  %v4776_v62 = vsel %vm3866_vm5, %v4772_v18, %v4773_v47  ;;  %v4778_v39 = vsel %vm3866_vm5, %v4774_v4, %v4771_v44  ;;  %v4804_v60 = vmul.f32 %v11410_v45, %v4777_v40 }
 0x617   :  { %4768 = vst [vmem:[#allocation2 + $0x28] sm:$0xf] %v7663_v8  ;;  %v4805_v34 = vmul.f32 %v11420_v33, %v4776_v62  ;;  %v4830_v10 = vrot.slane %v11450_v0, 7  ;;  %v4832_v52 = vsel %vm694_vm3, %v4828_v21, %v4829_v5  ;;  %v4833_v37 = vsel %vm694_vm3, %v4827_v63, %v4828_v21 }
 0x618   :  { %v7667_v51 = vpack.c.bf16 %v4804_v60, %v4804_v60  ;;  %v4860_v42 = vmul.f32 %v11414_v49, %v4833_v37  ;;  %v4861_v25 = vmul.f32 %v11424_v7, %v4832_v52  ;;  %v7675_v45 = vpack.c.bf16 %v11446_v6, %v11446_v6  ;;  %v5077_v52 = vpop.permute.xlu1 %5076 }
 0x619   :  { %v7668_v44 = vpack.c.bf16 %v4805_v34, %v4805_v34  ;;  %v11524_v33 = vsel %vm694_vm3, %v4829_v5, %v4830_v10  ;;  %v4834_v55 = vsel %vm694_vm3, %v4830_v10, %v4827_v63  ;;  %v4903_v57 = vrot.slane %v11444_v50, 1 }
 0x61a   :  { %4824 = vst [vmem:[#allocation2 + $0x2c] sm:$0xf] %v7667_v51  ;;  %v7671_v24 = vpack.c.bf16 %v4860_v42, %v4860_v42  ;;  %v7672_v18 = vpack.c.bf16 %v4861_v25, %v4861_v25  ;;  %4900 = vst [vmem:[#allocation2 + $0x34] sm:$0xf] %v7675_v45  ;;  %v4904_v49 = vrot.slane %v11446_v6, 1  ;;  %v4905_v7 = vrot.slane %v11448_v46, 1 }
 0x61b   :  { %4825 = vst [vmem:[#allocation2 + $0x50] sm:$0xf] %v7668_v44  ;;  %v4906_v36 = vrot.slane %v11450_v0, 1  ;;  %v4983_v47 = vmul.f32 %v11432_v35, %v4689_v19  ;;  %v4984_v4 = vmul.f32 %v11434_v59, %v4688_v53  ;;  %v5031_v8 = vmul.f32 %v11437_v16, %v4721_v38  ;;  %v5072_v53 = vpop.permute.xlu0 %5071 }
 0x61c   :  { %4880 = vst [vmem:[#allocation2 + $0x30] sm:$0xf] %v7671_v24  ;;  %4881 = vst [vmem:[#allocation2 + $0x54] sm:$0xf] %v7672_v18  ;;  %v4908_v63 = vsel %vm1436_vm2, %v4904_v49, %v4905_v7  ;;  %v4909_v21 = vsel %vm1436_vm2, %v4903_v57, %v4904_v49  ;;  %v5032_v6 = vmul.f32 %v11439_v29, %v4720_v17 }
 0x61d   :  { %v5079_v5 = vmul.f32 %v5062_v3, %v4777_v40  ;;  %v4907_v60 = vsel %vm1436_vm2, %v4905_v7, %v4906_v36  ;;  %v4910_v35 = vsel %vm1436_vm2, %v4906_v36, %v4903_v57  ;;  %v4935_v59 = vmul.f32 %v11416_v54, %v4909_v21  ;;  %v8575_v21 = vld [vmem:[#allocation10 + $0x130] sm:$0xff]  }
 0x61e   :  { %v4936_v16 = vmul.f32 %v11418_v20, %v4908_v63  ;;  %v7682_v19 = vpack.c.bf16 %v4983_v47, %v4983_v47  ;;  %v7683_v38 = vpack.c.bf16 %v4984_v4, %v4984_v4  ;;  %v7686_v34 = vpack.c.bf16 %v5031_v8, %v5031_v8  ;;  %v8567_v4 = vld [vmem:[#allocation10 + $0x138] sm:$0xff]  }
 0x61f   :  { %v7687_v10 = vpack.c.bf16 %v5032_v6, %v5032_v6  ;;  %v7678_v37 = vpack.c.bf16 %v4935_v59, %v4935_v59  ;;  %v5080_v29 = vmul.f32 %v5067_v11, %v4776_v62  ;;  %v5081_v17 = vmul.f32 %v5072_v53, %v11505_v41  ;;  %v8568_v8 = vld [vmem:[#allocation10 + $0x1b8] sm:$0xff]   ;;  %v5113_v59 = vld [vmem:[#allocation2 + $0x48] sm:$0xff]  ;;  %v8580_v53 = vld [vmem:[#allocation10 + $0x128] sm:$0xff]  }
 0x620   :  { %v7679_v51 = vpack.c.bf16 %v4936_v16, %v4936_v16  ;;  %5003 = vst [vmem:[#allocation2 + $0x18] sm:$0xf] %v7682_v19  ;;  %5004 = vst [vmem:[#allocation2 + $0x3c] sm:$0xf] %v7683_v38  ;;  %v5082_v40 = vmul.f32 %v5077_v52, %v4778_v39  ;;  %v7690_v3 = vpack.c.bf16 %v5079_v5, %v5079_v5  ;;  %v8576_v5 = vld [vmem:[#allocation10 + $0x1b0] sm:$0xff]   ;;  %v8581_v38 = vld [vmem:[#allocation10 + $0x1a8] sm:$0xff]  }
 0x621   :  { %5051 = vst [vmem:[#allocation2 + $0x1c] sm:$0xf] %v7686_v34  ;;  %5052 = vst [vmem:[#allocation2 + $0x40] sm:$0xf] %v7687_v10  ;;  %v4691_v54 = vmul.f32 %v11472_v9, %v11177_v28  ;;  %v4747_v20 = vmul.f32 %v11400_v43, %v11488_v13  ;;  %v7691_v42 = vpack.c.bf16 %v5080_v29, %v5080_v29  ;;  %v8588_v10 = vld [vmem:[#allocation10 + $0x160] sm:$0xff]  }
 0x622   :  { %4955 = vst [vmem:[#allocation2 + $0x14] sm:$0xf] %v7678_v37  ;;  %4956 = vst [vmem:[#allocation2 + $0x38] sm:$0xf] %v7679_v51  ;;  %v7692_v25 = vpack.c.bf16 %v5081_v17, %v5081_v17  ;;  %v4803_v62 = vmul.f32 %v11408_v14, %v4778_v39  ;;  %v4859_v45 = vmul.f32 %v11412_v27, %v4834_v55  ;;  %v8589_v37 = vld [vmem:[#allocation10 + $0x1e0] sm:$0xff]  }
 0x623   :  { %v7693_v11 = vpack.c.bf16 %v5082_v40, %v5082_v40  ;;  %5099 = vst [vmem:[#allocation2 + $0x20] sm:$0xf] %v7690_v3  ;;  %v7658_v44 = vpack.c.bf16 %v4691_v54, %v4691_v54  ;;  %v7662_v57 = vpack.c.bf16 %v4747_v20, %v4747_v20  ;;  %v4694_v24 = vmul.f32 %v11464_v56, %v11179_v26  ;;  %v8590_v29 = vld [vmem:[#allocation10 + $0x120] sm:$0xff]   ;;  %v8592_v40 = vld [vmem:[#allocation10 + $0x158] sm:$0xff]  }
 0x624   :  { %5100 = vst [vmem:[#allocation2 + $0x44] sm:$0xf] %v7691_v42  ;;  %5101 = vst [vmem:[#allocation2 + $0x68] sm:$0xf] %v7692_v25  ;;  %v7666_v28 = vpack.c.bf16 %v4803_v62, %v4803_v62  ;;  %v7670_v18 = vpack.c.bf16 %v4859_v45, %v4859_v45  ;;  %v4750_v43 = vmul.f32 %v11406_v1, %v11478_v12  ;;  %v8591_v17 = vld [vmem:[#allocation10 + $0x1a0] sm:$0xff]   ;;  %v8593_v3 = vld [vmem:[#allocation10 + $0x1d8] sm:$0xff]  }
 0x625   :  { %v4806_v49 = vmul.f32 %v11422_v58, %v11505_v41  ;;  %5102 = vst [vmem:[#allocation2 + $0x8c] sm:$0xf] %v7693_v11  ;;  %4711 = vst [vmem:[#allocation2] sm:$0xf] %v7658_v44  ;;  %v7661_v14 = vpack.c.bf16 %v4694_v24, %v4694_v24  ;;  %v4862_v27 = vmul.f32 %v11426_v2, %v11524_v33  ;;  %v8594_v54 = vld [vmem:[#allocation10 + $0x118] sm:$0xff]   ;;  %v8596_v42 = vld [vmem:[#allocation10 + $0x150] sm:$0xff]  }
 0x626   :  { %4767 = vst [vmem:[#allocation2 + $0x4] sm:$0xf] %v7662_v57  ;;  %v7674_v26 = vpack.c.bf16 %v11444_v50, %v11444_v50  ;;  %v7676_v39 = vpack.c.bf16 %v11448_v46, %v11448_v46  ;;  %4823 = vst [vmem:[#allocation2 + $0x8] sm:$0xf] %v7666_v28  ;;  %v7665_v55 = vpack.c.bf16 %v4750_v43, %v4750_v43  ;;  %v8595_v20 = vld [vmem:[#allocation10 + $0x198] sm:$0xff]   ;;  %v8597_v25 = vld [vmem:[#allocation10 + $0x1d0] sm:$0xff]  }
 0x627   :  { %4879 = vst [vmem:[#allocation2 + $0xc] sm:$0xf] %v7670_v18  ;;  %v7669_v1 = vpack.c.bf16 %v4806_v49, %v4806_v49  ;;  %v7677_v58 = vpack.c.bf16 %v11450_v0, %v11450_v0  ;;  %v4937_v41 = vmul.f32 %v11428_v30, %v4907_v60  ;;  %4714 = vst [vmem:[#allocation2 + $0x6c] sm:$0xf] %v7661_v14  ;;  %v8577_v60 = vld [vmem:[#allocation10 + $0x168] sm:$0xff]   ;;  %v8598_v62 = vld [vmem:[#allocation10 + $0x110] sm:$0xff]  }
 0x628   :  { %v7673_v7 = vpack.c.bf16 %v4862_v27, %v4862_v27  ;;  %4899 = vst [vmem:[#allocation2 + $0x10] sm:$0xf] %v7674_v26  ;;  %4901 = vst [vmem:[#allocation2 + $0x58] sm:$0xf] %v7676_v39  ;;  %v4938_v2 = vmul.f32 %v11430_v22, %v4910_v35  ;;  %v4985_v50 = vmul.f32 %v11442_v48, %v11464_v56  ;;  %v8578_v35 = vld [vmem:[#allocation10 + $0x1e8] sm:$0xff]   ;;  %v8599_v45 = vld [vmem:[#allocation10 + $0x190] sm:$0xff]  }
 0x629   :  { %v4986_v46 = vmul.f32 %v11452_v23, %v11472_v9  ;;  %4770 = vst [vmem:[#allocation2 + $0x70] sm:$0xf] %v7665_v55  ;;  %4826 = vst [vmem:[#allocation2 + $0x74] sm:$0xf] %v7669_v1  ;;  %v7680_v33 = vpack.c.bf16 %v4937_v41, %v4937_v41  ;;  %v5033_v0 = vmul.f32 %v11482_v31, %v11478_v12  ;;  %v8584_v52 = vld [vmem:[#allocation2 + $0x14] ss:$36 sps:$4 sm:$0xff]  }
 0x62a   :  { %4902 = vst [vmem:[#allocation2 + $0x7c] sm:$0xf] %v7677_v58  ;;  %v5034_v30 = vmul.f32 %v11492_v61, %v11488_v13  ;;  %4882 = vst [vmem:[#allocation2 + $0x78] sm:$0xf] %v7673_v7  ;;  %v7681_v36 = vpack.c.bf16 %v4938_v2, %v4938_v2  ;;  %v7684_v47 = vpack.c.bf16 %v4985_v50, %v4985_v50  ;;  %v8573_v13 = vld [vmem:[#allocation10 + $0x170] sm:$0xff]   ;;  %v8600_v11 = vld [vmem:[#allocation10 + $0x148] sm:$0xff]  }
 0x62b   :  { %v7685_v22 = vpack.c.bf16 %v4986_v46, %v4986_v46  ;;  %4957 = vst [vmem:[#allocation2 + $0x5c] sm:$0xf] %v7680_v33  ;;  %v7688_v48 = vpack.c.bf16 %v5033_v0, %v5033_v0  ;;  %v8574_v61 = vld [vmem:[#allocation10 + $0x1f0] sm:$0xff]   ;;  %v8587_v51 = vld [vmem:[#allocation2 + $0x1c] ss:$36 sps:$4 sm:$0xff]   ;;  %v8608_v14 = vld [vmem:[#allocation10 + $0x238] sm:$0xff]  }
 0x62c   :  { %v7689_v56 = vpack.c.bf16 %v5034_v30, %v5034_v30  ;;  %4958 = vst [vmem:[#allocation2 + $0x80] sm:$0xf] %v7681_v36  ;;  %5005 = vst [vmem:[#allocation2 + $0x60] sm:$0xf] %v7684_v47  ;;  %v8559_v23 = vld [vmem:[#allocation2] ss:$36 sps:$4 sm:$0xff]  }
 0x62d   :  { %5006 = vst [vmem:[#allocation2 + $0x84] sm:$0xf] %v7685_v22  ;;  %v8561_v9 = vld [vmem:[#allocation2 + $0x4] ss:$36 sps:$4 sm:$0xff]   ;;  %5053 = vst [vmem:[#allocation2 + $0x64] sm:$0xf] %v7688_v48 }
 0x62e   :  { %5054 = vst [vmem:[#allocation2 + $0x88] sm:$0xf] %v7689_v56  ;;  %v8562_v12 = vld [vmem:[#allocation2 + $0x8] ss:$36 sps:$4 sm:$0xff]   ;;  %5823 = vmatprep.mubr.bf16.mxu0 %v8561_v9  ;;  %v8601_v44 = vld [vmem:[#allocation10 + $0x1c8] sm:$0xff]   ;;  %v8604_v28 = vld [vmem:[#allocation10 + $0x140] sm:$0xff]  }
 0x62f   :  { %v8564_v31 = vld [vmem:[#allocation2 + $0xc] ss:$36 sps:$4 sm:$0xff]   ;;  %5824 = vmatmul.mubr.bf16.vlgmr.msra.gmra.mxu0 %v8559_v23  ;;  %v8602_v57 = vld [vmem:[#allocation10 + $0x108] sm:$0xff]   ;;  %v8605_v18 = vld [vmem:[#allocation10 + $0x1c0] sm:$0xff]  }
 0x630   :  { %5872 = vmatprep.mubr.bf16.mxu1 %v8564_v31  ;;  %v8569_v63 = vld [vmem:[#allocation2 + $0x4c] ss:$36 sps:$4 sm:$0xff]   ;;  %7948 = vmatpush3.bf16.msra.mxu0 %v8567_v4  ;;  %v8603_v24 = vld [vmem:[#allocation10 + $0x188] sm:$0xff]   ;;  %v8606_v43 = vld [vmem:[#allocation10 + $0x100] sm:$0xff]  }
 0x631   :  { %5873 = vmatmul.mubr.bf16.vlgmr.msra.gmra.mxu1 %v8562_v12  ;;  %v8571_v6 = vld [vmem:[#allocation2 + $0x54] ss:$36 sps:$4 sm:$0xff]   ;;  %5831 = vmatprep.mubr.bf16.mxu0 %v8569_v63  ;;  %v5118_v16 = vld [vmem:[#allocation2 + $0x6c] sm:$0xff]  ;;  %v8616_v58 = vld [vmem:[#allocation10 + $0x228] sm:$0xff]  }
 0x632   :  { %7976 = vmatpush3.bf16.msra.mxu1 %v8568_v8  ;;  %5880 = vmatprep.mubr.bf16.mxu1 %v8571_v6  ;;  %v7440_v19 = vcombine.low %v5113_v59, %v5118_v16  ;;  %v8579_v34 = vld [vmem:[#allocation2 + $0x50] ss:$36 sps:$4 sm:$0xff]   ;;  %v8607_v49 = vld [vmem:[#allocation10 + $0x180] sm:$0xff]   ;;  %v8615_v55 = vld [vmem:[#allocation10 + $0x230] sm:$0xff]  }
 0x633   :  { %7949 = vmatprep.subr.bf16.mxu0 %v8573_v13  ;;  %7977 = vmatprep.subr.bf16.mxu1 %v8574_v61  ;;  %v8582_v27 = vld [vmem:[#allocation2 + $0x10] ss:$36 sps:$4 sm:$0xff]   ;;  %v8585_v26 = vld [vmem:[#allocation2 + $0x18] ss:$36 sps:$4 sm:$0xff]   ;;  %v8617_v2 = vld [vmem:[#allocation2 + $0x20] ss:$36 sps:$4 sm:$0xff]  }
 0x634   :  { %7950 = vmatpush3.bf16.msra.mxu0 %v8575_v21  ;;  %v8611_v39 = vld [vmem:[#allocation2 + $0x5c] ss:$36 sps:$4 sm:$0xff]   ;;  %v8619_v46 = vld [vmem:[#allocation10 + $0x218] sm:$0xff]   ;;  %v8620_v33 = vld [vmem:[#allocation10 + $0x210] sm:$0xff]  }
 0x635   :  { %7951 = vmatprep.subr.bf16.mxu0 %v8577_v60  ;;  %v8614_v1 = vld [vmem:[#allocation2 + $0x64] ss:$36 sps:$4 sm:$0xff]   ;;  %v8609_v41 = vld [vmem:[#allocation2 + $0x58] ss:$36 sps:$4 sm:$0xff]  }
 0x636   :  { %7978 = vmatpush3.bf16.msra.mxu1 %v8576_v5  ;;  %v8612_v7 = vld [vmem:[#allocation2 + $0x60] ss:$36 sps:$4 sm:$0xff]   ;;  %v8618_v50 = vld [vmem:[#allocation10 + $0x220] sm:$0xff]   ;;  %v8623_v36 = vld [vmem:[#allocation2 + $0x68] ss:$36 sps:$4 sm:$0xff]  }
 0x637   :  { %7979 = vmatprep.subr.bf16.mxu1 %v8578_v35  ;;  %5832 = vmatmul.mubr.bf16.gmra.mxu0 %v7440_v19  ;;  %v8621_v0 = vld [vmem:[#allocation10 + $0x208] sm:$0xff]   ;;  %v8622_v30 = vld [vmem:[#allocation10 + $0x200] sm:$0xff]  }
 0x638   :  { %7952 = vmatpush3.bf16.msra.mxu0 %v8580_v53  ;;  %5921 = vmatprep.mubr.bf16.mxu0 %v8584_v52  ;;  %v8626_v47 = vld [vmem:[%s11859_s16 + $0x74] ss:$8 sps:$4 sm:$0xff]   ;;  %v8624_v4 = vld [vmem:[%s11859_s16 + $0x70] ss:$8 sps:$4 sm:$0xff]   ;;  %v8632_v56 = vld [vmem:[%s11859_s16 + $0x64] ss:$8 sps:$4 sm:$0xff]  }
 0x639   :  { %5881 = vmatmul.mubr.bf16.gmra.mxu1 %v8579_v34  ;;  %7953 = vmatprep.subr.bf16.mxu0 %v8588_v10  ;;  %v8629_v22 = vld [vmem:[%s11859_s16 + $0x174] ss:$8 sps:$4 sm:$0xff]   ;;  %v8627_v48 = vld [vmem:[%s11859_s16 + $0x170] ss:$8 sps:$4 sm:$0xff]   ;;  %v8635_v8 = vld [vmem:[%s11859_s16 + $0x164] ss:$8 sps:$4 sm:$0xff]  }
 0x63a   :  { %7980 = vmatpush3.bf16.msra.mxu1 %v8581_v38  ;;  %5970 = vmatprep.mubr.bf16.mxu1 %v8587_v51  ;;  %v8630_v23 = vld [vmem:[%s11859_s16 + $0x60] ss:$8 sps:$4 sm:$0xff]   ;;  %v8638_v12 = vld [vmem:[%s11859_s16 + $0x54] ss:$8 sps:$4 sm:$0xff]   ;;  %v8636_v13 = vld [vmem:[%s11859_s16 + $0x50] ss:$8 sps:$4 sm:$0xff]  }
 0x63b   :  { %7981 = vmatprep.subr.bf16.mxu1 %v8589_v37  ;;  %v8633_v9 = vld [vmem:[%s11859_s16 + $0x160] ss:$8 sps:$4 sm:$0xff]   ;;  %v8641_v31 = vld [vmem:[%s11859_s16 + $0x154] ss:$8 sps:$4 sm:$0xff]   ;;  %v8639_v61 = vld [vmem:[%s11859_s16 + $0x150] ss:$8 sps:$4 sm:$0xff]  }
 0x63c   :  { %7954 = vmatpush3.bf16.msra.mxu0 %v8590_v29  ;;  %v8644_v63 = vld [vmem:[%s11859_s16 + $0x44] ss:$8 sps:$4 sm:$0xff]   ;;  %v8642_v6 = vld [vmem:[%s11859_s16 + $0x40] ss:$8 sps:$4 sm:$0xff]   ;;  %v8650_v60 = vld [vmem:[%s11859_s16 + $0x34] ss:$8 sps:$4 sm:$0xff]  }
 0x63d   :  { %7955 = vmatprep.subr.bf16.mxu0 %v8592_v40  ;;  %v8647_v21 = vld [vmem:[%s11859_s16 + $0x144] ss:$8 sps:$4 sm:$0xff]   ;;  %v8645_v5 = vld [vmem:[%s11859_s16 + $0x140] ss:$8 sps:$4 sm:$0xff]   ;;  %v8653_v35 = vld [vmem:[%s11859_s16 + $0x134] ss:$8 sps:$4 sm:$0xff]  }
 0x63e   :  { %7982 = vmatpush3.bf16.msra.mxu1 %v8591_v17  ;;  %v8648_v59 = vld [vmem:[%s11859_s16 + $0x30] ss:$8 sps:$4 sm:$0xff]   ;;  %v8656_v53 = vld [vmem:[%s11859_s16 + $0x24] ss:$8 sps:$4 sm:$0xff]   ;;  %v8654_v38 = vld [vmem:[%s11859_s16 + $0x20] ss:$8 sps:$4 sm:$0xff]  }
 0x63f   :  { %7983 = vmatprep.subr.bf16.mxu1 %v8593_v3  ;;  %v8651_v16 = vld [vmem:[%s11859_s16 + $0x130] ss:$8 sps:$4 sm:$0xff]   ;;  %v8659_v19 = vld [vmem:[%s11859_s16 + $0x124] ss:$8 sps:$4 sm:$0xff]   ;;  %v8657_v34 = vld [vmem:[%s11859_s16 + $0x120] ss:$8 sps:$4 sm:$0xff]  }
 0x640   :  { %7956 = vmatpush3.bf16.msra.mxu0 %v8594_v54  ;;  %v8662_v10 = vld [vmem:[%s11859_s16 + $0x14] ss:$8 sps:$4 sm:$0xff]   ;;  %v8660_v37 = vld [vmem:[%s11859_s16 + $0x10] ss:$8 sps:$4 sm:$0xff]   ;;  %v8668_v29 = vld [vmem:[%s11859_s16 + $0x4] ss:$8 sps:$4 sm:$0xff]  }
 0x641   :  { %7957 = vmatprep.subr.bf16.mxu0 %v8596_v42  ;;  %v8665_v52 = vld [vmem:[%s11859_s16 + $0x114] ss:$8 sps:$4 sm:$0xff]   ;;  %v8663_v51 = vld [vmem:[%s11859_s16 + $0x110] ss:$8 sps:$4 sm:$0xff]   ;;  %v8671_v17 = vld [vmem:[%s11859_s16 + $0x104] ss:$8 sps:$4 sm:$0xff]  }
 0x642   :  { %7984 = vmatpush3.bf16.msra.mxu1 %v8595_v20  ;;  %v8666_v40 = vld [vmem:[%s11859_s16] ss:$8 sps:$4 sm:$0xff]   ;;  %v8674_v54 = vld [vmem:[%s11859_s16 + $0xf4] ss:$8 sps:$4 sm:$0xff]   ;;  %v8672_v42 = vld [vmem:[%s11859_s16 + $0xf0] ss:$8 sps:$4 sm:$0xff]  }
 0x643   :  { %7985 = vmatprep.subr.bf16.mxu1 %v8597_v25  ;;  %v8669_v3 = vld [vmem:[%s11859_s16 + $0x100] ss:$8 sps:$4 sm:$0xff]   ;;  %v8677_v20 = vld [vmem:[%s11859_s16 + $0x1f4] ss:$8 sps:$4 sm:$0xff]   ;;  %v8675_v25 = vld [vmem:[%s11859_s16 + $0x1f0] ss:$8 sps:$4 sm:$0xff]  }
 0x644   :  { %7958 = vmatpush3.bf16.msra.mxu0 %v8598_v62 }
 0x645   :  { %7959 = vmatprep.subr.bf16.mxu0 %v8600_v11  ;;  %v8683_v11 = vld [vmem:[%s11859_s16 + $0x1e4] ss:$8 sps:$4 sm:$0xff]  }
 0x646   :  { %7986 = vmatpush3.bf16.msra.mxu1 %v8599_v45  ;;  %v8680_v45 = vld [vmem:[%s11859_s16 + $0xe4] ss:$8 sps:$4 sm:$0xff]  }
 0x647   :  { %7987 = vmatprep.subr.bf16.mxu1 %v8601_v44  ;;  %v8678_v44 = vld [vmem:[%s11859_s16 + $0xe0] ss:$8 sps:$4 sm:$0xff]  }
 0x648   :  { %7960 = vmatpush3.bf16.msra.mxu0 %v8602_v57  ;;  %v8681_v57 = vld [vmem:[%s11859_s16 + $0x1e0] ss:$8 sps:$4 sm:$0xff]  }
 0x649   :  { %7961 = vmatprep.subr.bf16.mxu0 %v8604_v28 }
 0x64a   :  { %7988 = vmatpush3.bf16.msra.mxu1 %v8603_v24 }
 0x64b   :  { %7989 = vmatprep.subr.bf16.mxu1 %v8605_v18  ;;  %v8686_v18 = vld [vmem:[%s11859_s16 + $0xd4] ss:$8 sps:$4 sm:$0xff]  }
 0x64c   :  { %7962 = vmatpush3.bf16.msra.mxu0 %v8606_v43  ;;  %v8689_v43 = vld [vmem:[%s11859_s16 + $0x1d4] ss:$8 sps:$4 sm:$0xff]  }
 0x64d   :  { %8397 = vmatprep.subr.bf16.mxu0 %v8608_v14 }
 0x64e   :  { %7990 = vmatpush3.bf16.msra.mxu1 %v8607_v49  ;;  %v8684_v49 = vld [vmem:[%s11859_s16 + $0xd0] ss:$8 sps:$4 sm:$0xff]  }
 0x64f   :  { %5922 = vmatmul.mubr.bf16.vlgmr.msra.gmra.mxu0 %v8582_v27  ;;  %6666 = vmatprep.subr.bf16.mxu1 %v8626_v47  ;;  %v8702_v47 = vld [vmem:[%s11859_s16 + $0xa0] ss:$8 sps:$4 sm:$0xff]  }
 0x650   :  { %5929 = vmatprep.mubr.bf16.mxu0 %v8611_v39  ;;  %8398 = vmatpush3.bf16.msra.mxu0 %v8608_v14  ;;  %v8687_v14 = vld [vmem:[%s11859_s16 + $0x1d0] ss:$8 sps:$4 sm:$0xff]   ;;  %v8692_v39 = vld [vmem:[%s11859_s16 + $0xc4] ss:$8 sps:$4 sm:$0xff]  }
 0x651   :  { %5971 = vmatmul.mubr.bf16.vlgmr.msra.gmra.mxu1 %v8585_v26  ;;  %8399 = vmatprep.subr.bf16.mxu0 %v8615_v55 }
 0x652   :  { %5978 = vmatprep.mubr.bf16.mxu1 %v8614_v1  ;;  %6667 = vmatpush1.bf16.msra.mxu1 %v8624_v4  ;;  %v8690_v1 = vld [vmem:[%s11859_s16 + $0xc0] ss:$8 sps:$4 sm:$0xff]  }
 0x653   :  { %6668 = vmatprep.subr.bf16.mxu1 %v8632_v56  ;;  %v8705_v4 = vld [vmem:[%s11859_s16 + $0x1a0] ss:$8 sps:$4 sm:$0xff]   ;;  %v8713_v56 = vld [vmem:[%s11859_s16 + $0x194] ss:$8 sps:$4 sm:$0xff]  }
 0x654   :  { %8400 = vmatpush3.bf16.msra.mxu0 %v8615_v55  ;;  %v8695_v55 = vld [vmem:[%s11859_s16 + $0x1c4] ss:$8 sps:$4 sm:$0xff]  }
 0x655   :  { %8401 = vmatprep.subr.bf16.mxu0 %v8616_v58 }
 0x656   :  { %6669 = vmatpush1.bf16.msra.mxu1 %v8630_v23  ;;  %v8708_v23 = vld [vmem:[%s11859_s16 + $0x90] ss:$8 sps:$4 sm:$0xff]  }
 0x657   :  { %5930 = vmatmul.mubr.bf16.gmra.mxu0 %v8609_v41  ;;  %6670 = vmatprep.subr.bf16.mxu1 %v8638_v12  ;;  %v8711_v12 = vld [vmem:[%s11859_s16 + $0x190] ss:$8 sps:$4 sm:$0xff]  }
 0x658   :  { %8413 = vmatprep.mubr.bf16.mxu0 %v8617_v2  ;;  %8402 = vmatpush3.bf16.msra.mxu0 %v8616_v58  ;;  %v8693_v58 = vld [vmem:[%s11859_s16 + $0x1c0] ss:$8 sps:$4 sm:$0xff]   ;;  %v8696_v2 = vld [vmem:[%s11859_s16 + $0xb0] ss:$8 sps:$4 sm:$0xff]  }
 0x659   :  { %5979 = vmatmul.mubr.bf16.gmra.mxu1 %v8612_v7  ;;  %8403 = vmatprep.subr.bf16.mxu0 %v8618_v50 }
 0x65a   :  { %6671 = vmatpush1.bf16.msra.mxu1 %v8636_v13  ;;  %v8719_v13 = vld [vmem:[%s11859_s16 + $0x184] ss:$8 sps:$4 sm:$0xff]  }
 0x65b   :  { %6672 = vmatprep.subr.bf16.mxu1 %v8644_v63  ;;  %v8714_v63 = vld [vmem:[%s11859_s16 + $0x80] ss:$8 sps:$4 sm:$0xff]  }
 0x65c   :  { %8404 = vmatpush3.bf16.msra.mxu0 %v8618_v50  ;;  %v8698_v50 = vld [vmem:[%s11859_s16 + $0xb4] ss:$8 sps:$4 sm:$0xff]  }
 0x65d   :  { %8405 = vmatprep.subr.bf16.mxu0 %v8619_v46 }
 0x65e   :  { %6673 = vmatpush1.bf16.msra.mxu1 %v8642_v6  ;;  %v8717_v6 = vld [vmem:[%s11859_s16 + $0x180] ss:$8 sps:$4 sm:$0xff]  }
 0x65f   :  { %6674 = vmatprep.subr.bf16.mxu1 %v8650_v60  ;;  %v8730_v60 = vld [vmem:[#allocation28 + $0x74] ss:$8 sps:$4 sm:$0xff]  }
 0x660   :  { %8406 = vmatpush3.bf16.msra.mxu0 %v8619_v46  ;;  %v8699_v46 = vld [vmem:[%s11859_s16 + $0x1b0] ss:$8 sps:$4 sm:$0xff]  }
 0x661   :  { %8407 = vmatprep.subr.bf16.mxu0 %v8620_v33 }
 0x662   :  { %6675 = vmatpush1.bf16.msra.mxu1 %v8648_v59 }
 0x663   :  { %6676 = vmatprep.subr.bf16.mxu1 %v8656_v53 }
 0x664   :  { %8408 = vmatpush3.bf16.msra.mxu0 %v8620_v33  ;;  %v8701_v33 = vld [vmem:[%s11859_s16 + $0x1b4] ss:$8 sps:$4 sm:$0xff]  }
 0x665   :  { %8409 = vmatprep.subr.bf16.mxu0 %v8621_v0 }
 0x666   :  { %6677 = vmatpush1.bf16.msra.mxu1 %v8654_v38 }
 0x667   :  { %6678 = vmatprep.subr.bf16.mxu1 %v8662_v10 }
 0x668   :  { %8410 = vmatpush3.bf16.msra.mxu0 %v8621_v0  ;;  %v8704_v0 = vld [vmem:[%s11859_s16 + $0xa4] ss:$8 sps:$4 sm:$0xff]  }
 0x669   :  { %8411 = vmatprep.subr.bf16.mxu0 %v8622_v30 }
 0x66a   :  { %6679 = vmatpush1.bf16.msra.mxu1 %v8660_v37 }
 0x66b   :  { %6680 = vmatprep.subr.bf16.mxu1 %v8668_v29 }
 0x66c   :  { %8412 = vmatpush3.bf16.msra.mxu0 %v8622_v30 }
 0x66d   :  { %6707 = vmatprep.subr.bf16.mxu0 %v8629_v22 }
 0x66e   :  { %6681 = vmatpush1.bf16.msra.mxu1 %v8666_v40 }
 0x66f   :  { %8414 = vmatmul.mubr.bf16.vlgmr.msra.gmra.mxu0 %v8623_v36  ;;  %6682 = vmatprep.subr.bf16.mxu1 %v8674_v54  ;;  %v8707_v36 = vld [vmem:[%s11859_s16 + $0x1a4] ss:$8 sps:$4 sm:$0xff]  }
 0x670   :  { %6708 = vmatpush1.bf16.msra.mxu0 %v8627_v48  ;;  %v8710_v48 = vld [vmem:[%s11859_s16 + $0x94] ss:$8 sps:$4 sm:$0xff]  }
 0x671   :  { %6709 = vmatprep.subr.bf16.mxu0 %v8635_v8 }
 0x672   :  { %6683 = vmatpush2.bf16.msra.mxu1 %v8672_v42 }
 0x673   :  { %6684 = vmatprep.subr.bf16.mxu1 %v8680_v45 }
 0x674   :  { %6710 = vmatpush1.bf16.msra.mxu0 %v8633_v9 }
 0x675   :  { %6711 = vmatprep.subr.bf16.mxu0 %v8641_v31  ;;  %v8716_v31 = vld [vmem:[%s11859_s16 + $0x84] ss:$8 sps:$4 sm:$0xff]  }
 0x676   :  { %6685 = vmatpush2.bf16.msra.mxu1 %v8678_v44 }
 0x677   :  { %6686 = vmatprep.subr.bf16.mxu1 %v8686_v18 }
 0x678   :  { %6712 = vmatpush1.bf16.msra.mxu0 %v8639_v61 }
 0x679   :  { %6713 = vmatprep.subr.bf16.mxu0 %v8647_v21 }
 0x67a   :  { %6687 = vmatpush2.bf16.msra.mxu1 %v8684_v49 }
 0x67b   :  { %6688 = vmatprep.subr.bf16.mxu1 %v8692_v39 }
 0x67c   :  { %6714 = vmatpush1.bf16.msra.mxu0 %v8645_v5 }
 0x67d   :  { %6715 = vmatprep.subr.bf16.mxu0 %v8653_v35 }
 0x67e   :  { %6689 = vmatpush2.bf16.msra.mxu1 %v8690_v1 }
 0x67f   :  { %6690 = vmatprep.subr.bf16.mxu1 %v8698_v50 }
 0x680   :  { %6716 = vmatpush1.bf16.msra.mxu0 %v8651_v16 }
 0x681   :  { %6717 = vmatprep.subr.bf16.mxu0 %v8659_v19 }
 0x682   :  { %6691 = vmatpush2.bf16.msra.mxu1 %v8696_v2 }
 0x683   :  { %6692 = vmatprep.subr.bf16.mxu1 %v8704_v0 }
 0x684   :  { %6718 = vmatpush1.bf16.msra.mxu0 %v8657_v34 }
 0x685   :  { %6719 = vmatprep.subr.bf16.mxu0 %v8665_v52 }
 0x686   :  { %6693 = vmatpush2.bf16.msra.mxu1 %v8702_v47 }
 0x687   :  { %6694 = vmatprep.subr.bf16.mxu1 %v8710_v48 }
 0x688   :  { %6720 = vmatpush1.bf16.msra.mxu0 %v8663_v51 }
 0x689   :  { %6721 = vmatprep.subr.bf16.mxu0 %v8671_v17 }
 0x68a   :  { %6695 = vmatpush2.bf16.msra.mxu1 %v8708_v23 }
 0x68b   :  { %6696 = vmatprep.subr.bf16.mxu1 %v8716_v31 }
 0x68c   :  { %6722 = vmatpush1.bf16.msra.mxu0 %v8669_v3 }
 0x68d   :  { %6723 = vmatprep.subr.bf16.mxu0 %v8677_v20 }
 0x68e   :  { %6697 = vmatpush2.bf16.msra.mxu1 %v8714_v63 }
 0x68f   :  { %6956 = vmatprep.subr.bf16.mxu1 %v8730_v60 }
 0x690   :  { %6724 = vmatpush2.bf16.msra.mxu0 %v8675_v25 }
 0x691   :  { %6725 = vmatprep.subr.bf16.mxu0 %v8683_v11 }
 0x694   :  { %6726 = vmatpush2.bf16.msra.mxu0 %v8681_v57 }
 0x695   :  { %6727 = vmatprep.subr.bf16.mxu0 %v8689_v43 }
 0x698   :  { %6728 = vmatpush2.bf16.msra.mxu0 %v8687_v14 }
 0x699   :  { %6729 = vmatprep.subr.bf16.mxu0 %v8695_v55 }
 0x69c   :  { %6730 = vmatpush2.bf16.msra.mxu0 %v8693_v58 }
 0x69d   :  { %6731 = vmatprep.subr.bf16.mxu0 %v8701_v33 }
 0x6a0   :  { %6732 = vmatpush2.bf16.msra.mxu0 %v8699_v46 }
 0x6a1   :  { %6733 = vmatprep.subr.bf16.mxu0 %v8707_v36 }
 0x6a4   :  { %6734 = vmatpush2.bf16.msra.mxu0 %v8705_v4 }
 0x6a5   :  { %6735 = vmatprep.subr.bf16.mxu0 %v8713_v56 }
 0x6a8   :  { %6736 = vmatpush2.bf16.msra.mxu0 %v8711_v12 }
 0x6a9   :  { %6737 = vmatprep.subr.bf16.mxu0 %v8719_v13 }
 0x6ac   :  { %6738 = vmatpush2.bf16.msra.mxu0 %v8717_v6 }
 0x6ef   :  { %v11685_v62 = vpop.f32.mrf.mxu0 }
 0x6f1   :  { %v11699_v24 = vpop.f32.mrf.mxu0  ;;  %v11701_v28 = vpop.f32.mrf.mxu1 }
 0x6f2   :  { %v7909_v40 = vadd.f32 %v11699_v24, %v11685_v62 }
 0x6f3   :  { %v11715_v27 = vpop.f32.mrf.mxu0  ;;  %v11717_v26 = vpop.f32.mrf.mxu1 }
 0x6f4   :  { %v7937_v3 = vadd.f32 %v11717_v26, %v11701_v28 }
 0x6f5   :  { %v11731_v41 = vpop.f32.mrf.mxu0  ;;  %v7938_v7 = vpop.f32.mrf.mxu1 }
 0x6f6   :  { %v7912_v20 = vadd.f32 %v11731_v41, %v11715_v27  ;;  %v5875_v57 = vadd.f32 %v7937_v3, %v7909_v40 }
 0x6f7   :  { %v7913_v30 = vpop.f32.mrf.mxu0  ;;  %v7939_v22 = vpop.f32.mrf.mxu1 }
 0x6f8   :  { %v7940_v25 = vadd.f32 %v7939_v22, %v7938_v7 }
 0x6f9   :  { %v7914_v8 = vpop.f32.mrf.mxu0  ;;  %v7941_v9 = vpop.f32.mrf.mxu1 }
 0x6fa   :  { %v7915_v45 = vadd.f32 %v7914_v8, %v7913_v30  ;;  %v5878_v62 = vadd.f32 %v7940_v25, %v7912_v20 }
 0x6fb   :  { %v7916_v61 = vpop.f32.mrf.mxu0  ;;  %v7942_v21 = vpop.f32.mrf.mxu1 }
 0x6fc   :  { %v7943_v11 = vadd.f32 %v7942_v21, %v7941_v9 }
 0x6fd   :  { %v7917_v5 = vpop.f32.mrf.mxu0  ;;  %v7944_v35 = vpop.f32.mrf.mxu1 }
 0x6fe   :  { %v7918_v43 = vadd.f32 %v7917_v5, %v7916_v61  ;;  %v5883_v24 = vadd.f32 %v7943_v11, %v7915_v45  ;;  %v6036_v11 = vld [vmem:[#allocation21] sm:$0x1] }
 0x6ff   :  { %v7945_v16 = vpop.f32.mrf.mxu1 }
 0x700   :  { %v7946_v49 = vadd.f32 %v7945_v16, %v7944_v35 }
 0x702   :  { %v5886_v58 = vadd.f32 %v7946_v49, %v7918_v43 }
 0x70f   :  { %v7963_v59 = vpop.f32.mrf.mxu0 }
 0x711   :  { %v7964_v53 = vpop.f32.mrf.mxu0  ;;  %v7991_v19 = vpop.f32.mrf.mxu1 }
 0x712   :  { %v7965_v44 = vadd.f32 %v7964_v53, %v7963_v59 }
 0x713   :  { %v7966_v38 = vpop.f32.mrf.mxu0  ;;  %v7992_v34 = vpop.f32.mrf.mxu1 }
 0x714   :  { %v5924_v1 = vadd.f32 %v7965_v44, %v5875_v57  ;;  %v7993_v2 = vadd.f32 %v7992_v34, %v7991_v19 }
 0x715   :  { %v7967_v10 = vpop.f32.mrf.mxu0  ;;  %v7994_v52 = vpop.f32.mrf.mxu1 }
 0x716   :  { %v7968_v14 = vadd.f32 %v7967_v10, %v7966_v38  ;;  %v5973_v30 = vadd.f32 %v7993_v2, %v5924_v1 }
 0x717   :  { %v7969_v37 = vpop.f32.mrf.mxu0  ;;  %v7995_v51 = vpop.f32.mrf.mxu1 }
 0x718   :  { %v5927_v27 = vadd.f32 %v7968_v14, %v5878_v62  ;;  %v7996_v46 = vadd.f32 %v7995_v51, %v7994_v52 }
 0x719   :  { %v7970_v29 = vpop.f32.mrf.mxu0  ;;  %v7997_v17 = vpop.f32.mrf.mxu1 }
 0x71a   :  { %v7971_v39 = vadd.f32 %v7970_v29, %v7969_v37  ;;  %v5976_v48 = vadd.f32 %v7996_v46, %v5927_v27 }
 0x71b   :  { %v7972_v54 = vpop.f32.mrf.mxu0  ;;  %v7998_v42 = vpop.f32.mrf.mxu1 }
 0x71c   :  { %v5932_v41 = vadd.f32 %v7971_v39, %v5883_v24  ;;  %v7999_v33 = vadd.f32 %v7998_v42, %v7997_v17 }
 0x71d   :  { %v7973_v18 = vpop.f32.mrf.mxu0  ;;  %v8000_v55 = vpop.f32.mrf.mxu1 }
 0x71e   :  { %v7974_v28 = vadd.f32 %v7973_v18, %v7972_v54  ;;  %v5981_v22 = vadd.f32 %v7999_v33, %v5932_v41  ;;  %v6037_v18 = vld [vmem:[#allocation22] sm:$0x1] }
 0x71f   :  { %v8001_v7 = vpop.f32.mrf.mxu1 }
 0x720   :  { %v5935_v0 = vadd.f32 %v7974_v28, %v5886_v58  ;;  %v8002_v47 = vadd.f32 %v8001_v7, %v8000_v55 }
 0x722   :  { %v5984_v23 = vadd.f32 %v8002_v47, %v5935_v0 }
 0x72f   :  { %v8415_v26 = vpop.f32.mrf.mxu0 }
 0x730   :  { %v6030_v8 = vadd.f32 %v8415_v26, %v5981_v22 }
 0x731   :  { %v6021_v50 = vpop.f32.mrf.mxu0 }
 0x732   :  { %v6022_v4 = vadd.f32 %v6021_v50, %v5973_v30  ;;  %v6050_v63 = vmul.f32 %v6030_v8, %v6030_v8 }
 0x733   :  { %v8416_v36 = vpop.f32.mrf.mxu0 }
 0x734   :  { %v6048_v12 = vmul.f32 %v6022_v4, %v6022_v4  ;;  %v6033_v31 = vadd.f32 %v8416_v36, %v5984_v23 }
 0x735   :  { %v6024_v56 = vpop.f32.mrf.mxu0 }
 0x736   :  { %v6025_v9 = vadd.f32 %v6024_v56, %v5976_v48  ;;  %v6051_v5 = vmul.f32 %v6033_v31, %v6033_v31 }
 0x738   :  { %v6038_v13 = vadd.f32 %v6025_v9, %v6022_v4  ;;  %v6049_v61 = vmul.f32 %v6025_v9, %v6025_v9 }
 0x73a   :  { %v6039_v21 = vadd.f32 %v6038_v13, %v6030_v8  ;;  %v6052_v6 = vadd.f32 %v6049_v61, %v6048_v12 }
 0x73c   :  { %v6040_v60 = vadd.f32 %v6039_v21, %v6033_v31  ;;  %v6053_v35 = vadd.f32 %v6052_v6, %v6050_v63 }
 0x73e   :  { %v6041_v59 = vrot.slane %v6040_v60, 4  ;;  %v6054_v16 = vadd.f32 %v6053_v35, %v6051_v5 }
 0x740   :  { %v6042_v53 = vadd.f32 %v6041_v59, %v6040_v60  ;;  %v6055_v19 = vrot.slane %v6054_v16, 4 }
 0x742   :  { %v6043_v38 = vrot.slane %v6042_v53, 2  ;;  %v6056_v34 = vadd.f32 %v6055_v19, %v6054_v16 }
 0x744   :  { %v6044_v10 = vadd.f32 %v6043_v38, %v6042_v53  ;;  %v6057_v52 = vrot.slane %v6056_v34, 2 }
 0x746   :  { %v6045_v37 = vrot.slane %v6044_v10, 1  ;;  %v6058_v51 = vadd.f32 %v6057_v52, %v6056_v34 }
 0x748   :  { %v6046_v29 = vadd.f32 %v6045_v37, %v6044_v10  ;;  %v6059_v17 = vrot.slane %v6058_v51, 1 }
 0x74a   :  { %v6047_v40 = vmul.f32 0.03125, %v6046_v29  ;;  %v6060_v3 = vadd.f32 %v6059_v17, %v6058_v51 }
 0x74c   :  { %v6061_v54 = vmul.f32 0.03125, %v6060_v3  ;;  %v6062_v20 = vmul.f32 %v6047_v40, %v6047_v40 }
 0x74e   :  { %v6063_v42 = vsub.f32 %v6061_v54, %v6062_v20 }
 0x750   :  { %v6064_v25 = vmax.f32 %v6063_v42, 0.0 }
 0x752   :  { %v6065_v45 = vadd.f32 1e-05, %v6064_v25 }
 0x754   :  { %8798 = vrsqrt.f32 %v6065_v45 }
 0x761   :  { %v8799_v44 = vpop.eup %8798 }
 0x762   :  { %v6067_v57 = vmul.f32 %v8799_v44, %v6036_v11 }
 0x764   :  { %v6068_v43 = vmul.f32 %v6067_v57, %v6047_v40  ;;  %v6074_v49 = vrot.slane %v6067_v57, %v12302_v32 }
 0x766   :  { %v6069_v14 = vsub.f32 %v6037_v18, %v6068_v43  ;;  %v6076_v39 = vmul.f32 %v6074_v49, %v6022_v4  ;;  %v6077_v55 = vmul.f32 %v6074_v49, %v6025_v9  ;;  %v6078_v62 = vmul.f32 %v6074_v49, %v6030_v8 }
 0x767   :  { %v6079_v24 = vmul.f32 %v6074_v49, %v6033_v31 }
 0x768   :  { %v6084_v1 = vrot.slane %v6069_v14, %v12302_v32 }
 0x76a   :  { %v6086_v28 = vadd.f32 %v6084_v1, %v6076_v39  ;;  %v6087_v26 = vadd.f32 %v6084_v1, %v6077_v55  ;;  %v6088_v58 = vadd.f32 %v6084_v1, %v6078_v62  ;;  %v6089_v2 = vadd.f32 %v6084_v1, %v6079_v24 }
 0x76c   :  { %v6090_v27 = vmax.f32 %v6086_v28, 0.0  ;;  %v6091_v41 = vmax.f32 %v6087_v26, 0.0  ;;  %v6092_v7 = vmax.f32 %v6088_v58, 0.0  ;;  %v6093_v50 = vmax.f32 %v6089_v2, 0.0 }
 0x76e   :  { %v6094_v46 = vrot.slane %v6090_v27, 1  ;;  %v6095_v33 = vrot.slane %v6091_v41, 1  ;;  %v6096_v0 = vrot.slane %v6092_v7, 1  ;;  %v6097_v30 = vrot.slane %v6093_v50, 1 }
 0x76f   :  { %v6106_v36 = vrot.slane %v6090_v27, 4  ;;  %v6107_v47 = vrot.slane %v6091_v41, 4  ;;  %v6108_v22 = vrot.slane %v6092_v7, 4  ;;  %v6109_v4 = vrot.slane %v6093_v50, 4 }
 0x770   :  { %v6098_v48 = vsel %vm1436_vm2, %v6096_v0, %v6097_v30  ;;  %v6099_v56 = vsel %vm1436_vm2, %v6095_v33, %v6096_v0  ;;  %v6100_v8 = vsel %vm1436_vm2, %v6094_v46, %v6095_v33  ;;  %v6101_v23 = vsel %vm1436_vm2, %v6097_v30, %v6094_v46 }
 0x771   :  { %v6102_v9 = vmax.f32 %v6090_v27, %v6100_v8  ;;  %v6103_v12 = vmax.f32 %v6091_v41, %v6099_v56  ;;  %v6104_v31 = vmax.f32 %v6092_v7, %v6098_v48  ;;  %v6105_v13 = vmax.f32 %v6093_v50, %v6101_v23  ;;  %v8733_v8 = vld [vmem:[#allocation28 + $0x64] ss:$8 sps:$4 sm:$0xff]  }
 0x772   :  { %v6110_v61 = vsel %vm3734_vm6, %v6108_v22, %v6109_v4  ;;  %v6111_v63 = vsel %vm3734_vm6, %v6107_v47, %v6108_v22  ;;  %v6112_v21 = vsel %vm3734_vm6, %v6106_v36, %v6107_v47  ;;  %v6113_v6 = vsel %vm3734_vm6, %v6109_v4, %v6106_v36  ;;  %v8728_v4 = vld [vmem:[#allocation28 + $0x70] ss:$8 sps:$4 sm:$0xff]  }
 0x773   :  { %v6114_v5 = vmax.f32 %v6102_v9, %v6112_v21  ;;  %v6115_v60 = vmax.f32 %v6103_v12, %v6111_v63  ;;  %v6116_v35 = vmax.f32 %v6104_v31, %v6110_v61  ;;  %v6117_v59 = vmax.f32 %v6105_v13, %v6113_v6  ;;  %v8731_v12 = vld [vmem:[#allocation28 + $0x60] ss:$8 sps:$4 sm:$0xff]   ;;  %v8736_v31 = vld [vmem:[#allocation28 + $0x54] ss:$8 sps:$4 sm:$0xff]   ;;  %v8734_v13 = vld [vmem:[#allocation28 + $0x50] ss:$8 sps:$4 sm:$0xff]  }
 0x774   :  { %v6118_v16 = vrot.slane %v6090_v27, 5  ;;  %v6119_v53 = vrot.slane %v6091_v41, 5  ;;  %v6120_v19 = vrot.slane %v6092_v7, 5  ;;  %v6121_v38 = vrot.slane %v6093_v50, 5  ;;  %v8739_v61 = vld [vmem:[#allocation28 + $0x44] ss:$8 sps:$4 sm:$0xff]  }
 0x775   :  { %v8737_v63 = vld [vmem:[#allocation28 + $0x40] ss:$8 sps:$4 sm:$0xff]   ;;  %v8742_v21 = vld [vmem:[#allocation28 + $0x34] ss:$8 sps:$4 sm:$0xff]   ;;  %v8740_v6 = vld [vmem:[#allocation28 + $0x30] ss:$8 sps:$4 sm:$0xff]  }
 0x776   :  { %v6122_v34 = vsel %vm3866_vm5, %v6120_v19, %v6121_v38  ;;  %v6123_v10 = vsel %vm3866_vm5, %v6119_v53, %v6120_v19  ;;  %v6124_v52 = vsel %vm3866_vm5, %v6118_v16, %v6119_v53  ;;  %v6125_v37 = vsel %vm3866_vm5, %v6121_v38, %v6118_v16  ;;  %v8751_v16 = vld [vmem:[#allocation28 + $0x4] ss:$8 sps:$4 sm:$0xff]   ;;  %v8749_v53 = vld [vmem:[#allocation28] ss:$8 sps:$4 sm:$0xff]   ;;  %v8754_v19 = vld [vmem:[#allocation28 + $0xf4] ss:$8 sps:$4 sm:$0xff]  }
 0x777   :  { %v6126_v51 = vmax.f32 %v6114_v5, %v6124_v52  ;;  %v6127_v29 = vmax.f32 %v6115_v60, %v6123_v10  ;;  %v6128_v17 = vmax.f32 %v6116_v35, %v6122_v34  ;;  %v6129_v40 = vmax.f32 %v6117_v59, %v6125_v37  ;;  %v8745_v5 = vld [vmem:[#allocation28 + $0x24] ss:$8 sps:$4 sm:$0xff]   ;;  %v8743_v60 = vld [vmem:[#allocation28 + $0x20] ss:$8 sps:$4 sm:$0xff]   ;;  %v8748_v35 = vld [vmem:[#allocation28 + $0x14] ss:$8 sps:$4 sm:$0xff]  }
 0x778   :  { %v8746_v59 = vld [vmem:[#allocation28 + $0x10] ss:$8 sps:$4 sm:$0xff]   ;;  %v8757_v34 = vld [vmem:[#allocation28 + $0xe4] ss:$8 sps:$4 sm:$0xff]   ;;  %v8755_v10 = vld [vmem:[#allocation28 + $0xe0] ss:$8 sps:$4 sm:$0xff]  }
 0x779   :  { %v7694_v3 = vpack.c.bf16 %v6126_v51, %v6126_v51  ;;  %v7695_v54 = vpack.c.bf16 %v6127_v29, %v6127_v29  ;;  %v7696_v20 = vpack.c.bf16 %v6128_v17, %v6128_v17  ;;  %v7697_v42 = vpack.c.bf16 %v6129_v40, %v6129_v40  ;;  %v8752_v38 = vld [vmem:[#allocation28 + $0xf0] ss:$8 sps:$4 sm:$0xff]   ;;  %v8760_v52 = vld [vmem:[#allocation28 + $0xd4] ss:$8 sps:$4 sm:$0xff]  }
 0x77a   :  { %v6150_v25 = vrot.slane %v6126_v51, 2  ;;  %v6151_v45 = vrot.slane %v6127_v29, 2  ;;  %v6152_v11 = vrot.slane %v6128_v17, 2  ;;  %v6153_v44 = vrot.slane %v6129_v40, 2  ;;  %v8758_v37 = vld [vmem:[#allocation28 + $0xd0] ss:$8 sps:$4 sm:$0xff]  }
 0x77b   :  { %6146 = vst [vmem:[#allocation3] sm:$0xf] %v7694_v3  ;;  %6148 = vst [vmem:[#allocation3 + $0x20] sm:$0xf] %v7696_v20  ;;  %v8763_v51 = vld [vmem:[#allocation28 + $0xc4] ss:$8 sps:$4 sm:$0xff]  }
 0x77c   :  { %6195 = vst [vmem:[#allocation3 + $0x8] sm:$0xf] %v7695_v54  ;;  %6197 = vst [vmem:[#allocation3 + $0x28] sm:$0xf] %v7697_v42  ;;  %v6155_v57 = vsel %vm6154_vm7, %v6152_v11, %v6153_v44  ;;  %v6156_v18 = vsel %vm6154_vm7, %v6151_v45, %v6152_v11  ;;  %v6157_v43 = vsel %vm6154_vm7, %v6150_v25, %v6151_v45  ;;  %v8761_v29 = vld [vmem:[#allocation28 + $0xc0] ss:$8 sps:$4 sm:$0xff]  }
 0x77d   :  { %v6158_v49 = vsel %vm6154_vm7, %v6153_v44, %v6150_v25  ;;  %v7698_v14 = vpack.c.bf16 %v6157_v43, %v6157_v43  ;;  %v7699_v39 = vpack.c.bf16 %v6156_v18, %v6156_v18  ;;  %v7700_v55 = vpack.c.bf16 %v6155_v57, %v6155_v57  ;;  %v8766_v17 = vld [vmem:[#allocation28 + $0xb4] ss:$8 sps:$4 sm:$0xff]   ;;  %v8764_v40 = vld [vmem:[#allocation28 + $0xb0] ss:$8 sps:$4 sm:$0xff]   ;;  %v8769_v3 = vld [vmem:[#allocation28 + $0xa4] ss:$8 sps:$4 sm:$0xff]  }
 0x77e   :  { %v7701_v62 = vpack.c.bf16 %v6158_v49, %v6158_v49  ;;  %v8767_v54 = vld [vmem:[#allocation28 + $0xa0] ss:$8 sps:$4 sm:$0xff]   ;;  %v8772_v20 = vld [vmem:[#allocation28 + $0x94] ss:$8 sps:$4 sm:$0xff]   ;;  %v8770_v42 = vld [vmem:[#allocation28 + $0x90] ss:$8 sps:$4 sm:$0xff]  }
 0x77f   :  { %6175 = vst [vmem:[#allocation3 + $0x4] sm:$0xf] %v7698_v14  ;;  %6177 = vst [vmem:[#allocation3 + $0x24] sm:$0xf] %v7700_v55  ;;  %v8773_v25 = vld [vmem:[#allocation28 + $0x80] ss:$8 sps:$4 sm:$0xff]  }
 0x780   :  { %6215 = vst [vmem:[#allocation3 + $0xc] sm:$0xf] %v7699_v39  ;;  %6217 = vst [vmem:[#allocation3 + $0x2c] sm:$0xf] %v7701_v62  ;;  %v8775_v45 = vld [vmem:[#allocation28 + $0x84] ss:$8 sps:$4 sm:$0xff]  }
 0x781   :  { %v8776_v11 = vld [vmem:[#allocation31 + $0x78] sm:$0xff]   ;;  %v8778_v57 = vld [vmem:[#allocation31 + $0x70] sm:$0xff]   ;;  %v8780_v43 = vld [vmem:[#allocation31 + $0x68] sm:$0xff]  }
 0x782   :  { %v8777_v44 = vld [vmem:[#allocation31 + $0x38] sm:$0xff]   ;;  %8013 = vmatprep.subr.bf16.mxu0 %v8776_v11  ;;  %v8779_v18 = vld [vmem:[#allocation31 + $0x30] sm:$0xff]   ;;  %v8781_v49 = vld [vmem:[#allocation31 + $0x28] sm:$0xff]  }
 0x783   :  { %v8782_v14 = vld [vmem:[#allocation31 + $0x60] sm:$0xff]   ;;  %v8784_v55 = vld [vmem:[#allocation31 + $0x58] sm:$0xff]  }
 0x784   :  { %v8783_v39 = vld [vmem:[#allocation31 + $0x20] sm:$0xff]   ;;  %v8785_v62 = vld [vmem:[#allocation31 + $0x18] sm:$0xff]  }
 0x786   :  { %v6219_v24 = vld [vmem:[#allocation3] sm:$0x11] }
 0x787   :  { %v6221_v1 = vld [vmem:[#allocation3 + $0x20] sm:$0x11]  ;;  %v6220_v58 = vld [vmem:[#allocation3 + $0x8] sm:$0x11]  ;;  %v7537_v50 = vcombine.low %v6219_v24, %v6219_v24  ;;  %v7538_v46 = vcombine.high %v6219_v24, %v6219_v24 }
 0x788   :  { %v7541_v28 = vcombine.low %v6221_v1, %v6221_v1  ;;  %v7542_v26 = vcombine.high %v6221_v1, %v6221_v1  ;;  %v6222_v2 = vld [vmem:[#allocation3 + $0x28] sm:$0x11]  ;;  %v7539_v30 = vcombine.low %v6220_v58, %v6220_v58  ;;  %v7540_v36 = vcombine.high %v6220_v58, %v6220_v58  ;;  %v8786_v24 = vld [vmem:[#allocation31 + $0x50] sm:$0xff]  }
 0x789   :  { %v7543_v41 = vcombine.low %v6222_v2, %v6222_v2  ;;  %v7544_v7 = vcombine.high %v6222_v2, %v6222_v2  ;;  %v8787_v1 = vld [vmem:[#allocation31 + $0x10] sm:$0xff]  }
 0x78a   :  { %v6248_v33 = vshll.u32 %v7541_v28, 16  ;;  %v6251_v0 = vshll.u32 %v7542_v26, 16  ;;  %v6334_v28 = vld [vmem:[%s11860_s17] sm:$0x3]  ;;  %v6342_v26 = vsub.s32 1, %v12303_v15  ;;  %v8788_v15 = vld [vmem:[#allocation31 + $0x48] sm:$0xff]  }
 0x78b   :  { %v6254_v47 = vshll.u32 %v7543_v41, 16  ;;  %v6257_v22 = vshll.u32 %v7544_v7, 16  ;;  %v6339_v58 = vrot.slane %v6334_v28, %v12302_v32  ;;  %s9250_s17 = smov [#allocation34]  }
 0x78c   :  { %v6267_v48 = vsel %vm11822_vm10, %v7538_v46, %v6251_v0  ;;  %v6266_v56 = vsel %vm11822_vm10, %v7537_v50, %v6248_v33  ;;  %v6343_v2 = vrot.slane %v6334_v28, %v6342_v26  ;;  %s7196_s7 = sshll.u32 %s9250_s17, 4  ;;  %s7197_s7 = int_to_ptr.vmem [resolvable:$true] %s7196_s7 }
 0x78d   :  { %6698 = vmatprep.mubr.bf16.mxu1 %v6267_v48  ;;  %v6269_v23 = vsel %vm11822_vm10, %v7540_v36, %v6257_v22  ;;  %v6268_v9 = vsel %vm11822_vm10, %v7539_v30, %v6254_v47  ;;  %s9184_s18 = scalar_lea.vmem %s7197_s7, 32  ;;  %p9189_p12 = scmp.lt.s32.totalorder %s7197_s7, %s7197_s7 }
 0x78e   :  { %6739 = vmatprep.mubr.bf16.mxu0 %v6269_v23  ;;  %6699 = vmatmul.mubr.bf16.vlgmr.msra.gmra.mxu1 %v6266_v56  ;;  %p9185_p11 = scmp.ne.s32.totalorder %s7197_s7, %s9184_s18  ;;  %p9190_p13 = scmp.lt.s32.totalorder %s9184_s18, %s9184_s18 }
 0x78f   :  { %6740 = vmatmul.mubr.bf16.vlgmr.msra.gmra.mxu0 %v6268_v9  ;;  %6957 = vmatpush1.bf16.msra.mxu1 %v8728_v4  ;;  %v8789_v9 = vld [vmem:[#allocation31 + $0x8] sm:$0xff]  }
 0x790   :  { %6958 = vmatprep.subr.bf16.mxu1 %v8733_v8  ;;  %8014 = vmatpush3.bf16.msra.mxu0 %v8777_v44  ;;  %p9191_p0 = por %p9190_p13, %p9189_p12 }
 0x791   :  { %8015 = vmatprep.subr.bf16.mxu0 %v8778_v57 }
 0x792   :  { %p9192_p1 = pnand %p9191_p0, %p9185_p11 }
 0x793   :  { %6959 = vmatpush1.bf16.msra.mxu1 %v8731_v12  ;;  %v8790_v12 = vld [vmem:[#allocation31 + $0x40] sm:$0xff]  }
 0x794   :  { %6960 = vmatprep.subr.bf16.mxu1 %v8736_v31  ;;  %8016 = vmatpush3.bf16.msra.mxu0 %v8779_v18  ;;  %v8791_v31 = vld [vmem:[#allocation31] sm:$0xff]  }
 0x795   :  { %8017 = vmatprep.subr.bf16.mxu0 %v8780_v43 }
 0x797   :  { %6961 = vmatpush1.bf16.msra.mxu1 %v8734_v13  ;;  %v6784_v13 = vld [vmem:[#allocation30] sm:$0x3] }
 0x798   :  { %6962 = vmatprep.subr.bf16.mxu1 %v8739_v61  ;;  %8018 = vmatpush3.bf16.msra.mxu0 %v8781_v49  ;;  %v6789_v61 = vrot.slane %v6784_v13, %v12302_v32 }
 0x799   :  { %8019 = vmatprep.subr.bf16.mxu0 %v8782_v14 }
 0x79b   :  { %6963 = vmatpush1.bf16.msra.mxu1 %v8737_v63  ;;  %v6793_v63 = vrot.slane %v6784_v13, %v6342_v26 }
 0x79c   :  { %6964 = vmatprep.subr.bf16.mxu1 %v8742_v21  ;;  %8020 = vmatpush3.bf16.msra.mxu0 %v8783_v39 }
 0x79d   :  { %8021 = vmatprep.subr.bf16.mxu0 %v8784_v55 }
 0x79f   :  { %6965 = vmatpush1.bf16.msra.mxu1 %v8740_v6 }
 0x7a0   :  { %6966 = vmatprep.subr.bf16.mxu1 %v8745_v5  ;;  %8022 = vmatpush3.bf16.msra.mxu0 %v8785_v62 }
 0x7a1   :  { %8023 = vmatprep.subr.bf16.mxu0 %v8786_v24 }
 0x7a3   :  { %6967 = vmatpush1.bf16.msra.mxu1 %v8743_v60 }
 0x7a4   :  { %6968 = vmatprep.subr.bf16.mxu1 %v8748_v35  ;;  %8024 = vmatpush3.bf16.msra.mxu0 %v8787_v1 }
 0x7a5   :  { %8025 = vmatprep.subr.bf16.mxu0 %v8788_v15 }
 0x7a7   :  { %6969 = vmatpush1.bf16.msra.mxu1 %v8746_v59 }
 0x7a8   :  { %6970 = vmatprep.subr.bf16.mxu1 %v8751_v16  ;;  %8026 = vmatpush3.bf16.msra.mxu0 %v8789_v9 }
 0x7a9   :  { %8027 = vmatprep.subr.bf16.mxu0 %v8790_v12 }
 0x7ab   :  { %6971 = vmatpush1.bf16.msra.mxu1 %v8749_v53 }
 0x7ac   :  { %6972 = vmatprep.subr.bf16.mxu1 %v8754_v19  ;;  %8028 = vmatpush3.bf16.msra.mxu0 %v8791_v31 }
 0x7af   :  { %6973 = vmatpush2.bf16.msra.mxu1 %v8752_v38 }
 0x7b0   :  { %6974 = vmatprep.subr.bf16.mxu1 %v8757_v34 }
 0x7b3   :  { %6975 = vmatpush2.bf16.msra.mxu1 %v8755_v10  ;;  %v7641_v10 = vld [vmem:[#allocation33] ss:$0 sm:$0xff] }
 0x7b4   :  { %6976 = vmatprep.subr.bf16.mxu1 %v8760_v52 }
 0x7b7   :  { %6977 = vmatpush2.bf16.msra.mxu1 %v8758_v37 }
 0x7b8   :  { %6978 = vmatprep.subr.bf16.mxu1 %v8763_v51 }
 0x7bb   :  { %6979 = vmatpush2.bf16.msra.mxu1 %v8761_v29 }
 0x7bc   :  { %6980 = vmatprep.subr.bf16.mxu1 %v8766_v17 }
 0x7bf   :  { %6981 = vmatpush2.bf16.msra.mxu1 %v8764_v40 }
 0x7c0   :  { %6982 = vmatprep.subr.bf16.mxu1 %v8769_v3 }
 0x7c3   :  { %6983 = vmatpush2.bf16.msra.mxu1 %v8767_v54 }
 0x7c4   :  { %6984 = vmatprep.subr.bf16.mxu1 %v8772_v20 }
 0x7c7   :  { %6985 = vmatpush2.bf16.msra.mxu1 %v8770_v42 }
 0x7c8   :  { %6986 = vmatprep.subr.bf16.mxu1 %v8775_v45 }
 0x7cb   :  { %6987 = vmatpush2.bf16.msra.mxu1 %v8773_v25 }
 0x84e   :  { %v6700_v27 = vpop.f32.mrf.mxu1 }
 0x84f   :  { %v6701_v41 = vadd.f32 %v6700_v27, %v6339_v58  ;;  %v6741_v7 = vpop.f32.mrf.mxu0 }
 0x850   :  { %v6702_v50 = vpop.f32.mrf.mxu1 }
 0x851   :  { %v6742_v46 = vadd.f32 %v6741_v7, %v6701_v41  ;;  %v6703_v33 = vadd.f32 %v6702_v50, %v6343_v2  ;;  %v6743_v0 = vpop.f32.mrf.mxu0 }
 0x852   :  { %v6704_v30 = vpop.f32.mrf.mxu1 }
 0x853   :  { %v6744_v36 = vadd.f32 %v6743_v0, %v6703_v33  ;;  %v6745_v47 = vpop.f32.mrf.mxu0  ;;  %v6748_v22 = vmax.f32 %v6742_v46, 0.0 }
 0x854   :  { %v6705_v4 = vpop.f32.mrf.mxu1 }
 0x855   :  { %v6749_v48 = vmax.f32 %v6744_v36, 0.0  ;;  %v6746_v56 = vpop.f32.mrf.mxu0  ;;  %v6750_v23 = vpack.c.bf16 %v6748_v22, %v6748_v22 }
 0x857   :  { %v6751_v8 = vpack.c.bf16 %v6749_v48, %v6749_v48 }
 0x859   :  { %6988 = vmatprep.mubr.bf16.mxu1 %v6751_v8 }
 0x85a   :  { %6989 = vmatmul.mubr.bf16.vlgmr.msra.gmra.mxu1 %v6750_v23 }
 0x91a   :  { %v6990_v21 = vpop.f32.mrf.mxu1 }
 0x91b   :  { %v6991_v6 = vadd.f32 %v6990_v21, %v6789_v61 }
 0x91c   :  { %v6992_v5 = vpop.f32.mrf.mxu1 }
 0x91d   :  { %v6993_v60 = vadd.f32 %v6992_v5, %v6793_v63  ;;  %v6997_v35 = vmax.f32 %v6991_v6, 0.0 }
 0x91e   :  { %v6994_v59 = vpop.f32.mrf.mxu1 }
 0x91f   :  { %v6998_v16 = vmax.f32 %v6993_v60, 0.0  ;;  %v6999_v38 = vpack.c.bf16 %v6997_v35, %v6997_v35 }
 0x920   :  { %v6995_v53 = vpop.f32.mrf.mxu1 }
 0x921   :  { %v7000_v19 = vpack.c.bf16 %v6998_v16, %v6998_v16 }
 0x923   :  { %7168 = vmatprep.mubr.bf16.mxu0 %v7000_v19 }
 0x924   :  { %7169 = vmatmul.mubr.bf16.vlgmr.msra.gmra.mxu0 %v6999_v38 }
 0x9e4   :  { %v8029_v34 = vpop.f32.mrf.mxu0 }
 0x9e6   :  { %v8030_v52 = vpop.f32.mrf.mxu0 }
 0x9e7   :  { %v8031_v37 = vadd.f32 %v8030_v52, %v8029_v34 }
 0x9e8   :  { %v8032_v51 = vpop.f32.mrf.mxu0 }
 0x9e9   :  { %v7171_v32 = vadd.f32 %v8031_v37, %v7641_v10 }
 0x9ea   :  { %v8033_v29 = vpop.f32.mrf.mxu0 }
 0x9eb   :  { %v7177_v17 = vsel %vm7176_vm11, %v7171_v32, -inf }
 0x9ec   :  { %7178 = vmax.xlane.f32.xlu0 %v7177_v17 }
 0xa75   :  { %v7179_v40 = vpop.xlane.xlu0 %7178 }
 0xa76   :  { %v7180_v3 = vsub.f32 %v7171_v32, %v7179_v40 }
 0xa78   :  { %v7181_v54 = vmul.f32 1.442695, %v7180_v3 }
 0xa7a   :  { %8800 = vpow2.f32 %v7181_v54 }
 0xa87   :  { %v8801_v20 = vpop.eup %8800 }
 0xa88   :  { %v7183_v42 = vsel %vm7176_vm11, %v8801_v20, 0.0 }
 0xa89   :  { %7184 = vadd.xlane.f32.xlu1 %v7183_v42 }
 0xb12   :  { %v7185_v25 = vpop.xlane.xlu1 %7184 }
 0xb13   :  { %8802 = vlog2.f32 %v7185_v25 }
 0xb20   :  { %v8803_v45 = vpop.eup %8802 }
 0xb21   :  { %v7187_v11 = vmul.f32 0.6931472, %v8803_v45 }
 0xb23   :  { %v7188_v44 = vsub.f32 %v7180_v3, %v7187_v11 }
 0xb25   :  { %7189 = vst [vmem:[#allocation34] sm:$0x3] %v7188_v44 }
 0xb26   :  { %9195 = shalt.err (!%p9192_p1)
}
 0xb27   :  { %7199 = dma.vmem_to_hbm [thread:$0]  %s7197_s7, 32, %s11865_s22, [#allocation6]  }
 0xb28   :  { %9224 = dma.done.wait [#allocation6], 32  }
 0xb29   :  { %9225 = vsyncadd [#allocation6], 4294967264 }
 0xb2a   :  { %7203 = vsyncpa [#allocation5], 1 }
 0xb2b   :  { %7204 = vsyncpa [#allocation8], 1 }
 0xb2c   :  { %7205 = vsyncpa [#allocation11], 1 }
 0xb2d   :  { %7206 = vsyncpa [#allocation14], 1 }
 0xb2e   :  { %7207 = vsyncpa [#allocation17], 1 }
 0xb2f   :  { %7208 = vsyncpa [#allocation20], 1 }
 0xb30   :  { %7209 = vsyncpa [#allocation23], 1 }
 0xb31   :  { %7210 = vsyncpa [#allocation26], 1 }
 0xb32   :  { %7211 = vsyncpa [#allocation29], 1 }
 0xb33   :  { %7212 = vsyncpa [#allocation32], 1 }
 0xb34   :  { %7213 = vsyncpa [#allocation6], 1 }

</bundles_post_ra>
